<compile_context>
chip_gen: v5e
topology: v5e:2x2
jax: 0.10.0
libtpu: 0.0.40
codegen_flags: <defaults>
</compile_context>

<pallas_src>
import math
from functools import partial

import jax
import jax.numpy as jnp
from jax.experimental import pallas as pl
from jax.experimental.pallas import tpu as pltpu


# ----------------------------------------------------------------------------
# helpers
# ----------------------------------------------------------------------------
def _layer_norm(x, g, b, eps=1e-5):
    mu = jnp.mean(x, axis=-1, keepdims=True)
    var = jnp.mean((x - mu) ** 2, axis=-1, keepdims=True)
    return (x - mu) * jax.lax.rsqrt(var + eps) * g + b


def _padded_vmem_bytes(shape, dtype):
    """Approximate VMEM footprint with (8,128) tile padding of the last two dims."""
    s = (1, 1) + tuple(int(d) for d in shape)
    lead = 1
    for d in s[:-2]:
        lead *= d
    sub = -(-s[-2] // 8) * 8
    lane = -(-s[-1] // 128) * 128
    return lead * sub * lane * jnp.dtype(dtype).itemsize


def _pick_tile_bm(BM, N):
    """Largest useful multiple-of-8 divisor of BM; keep >=2 grid steps if we can
    (v7x has 2 TensorCores), target ~256 GEMM LHS rows per step."""
    if BM % 8 != 0:
        return BM
    divs = [d for d in range(8, BM + 1, 8) if BM % d == 0]
    target = max(8, -(-256 // N))
    best = max([d for d in divs if d <= target], default=divs[0])
    if BM // best == 1:
        two_step = [d for d in divs if BM // d >= 2]
        if two_step:
            best = max(two_step)
    return best


# ----------------------------------------------------------------------------
# Pallas kernel: one tile of (B*M) sequences; weights resident in VMEM.
# ----------------------------------------------------------------------------
def patchtst_kernel(
    # tiled inputs
    patches_ref, add_ref,
    # resident weights / tables
    w_proj_ref,
    w_qkv_ref, b_qkv_ref, w_o_ref, b_o_ref, ln1_g_ref, ln1_b_ref,
    w_ff1_ref, b_ff1_ref, w_ff2_ref, b_ff2_ref, ln2_g_ref, ln2_b_ref,
    w_head_ref, b_head_ref,
    # output
    out_ref,
    *, num_layers, num_heads, d_model, head_dim, n_patches,
    compute_dtype, approx_recip,
):
    cdt = compute_dtype
    f32 = jnp.float32
    TN = patches_ref.shape[0]
    N = n_patches
    T = TN // N
    D, hd, H = d_model, head_dim, num_heads

    def mm(x2, w):  # 2-D GEMM: compute-dtype operands, f32 MXU accumulation
        return jnp.dot(x2.astype(cdt), w, preferred_element_type=f32)

    # Patch projection.  BN scale (and the "2u + pe" factor of 2) is pre-folded
    # into the patches host-side; BN shift, projection bias and the positional
    # encoding live in add_ref (already broadcast to one row per patch).
    u = mm(patches_ref[...], w_proj_ref[...]) + add_ref[...]            # (TN, D) f32

    for l in range(num_layers):
        # ---- fused QKV projection: ONE (TN, D) @ (D, 3D) GEMM per layer ----
        qkv = (mm(u, w_qkv_ref[l]) + b_qkv_ref[l]).astype(cdt)          # (TN, 3D)
        qkv3 = qkv.reshape(T, N, 3 * D)

        def to_heads(base):
            # lane-sliced heads stacked onto the batch axis: (H*T, N, hd)
            return jnp.concatenate(
                [qkv3[:, :, base + h * hd: base + (h + 1) * hd] for h in range(H)],
                axis=0)

        q = to_heads(0)          # 1/sqrt(hd) already folded into W_q / b_q
        k = to_heads(D)
        v = to_heads(2 * D)

        # ---- all heads in one batched score / softmax / AV pass ----
        s = jnp.einsum('bqh,bkh->bqk', q, k,
                       preferred_element_type=f32)                       # (H*T,N,N)
        s = s - jnp.max(s, axis=-1, keepdims=True)
        p = jnp.exp(s)
        denom = jnp.sum(p, axis=-1, keepdims=True)
        if approx_recip:
            p = p * pl.reciprocal(denom, approx=True)
        else:
            p = p / denom
        o = jnp.einsum('bqk,bkh->bqh', p.astype(cdt), v,
                       preferred_element_type=f32)                       # (H*T,N,hd)

        # heads back onto the lane axis, then ONE (TN, D) @ (D, D) output GEMM
        o3 = jnp.concatenate([o[h * T:(h + 1) * T] for h in range(H)], axis=-1)
        attn = mm(o3.reshape(TN, D), w_o_ref[l]) + b_o_ref[l]            # (TN, D)

        # ---- post-norm encoder layer, all in 2-D f32 ----
        x1 = _layer_norm(u + attn, ln1_g_ref[l], ln1_b_ref[l])
        ff = jnp.maximum(mm(x1, w_ff1_ref[l]) + b_ff1_ref[l], 0.0)
        ff2 = mm(ff, w_ff2_ref[l]) + b_ff2_ref[l]
        u = _layer_norm(x1 + ff2, ln2_g_ref[l], ln2_b_ref[l])

    # ---- Task_Specific_Head: VPU multiply + reduce (no 1-column GEMMs) ----
    u3 = u.reshape(T, N, D)
    prod = u3 * w_head_ref[...]                                          # (T, N, D)
    r = jnp.sum(jnp.sum(prod, axis=-1, keepdims=True), axis=1)           # (T, 1)
    r = r + b_head_ref[...]
    lane = jax.lax.broadcasted_iota(jnp.int32, (T, 128), 1)
    out_ref[...] = jnp.where(lane == 0, r, 0.0)                          # lane-dense


# ----------------------------------------------------------------------------
# wrapper: host-side folding, BlockSpecs, pallas_call
# ----------------------------------------------------------------------------
def patchtst_forward(x, params, cfg, *, compute_dtype=jnp.bfloat16, tile_bm=None,
                     approx_recip=None):
    B, L, M = x.shape
    P, S, N, D = cfg['P'], cfg['S'], cfg['N'], cfg['d_model']
    H, NL, F = cfg['num_heads'], cfg['num_layers'], cfg['dim_feedforward']
    hd = D // H
    BM = B * M
    f32 = jnp.float32
    cdt = jnp.dtype(compute_dtype)
    if approx_recip is None:
        approx_recip = bool(cdt != jnp.dtype(jnp.float32))

    if tile_bm is None:
        tile_bm = _pick_tile_bm(BM, N)
    if BM % tile_bm != 0 or (tile_bm % 8 != 0 and tile_bm != BM):
        tile_bm = BM                          # single-tile fallback
    n_tiles = BM // tile_bm

    # ---- patches: BN scale and the "2u + pe" factor of 2 folded into the data
    bn_scale = params['bn_gamma'] / jnp.sqrt(params['bn_var'] + 1e-5)    # (M,)
    bn_shift = params['bn_beta'] - params['bn_mean'] * bn_scale          # (M,)
    xt = jnp.transpose(x, (0, 2, 1)) * (2.0 * bn_scale)[None, :, None]   # (B, M, L)
    patches = jnp.stack([xt[:, :, n * S:n * S + P] for n in range(N)], axis=2)
    patches = patches.reshape(BM * N, P).astype(cdt)                     # (BM*N, P)

    # ---- fold BN shift + b_proj + PosEnc into a pre-broadcast add table
    #   u = (2*scale*x)@W + [ 2*(shift*colsum(W) + b_proj) + pe[bm] ]
    w_proj32 = params['w_proj'].astype(f32)
    shift_d = bn_shift[:, None] * jnp.sum(w_proj32, axis=0)[None, :] + params['b_proj']
    pos = jnp.arange(BM, dtype=f32)[:, None]
    div = jnp.exp(jnp.arange(0, D, 2, dtype=f32) * (-math.log(10000.0) / D))
    pe = jnp.zeros((BM, D), f32)
    pe = pe.at[:, 0::2].set(jnp.sin(pos * div))
    pe = pe.at[:, 1::2].set(jnp.cos(pos * div))
    add_bm = 2.0 * jnp.tile(shift_d, (B, 1)) + pe                        # (BM, D)
    add_tab = jnp.repeat(add_bm, N, axis=0).astype(f32)                  # (BM*N, D)

    # ---- fused attention weights: 1/sqrt(hd) folded into the Q block ----
    inv = 1.0 / math.sqrt(hd)
    qscale = jnp.concatenate([jnp.full((D,), inv, f32), jnp.ones((2 * D,), f32)])
    w_qkv = params['w_qkv'].astype(f32) * qscale[None, None, :]          # (NL, D, 3D)
    b_qkv = params['b_qkv'].astype(f32) * qscale[None, None, :]          # (NL, 1, 3D)

    # ---- task-head weight: (1, N*D) flattened d-major/n-minor -> (N, D) ----
    w_head_nd = params['w_head'].reshape(D, N).T.astype(f32)             # (N, D)
    b_head = params['b_head'].reshape(1, 1).astype(f32)

    wc = lambda a: a.astype(cdt)
    inputs = (
        patches, add_tab,
        wc(w_proj32),
        wc(w_qkv), b_qkv,
        wc(params['w_o']), params['b_o'].astype(f32),
        params['ln1_g'].astype(f32), params['ln1_b'].astype(f32),
        wc(params['w_ff1']), params['b_ff1'].astype(f32),
        wc(params['w_ff2']), params['b_ff2'].astype(f32),
        params['ln2_g'].astype(f32), params['ln2_b'].astype(f32),
        w_head_nd, b_head,
    )

    # ---- BlockSpecs: tile the flattened (B*M) axis, weights stay resident ----
    def tiled(rows, cols):
        return pl.BlockSpec((rows, cols), lambda i: (i, 0))

    def resident(a):
        return pl.BlockSpec(a.shape, lambda i, _nd=a.ndim: (0,) * _nd)

    in_specs = ([tiled(tile_bm * N, P), tiled(tile_bm * N, D)]
                + [resident(a) for a in inputs[2:]])
    out_specs = pl.BlockSpec((tile_bm, 128), lambda i: (i, 0))

    # ---- VMEM budget: double-buffered tiles + double-buffered residents +
    #      in-kernel f32 intermediates, capped by the chip's VMEM capacity.
    pad = _padded_vmem_bytes
    tiled_bytes = (pad((tile_bm * N, P), cdt) + pad((tile_bm * N, D), f32)
                   + pad((tile_bm, 128), f32))
    weight_bytes = sum(pad(a.shape, a.dtype) for a in inputs[2:])
    TNt = tile_bm * N
    inter_bytes = (pad((TNt, 3 * D), f32) + 4 * pad((TNt, D), f32)
                   + pad((TNt, F), f32)
                   + 3 * pad((H * tile_bm, N, hd), f32)
                   + 2 * pad((H * tile_bm, N, N), f32))
    vmem_limit = 2 * tiled_bytes + 2 * weight_bytes + 2 * inter_bytes + (4 << 20)
    try:
        cap = int(getattr(pltpu.get_tpu_info(), "vmem_capacity_bytes", 64 << 20))
    except Exception:
        cap = 64 << 20
    vmem_limit = int(min(max(vmem_limit, 16 << 20), int(0.65 * cap)))

    # ---- cost estimate for XLA scheduling ----
    flops_layer = (2 * BM * N * D * (3 * D)      # fused QKV projection
                   + 2 * 2 * BM * N * N * D      # scores + AV (all heads)
                   + 2 * BM * N * D * D          # output projection
                   + 2 * 2 * BM * N * D * F)     # feed-forward
    flops = int(2 * BM * N * P * D + NL * flops_layer + 2 * BM * N * D)
    transcendentals = int(NL * BM * H * N * N + NL * BM * H * N + 2 * NL * BM * N)
    bytes_accessed = int(sum(math.prod(a.shape) * a.dtype.itemsize for a in inputs)
                         + BM * 128 * 4)

    kernel = partial(patchtst_kernel,
                     num_layers=NL, num_heads=H, d_model=D, head_dim=hd,
                     n_patches=N, compute_dtype=cdt, approx_recip=approx_recip)

    out = pl.pallas_call(
        kernel,
        grid=(n_tiles,),
        in_specs=in_specs,
        out_specs=out_specs,
        out_shape=jax.ShapeDtypeStruct((BM, 128), jnp.float32),
        compiler_params=pltpu.CompilerParams(
            dimension_semantics=("parallel",),
            vmem_limit_bytes=vmem_limit),
        cost_estimate=pl.CostEstimate(flops=flops,
                                      transcendentals=transcendentals,
                                      bytes_accessed=bytes_accessed),
    )(*inputs)
    return out[:, 0].reshape(B, M)


# ----------------------------------------------------------------------------
# pure-JAX reference mirroring the PyTorch forward (eval mode)
# ----------------------------------------------------------------------------
def patchtst_reference(x, params, cfg):
    B, L, M = x.shape
    P, S, N, D = cfg['P'], cfg['S'], cfg['N'], cfg['d_model']
    H, NL = cfg['num_heads'], cfg['num_layers']
    hd = D // H
    BM = B * M

    xt = jnp.transpose(x, (0, 2, 1))
    bn_scale = params['bn_gamma'] / jnp.sqrt(params['bn_var'] + 1e-5)
    bn_shift = params['bn_beta'] - params['bn_mean'] * bn_scale
    xt = xt * bn_scale[None, :, None] + bn_shift[None, :, None]
    patches = jnp.stack([xt[:, :, n * S:n * S + P] for n in range(N)], axis=2)
    xp = patches @ params['w_proj'] + params['b_proj'][0]
    u = xp.reshape(BM, N, D)

    pos = jnp.arange(BM, dtype=jnp.float32)[:, None]
    div = jnp.exp(jnp.arange(0, D, 2, dtype=jnp.float32) * (-math.log(10000.0) / D))
    pe = jnp.zeros((BM, D), jnp.float32)
    pe = pe.at[:, 0::2].set(jnp.sin(pos * div))
    pe = pe.at[:, 1::2].set(jnp.cos(pos * div))
    u = 2.0 * u + pe[:, None, :]

    for l in range(NL):
        qkv = u @ params['w_qkv'][l] + params['b_qkv'][l]
        q, k, v = qkv[..., :D], qkv[..., D:2 * D], qkv[..., 2 * D:]
        qh = q.reshape(BM, N, H, hd).transpose(0, 2, 1, 3)
        kh = k.reshape(BM, N, H, hd).transpose(0, 2, 1, 3)
        vh = v.reshape(BM, N, H, hd).transpose(0, 2, 1, 3)
        s = (qh @ kh.transpose(0, 1, 3, 2)) / math.sqrt(hd)
        p = jax.nn.softmax(s, axis=-1)
        o = (p @ vh).transpose(0, 2, 1, 3).reshape(BM, N, D)
        attn = o @ params['w_o'][l] + params['b_o'][l]
        x1 = _layer_norm(u + attn, params['ln1_g'][l], params['ln1_b'][l])
        ff = jnp.maximum(x1 @ params['w_ff1'][l] + params['b_ff1'][l], 0.0)
        ff = ff @ params['w_ff2'][l] + params['b_ff2'][l]
        u = _layer_norm(x1 + ff, params['ln2_g'][l], params['ln2_b'][l])

    z = u.reshape(B, M, N, D).transpose(0, 1, 3, 2).reshape(B, M, D * N)
    out = z @ params['w_head'][0] + params['b_head'][0, 0]
    return out.reshape(B, M)


# ----------------------------------------------------------------------------
def init_params(key, cfg):
    M, P, D = cfg['M'], cfg['P'], cfg['d_model']
    F, NL, N = cfg['dim_feedforward'], cfg['num_layers'], cfg['N']
    ks = jax.random.split(key, 20)

    def nrm(k, shape, scale=0.1):
        return scale * jax.random.normal(k, shape, jnp.float32)

    return dict(
        bn_gamma=1.0 + 0.1 * jax.random.normal(ks[0], (M,), jnp.float32),
        bn_beta=nrm(ks[1], (M,)),
        bn_mean=nrm(ks[2], (M,)),
        bn_var=0.5 + jnp.abs(jax.random.normal(ks[3], (M,), jnp.float32)),
        w_proj=nrm(ks[4], (P, D)),
        b_proj=nrm(ks[5], (1, D)),
        w_qkv=nrm(ks[6], (NL, D, 3 * D)),
        b_qkv=nrm(ks[7], (NL, 1, 3 * D)),
        w_o=nrm(ks[8], (NL, D, D)),
        b_o=nrm(ks[9], (NL, 1, D)),
        ln1_g=1.0 + 0.05 * jax.random.normal(ks[10], (NL, 1, D), jnp.float32),
        ln1_b=nrm(ks[11], (NL, 1, D)),
        w_ff1=nrm(ks[12], (NL, D, F)),
        b_ff1=nrm(ks[13], (NL, 1, F)),
        w_ff2=nrm(ks[14], (NL, F, D)),
        b_ff2=nrm(ks[15], (NL, 1, D)),
        ln2_g=1.0 + 0.05 * jax.random.normal(ks[16], (NL, 1, D), jnp.float32),
        ln2_b=nrm(ks[17], (NL, 1, D)),
        w_head=nrm(ks[18], (1, N * D)),
        b_head=nrm(ks[19], (1, 1)),
    )


if __name__ == "__main__":
    # PatchTST(M=4, L=16, P=8, S=4, num_heads=4, dim_feedforward=64,
    #          num_layers=2, d_model=32, dropout=0.1) -- eval semantics.
    # B=4 so the flattened B*M=16 axis gives a 2-step "parallel" grid (keeps both
    # v7x TensorCores busy; on v5e/v6e the 2 steps just amortize trivially).
    B, M, L, P, S = 4, 4, 16, 8, 4
    num_heads, dim_feedforward, num_layers, d_model = 4, 64, 2, 32
    N = round((L - P) / S) + 1
    cfg = dict(M=M, L=L, P=P, S=S, N=N, num_heads=num_heads,
               dim_feedforward=dim_feedforward, num_layers=num_layers,
               d_model=d_model)

    key = jax.random.PRNGKey(0)
    kp, kx = jax.random.split(key)
    params = init_params(kp, cfg)
    x = jax.random.normal(kx, (B, L, M), jnp.float32)

    ref = patchtst_reference(x, params, cfg)

    # exact-semantics configuration (f32 MXU operands, exact softmax divide)
    out_f32 = patchtst_forward(x, params, cfg, compute_dtype=jnp.float32)
    jax.block_until_ready(out_f32)
    assert out_f32.shape == (B, M), out_f32.shape
    if not jnp.allclose(out_f32, ref, atol=5e-4, rtol=5e-4):
        raise AssertionError(f"f32 mismatch: kernel={out_f32}, ref={ref}")

    # performance configuration (bf16 MXU operands, f32 accumulation,
    # f32 LayerNorm/softmax, approximate-reciprocal softmax normalization)
    out_bf16 = patchtst_forward(x, params, cfg, compute_dtype=jnp.bfloat16)
    jax.block_until_ready(out_bf16)
    if not jnp.allclose(out_bf16, ref, atol=3e-2, rtol=3e-2):
        raise AssertionError(f"bf16 mismatch: kernel={out_bf16}, ref={ref}")

    print("KERNEL_OK")
</pallas_src>

<mosaic_0001>
module attributes {stable_mosaic.version = 11 : i64} {
  func.func @patchtst_kernel(%arg0: i32, %arg1: memref<24x8xf32, #tpu.memory_space<vmem>>, %arg2: memref<24x32xf32, #tpu.memory_space<vmem>>, %arg3: memref<8x32xf32, #tpu.memory_space<vmem>>, %arg4: memref<2x32x96xf32, #tpu.memory_space<vmem>>, %arg5: memref<2x1x96xf32, #tpu.memory_space<vmem>>, %arg6: memref<2x32x32xf32, #tpu.memory_space<vmem>>, %arg7: memref<2x1x32xf32, #tpu.memory_space<vmem>>, %arg8: memref<2x1x32xf32, #tpu.memory_space<vmem>>, %arg9: memref<2x1x32xf32, #tpu.memory_space<vmem>>, %arg10: memref<2x32x64xf32, #tpu.memory_space<vmem>>, %arg11: memref<2x1x64xf32, #tpu.memory_space<vmem>>, %arg12: memref<2x64x32xf32, #tpu.memory_space<vmem>>, %arg13: memref<2x1x32xf32, #tpu.memory_space<vmem>>, %arg14: memref<2x1x32xf32, #tpu.memory_space<vmem>>, %arg15: memref<2x1x32xf32, #tpu.memory_space<vmem>>, %arg16: memref<3x32xf32, #tpu.memory_space<vmem>>, %arg17: memref<1x1xf32, #tpu.memory_space<vmem>>, %arg18: memref<8x128xf32, #tpu.memory_space<vmem>>) attributes {dimension_semantics = [#tpu.dimension_semantics<parallel>], iteration_bounds = array<i64: 2>, scalar_prefetch = 0 : i64, scratch_operands = 0 : i64, tpu.core_type = #tpu.core_type<tc>, window_params = [{transform_indices = @transform_0, window_bounds = array<i64: 24, 8>}, {transform_indices = @transform_1, window_bounds = array<i64: 24, 32>}, {pipeline_mode = #tpu.pipeline_mode<synchronous>, transform_indices = @transform_2, window_bounds = array<i64: 8, 32>}, {pipeline_mode = #tpu.pipeline_mode<synchronous>, transform_indices = @transform_3, window_bounds = array<i64: 2, 32, 96>}, {pipeline_mode = #tpu.pipeline_mode<synchronous>, transform_indices = @transform_4, window_bounds = array<i64: 2, 1, 96>}, {pipeline_mode = #tpu.pipeline_mode<synchronous>, transform_indices = @transform_5, window_bounds = array<i64: 2, 32, 32>}, {pipeline_mode = #tpu.pipeline_mode<synchronous>, transform_indices = @transform_6, window_bounds = array<i64: 2, 1, 32>}, {pipeline_mode = #tpu.pipeline_mode<synchronous>, transform_indices = @transform_7, window_bounds = array<i64: 2, 1, 32>}, {pipeline_mode = #tpu.pipeline_mode<synchronous>, transform_indices = @transform_8, window_bounds = array<i64: 2, 1, 32>}, {pipeline_mode = #tpu.pipeline_mode<synchronous>, transform_indices = @transform_9, window_bounds = array<i64: 2, 32, 64>}, {pipeline_mode = #tpu.pipeline_mode<synchronous>, transform_indices = @transform_10, window_bounds = array<i64: 2, 1, 64>}, {pipeline_mode = #tpu.pipeline_mode<synchronous>, transform_indices = @transform_11, window_bounds = array<i64: 2, 64, 32>}, {pipeline_mode = #tpu.pipeline_mode<synchronous>, transform_indices = @transform_12, window_bounds = array<i64: 2, 1, 32>}, {pipeline_mode = #tpu.pipeline_mode<synchronous>, transform_indices = @transform_13, window_bounds = array<i64: 2, 1, 32>}, {pipeline_mode = #tpu.pipeline_mode<synchronous>, transform_indices = @transform_14, window_bounds = array<i64: 2, 1, 32>}, {pipeline_mode = #tpu.pipeline_mode<synchronous>, transform_indices = @transform_15, window_bounds = array<i64: 3, 32>}, {pipeline_mode = #tpu.pipeline_mode<synchronous>, transform_indices = @transform_16, window_bounds = array<i64: 1, 1>}, {transform_indices = @transform_17, window_bounds = array<i64: 8, 128>}]} {
    %c0 = arith.constant 0 : index
    %c0_0 = arith.constant 0 : index
    %0 = vector.load %arg1[%c0, %c0_0] : memref<24x8xf32, #tpu.memory_space<vmem>>, vector<24x8xf32>
    %c0_1 = arith.constant 0 : index
    %c0_2 = arith.constant 0 : index
    %1 = vector.load %arg3[%c0_1, %c0_2] : memref<8x32xf32, #tpu.memory_space<vmem>>, vector<8x32xf32>
    %cst = arith.constant dense<0.000000e+00> : vector<24x32xf32>
    %2 = tpu.matmul %0, %1, %cst {dimension_numbers = #tpu.dot_dimension_numbers<[1], [0], [0], [1], [0, 0, 1, 1], [], []>} : vector<24x8xf32>, vector<8x32xf32>, vector<24x32xf32> -> vector<24x32xf32>
    %c0_3 = arith.constant 0 : index
    %c0_4 = arith.constant 0 : index
    %3 = vector.load %arg2[%c0_3, %c0_4] : memref<24x32xf32, #tpu.memory_space<vmem>>, vector<24x32xf32>
    %4 = arith.addf %2, %3 : vector<24x32xf32>
    %c0_5 = arith.constant 0 : index
    %c0_6 = arith.constant 0 : index
    %c0_7 = arith.constant 0 : index
    %5 = vector.load %arg4[%c0_5, %c0_6, %c0_7] : memref<2x32x96xf32, #tpu.memory_space<vmem>>, vector<1x32x96xf32>
    %6 = vector.shape_cast %5 : vector<1x32x96xf32> to vector<32x96xf32>
    %cst_8 = arith.constant dense<0.000000e+00> : vector<24x96xf32>
    %7 = tpu.matmul %4, %6, %cst_8 {dimension_numbers = #tpu.dot_dimension_numbers<[1], [0], [0], [1], [0, 0, 1, 1], [], []>} : vector<24x32xf32>, vector<32x96xf32>, vector<24x96xf32> -> vector<24x96xf32>
    %c0_9 = arith.constant 0 : index
    %c0_10 = arith.constant 0 : index
    %c0_11 = arith.constant 0 : index
    %8 = vector.load %arg5[%c0_9, %c0_10, %c0_11] : memref<2x1x96xf32, #tpu.memory_space<vmem>>, vector<1x1x96xf32>
    %9 = vector.shape_cast %8 : vector<1x1x96xf32> to vector<1x96xf32>
    %10 = vector.broadcast %9 : vector<1x96xf32> to vector<24x96xf32>
    %11 = arith.addf %7, %10 : vector<24x96xf32>
    %12 = vector.shape_cast %11 : vector<24x96xf32> to vector<8x3x96xf32>
    %13 = vector.extract_strided_slice %12 {offsets = [0, 0, 0], sizes = [8, 3, 8], strides = [1, 1, 1]} : vector<8x3x96xf32> to vector<8x3x8xf32>
    %14 = vector.extract_strided_slice %12 {offsets = [0, 0, 8], sizes = [8, 3, 8], strides = [1, 1, 1]} : vector<8x3x96xf32> to vector<8x3x8xf32>
    %15 = vector.extract_strided_slice %12 {offsets = [0, 0, 16], sizes = [8, 3, 8], strides = [1, 1, 1]} : vector<8x3x96xf32> to vector<8x3x8xf32>
    %16 = vector.extract_strided_slice %12 {offsets = [0, 0, 24], sizes = [8, 3, 8], strides = [1, 1, 1]} : vector<8x3x96xf32> to vector<8x3x8xf32>
    %17 = tpu.concatenate %13, %14, %15, %16 in 0 : vector<8x3x8xf32>, vector<8x3x8xf32>, vector<8x3x8xf32>, vector<8x3x8xf32> -> vector<32x3x8xf32>
    %18 = vector.extract_strided_slice %12 {offsets = [0, 0, 32], sizes = [8, 3, 8], strides = [1, 1, 1]} : vector<8x3x96xf32> to vector<8x3x8xf32>
    %19 = vector.extract_strided_slice %12 {offsets = [0, 0, 40], sizes = [8, 3, 8], strides = [1, 1, 1]} : vector<8x3x96xf32> to vector<8x3x8xf32>
    %20 = vector.extract_strided_slice %12 {offsets = [0, 0, 48], sizes = [8, 3, 8], strides = [1, 1, 1]} : vector<8x3x96xf32> to vector<8x3x8xf32>
    %21 = vector.extract_strided_slice %12 {offsets = [0, 0, 56], sizes = [8, 3, 8], strides = [1, 1, 1]} : vector<8x3x96xf32> to vector<8x3x8xf32>
    %22 = tpu.concatenate %18, %19, %20, %21 in 0 : vector<8x3x8xf32>, vector<8x3x8xf32>, vector<8x3x8xf32>, vector<8x3x8xf32> -> vector<32x3x8xf32>
    %23 = vector.extract_strided_slice %12 {offsets = [0, 0, 64], sizes = [8, 3, 8], strides = [1, 1, 1]} : vector<8x3x96xf32> to vector<8x3x8xf32>
    %24 = vector.extract_strided_slice %12 {offsets = [0, 0, 72], sizes = [8, 3, 8], strides = [1, 1, 1]} : vector<8x3x96xf32> to vector<8x3x8xf32>
    %25 = vector.extract_strided_slice %12 {offsets = [0, 0, 80], sizes = [8, 3, 8], strides = [1, 1, 1]} : vector<8x3x96xf32> to vector<8x3x8xf32>
    %26 = vector.extract_strided_slice %12 {offsets = [0, 0, 88], sizes = [8, 3, 8], strides = [1, 1, 1]} : vector<8x3x96xf32> to vector<8x3x8xf32>
    %27 = tpu.concatenate %23, %24, %25, %26 in 0 : vector<8x3x8xf32>, vector<8x3x8xf32>, vector<8x3x8xf32>, vector<8x3x8xf32> -> vector<32x3x8xf32>
    "tpu.trace_start"() <{level = 10 : i32, message = "bqh,bkh->bqk"}> : () -> ()
    %cst_12 = arith.constant dense<0.000000e+00> : vector<32x3x3xf32>
    %28 = tpu.matmul %17, %22, %cst_12 {dimension_numbers = #tpu.dot_dimension_numbers<[2], [2], [1], [1], [0, 0, 0, 1, 1, 1], [0], [0]>} : vector<32x3x8xf32>, vector<32x3x8xf32>, vector<32x3x3xf32> -> vector<32x3x3xf32>
    "tpu.trace_stop"() : () -> ()
    %cst_13 = arith.constant dense<0xFF800000> : vector<32x3xf32>
    %29 = vector.multi_reduction <maximumf>, %28, %cst_13 [2] : vector<32x3x3xf32> to vector<32x3xf32>
    %30 = vector.shape_cast %29 : vector<32x3xf32> to vector<32x3x1xf32>
    %31 = vector.broadcast %30 : vector<32x3x1xf32> to vector<32x3x3xf32>
    %32 = arith.subf %28, %31 : vector<32x3x3xf32>
    %33 = math.exp %32 : vector<32x3x3xf32>
    %cst_14 = arith.constant dense<0.000000e+00> : vector<32x3xf32>
    %34 = vector.multi_reduction <add>, %33, %cst_14 [2] : vector<32x3x3xf32> to vector<32x3xf32>
    %35 = vector.shape_cast %34 : vector<32x3xf32> to vector<32x3x1xf32>
    %36 = vector.broadcast %35 : vector<32x3x1xf32> to vector<32x3x3xf32>
    %37 = arith.divf %33, %36 : vector<32x3x3xf32>
    "tpu.trace_start"() <{level = 10 : i32, message = "bqk,bkh->bqh"}> : () -> ()
    %cst_15 = arith.constant dense<0.000000e+00> : vector<32x3x8xf32>
    %38 = tpu.matmul %37, %27, %cst_15 {dimension_numbers = #tpu.dot_dimension_numbers<[2], [1], [1], [2], [0, 0, 0, 1, 1, 2], [0], [0]>} : vector<32x3x3xf32>, vector<32x3x8xf32>, vector<32x3x8xf32> -> vector<32x3x8xf32>
    "tpu.trace_stop"() : () -> ()
    %39 = vector.extract_strided_slice %38 {offsets = [0, 0, 0], sizes = [8, 3, 8], strides = [1, 1, 1]} : vector<32x3x8xf32> to vector<8x3x8xf32>
    %40 = vector.extract_strided_slice %38 {offsets = [8, 0, 0], sizes = [8, 3, 8], strides = [1, 1, 1]} : vector<32x3x8xf32> to vector<8x3x8xf32>
    %41 = vector.extract_strided_slice %38 {offsets = [16, 0, 0], sizes = [8, 3, 8], strides = [1, 1, 1]} : vector<32x3x8xf32> to vector<8x3x8xf32>
    %42 = vector.extract_strided_slice %38 {offsets = [24, 0, 0], sizes = [8, 3, 8], strides = [1, 1, 1]} : vector<32x3x8xf32> to vector<8x3x8xf32>
    %43 = tpu.concatenate %39, %40, %41, %42 in 2 : vector<8x3x8xf32>, vector<8x3x8xf32>, vector<8x3x8xf32>, vector<8x3x8xf32> -> vector<8x3x32xf32>
    %44 = vector.shape_cast %43 : vector<8x3x32xf32> to vector<24x32xf32>
    %c0_16 = arith.constant 0 : index
    %c0_17 = arith.constant 0 : index
    %c0_18 = arith.constant 0 : index
    %45 = vector.load %arg6[%c0_16, %c0_17, %c0_18] : memref<2x32x32xf32, #tpu.memory_space<vmem>>, vector<1x32x32xf32>
    %46 = vector.shape_cast %45 : vector<1x32x32xf32> to vector<32x32xf32>
    %cst_19 = arith.constant dense<0.000000e+00> : vector<24x32xf32>
    %47 = tpu.matmul %44, %46, %cst_19 {dimension_numbers = #tpu.dot_dimension_numbers<[1], [0], [0], [1], [0, 0, 1, 1], [], []>} : vector<24x32xf32>, vector<32x32xf32>, vector<24x32xf32> -> vector<24x32xf32>
    %c0_20 = arith.constant 0 : index
    %c0_21 = arith.constant 0 : index
    %c0_22 = arith.constant 0 : index
    %48 = vector.load %arg7[%c0_20, %c0_21, %c0_22] : memref<2x1x32xf32, #tpu.memory_space<vmem>>, vector<1x1x32xf32>
    %49 = vector.shape_cast %48 : vector<1x1x32xf32> to vector<1x32xf32>
    %50 = vector.broadcast %49 : vector<1x32xf32> to vector<24x32xf32>
    %51 = arith.addf %47, %50 : vector<24x32xf32>
    %52 = arith.addf %4, %51 : vector<24x32xf32>
    %c0_23 = arith.constant 0 : index
    %c0_24 = arith.constant 0 : index
    %c0_25 = arith.constant 0 : index
    %53 = vector.load %arg8[%c0_23, %c0_24, %c0_25] : memref<2x1x32xf32, #tpu.memory_space<vmem>>, vector<1x1x32xf32>
    %54 = vector.shape_cast %53 : vector<1x1x32xf32> to vector<1x32xf32>
    %c0_26 = arith.constant 0 : index
    %c0_27 = arith.constant 0 : index
    %c0_28 = arith.constant 0 : index
    %55 = vector.load %arg9[%c0_26, %c0_27, %c0_28] : memref<2x1x32xf32, #tpu.memory_space<vmem>>, vector<1x1x32xf32>
    %56 = vector.shape_cast %55 : vector<1x1x32xf32> to vector<1x32xf32>
    %cst_29 = arith.constant dense<0.000000e+00> : vector<24xf32>
    %57 = vector.multi_reduction <add>, %52, %cst_29 [1] : vector<24x32xf32> to vector<24xf32>
    %58 = vector.shape_cast %57 : vector<24xf32> to vector<24x1xf32>
    %cst_30 = arith.constant 3.200000e+01 : f32
    %59 = vector.broadcast %cst_30 : f32 to vector<24x1xf32>
    %60 = arith.divf %58, %59 : vector<24x1xf32>
    %61 = vector.broadcast %60 : vector<24x1xf32> to vector<24x32xf32>
    %62 = arith.subf %52, %61 : vector<24x32xf32>
    %63 = arith.mulf %62, %62 : vector<24x32xf32>
    %cst_31 = arith.constant dense<0.000000e+00> : vector<24xf32>
    %64 = vector.multi_reduction <add>, %63, %cst_31 [1] : vector<24x32xf32> to vector<24xf32>
    %65 = vector.shape_cast %64 : vector<24xf32> to vector<24x1xf32>
    %cst_32 = arith.constant 3.200000e+01 : f32
    %66 = vector.broadcast %cst_32 : f32 to vector<24x1xf32>
    %67 = arith.divf %65, %66 : vector<24x1xf32>
    %68 = vector.broadcast %60 : vector<24x1xf32> to vector<24x32xf32>
    %69 = arith.subf %52, %68 : vector<24x32xf32>
    %cst_33 = arith.constant 9.99999974E-6 : f32
    %70 = vector.broadcast %cst_33 : f32 to vector<24x1xf32>
    %71 = arith.addf %67, %70 : vector<24x1xf32>
    %72 = math.rsqrt %71 : vector<24x1xf32>
    %73 = vector.broadcast %72 : vector<24x1xf32> to vector<24x32xf32>
    %74 = arith.mulf %69, %73 : vector<24x32xf32>
    %75 = vector.broadcast %54 : vector<1x32xf32> to vector<24x32xf32>
    %76 = arith.mulf %74, %75 : vector<24x32xf32>
    %77 = vector.broadcast %56 : vector<1x32xf32> to vector<24x32xf32>
    %78 = arith.addf %76, %77 : vector<24x32xf32>
    %c0_34 = arith.constant 0 : index
    %c0_35 = arith.constant 0 : index
    %c0_36 = arith.constant 0 : index
    %79 = vector.load %arg10[%c0_34, %c0_35, %c0_36] : memref<2x32x64xf32, #tpu.memory_space<vmem>>, vector<1x32x64xf32>
    %80 = vector.shape_cast %79 : vector<1x32x64xf32> to vector<32x64xf32>
    %cst_37 = arith.constant dense<0.000000e+00> : vector<24x64xf32>
    %81 = tpu.matmul %78, %80, %cst_37 {dimension_numbers = #tpu.dot_dimension_numbers<[1], [0], [0], [1], [0, 0, 1, 1], [], []>} : vector<24x32xf32>, vector<32x64xf32>, vector<24x64xf32> -> vector<24x64xf32>
    %c0_38 = arith.constant 0 : index
    %c0_39 = arith.constant 0 : index
    %c0_40 = arith.constant 0 : index
    %82 = vector.load %arg11[%c0_38, %c0_39, %c0_40] : memref<2x1x64xf32, #tpu.memory_space<vmem>>, vector<1x1x64xf32>
    %83 = vector.shape_cast %82 : vector<1x1x64xf32> to vector<1x64xf32>
    %84 = vector.broadcast %83 : vector<1x64xf32> to vector<24x64xf32>
    %85 = arith.addf %81, %84 : vector<24x64xf32>
    %cst_41 = arith.constant 0.000000e+00 : f32
    %86 = vector.broadcast %cst_41 : f32 to vector<24x64xf32>
    %87 = arith.maximumf %85, %86 : vector<24x64xf32>
    %c0_42 = arith.constant 0 : index
    %c0_43 = arith.constant 0 : index
    %c0_44 = arith.constant 0 : index
    %88 = vector.load %arg12[%c0_42, %c0_43, %c0_44] : memref<2x64x32xf32, #tpu.memory_space<vmem>>, vector<1x64x32xf32>
    %89 = vector.shape_cast %88 : vector<1x64x32xf32> to vector<64x32xf32>
    %cst_45 = arith.constant dense<0.000000e+00> : vector<24x32xf32>
    %90 = tpu.matmul %87, %89, %cst_45 {dimension_numbers = #tpu.dot_dimension_numbers<[1], [0], [0], [1], [0, 0, 1, 1], [], []>} : vector<24x64xf32>, vector<64x32xf32>, vector<24x32xf32> -> vector<24x32xf32>
    %c0_46 = arith.constant 0 : index
    %c0_47 = arith.constant 0 : index
    %c0_48 = arith.constant 0 : index
    %91 = vector.load %arg13[%c0_46, %c0_47, %c0_48] : memref<2x1x32xf32, #tpu.memory_space<vmem>>, vector<1x1x32xf32>
    %92 = vector.shape_cast %91 : vector<1x1x32xf32> to vector<1x32xf32>
    %93 = vector.broadcast %92 : vector<1x32xf32> to vector<24x32xf32>
    %94 = arith.addf %90, %93 : vector<24x32xf32>
    %95 = arith.addf %78, %94 : vector<24x32xf32>
    %c0_49 = arith.constant 0 : index
    %c0_50 = arith.constant 0 : index
    %c0_51 = arith.constant 0 : index
    %96 = vector.load %arg14[%c0_49, %c0_50, %c0_51] : memref<2x1x32xf32, #tpu.memory_space<vmem>>, vector<1x1x32xf32>
    %97 = vector.shape_cast %96 : vector<1x1x32xf32> to vector<1x32xf32>
    %c0_52 = arith.constant 0 : index
    %c0_53 = arith.constant 0 : index
    %c0_54 = arith.constant 0 : index
    %98 = vector.load %arg15[%c0_52, %c0_53, %c0_54] : memref<2x1x32xf32, #tpu.memory_space<vmem>>, vector<1x1x32xf32>
    %99 = vector.shape_cast %98 : vector<1x1x32xf32> to vector<1x32xf32>
    %cst_55 = arith.constant dense<0.000000e+00> : vector<24xf32>
    %100 = vector.multi_reduction <add>, %95, %cst_55 [1] : vector<24x32xf32> to vector<24xf32>
    %101 = vector.shape_cast %100 : vector<24xf32> to vector<24x1xf32>
    %cst_56 = arith.constant 3.200000e+01 : f32
    %102 = vector.broadcast %cst_56 : f32 to vector<24x1xf32>
    %103 = arith.divf %101, %102 : vector<24x1xf32>
    %104 = vector.broadcast %103 : vector<24x1xf32> to vector<24x32xf32>
    %105 = arith.subf %95, %104 : vector<24x32xf32>
    %106 = arith.mulf %105, %105 : vector<24x32xf32>
    %cst_57 = arith.constant dense<0.000000e+00> : vector<24xf32>
    %107 = vector.multi_reduction <add>, %106, %cst_57 [1] : vector<24x32xf32> to vector<24xf32>
    %108 = vector.shape_cast %107 : vector<24xf32> to vector<24x1xf32>
    %cst_58 = arith.constant 3.200000e+01 : f32
    %109 = vector.broadcast %cst_58 : f32 to vector<24x1xf32>
    %110 = arith.divf %108, %109 : vector<24x1xf32>
    %111 = vector.broadcast %103 : vector<24x1xf32> to vector<24x32xf32>
    %112 = arith.subf %95, %111 : vector<24x32xf32>
    %cst_59 = arith.constant 9.99999974E-6 : f32
    %113 = vector.broadcast %cst_59 : f32 to vector<24x1xf32>
    %114 = arith.addf %110, %113 : vector<24x1xf32>
    %115 = math.rsqrt %114 : vector<24x1xf32>
    %116 = vector.broadcast %115 : vector<24x1xf32> to vector<24x32xf32>
    %117 = arith.mulf %112, %116 : vector<24x32xf32>
    %118 = vector.broadcast %97 : vector<1x32xf32> to vector<24x32xf32>
    %119 = arith.mulf %117, %118 : vector<24x32xf32>
    %120 = vector.broadcast %99 : vector<1x32xf32> to vector<24x32xf32>
    %121 = arith.addf %119, %120 : vector<24x32xf32>
    %c1 = arith.constant 1 : index
    %c0_60 = arith.constant 0 : index
    %c0_61 = arith.constant 0 : index
    %122 = vector.load %arg4[%c1, %c0_60, %c0_61] : memref<2x32x96xf32, #tpu.memory_space<vmem>>, vector<1x32x96xf32>
    %123 = vector.shape_cast %122 : vector<1x32x96xf32> to vector<32x96xf32>
    %cst_62 = arith.constant dense<0.000000e+00> : vector<24x96xf32>
    %124 = tpu.matmul %121, %123, %cst_62 {dimension_numbers = #tpu.dot_dimension_numbers<[1], [0], [0], [1], [0, 0, 1, 1], [], []>} : vector<24x32xf32>, vector<32x96xf32>, vector<24x96xf32> -> vector<24x96xf32>
    %c1_63 = arith.constant 1 : index
    %c0_64 = arith.constant 0 : index
    %c0_65 = arith.constant 0 : index
    %125 = vector.load %arg5[%c1_63, %c0_64, %c0_65] : memref<2x1x96xf32, #tpu.memory_space<vmem>>, vector<1x1x96xf32>
    %126 = vector.shape_cast %125 : vector<1x1x96xf32> to vector<1x96xf32>
    %127 = vector.broadcast %126 : vector<1x96xf32> to vector<24x96xf32>
    %128 = arith.addf %124, %127 : vector<24x96xf32>
    %129 = vector.shape_cast %128 : vector<24x96xf32> to vector<8x3x96xf32>
    %130 = vector.extract_strided_slice %129 {offsets = [0, 0, 0], sizes = [8, 3, 8], strides = [1, 1, 1]} : vector<8x3x96xf32> to vector<8x3x8xf32>
    %131 = vector.extract_strided_slice %129 {offsets = [0, 0, 8], sizes = [8, 3, 8], strides = [1, 1, 1]} : vector<8x3x96xf32> to vector<8x3x8xf32>
    %132 = vector.extract_strided_slice %129 {offsets = [0, 0, 16], sizes = [8, 3, 8], strides = [1, 1, 1]} : vector<8x3x96xf32> to vector<8x3x8xf32>
    %133 = vector.extract_strided_slice %129 {offsets = [0, 0, 24], sizes = [8, 3, 8], strides = [1, 1, 1]} : vector<8x3x96xf32> to vector<8x3x8xf32>
    %134 = tpu.concatenate %130, %131, %132, %133 in 0 : vector<8x3x8xf32>, vector<8x3x8xf32>, vector<8x3x8xf32>, vector<8x3x8xf32> -> vector<32x3x8xf32>
    %135 = vector.extract_strided_slice %129 {offsets = [0, 0, 32], sizes = [8, 3, 8], strides = [1, 1, 1]} : vector<8x3x96xf32> to vector<8x3x8xf32>
    %136 = vector.extract_strided_slice %129 {offsets = [0, 0, 40], sizes = [8, 3, 8], strides = [1, 1, 1]} : vector<8x3x96xf32> to vector<8x3x8xf32>
    %137 = vector.extract_strided_slice %129 {offsets = [0, 0, 48], sizes = [8, 3, 8], strides = [1, 1, 1]} : vector<8x3x96xf32> to vector<8x3x8xf32>
    %138 = vector.extract_strided_slice %129 {offsets = [0, 0, 56], sizes = [8, 3, 8], strides = [1, 1, 1]} : vector<8x3x96xf32> to vector<8x3x8xf32>
    %139 = tpu.concatenate %135, %136, %137, %138 in 0 : vector<8x3x8xf32>, vector<8x3x8xf32>, vector<8x3x8xf32>, vector<8x3x8xf32> -> vector<32x3x8xf32>
    %140 = vector.extract_strided_slice %129 {offsets = [0, 0, 64], sizes = [8, 3, 8], strides = [1, 1, 1]} : vector<8x3x96xf32> to vector<8x3x8xf32>
    %141 = vector.extract_strided_slice %129 {offsets = [0, 0, 72], sizes = [8, 3, 8], strides = [1, 1, 1]} : vector<8x3x96xf32> to vector<8x3x8xf32>
    %142 = vector.extract_strided_slice %129 {offsets = [0, 0, 80], sizes = [8, 3, 8], strides = [1, 1, 1]} : vector<8x3x96xf32> to vector<8x3x8xf32>
    %143 = vector.extract_strided_slice %129 {offsets = [0, 0, 88], sizes = [8, 3, 8], strides = [1, 1, 1]} : vector<8x3x96xf32> to vector<8x3x8xf32>
    %144 = tpu.concatenate %140, %141, %142, %143 in 0 : vector<8x3x8xf32>, vector<8x3x8xf32>, vector<8x3x8xf32>, vector<8x3x8xf32> -> vector<32x3x8xf32>
    "tpu.trace_start"() <{level = 10 : i32, message = "bqh,bkh->bqk"}> : () -> ()
    %cst_66 = arith.constant dense<0.000000e+00> : vector<32x3x3xf32>
    %145 = tpu.matmul %134, %139, %cst_66 {dimension_numbers = #tpu.dot_dimension_numbers<[2], [2], [1], [1], [0, 0, 0, 1, 1, 1], [0], [0]>} : vector<32x3x8xf32>, vector<32x3x8xf32>, vector<32x3x3xf32> -> vector<32x3x3xf32>
    "tpu.trace_stop"() : () -> ()
    %cst_67 = arith.constant dense<0xFF800000> : vector<32x3xf32>
    %146 = vector.multi_reduction <maximumf>, %145, %cst_67 [2] : vector<32x3x3xf32> to vector<32x3xf32>
    %147 = vector.shape_cast %146 : vector<32x3xf32> to vector<32x3x1xf32>
    %148 = vector.broadcast %147 : vector<32x3x1xf32> to vector<32x3x3xf32>
    %149 = arith.subf %145, %148 : vector<32x3x3xf32>
    %150 = math.exp %149 : vector<32x3x3xf32>
    %cst_68 = arith.constant dense<0.000000e+00> : vector<32x3xf32>
    %151 = vector.multi_reduction <add>, %150, %cst_68 [2] : vector<32x3x3xf32> to vector<32x3xf32>
    %152 = vector.shape_cast %151 : vector<32x3xf32> to vector<32x3x1xf32>
    %153 = vector.broadcast %152 : vector<32x3x1xf32> to vector<32x3x3xf32>
    %154 = arith.divf %150, %153 : vector<32x3x3xf32>
    "tpu.trace_start"() <{level = 10 : i32, message = "bqk,bkh->bqh"}> : () -> ()
    %cst_69 = arith.constant dense<0.000000e+00> : vector<32x3x8xf32>
    %155 = tpu.matmul %154, %144, %cst_69 {dimension_numbers = #tpu.dot_dimension_numbers<[2], [1], [1], [2], [0, 0, 0, 1, 1, 2], [0], [0]>} : vector<32x3x3xf32>, vector<32x3x8xf32>, vector<32x3x8xf32> -> vector<32x3x8xf32>
    "tpu.trace_stop"() : () -> ()
    %156 = vector.extract_strided_slice %155 {offsets = [0, 0, 0], sizes = [8, 3, 8], strides = [1, 1, 1]} : vector<32x3x8xf32> to vector<8x3x8xf32>
    %157 = vector.extract_strided_slice %155 {offsets = [8, 0, 0], sizes = [8, 3, 8], strides = [1, 1, 1]} : vector<32x3x8xf32> to vector<8x3x8xf32>
    %158 = vector.extract_strided_slice %155 {offsets = [16, 0, 0], sizes = [8, 3, 8], strides = [1, 1, 1]} : vector<32x3x8xf32> to vector<8x3x8xf32>
    %159 = vector.extract_strided_slice %155 {offsets = [24, 0, 0], sizes = [8, 3, 8], strides = [1, 1, 1]} : vector<32x3x8xf32> to vector<8x3x8xf32>
    %160 = tpu.concatenate %156, %157, %158, %159 in 2 : vector<8x3x8xf32>, vector<8x3x8xf32>, vector<8x3x8xf32>, vector<8x3x8xf32> -> vector<8x3x32xf32>
    %161 = vector.shape_cast %160 : vector<8x3x32xf32> to vector<24x32xf32>
    %c1_70 = arith.constant 1 : index
    %c0_71 = arith.constant 0 : index
    %c0_72 = arith.constant 0 : index
    %162 = vector.load %arg6[%c1_70, %c0_71, %c0_72] : memref<2x32x32xf32, #tpu.memory_space<vmem>>, vector<1x32x32xf32>
    %163 = vector.shape_cast %162 : vector<1x32x32xf32> to vector<32x32xf32>
    %cst_73 = arith.constant dense<0.000000e+00> : vector<24x32xf32>
    %164 = tpu.matmul %161, %163, %cst_73 {dimension_numbers = #tpu.dot_dimension_numbers<[1], [0], [0], [1], [0, 0, 1, 1], [], []>} : vector<24x32xf32>, vector<32x32xf32>, vector<24x32xf32> -> vector<24x32xf32>
    %c1_74 = arith.constant 1 : index
    %c0_75 = arith.constant 0 : index
    %c0_76 = arith.constant 0 : index
    %165 = vector.load %arg7[%c1_74, %c0_75, %c0_76] : memref<2x1x32xf32, #tpu.memory_space<vmem>>, vector<1x1x32xf32>
    %166 = vector.shape_cast %165 : vector<1x1x32xf32> to vector<1x32xf32>
    %167 = vector.broadcast %166 : vector<1x32xf32> to vector<24x32xf32>
    %168 = arith.addf %164, %167 : vector<24x32xf32>
    %169 = arith.addf %121, %168 : vector<24x32xf32>
    %c1_77 = arith.constant 1 : index
    %c0_78 = arith.constant 0 : index
    %c0_79 = arith.constant 0 : index
    %170 = vector.load %arg8[%c1_77, %c0_78, %c0_79] : memref<2x1x32xf32, #tpu.memory_space<vmem>>, vector<1x1x32xf32>
    %171 = vector.shape_cast %170 : vector<1x1x32xf32> to vector<1x32xf32>
    %c1_80 = arith.constant 1 : index
    %c0_81 = arith.constant 0 : index
    %c0_82 = arith.constant 0 : index
    %172 = vector.load %arg9[%c1_80, %c0_81, %c0_82] : memref<2x1x32xf32, #tpu.memory_space<vmem>>, vector<1x1x32xf32>
    %173 = vector.shape_cast %172 : vector<1x1x32xf32> to vector<1x32xf32>
    %cst_83 = arith.constant dense<0.000000e+00> : vector<24xf32>
    %174 = vector.multi_reduction <add>, %169, %cst_83 [1] : vector<24x32xf32> to vector<24xf32>
    %175 = vector.shape_cast %174 : vector<24xf32> to vector<24x1xf32>
    %cst_84 = arith.constant 3.200000e+01 : f32
    %176 = vector.broadcast %cst_84 : f32 to vector<24x1xf32>
    %177 = arith.divf %175, %176 : vector<24x1xf32>
    %178 = vector.broadcast %177 : vector<24x1xf32> to vector<24x32xf32>
    %179 = arith.subf %169, %178 : vector<24x32xf32>
    %180 = arith.mulf %179, %179 : vector<24x32xf32>
    %cst_85 = arith.constant dense<0.000000e+00> : vector<24xf32>
    %181 = vector.multi_reduction <add>, %180, %cst_85 [1] : vector<24x32xf32> to vector<24xf32>
    %182 = vector.shape_cast %181 : vector<24xf32> to vector<24x1xf32>
    %cst_86 = arith.constant 3.200000e+01 : f32
    %183 = vector.broadcast %cst_86 : f32 to vector<24x1xf32>
    %184 = arith.divf %182, %183 : vector<24x1xf32>
    %185 = vector.broadcast %177 : vector<24x1xf32> to vector<24x32xf32>
    %186 = arith.subf %169, %185 : vector<24x32xf32>
    %cst_87 = arith.constant 9.99999974E-6 : f32
    %187 = vector.broadcast %cst_87 : f32 to vector<24x1xf32>
    %188 = arith.addf %184, %187 : vector<24x1xf32>
    %189 = math.rsqrt %188 : vector<24x1xf32>
    %190 = vector.broadcast %189 : vector<24x1xf32> to vector<24x32xf32>
    %191 = arith.mulf %186, %190 : vector<24x32xf32>
    %192 = vector.broadcast %171 : vector<1x32xf32> to vector<24x32xf32>
    %193 = arith.mulf %191, %192 : vector<24x32xf32>
    %194 = vector.broadcast %173 : vector<1x32xf32> to vector<24x32xf32>
    %195 = arith.addf %193, %194 : vector<24x32xf32>
    %c1_88 = arith.constant 1 : index
    %c0_89 = arith.constant 0 : index
    %c0_90 = arith.constant 0 : index
    %196 = vector.load %arg10[%c1_88, %c0_89, %c0_90] : memref<2x32x64xf32, #tpu.memory_space<vmem>>, vector<1x32x64xf32>
    %197 = vector.shape_cast %196 : vector<1x32x64xf32> to vector<32x64xf32>
    %cst_91 = arith.constant dense<0.000000e+00> : vector<24x64xf32>
    %198 = tpu.matmul %195, %197, %cst_91 {dimension_numbers = #tpu.dot_dimension_numbers<[1], [0], [0], [1], [0, 0, 1, 1], [], []>} : vector<24x32xf32>, vector<32x64xf32>, vector<24x64xf32> -> vector<24x64xf32>
    %c1_92 = arith.constant 1 : index
    %c0_93 = arith.constant 0 : index
    %c0_94 = arith.constant 0 : index
    %199 = vector.load %arg11[%c1_92, %c0_93, %c0_94] : memref<2x1x64xf32, #tpu.memory_space<vmem>>, vector<1x1x64xf32>
    %200 = vector.shape_cast %199 : vector<1x1x64xf32> to vector<1x64xf32>
    %201 = vector.broadcast %200 : vector<1x64xf32> to vector<24x64xf32>
    %202 = arith.addf %198, %201 : vector<24x64xf32>
    %cst_95 = arith.constant 0.000000e+00 : f32
    %203 = vector.broadcast %cst_95 : f32 to vector<24x64xf32>
    %204 = arith.maximumf %202, %203 : vector<24x64xf32>
    %c1_96 = arith.constant 1 : index
    %c0_97 = arith.constant 0 : index
    %c0_98 = arith.constant 0 : index
    %205 = vector.load %arg12[%c1_96, %c0_97, %c0_98] : memref<2x64x32xf32, #tpu.memory_space<vmem>>, vector<1x64x32xf32>
    %206 = vector.shape_cast %205 : vector<1x64x32xf32> to vector<64x32xf32>
    %cst_99 = arith.constant dense<0.000000e+00> : vector<24x32xf32>
    %207 = tpu.matmul %204, %206, %cst_99 {dimension_numbers = #tpu.dot_dimension_numbers<[1], [0], [0], [1], [0, 0, 1, 1], [], []>} : vector<24x64xf32>, vector<64x32xf32>, vector<24x32xf32> -> vector<24x32xf32>
    %c1_100 = arith.constant 1 : index
    %c0_101 = arith.constant 0 : index
    %c0_102 = arith.constant 0 : index
    %208 = vector.load %arg13[%c1_100, %c0_101, %c0_102] : memref<2x1x32xf32, #tpu.memory_space<vmem>>, vector<1x1x32xf32>
    %209 = vector.shape_cast %208 : vector<1x1x32xf32> to vector<1x32xf32>
    %210 = vector.broadcast %209 : vector<1x32xf32> to vector<24x32xf32>
    %211 = arith.addf %207, %210 : vector<24x32xf32>
    %212 = arith.addf %195, %211 : vector<24x32xf32>
    %c1_103 = arith.constant 1 : index
    %c0_104 = arith.constant 0 : index
    %c0_105 = arith.constant 0 : index
    %213 = vector.load %arg14[%c1_103, %c0_104, %c0_105] : memref<2x1x32xf32, #tpu.memory_space<vmem>>, vector<1x1x32xf32>
    %214 = vector.shape_cast %213 : vector<1x1x32xf32> to vector<1x32xf32>
    %c1_106 = arith.constant 1 : index
    %c0_107 = arith.constant 0 : index
    %c0_108 = arith.constant 0 : index
    %215 = vector.load %arg15[%c1_106, %c0_107, %c0_108] : memref<2x1x32xf32, #tpu.memory_space<vmem>>, vector<1x1x32xf32>
    %216 = vector.shape_cast %215 : vector<1x1x32xf32> to vector<1x32xf32>
    %cst_109 = arith.constant dense<0.000000e+00> : vector<24xf32>
    %217 = vector.multi_reduction <add>, %212, %cst_109 [1] : vector<24x32xf32> to vector<24xf32>
    %218 = vector.shape_cast %217 : vector<24xf32> to vector<24x1xf32>
    %cst_110 = arith.constant 3.200000e+01 : f32
    %219 = vector.broadcast %cst_110 : f32 to vector<24x1xf32>
    %220 = arith.divf %218, %219 : vector<24x1xf32>
    %221 = vector.broadcast %220 : vector<24x1xf32> to vector<24x32xf32>
    %222 = arith.subf %212, %221 : vector<24x32xf32>
    %223 = arith.mulf %222, %222 : vector<24x32xf32>
    %cst_111 = arith.constant dense<0.000000e+00> : vector<24xf32>
    %224 = vector.multi_reduction <add>, %223, %cst_111 [1] : vector<24x32xf32> to vector<24xf32>
    %225 = vector.shape_cast %224 : vector<24xf32> to vector<24x1xf32>
    %cst_112 = arith.constant 3.200000e+01 : f32
    %226 = vector.broadcast %cst_112 : f32 to vector<24x1xf32>
    %227 = arith.divf %225, %226 : vector<24x1xf32>
    %228 = vector.broadcast %220 : vector<24x1xf32> to vector<24x32xf32>
    %229 = arith.subf %212, %228 : vector<24x32xf32>
    %cst_113 = arith.constant 9.99999974E-6 : f32
    %230 = vector.broadcast %cst_113 : f32 to vector<24x1xf32>
    %231 = arith.addf %227, %230 : vector<24x1xf32>
    %232 = math.rsqrt %231 : vector<24x1xf32>
    %233 = vector.broadcast %232 : vector<24x1xf32> to vector<24x32xf32>
    %234 = arith.mulf %229, %233 : vector<24x32xf32>
    %235 = vector.broadcast %214 : vector<1x32xf32> to vector<24x32xf32>
    %236 = arith.mulf %234, %235 : vector<24x32xf32>
    %237 = vector.broadcast %216 : vector<1x32xf32> to vector<24x32xf32>
    %238 = arith.addf %236, %237 : vector<24x32xf32>
    %239 = vector.shape_cast %238 : vector<24x32xf32> to vector<8x3x32xf32>
    %c0_114 = arith.constant 0 : index
    %c0_115 = arith.constant 0 : index
    %240 = vector.load %arg16[%c0_114, %c0_115] : memref<3x32xf32, #tpu.memory_space<vmem>>, vector<3x32xf32>
    %241 = vector.shape_cast %240 : vector<3x32xf32> to vector<1x3x32xf32>
    %242 = vector.broadcast %241 : vector<1x3x32xf32> to vector<8x3x32xf32>
    %243 = arith.mulf %239, %242 : vector<8x3x32xf32>
    %cst_116 = arith.constant dense<0.000000e+00> : vector<8x3xf32>
    %244 = vector.multi_reduction <add>, %243, %cst_116 [2] : vector<8x3x32xf32> to vector<8x3xf32>
    %245 = vector.shape_cast %244 : vector<8x3xf32> to vector<8x3x1xf32>
    %cst_117 = arith.constant dense<0.000000e+00> : vector<8x1xf32>
    %246 = vector.multi_reduction <add>, %245, %cst_117 [1] : vector<8x3x1xf32> to vector<8x1xf32>
    %c0_118 = arith.constant 0 : index
    %c0_119 = arith.constant 0 : index
    %247 = vector.load %arg17[%c0_118, %c0_119] : memref<1x1xf32, #tpu.memory_space<vmem>>, vector<1x1xf32>
    %248 = vector.broadcast %247 : vector<1x1xf32> to vector<8x1xf32>
    %249 = arith.addf %246, %248 : vector<8x1xf32>
    %250 = tpu.iota {dimensions = array<i32: 1>} : vector<8x128xi32>
    %c0_i32 = arith.constant 0 : i32
    %251 = vector.broadcast %c0_i32 : i32 to vector<8x128xi32>
    %252 = arith.cmpi eq, %250, %251 : vector<8x128xi32>
    %cst_120 = arith.constant 0.000000e+00 : f32
    %253 = vector.shape_cast %249 : vector<8x1xf32> to vector<8x1xf32>
    %254 = vector.broadcast %253 : vector<8x1xf32> to vector<8x128xf32>
    %255 = vector.broadcast %cst_120 : f32 to vector<8x128xf32>
    %256 = arith.select %252, %254, %255 : vector<8x128xi1>, vector<8x128xf32>
    %c0_121 = arith.constant 0 : index
    %c0_122 = arith.constant 0 : index
    %257 = vector.load %arg18[%c0_121, %c0_122] : memref<8x128xf32, #tpu.memory_space<vmem>>, vector<8x128xf32>
    tpu.vector_store %arg18[%c0_121, %c0_122], %256 {strides = array<i32>} : memref<8x128xf32, #tpu.memory_space<vmem>>, vector<8x128xf32>,
    return
  }
  func.func @transform_0(%arg0: i32) -> (i32, i32) {
    %c0_i32 = arith.constant 0 : i32
    %c0_i32_0 = arith.constant 0 : i32
    return %arg0, %c0_i32 : i32, i32
  }
  func.func @transform_1(%arg0: i32) -> (i32, i32) {
    %c0_i32 = arith.constant 0 : i32
    %c0_i32_0 = arith.constant 0 : i32
    return %arg0, %c0_i32 : i32, i32
  }
  func.func @transform_2(%arg0: i32) -> (i32, i32) {
    %c0_i32 = arith.constant 0 : i32
    %c0_i32_0 = arith.constant 0 : i32
    %c0_i32_1 = arith.constant 0 : i32
    return %c0_i32, %c0_i32_0 : i32, i32
  }
  func.func @transform_3(%arg0: i32) -> (i32, i32, i32) {
    %c0_i32 = arith.constant 0 : i32
    %c0_i32_0 = arith.constant 0 : i32
    %c0_i32_1 = arith.constant 0 : i32
    %c0_i32_2 = arith.constant 0 : i32
    return %c0_i32, %c0_i32_0, %c0_i32_1 : i32, i32, i32
  }
  func.func @transform_4(%arg0: i32) -> (i32, i32, i32) {
    %c0_i32 = arith.constant 0 : i32
    %c0_i32_0 = arith.constant 0 : i32
    %c0_i32_1 = arith.constant 0 : i32
    %c0_i32_2 = arith.constant 0 : i32
    return %c0_i32, %c0_i32_0, %c0_i32_1 : i32, i32, i32
  }
  func.func @transform_5(%arg0: i32) -> (i32, i32, i32) {
    %c0_i32 = arith.constant 0 : i32
    %c0_i32_0 = arith.constant 0 : i32
    %c0_i32_1 = arith.constant 0 : i32
    %c0_i32_2 = arith.constant 0 : i32
    return %c0_i32, %c0_i32_0, %c0_i32_1 : i32, i32, i32
  }
  func.func @transform_6(%arg0: i32) -> (i32, i32, i32) {
    %c0_i32 = arith.constant 0 : i32
    %c0_i32_0 = arith.constant 0 : i32
    %c0_i32_1 = arith.constant 0 : i32
    %c0_i32_2 = arith.constant 0 : i32
    return %c0_i32, %c0_i32_0, %c0_i32_1 : i32, i32, i32
  }
  func.func @transform_7(%arg0: i32) -> (i32, i32, i32) {
    %c0_i32 = arith.constant 0 : i32
    %c0_i32_0 = arith.constant 0 : i32
    %c0_i32_1 = arith.constant 0 : i32
    %c0_i32_2 = arith.constant 0 : i32
    return %c0_i32, %c0_i32_0, %c0_i32_1 : i32, i32, i32
  }
  func.func @transform_8(%arg0: i32) -> (i32, i32, i32) {
    %c0_i32 = arith.constant 0 : i32
    %c0_i32_0 = arith.constant 0 : i32
    %c0_i32_1 = arith.constant 0 : i32
    %c0_i32_2 = arith.constant 0 : i32
    return %c0_i32, %c0_i32_0, %c0_i32_1 : i32, i32, i32
  }
  func.func @transform_9(%arg0: i32) -> (i32, i32, i32) {
    %c0_i32 = arith.constant 0 : i32
    %c0_i32_0 = arith.constant 0 : i32
    %c0_i32_1 = arith.constant 0 : i32
    %c0_i32_2 = arith.constant 0 : i32
    return %c0_i32, %c0_i32_0, %c0_i32_1 : i32, i32, i32
  }
  func.func @transform_10(%arg0: i32) -> (i32, i32, i32) {
    %c0_i32 = arith.constant 0 : i32
    %c0_i32_0 = arith.constant 0 : i32
    %c0_i32_1 = arith.constant 0 : i32
    %c0_i32_2 = arith.constant 0 : i32
    return %c0_i32, %c0_i32_0, %c0_i32_1 : i32, i32, i32
  }
  func.func @transform_11(%arg0: i32) -> (i32, i32, i32) {
    %c0_i32 = arith.constant 0 : i32
    %c0_i32_0 = arith.constant 0 : i32
    %c0_i32_1 = arith.constant 0 : i32
    %c0_i32_2 = arith.constant 0 : i32
    return %c0_i32, %c0_i32_0, %c0_i32_1 : i32, i32, i32
  }
  func.func @transform_12(%arg0: i32) -> (i32, i32, i32) {
    %c0_i32 = arith.constant 0 : i32
    %c0_i32_0 = arith.constant 0 : i32
    %c0_i32_1 = arith.constant 0 : i32
    %c0_i32_2 = arith.constant 0 : i32
    return %c0_i32, %c0_i32_0, %c0_i32_1 : i32, i32, i32
  }
  func.func @transform_13(%arg0: i32) -> (i32, i32, i32) {
    %c0_i32 = arith.constant 0 : i32
    %c0_i32_0 = arith.constant 0 : i32
    %c0_i32_1 = arith.constant 0 : i32
    %c0_i32_2 = arith.constant 0 : i32
    return %c0_i32, %c0_i32_0, %c0_i32_1 : i32, i32, i32
  }
  func.func @transform_14(%arg0: i32) -> (i32, i32, i32) {
    %c0_i32 = arith.constant 0 : i32
    %c0_i32_0 = arith.constant 0 : i32
    %c0_i32_1 = arith.constant 0 : i32
    %c0_i32_2 = arith.constant 0 : i32
    return %c0_i32, %c0_i32_0, %c0_i32_1 : i32, i32, i32
  }
  func.func @transform_15(%arg0: i32) -> (i32, i32) {
    %c0_i32 = arith.constant 0 : i32
    %c0_i32_0 = arith.constant 0 : i32
    %c0_i32_1 = arith.constant 0 : i32
    return %c0_i32, %c0_i32_0 : i32, i32
  }
  func.func @transform_16(%arg0: i32) -> (i32, i32) {
    %c0_i32 = arith.constant 0 : i32
    %c0_i32_0 = arith.constant 0 : i32
    %c0_i32_1 = arith.constant 0 : i32
    return %c0_i32, %c0_i32_0 : i32, i32
  }
  func.func @transform_17(%arg0: i32) -> (i32, i32) {
    %c0_i32 = arith.constant 0 : i32
    %c0_i32_0 = arith.constant 0 : i32
    return %arg0, %c0_i32 : i32, i32
  }
}

</mosaic_0001>

<bundles_post_ra>
// kernel: tpu_custom_call.1
= control target key start
LH: loop header
LB: loop body
LE: loop exit
PB: predicated region body
PF: predicated region fallthrough
CT: control target
= control target key end

     0   :  { %s13255_s0 = inlined_call_operand.vmem [shape: f32[48,8], index: 0, kind: input, shape index: {}]   ;;  %s13256_s1 = inlined_call_operand.vmem [shape: f32[48,32], index: 1, kind: input, shape index: {}]   ;;  %s13257_s2 = inlined_call_operand.vmem [shape: f32[8,32], index: 2, kind: input, shape index: {}]   ;;  %s13258_s3 = inlined_call_operand.vmem [shape: f32[2,32,96], index: 3, kind: input, shape index: {}]   ;;  %s13259_s4 = inlined_call_operand.vmem [shape: f32[2,1,96], index: 4, kind: input, shape index: {}]   ;;  %s13260_s5 = inlined_call_operand.vmem [shape: f32[2,32,32], index: 5, kind: input, shape index: {}]   ;;  %s13261_s6 = inlined_call_operand.vmem [shape: f32[2,1,32], index: 6, kind: input, shape index: {}]   ;;  %s13262_s7 = inlined_call_operand.vmem [shape: f32[2,1,32], index: 7, kind: input, shape index: {}]   ;;  %s13263_s8 = inlined_call_operand.vmem [shape: f32[2,1,32], index: 8, kind: input, shape index: {}]   ;;  %s13264_s9 = inlined_call_operand.vmem [shape: f32[2,32,64], index: 9, kind: input, shape index: {}]   ;;  %s13265_s10 = inlined_call_operand.vmem [shape: f32[2,1,64], index: 10, kind: input, shape index: {}]   ;;  %s13266_s11 = inlined_call_operand.vmem [shape: f32[2,64,32], index: 11, kind: input, shape index: {}]   ;;  %s13267_s12 = inlined_call_operand.vmem [shape: f32[2,1,32], index: 12, kind: input, shape index: {}]   ;;  %s13268_s13 = inlined_call_operand.vmem [shape: f32[2,1,32], index: 13, kind: input, shape index: {}]   ;;  %s13269_s14 = inlined_call_operand.vmem [shape: f32[2,1,32], index: 14, kind: input, shape index: {}]   ;;  %s13270_s15 = inlined_call_operand.vmem [shape: f32[3,32], index: 15, kind: input, shape index: {}]   ;;  %s13271_s16 = inlined_call_operand.<no memory space> [shape: f32[1,1], index: 16, kind: input, shape index: {}]   ;;  %s13272_s17 = inlined_call_operand.hbm [shape: f32[16,128], index: 17, kind: output, shape index: {}]  }
   0x1   :  { %13453 = sst [smem:[#allocation87_spill]] %s13255_s0  ;;  %v22_v0 = vstv %s13271_s16 }
   0x2   :  { %13454 = sst [smem:[#allocation88_spill]] %s13256_s1  ;;  %23 = vst [vmem:[#allocation2] sm:$0x1] %v22_v0 }
   0x3   :  { %13455 = sst [smem:[#allocation89_spill]] %s13257_s2 }
   0x4   :  { %13456 = sst [smem:[#allocation90_spill]] %s13258_s3 }
   0x5   :  { %24 = vsyncpa [#allocation4], 0 }
   0x6   :  { %26 = vsyncpa [#allocation4 + $0x1], 0  ;;  %s9322_s26 = smov 0   ;;  %s9324_s27 = smov 0  }
   0x7   :  { %s9326_s28 = smov 0   ;;  %s9328_s29 = smov 0  }
   0x8 LB: > { %13457 = sst [smem:[#allocation6_spill]] %s9213_s28  ;;  %s9343_s16 = sadd.s32 4294967295, %s9217_s29   ;;  %s9217_s29 = sphi %s9328_s29, %s13851_s29   ;;  %s9213_s28 = sphi %s9326_s28, %s13848_s28   ;;  %s9209_s27 = sphi %s9324_s27, %s13850_s27   ;;  %s9205_s26 = sphi %s9322_s26, %s13849_s26  }
   0x9   : > { %s8478_s0 = sadd.s32 4294967294, %s9217_s29   ;;  %s9347_s30 = sadd.s32 1, %s9217_s29  }
   0xa   : > { %s406_s18 = sadd.s32 1, %s9213_s28  ;;  %s403_s19 = ssub.s32 %s9217_s29, %s9347_s30 }
   0xb   : > { %p416_p0 = scmp.ne.s32.totalorder %s9213_s28, %s9209_s27  ;;  %p404_p1 = scmp.eq.s32.totalorder %s403_s19, 0 }
   0xc   : > { %p417_p2 = scmp.eq.s32.totalorder %s9343_s16, 1  ;;  %p422_p3 = scmp.ne.s32.totalorder %s9209_s27, %s9205_s26 }
   0xd   : > { %p423_p4 = scmp.eq.s32.totalorder %s8478_s0, 1  ;;  %p8481_p7 = scmp.ge.s32.totalorder %s9217_s29, 1 }
   0xe   : > { %s9358_s1 = scalar_select %p404_p1, %s9213_s28, %s406_s18  }
   0xf   : > { %p9360_p5 = por %p417_p2, %p416_p0  ;;  %p9364_p6 = por %p423_p4, %p422_p3 }
  0x10   : > { %13458 = sst [smem:[#allocation7_spill]] %s9358_s1  ;;  %p504_p8 = scmp.lt.s32.totalorder %s9217_s29, 3 }
  0x12   : > { %p505_p9 = pnand %p8481_p7, %p504_p8 }
  0x14   : > { %508 = sbr.rel (%p505_p9) target bundleno = 5984 (0x1760), region = 88 }
  0x19   : > { %s13461_s2 = sld [smem:[#allocation89_spill]]  ;;  %s561_s24 = smul.u32 3, %s9343_s16  ;;  %vm580_vm0 = vcmask 64512   ;;  %vm624_vm1 = vcmask 261120   ;;  %v9410_v18 = vld [vmem:[%s13259_s4] ss:$0 sm:$0xff] }
  0x1a   : > { %s13462_s3 = sld [smem:[#allocation90_spill]]  ;;  %s13357_s25 = smov 120   ;;  %vm2044_vm2 = vcmask 18432   ;;  %vm2825_vm10 = vcmask 1042432   ;;  %vm2821_vm11 = vcmask 23552  }
  0x1b   : > { %p562_p10 = scmp.lt.s32.totalorder %s561_s24, 5  ;;  %s13463_s23 = sld [smem:[#allocation87_spill]] }
  0x1c   : > { %s13464_s22 = sld [smem:[#allocation88_spill]]  ;;  %s13361_s0 = smov 112  }
  0x1d   : > { %s13853_s24 = smov (!%p562_p10, %s561_s24), 5  ;;  %s13353_s18 = smov 96  }
  0x1e   : > { %s8483_s1 = sshll.u32 %s13853_s24, 3  ;;  %s13355_s24 = smov 104  }
  0x1f   : > { %v576_v1 = vld [vmem:[%s13461_s2] sm:$0xff]  ;;  %s13351_s28 = smov 64   ;;  %s13359_s19 = smov 8  }
  0x20   : > { %v619_v2 = vld [vmem:[%s13462_s3 + $0x18] sm:$0xff]  ;;  %v618_v3 = vld [vmem:[%s13462_s3 + $0x10] sm:$0xff]  ;;  %605 = vmatpush.msra.mxu0 %v576_v1  ;;  %v617_v7 = vld [vmem:[%s13462_s3 + $0x8] sm:$0xff] }
  0x21   : > { %646 = vmatpush.msra.mxu1 %v619_v2  ;;  %s565_s2 = scalar_lea.vmem %s13463_s23, %s8483_s1  ;;  %v616_v8 = vld [vmem:[%s13462_s3] sm:$0xff] }
  0x22   : > { %v573_v4 = vld [vmem:[%s565_s2] sm:$0xff]  ;;  %v574_v5 = vld [vmem:[%s565_s2 + $0x8] sm:$0xff]  ;;  %v575_v6 = vld [vmem:[%s565_s2 + $0x10] sm:$0xff]  ;;  %s571_s23 = scalar_lea.vmem %s13464_s22, %s8483_s1  ;;  %s13365_s22 = smov 16  }
  0x23   : > { %647 = vmatpush.msra.mxu1 %v618_v3  ;;  %8485 = vmatmul.msk.f32.vlgmr.msra.gmra.mxu0 %vm580_vm0, %v573_v4  ;;  %v577_v9 = vld [vmem:[%s571_s23] sm:$0xff]  ;;  %v578_v12 = vld [vmem:[%s571_s23 + $0x8] sm:$0xff]  ;;  %v579_v15 = vld [vmem:[%s571_s23 + $0x10] sm:$0xff]  ;;  %s13363_s23 = smov 24   ;;  %s13841_s2 = smov 16  }
  0x24   : > { %s13842_s1 = smov 24  }
  0x25   : > { %648 = vmatpush.msra.mxu1 %v617_v7 }
  0x27   : > { %649 = vmatpush.msra.mxu1 %v616_v8 }
  0x2b   : > { %8486 = vmatmul.msk.f32.gmra.mxu0 %vm580_vm0, %v574_v5 }
  0x33   : > { %8487 = vmatmul.msk.f32.gmra.mxu0 %vm580_vm0, %v575_v6 }
  0xa0   : > { %v607_v10 = vpop.f32.mrf.mxu0 }
  0xa1   : > { %v9395_v11 = vadd.f32 %v607_v10, %v577_v9 }
  0xa3   : > { %13465 = vst [vmem:[#allocation8_spill] sm:$0xff] %v9395_v11  ;;  %8488 = vmatmul.msk.f32.vlgmr.msra.gmra.mxu1 %vm624_vm1, %v9395_v11 }
  0xa8   : > { %v610_v13 = vpop.f32.mrf.mxu0 }
  0xa9   : > { %v9399_v14 = vadd.f32 %v610_v13, %v578_v12 }
  0xab   : > { %13466 = vst [vmem:[#allocation9_spill] sm:$0xff] %v9399_v14  ;;  %8489 = vmatmul.msk.f32.gmra.mxu1 %vm624_vm1, %v9399_v14 }
  0xb0   : > { %v613_v16 = vpop.f32.mrf.mxu0 }
  0xb1   : > { %v9403_v17 = vadd.f32 %v613_v16, %v579_v15 }
  0xb3   : > { %13467 = vst [vmem:[#allocation10_spill] sm:$0xff] %v9403_v17  ;;  %8490 = vmatmul.msk.f32.gmra.mxu1 %vm624_vm1, %v9403_v17 }
 0x120   : > { %v651_v19 = vpop.f32.mrf.mxu1 }
 0x121   : > { %v9413_v20 = vadd.f32 %v9410_v18, %v651_v19 }
 0x123   : > { %828 = vst [vmem:[#allocation1] ss:$9 sm:$0xff] %v9413_v20  ;;  %684 = vrot.lane.b32.xlu0 %v9413_v20, %s13357_s25  ;;  %v9419_v21 = vrot.slane %v9413_v20, 4  ;;  %v9422_v22 = vrot.slane %v9413_v20, 2  ;;  %v9425_v23 = vrot.slane %v9413_v20, 1  ;;  %v9436_v24 = vrot.slane %v9413_v20, 5 }
 0x124   : > { %v9439_v25 = vrot.slane %v9413_v20, 3  ;;  %v9453_v27 = vrot.slane %v9413_v20, 7  ;;  %v9473_v30 = vrot.slane %v9413_v20, 6 }
 0x125   : > { %13468 = vst [vmem:[#allocation11_spill] sm:$0xff] %v9419_v21  ;;  %692 = vrot.lane.b32.xlu2 %v9419_v21, %s13357_s25  ;;  %688 = vrot.lane.b32.xlu1 %v9422_v22, %s13357_s25 }
 0x126   : > { %830 = vst [vmem:[#allocation1 + $0x1] ss:$9 sm:$0xff] %v9425_v23 }
 0x127   : > { %832 = vst [vmem:[#allocation1 + $0x2] ss:$9 sm:$0xff] %v9422_v22 }
 0x128   : > { %13469 = vst [vmem:[#allocation12_spill] sm:$0xff] %v9436_v24  ;;  %v654_v31 = vpop.f32.mrf.mxu1 }
 0x129   : > { %13470 = vst [vmem:[#allocation13_spill] sm:$0xff] %v9453_v27  ;;  %v9485_v32 = vadd.f32 %v9410_v18, %v654_v31 }
 0x12a   : > { %13471 = vst [vmem:[#allocation14_spill] sm:$0xff] %v9473_v30 }
 0x12b   : > { %732 = vrot.lane.b32.xlu0 %v9413_v20, %s13361_s0  ;;  %13472 = vst [vmem:[#allocation15_spill] sm:$0xff] %v9485_v32  ;;  %v9512_v35 = vrot.slane %v9485_v32, 1  ;;  %v9519_v36 = vrot.slane %v9485_v32, 2  ;;  %v9522_v37 = vrot.slane %v9485_v32, 3  ;;  %v9547_v40 = vrot.slane %v9485_v32, 4 }
 0x12c   : > { %v9550_v41 = vrot.slane %v9485_v32, 5  ;;  %v9553_v42 = vrot.slane %v9485_v32, 6  ;;  %v9567_v44 = vrot.slane %v9485_v32, 7 }
 0x12d   : > { %694 = vrot.lane.b32.xlu2 %v9436_v24, %s13357_s25  ;;  %690 = vrot.lane.b32.xlu1 %v9439_v25, %s13357_s25  ;;  %13473 = vst [vmem:[#allocation16_spill] sm:$0xff] %v9512_v35 }
 0x12e   : > { %v9441_v26 = vld [vmem:[#allocation1] sm:$0xff]  ;;  %13474 = vst [vmem:[#allocation17_spill] sm:$0xff] %v9519_v36 }
 0x12f   : > { %838 = vst [vmem:[#allocation1 + $0x2] ss:$9 sm:$0xff] %v9422_v22 }
 0x130   : > { %834 = vst [vmem:[#allocation1] ss:$9 sm:$0xff] %v9413_v20  ;;  %v657_v46 = vpop.f32.mrf.mxu1 }
 0x131   : > { %836 = vst [vmem:[#allocation1 + $0x1] ss:$9 sm:$0xff] %v9425_v23  ;;  %v9581_v47 = vadd.f32 %v9410_v18, %v657_v46 }
 0x132   : > { %13475 = vst [vmem:[#allocation18_spill] sm:$0xff] %v9522_v37 }
 0x133   : > { %780 = vrot.lane.b32.xlu0 %v9413_v20, %s13355_s24  ;;  %13476 = vst [vmem:[#allocation19_spill] sm:$0xff] %v9547_v40  ;;  %v9590_v48 = vrot.slane %v9581_v47, 1  ;;  %v9623_v55 = vrot.slane %v9581_v47, 2  ;;  %v9626_v56 = vrot.slane %v9581_v47, 3  ;;  %v9629_v57 = vrot.slane %v9581_v47, 4 }
 0x134   : > { %13477 = vst [vmem:[#allocation20_spill] sm:$0xff] %v9550_v41  ;;  %v9668_v2 = vrot.slane %v9581_v47, 5  ;;  %v9677_v4 = vrot.slane %v9581_v47, 6  ;;  %v9680_v5 = vrot.slane %v9581_v47, 7 }
 0x135   : > { %736 = vrot.lane.b32.xlu2 %v9422_v22, %s13361_s0  ;;  %698 = vrot.lane.b32.xlu1 %v9453_v27, %s13357_s25  ;;  %13478 = vst [vmem:[#allocation21_spill] sm:$0xff] %v9553_v42 }
 0x136   : > { %13479 = vst [vmem:[#allocation22_spill] sm:$0xff] %v9567_v44 }
 0x137   : > { %13480 = vst [vmem:[#allocation23_spill] sm:$0xff] %v9581_v47 }
 0x138   : > { %v9459_v28 = vld [vmem:[#allocation1] sm:$0xff]  ;;  %13481 = vst [vmem:[#allocation24_spill] sm:$0xff] %v9590_v48 }
 0x139   : > { %866 = vst [vmem:[#allocation1] ss:$9 sm:$0xff] %v9439_v25 }
 0x13a   : > { %868 = vst [vmem:[#allocation1 + $0x1] ss:$9 sm:$0xff] %v9419_v21 }
 0x13b   : > { %870 = vst [vmem:[#allocation1 + $0x2] ss:$9 sm:$0xff] %v9436_v24  ;;  %686 = vrot.lane.b32.xlu0 %v9425_v23, %s13357_s25 }
 0x13c   : > { %13486 = vst [vmem:[#allocation29_spill] sm:$0xff] %v9623_v55 }
 0x13d   : > { %742 = vrot.lane.b32.xlu2 %v9436_v24, %s13361_s0  ;;  %734 = vrot.lane.b32.xlu1 %v9425_v23, %s13361_s0  ;;  %13487 = vst [vmem:[#allocation30_spill] sm:$0xff] %v9626_v56 }
 0x13e   : > { %13488 = vst [vmem:[#allocation31_spill] sm:$0xff] %v9629_v57 }
 0x13f   : > { %13493 = vst [vmem:[#allocation36_spill] sm:$0xff] %v9668_v2 }
 0x140   : > { %13495 = vst [vmem:[#allocation38_spill] sm:$0xff] %v9677_v4 }
 0x141   : > { %13496 = vst [vmem:[#allocation39_spill] sm:$0xff] %v9680_v5 }
 0x142   : > { %v9470_v29 = vld [vmem:[#allocation1] sm:$0xff] }
 0x143   : > { %876 = vst [vmem:[#allocation1 + $0x2] ss:$9 sm:$0xff] %v9436_v24  ;;  %696 = vrot.lane.b32.xlu0 %v9473_v30, %s13357_s25 }
 0x144   : > { %872 = vst [vmem:[#allocation1] ss:$9 sm:$0xff] %v9439_v25 }
 0x145   : > { %874 = vst [vmem:[#allocation1 + $0x1] ss:$9 sm:$0xff] %v9419_v21  ;;  %784 = vrot.lane.b32.xlu2 %v9422_v22, %s13355_s24  ;;  %740 = vrot.lane.b32.xlu1 %v9419_v21, %s13361_s0 }
 0x14b   : > { %738 = vrot.lane.b32.xlu0 %v9439_v25, %s13361_s0 }
 0x14c   : > { %v9487_v33 = vld [vmem:[#allocation1] sm:$0xff] }
 0x14d   : > { %906 = vst [vmem:[#allocation1 + $0x1] ss:$9 sm:$0xff] %v9453_v27  ;;  %790 = vrot.lane.b32.xlu2 %v9436_v24, %s13355_s24  ;;  %746 = vrot.lane.b32.xlu1 %v9453_v27, %s13361_s0 }
 0x14e   : > { %908 = vst [vmem:[#allocation1 + $0x2] ss:$9 sm:$0xff] %v9485_v32 }
 0x14f   : > { %904 = vst [vmem:[#allocation1] ss:$9 sm:$0xff] %v9473_v30 }
 0x153   : > { %744 = vrot.lane.b32.xlu0 %v9473_v30, %s13361_s0 }
 0x155   : > { %700 = vrot.lane.b32.xlu2 %v9485_v32, %s13357_s25  ;;  %782 = vrot.lane.b32.xlu1 %v9425_v23, %s13355_s24 }
 0x156   : > { %v9500_v34 = vld [vmem:[#allocation1] sm:$0xff] }
 0x157   : > { %910 = vst [vmem:[#allocation1] ss:$9 sm:$0xff] %v9473_v30 }
 0x158   : > { %912 = vst [vmem:[#allocation1 + $0x1] ss:$9 sm:$0xff] %v9453_v27 }
 0x159   : > { %914 = vst [vmem:[#allocation1 + $0x2] ss:$9 sm:$0xff] %v9485_v32 }
 0x15b   : > { %786 = vrot.lane.b32.xlu0 %v9439_v25, %s13355_s24 }
 0x15d   : > { %748 = vrot.lane.b32.xlu2 %v9485_v32, %s13361_s0  ;;  %788 = vrot.lane.b32.xlu1 %v9419_v21, %s13355_s24 }
 0x160   : > { %v9524_v38 = vld [vmem:[#allocation1] sm:$0xff] }
 0x161   : > { %942 = vst [vmem:[#allocation1] ss:$9 sm:$0xff] %v9512_v35 }
 0x162   : > { %944 = vst [vmem:[#allocation1 + $0x1] ss:$9 sm:$0xff] %v9519_v36 }
 0x163   : > { %946 = vst [vmem:[#allocation1 + $0x2] ss:$9 sm:$0xff] %v9522_v37  ;;  %792 = vrot.lane.b32.xlu0 %v9473_v30, %s13355_s24 }
 0x165   : > { %796 = vrot.lane.b32.xlu2 %v9485_v32, %s13355_s24  ;;  %794 = vrot.lane.b32.xlu1 %v9453_v27, %s13355_s24 }
 0x16a   : > { %v9535_v39 = vld [vmem:[#allocation1] sm:$0xff] }
 0x16b   : > { %948 = vst [vmem:[#allocation1] ss:$9 sm:$0xff] %v9512_v35  ;;  %702 = vrot.lane.b32.xlu0 %v9512_v35, %s13357_s25 }
 0x16c   : > { %950 = vst [vmem:[#allocation1 + $0x1] ss:$9 sm:$0xff] %v9519_v36 }
 0x16d   : > { %952 = vst [vmem:[#allocation1 + $0x2] ss:$9 sm:$0xff] %v9522_v37  ;;  %706 = vrot.lane.b32.xlu2 %v9522_v37, %s13357_s25  ;;  %704 = vrot.lane.b32.xlu1 %v9519_v36, %s13357_s25 }
 0x173   : > { %708 = vrot.lane.b32.xlu0 %v9547_v40, %s13357_s25 }
 0x174   : > { %v9555_v43 = vld [vmem:[#allocation1] sm:$0xff] }
 0x175   : > { %980 = vst [vmem:[#allocation1] ss:$9 sm:$0xff] %v9547_v40  ;;  %712 = vrot.lane.b32.xlu2 %v9553_v42, %s13357_s25  ;;  %710 = vrot.lane.b32.xlu1 %v9550_v41, %s13357_s25 }
 0x176   : > { %982 = vst [vmem:[#allocation1 + $0x1] ss:$9 sm:$0xff] %v9550_v41 }
 0x177   : > { %984 = vst [vmem:[#allocation1 + $0x2] ss:$9 sm:$0xff] %v9553_v42 }
 0x17b   : > { %714 = vrot.lane.b32.xlu0 %v9567_v44, %s13357_s25 }
 0x17d   : > { %754 = vrot.lane.b32.xlu2 %v9522_v37, %s13361_s0  ;;  %752 = vrot.lane.b32.xlu1 %v9519_v36, %s13361_s0 }
 0x17e   : > { %v9571_v45 = vld [vmem:[#allocation1] sm:$0xff] }
 0x17f   : > { %986 = vst [vmem:[#allocation1] ss:$9 sm:$0xff] %v9547_v40  ;;  %v9595_v50 = vpop.permute.xlu2 %692 }
 0x180   : > { %988 = vst [vmem:[#allocation1 + $0x1] ss:$9 sm:$0xff] %v9550_v41 }
 0x181   : > { %990 = vst [vmem:[#allocation1 + $0x2] ss:$9 sm:$0xff] %v9553_v42 }
 0x182   : > { %13482 = vst [vmem:[#allocation25_spill] sm:$0xff] %v9595_v50 }
 0x183   : > { %750 = vrot.lane.b32.xlu0 %v9512_v35, %s13361_s0 }
 0x185   : > { %760 = vrot.lane.b32.xlu2 %v9553_v42, %s13361_s0  ;;  %758 = vrot.lane.b32.xlu1 %v9550_v41, %s13361_s0 }
 0x187   : > { %v9608_v52 = vpop.permute.xlu2 %694 }
 0x188   : > { %v9592_v49 = vld [vmem:[#allocation1] sm:$0xff]  ;;  %13483 = vst [vmem:[#allocation26_spill] sm:$0xff] %v9608_v52 }
 0x189   : > { %1018 = vst [vmem:[#allocation1] ss:$9 sm:$0xff] %v9567_v44 }
 0x18a   : > { %1020 = vst [vmem:[#allocation1 + $0x1] ss:$9 sm:$0xff] %v9581_v47 }
 0x18b   : > { %1022 = vst [vmem:[#allocation1 + $0x2] ss:$9 sm:$0xff] %v9590_v48  ;;  %756 = vrot.lane.b32.xlu0 %v9547_v40, %s13361_s0 }
 0x18d   : > { %802 = vrot.lane.b32.xlu2 %v9522_v37, %s13355_s24  ;;  %800 = vrot.lane.b32.xlu1 %v9519_v36, %s13355_s24 }
 0x18f   : > { %v9635_v59 = vpop.permute.xlu2 %736 }
 0x190   : > { %13489 = vst [vmem:[#allocation32_spill] sm:$0xff] %v9635_v59 }
 0x192   : > { %v9605_v51 = vld [vmem:[#allocation1] sm:$0xff] }
 0x193   : > { %1026 = vst [vmem:[#allocation1 + $0x1] ss:$9 sm:$0xff] %v9581_v47  ;;  %762 = vrot.lane.b32.xlu0 %v9567_v44, %s13361_s0 }
 0x194   : > { %1024 = vst [vmem:[#allocation1] ss:$9 sm:$0xff] %v9567_v44 }
 0x195   : > { %1028 = vst [vmem:[#allocation1 + $0x2] ss:$9 sm:$0xff] %v9590_v48  ;;  %v9614_v53 = vpop.permute.xlu0 %684  ;;  %808 = vrot.lane.b32.xlu2 %v9553_v42, %s13355_s24  ;;  %806 = vrot.lane.b32.xlu1 %v9550_v41, %s13355_s24 }
 0x196   : > { %13484 = vst [vmem:[#allocation27_spill] sm:$0xff] %v9614_v53 }
 0x197   : > { %v9620_v54 = vpop.permute.xlu1 %688  ;;  %v9658_v0 = vpop.permute.xlu2 %742 }
 0x198   : > { %13485 = vst [vmem:[#allocation28_spill] sm:$0xff] %v9620_v54 }
 0x199   : > { %13491 = vst [vmem:[#allocation34_spill] sm:$0xff] %v9658_v0 }
 0x19b   : > { %798 = vrot.lane.b32.xlu0 %v9512_v35, %s13355_s24 }
 0x19c   : > { %v9633_v58 = vld [vmem:[#allocation1] sm:$0xff] }
 0x19d   : > { %1056 = vst [vmem:[#allocation1] ss:$9 sm:$0xff] %v9623_v55  ;;  %v9638_v60 = vpop.permute.xlu0 %732  ;;  %810 = vrot.lane.b32.xlu2 %v9567_v44, %s13355_s24  ;;  %716 = vrot.lane.b32.xlu1 %v9581_v47, %s13357_s25 }
 0x19e   : > { %1058 = vst [vmem:[#allocation1 + $0x1] ss:$9 sm:$0xff] %v9626_v56 }
 0x19f   : > { %1060 = vst [vmem:[#allocation1 + $0x2] ss:$9 sm:$0xff] %v9629_v57  ;;  %v9646_v61 = vpop.permute.xlu1 %690  ;;  %v9686_v8 = vpop.permute.xlu2 %784 }
 0x1a0   : > { %13490 = vst [vmem:[#allocation33_spill] sm:$0xff] %v9646_v61 }
 0x1a3   : > { %804 = vrot.lane.b32.xlu0 %v9547_v40, %s13355_s24 }
 0x1a5   : > { %v9650_v62 = vpop.permute.xlu0 %780  ;;  %718 = vrot.lane.b32.xlu2 %v9590_v48, %s13357_s25  ;;  %764 = vrot.lane.b32.xlu1 %v9581_v47, %s13361_s0 }
 0x1a6   : > { %v9656_v63 = vld [vmem:[#allocation1] sm:$0xff] }
 0x1a7   : > { %1066 = vst [vmem:[#allocation1 + $0x2] ss:$9 sm:$0xff] %v9629_v57  ;;  %v9661_v1 = vpop.permute.xlu1 %698  ;;  %v9703_v13 = vpop.permute.xlu2 %790 }
 0x1a8   : > { %13492 = vst [vmem:[#allocation35_spill] sm:$0xff] %v9661_v1 }
 0x1a9   : > { %1062 = vst [vmem:[#allocation1] ss:$9 sm:$0xff] %v9623_v55 }
 0x1aa   : > { %1064 = vst [vmem:[#allocation1 + $0x1] ss:$9 sm:$0xff] %v9626_v56 }
 0x1ab   : > { %812 = vrot.lane.b32.xlu0 %v9581_v47, %s13355_s24 }
 0x1ad   : > { %724 = vrot.lane.b32.xlu2 %v9629_v57, %s13357_s25  ;;  %722 = vrot.lane.b32.xlu1 %v9626_v56, %s13357_s25  ;;  %v9674_v3 = vpop.permute.xlu0 %686 }
 0x1ae   : > { %13494 = vst [vmem:[#allocation37_spill] sm:$0xff] %v9674_v3 }
 0x1af   : > { %v9682_v6 = vpop.permute.xlu1 %734  ;;  %v9720_v19 = vpop.permute.xlu2 %700 }
 0x1b0   : > { %13497 = vst [vmem:[#allocation40_spill] sm:$0xff] %v9682_v6 }
 0x1b1   : > { %v9684_v7 = vld [vmem:[#allocation1] sm:$0xff]  ;;  %13502 = vst [vmem:[#allocation45_spill] sm:$0xff] %v9720_v19 }
 0x1b2   : > { %1094 = vst [vmem:[#allocation1] ss:$9 sm:$0xff] %v9668_v2 }
 0x1b3   : > { %1096 = vst [vmem:[#allocation1 + $0x1] ss:$9 sm:$0xff] %v9677_v4  ;;  %720 = vrot.lane.b32.xlu0 %v9623_v55, %s13357_s25 }
 0x1b4   : > { %1098 = vst [vmem:[#allocation1 + $0x2] ss:$9 sm:$0xff] %v9680_v5 }
 0x1b5   : > { %730 = vrot.lane.b32.xlu2 %v9680_v5, %s13357_s25  ;;  %728 = vrot.lane.b32.xlu1 %v9677_v4, %s13357_s25  ;;  %v9697_v9 = vpop.permute.xlu0 %696 }
 0x1b6   : > { %13498 = vst [vmem:[#allocation41_spill] sm:$0xff] %v9697_v9 }
 0x1b7   : > { %v9699_v10 = vpop.permute.xlu1 %740  ;;  %v9742_v14 = vpop.permute.xlu2 %748 }
 0x1b8   : > { %13499 = vst [vmem:[#allocation42_spill] sm:$0xff] %v9699_v10 }
 0x1b9   : > { %13504 = vst [vmem:[#allocation47_spill] sm:$0xff] %v9742_v14 }
 0x1bb   : > { %v9701_v12 = vld [vmem:[#allocation1] sm:$0xff]  ;;  %726 = vrot.lane.b32.xlu0 %v9668_v2, %s13357_s25  ;;  %s8797_s25 = sshll.u32 %s9343_s16, 3 }
 0x1bc   : > { %1100 = vst [vmem:[#allocation1] ss:$9 sm:$0xff] %v9668_v2 }
 0x1bd   : > { %1102 = vst [vmem:[#allocation1 + $0x1] ss:$9 sm:$0xff] %v9677_v4  ;;  %766 = vrot.lane.b32.xlu2 %v9590_v48, %s13361_s0  ;;  %770 = vrot.lane.b32.xlu1 %v9626_v56, %s13361_s0  ;;  %v9714_v15 = vpop.permute.xlu0 %738 }
 0x1be   : > { %1104 = vst [vmem:[#allocation1 + $0x2] ss:$9 sm:$0xff] %v9680_v5 }
 0x1bf   : > { %13500 = vst [vmem:[#allocation43_spill] sm:$0xff] %v9714_v15  ;;  %v9716_v16 = vpop.permute.xlu1 %746 }
 0x1c0   : > { %13501 = vst [vmem:[#allocation44_spill] sm:$0xff] %v9716_v16 }
 0x1c3   : > { %768 = vrot.lane.b32.xlu0 %v9623_v55, %s13361_s0 }
 0x1c5   : > { %v1105_v18 = vld [vmem:[#allocation1] sm:$0xff]  ;;  %772 = vrot.lane.b32.xlu2 %v9629_v57, %s13361_s0  ;;  %776 = vrot.lane.b32.xlu1 %v9677_v4, %s13361_s0  ;;  %v9729_v31 = vpop.permute.xlu0 %744 }
 0x1c6   : > { %1132 = vst [vmem:[#allocation1] ss:$9 sm:$0xff] %v9614_v53 }
 0x1c7   : > { %1134 = vst [vmem:[#allocation1 + $0x1] ss:$9 sm:$0xff] %v9674_v3  ;;  %v9733_v46 = vpop.permute.xlu1 %782 }
 0x1c8   : > { %1136 = vst [vmem:[#allocation1 + $0x2] ss:$9 sm:$0xff] %v9620_v54 }
 0x1c9   : > { %13503 = vst [vmem:[#allocation46_spill] sm:$0xff] %v9729_v31 }
 0x1cb   : > { %774 = vrot.lane.b32.xlu0 %v9668_v2, %s13361_s0 }
 0x1cd   : > { %778 = vrot.lane.b32.xlu2 %v9680_v5, %s13361_s0  ;;  %814 = vrot.lane.b32.xlu1 %v9590_v48, %s13355_s24  ;;  %v9745_v11 = vpop.permute.xlu0 %786 }
 0x1cf   : > { %v9735_v17 = vld [vmem:[#allocation1] sm:$0xff]  ;;  %v9754_v48 = vpop.permute.xlu1 %788 }
 0x1d0   : > { %1138 = vst [vmem:[#allocation1] ss:$9 sm:$0xff] %v9614_v53 }
 0x1d1   : > { %1140 = vst [vmem:[#allocation1 + $0x1] ss:$9 sm:$0xff] %v9674_v3  ;;  %v9759_v3 = vpop.permute.xlu2 %796 }
 0x1d2   : > { %1142 = vst [vmem:[#allocation1 + $0x2] ss:$9 sm:$0xff] %v9620_v54 }
 0x1d3   : > { %840 = vrot.lane.b32.xlu0 %v9459_v28, %s13353_s18 }
 0x1d5   : > { %820 = vrot.lane.b32.xlu2 %v9629_v57, %s13355_s24  ;;  %818 = vrot.lane.b32.xlu1 %v9626_v56, %s13355_s24  ;;  %v9756_v47 = vpop.permute.xlu0 %792 }
 0x1d7   : > { %v9769_v28 = vpop.permute.xlu1 %794 }
 0x1d9   : > { %v1143_v53 = vld [vmem:[#allocation1] sm:$0xff]  ;;  %v9776_v56 = vpop.permute.xlu2 %706 }
 0x1da   : > { %1170 = vst [vmem:[#allocation1] ss:$9 sm:$0xff] %v9646_v61 }
 0x1db   : > { %1172 = vst [vmem:[#allocation1 + $0x1] ss:$9 sm:$0xff] %v9595_v50  ;;  %816 = vrot.lane.b32.xlu0 %v9623_v55, %s13355_s24 }
 0x1dc   : > { %1174 = vst [vmem:[#allocation1 + $0x2] ss:$9 sm:$0xff] %v9608_v52 }
 0x1dd   : > { %822 = vrot.lane.b32.xlu2 %v9668_v2, %s13355_s24  ;;  %826 = vrot.lane.b32.xlu1 %v9680_v5, %s13355_s24  ;;  %v9773_v57 = vpop.permute.xlu0 %702  ;;  %13506 = vst [vmem:[#allocation49_spill] sm:$0xff] %v9776_v56 }
 0x1de   : > { %13505 = vst [vmem:[#allocation48_spill] sm:$0xff] %v9773_v57 }
 0x1df   : > { %v9786_v5 = vpop.permute.xlu1 %704 }
 0x1e0   : > { %13507 = vst [vmem:[#allocation50_spill] sm:$0xff] %v9786_v5 }
 0x1e3   : > { %v9771_v54 = vld [vmem:[#allocation1] sm:$0xff]  ;;  %824 = vrot.lane.b32.xlu0 %v9677_v4, %s13355_s24  ;;  %s13668_s24 = smov 112  }
 0x1e4   : > { %1176 = vst [vmem:[#allocation1] ss:$9 sm:$0xff] %v9646_v61 }
 0x1e5   : > { %1178 = vst [vmem:[#allocation1 + $0x1] ss:$9 sm:$0xff] %v9595_v50  ;;  %878 = vrot.lane.b32.xlu1 %v9487_v33, %s13353_s18  ;;  %916 = vrot.lane.b32.xlu2 %v9524_v38, %s13353_s18  ;;  %v9788_v55 = vpop.permute.xlu0 %708  ;;  %v9793_v50 = vpop.permute.xlu2 %712 }
 0x1e6   : > { %1180 = vst [vmem:[#allocation1 + $0x2] ss:$9 sm:$0xff] %v9608_v52 }
 0x1e7   : > { %13508 = vst [vmem:[#allocation51_spill] sm:$0xff] %v9788_v55  ;;  %v9802_v33 = vpop.permute.xlu1 %710 }
 0x1e8   : > { %13509 = vst [vmem:[#allocation52_spill] sm:$0xff] %v9793_v50 }
 0x1e9   : > { %13510 = vst [vmem:[#allocation53_spill] sm:$0xff] %v9802_v33 }
 0x1eb   : > { %954 = vrot.lane.b32.xlu0 %v9555_v43, %s13353_s18 }
 0x1ed   : > { %v1181_v2 = vld [vmem:[#allocation1] sm:$0xff]  ;;  %992 = vrot.lane.b32.xlu1 %v9592_v49, %s13353_s18  ;;  %1030 = vrot.lane.b32.xlu2 %v9633_v58, %s13353_s18  ;;  %v9806_v43 = vpop.permute.xlu0 %714  ;;  %v9811_v52 = vpop.permute.xlu2 %754 }
 0x1ee   : > { %1212 = vst [vmem:[#allocation1 + $0x2] ss:$9 sm:$0xff] %v9720_v19 }
 0x1ef   : > { %1210 = vst [vmem:[#allocation1 + $0x1] ss:$9 sm:$0xff] %v9661_v1  ;;  %v9816_v49 = vpop.permute.xlu1 %752 }
 0x1f0   : > { %1208 = vst [vmem:[#allocation1] ss:$9 sm:$0xff] %v9697_v9 }
 0x1f1   : > { %13511 = vst [vmem:[#allocation54_spill] sm:$0xff] %v9806_v43 }
 0x1f2   : > { %13512 = vst [vmem:[#allocation55_spill] sm:$0xff] %v9811_v52 }
 0x1f3   : > { %1106 = vrot.lane.b32.xlu0 %v1105_v18, %s13353_s18  ;;  %13513 = vst [vmem:[#allocation56_spill] sm:$0xff] %v9816_v49 }
 0x1f5   : > { %1068 = vrot.lane.b32.xlu1 %v9684_v7, %s13353_s18  ;;  %v9818_v18 = vpop.permute.xlu0 %750  ;;  %v9821_v61 = vpop.permute.xlu2 %760 }
 0x1f6   : > { %13514 = vst [vmem:[#allocation57_spill] sm:$0xff] %v9818_v18 }
 0x1f7   : > { %v9804_v38 = vld [vmem:[#allocation1] sm:$0xff]  ;;  %13515 = vst [vmem:[#allocation58_spill] sm:$0xff] %v9821_v61  ;;  %v9827_v7 = vpop.permute.xlu1 %758 }
 0x1f8   : > { %1214 = vst [vmem:[#allocation1] ss:$9 sm:$0xff] %v9697_v9 }
 0x1f9   : > { %1216 = vst [vmem:[#allocation1 + $0x1] ss:$9 sm:$0xff] %v9661_v1 }
 0x1fa   : > { %1218 = vst [vmem:[#allocation1 + $0x2] ss:$9 sm:$0xff] %v9720_v19 }
 0x1fb   : > { %1144 = vrot.lane.b32.xlu0 %v1143_v53, %s13353_s18  ;;  %13516 = vst [vmem:[#allocation59_spill] sm:$0xff] %v9827_v7 }
 0x1fd   : > { %v9831_v19 = vpop.permute.xlu0 %756  ;;  %v9834_v1 = vpop.permute.xlu2 %802 }
 0x1fe   : > { %13517 = vst [vmem:[#allocation60_spill] sm:$0xff] %v9831_v19 }
 0x1ff   : > { %13518 = vst [vmem:[#allocation61_spill] sm:$0xff] %v9834_v1 }
 0x201   : > { %v1219_v58 = vld [vmem:[#allocation1] sm:$0xff] }
 0x202   : > { %1250 = vst [vmem:[#allocation1 + $0x2] ss:$9 sm:$0xff] %v9776_v56  ;;  %1220 = vrot.lane.b32.xlu1 %v1219_v58, %s13353_s18  ;;  %v9838_v58 = vpop.permute.xlu1 %800 }
 0x203   : > { %1246 = vst [vmem:[#allocation1] ss:$9 sm:$0xff] %v9773_v57  ;;  %1182 = vrot.lane.b32.xlu0 %v1181_v2, %s13353_s18 }
 0x204   : > { %1248 = vst [vmem:[#allocation1 + $0x1] ss:$9 sm:$0xff] %v9786_v5 }
 0x205   : > { %v9840_v4 = vpop.permute.xlu0 %762  ;;  %v9843_v2 = vpop.permute.xlu2 %808 }
 0x206   : > { %13519 = vst [vmem:[#allocation62_spill] sm:$0xff] %v9840_v4 }
 0x207   : > { %13520 = vst [vmem:[#allocation63_spill] sm:$0xff] %v9843_v2 }
 0x20b   : > { %v9829_v53 = vld [vmem:[#allocation1] sm:$0xff] }
 0x20c   : > { %1252 = vst [vmem:[#allocation1] ss:$9 sm:$0xff] %v9773_v57  ;;  %v9848_v57 = vpop.permute.xlu1 %806 }
 0x20d   : > { %1254 = vst [vmem:[#allocation1 + $0x1] ss:$9 sm:$0xff] %v9786_v5  ;;  %v9855_v44 = vpop.permute.xlu2 %810 }
 0x20e   : > { %1256 = vst [vmem:[#allocation1 + $0x2] ss:$9 sm:$0xff] %v9776_v56  ;;  %v9852_v56 = vpop.permute.xlu0 %798 }
 0x20f   : > { %13521 = vst [vmem:[#allocation64_spill] sm:$0xff] %v9855_v44 }
 0x214   : > { %v9859_v42 = vpop.permute.xlu1 %716 }
 0x215   : > { %v1257_v9 = vld [vmem:[#allocation1] sm:$0xff]  ;;  %13522 = vst [vmem:[#allocation65_spill] sm:$0xff] %v9859_v42  ;;  %v9864_v40 = vpop.permute.xlu2 %718 }
 0x216   : > { %1288 = vst [vmem:[#allocation1 + $0x2] ss:$9 sm:$0xff] %v9793_v50  ;;  %1258 = vrot.lane.b32.xlu1 %v1257_v9, %s13353_s18  ;;  %v9861_v41 = vpop.permute.xlu0 %804 }
 0x217   : > { %1284 = vst [vmem:[#allocation1] ss:$9 sm:$0xff] %v9788_v55 }
 0x218   : > { %1286 = vst [vmem:[#allocation1 + $0x1] ss:$9 sm:$0xff] %v9802_v33 }
 0x219   : > { %13523 = vst [vmem:[#allocation66_spill] sm:$0xff] %v9864_v40 }
 0x21d   : > { %v9878_v37 = vpop.permute.xlu2 %724 }
 0x21e   : > { %13525 = vst [vmem:[#allocation68_spill] sm:$0xff] %v9878_v37 }
 0x21f   : > { %v9850_v5 = vld [vmem:[#allocation1] sm:$0xff] }
 0x220   : > { %1290 = vst [vmem:[#allocation1] ss:$9 sm:$0xff] %v9788_v55  ;;  %v9869_v55 = vpop.permute.xlu1 %764 }
 0x221   : > { %1292 = vst [vmem:[#allocation1 + $0x1] ss:$9 sm:$0xff] %v9802_v33 }
 0x222   : > { %1294 = vst [vmem:[#allocation1 + $0x2] ss:$9 sm:$0xff] %v9793_v50  ;;  %v9873_v50 = vpop.permute.xlu0 %812 }
 0x223   : > { %13524 = vst [vmem:[#allocation67_spill] sm:$0xff] %v9873_v50 }
 0x228   : > { %v9880_v36 = vpop.permute.xlu1 %722 }
 0x229   : > { %v1295_v9 = vld [vmem:[#allocation1] sm:$0xff]  ;;  %13526 = vst [vmem:[#allocation69_spill] sm:$0xff] %v9880_v36 }
 0x22a   : > { %1322 = vst [vmem:[#allocation1] ss:$9 sm:$0xff] %v9806_v43  ;;  %1296 = vrot.lane.b32.xlu2 %v1295_v9, %s13353_s18  ;;  %v9882_v35 = vpop.permute.xlu0 %720 }
 0x22b   : > { %1326 = vst [vmem:[#allocation1 + $0x2] ss:$9 sm:$0xff] %v9864_v40 }
 0x22c   : > { %1324 = vst [vmem:[#allocation1 + $0x1] ss:$9 sm:$0xff] %v9859_v42 }
 0x22d   : > { %13527 = vst [vmem:[#allocation70_spill] sm:$0xff] %v9882_v35 }
 0x232   : > { %v9902_v27 = vpop.permute.xlu0 %726 }
 0x233   : > { %v9871_v33 = vld [vmem:[#allocation1] sm:$0xff]  ;;  %13530 = vst [vmem:[#allocation73_spill] sm:$0xff] %v9902_v27 }
 0x234   : > { %1328 = vst [vmem:[#allocation1] ss:$9 sm:$0xff] %v9806_v43  ;;  %v9888_v43 = vpop.permute.xlu2 %730 }
 0x235   : > { %1330 = vst [vmem:[#allocation1 + $0x1] ss:$9 sm:$0xff] %v9859_v42 }
 0x236   : > { %1332 = vst [vmem:[#allocation1 + $0x2] ss:$9 sm:$0xff] %v9864_v40 }
 0x237   : > { %13528 = vst [vmem:[#allocation71_spill] sm:$0xff] %v9888_v43 }
 0x23c   : > { %v9895_v40 = vpop.permute.xlu2 %766 }
 0x23d   : > { %v1333_v9 = vld [vmem:[#allocation1] sm:$0xff] }
 0x23e   : > { %1364 = vst [vmem:[#allocation1 + $0x2] ss:$9 sm:$0xff] %v9878_v37  ;;  %1334 = vrot.lane.b32.xlu0 %v1333_v9, %s13353_s18  ;;  %v9898_v9 = vpop.permute.xlu1 %728 }
 0x23f   : > { %1362 = vst [vmem:[#allocation1 + $0x1] ss:$9 sm:$0xff] %v9880_v36 }
 0x240   : > { %1360 = vst [vmem:[#allocation1] ss:$9 sm:$0xff] %v9882_v35 }
 0x241   : > { %13529 = vst [vmem:[#allocation72_spill] sm:$0xff] %v9898_v9 }
 0x247   : > { %v9890_v42 = vld [vmem:[#allocation1] sm:$0xff] }
 0x248   : > { %1366 = vst [vmem:[#allocation1] ss:$9 sm:$0xff] %v9882_v35  ;;  %v9905_v35 = vpop.permute.xlu2 %772 }
 0x249   : > { %1368 = vst [vmem:[#allocation1 + $0x1] ss:$9 sm:$0xff] %v9880_v36 }
 0x24a   : > { %1370 = vst [vmem:[#allocation1 + $0x2] ss:$9 sm:$0xff] %v9878_v37 }
 0x250   : > { %v9912_v37 = vpop.permute.xlu2 %778 }
 0x251   : > { %v1371_v32 = vld [vmem:[#allocation1] sm:$0xff] }
 0x252   : > { %1402 = vst [vmem:[#allocation1 + $0x2] ss:$9 sm:$0xff] %v9888_v43  ;;  %1372 = vrot.lane.b32.xlu1 %v1371_v32, %s13353_s18  ;;  %v9918_v32 = vpop.permute.xlu0 %768 }
 0x253   : > { %1400 = vst [vmem:[#allocation1 + $0x1] ss:$9 sm:$0xff] %v9898_v9 }
 0x254   : > { %1398 = vst [vmem:[#allocation1] ss:$9 sm:$0xff] %v9902_v27 }
 0x258   : > { %v9920_v24 = vpop.permute.xlu2 %820 }
 0x259   : > { %13531 = vst [vmem:[#allocation74_spill] sm:$0xff] %v9920_v24 }
 0x25b   : > { %v9907_v36 = vld [vmem:[#allocation1] sm:$0xff] }
 0x25c   : > { %1404 = vst [vmem:[#allocation1] ss:$9 sm:$0xff] %v9902_v27 }
 0x25d   : > { %1406 = vst [vmem:[#allocation1 + $0x1] ss:$9 sm:$0xff] %v9898_v9 }
 0x25e   : > { %1408 = vst [vmem:[#allocation1 + $0x2] ss:$9 sm:$0xff] %v9888_v43  ;;  %v9927_v43 = vpop.permute.xlu0 %774 }
 0x260   : > { %v9929_v9 = vpop.permute.xlu2 %822 }
 0x261   : > { %13533 = vst [vmem:[#allocation76_spill] sm:$0xff] %v9929_v9 }
 0x265   : > { %v1409_v30 = vld [vmem:[#allocation1] sm:$0xff] }
 0x266   : > { %1436 = vst [vmem:[#allocation1] ss:$9 sm:$0xff] %v9638_v60  ;;  %1410 = vrot.lane.b32.xlu1 %v1409_v30, %s13353_s18  ;;  %v841_v21 = vpop.permute.xlu0 %840 }
 0x267   : > { %1438 = vst [vmem:[#allocation1 + $0x1] ss:$9 sm:$0xff] %v9682_v6  ;;  %8491 = vmatpush.xpose.msk.msra.mxu2 %vm580_vm0, %v841_v21 }
 0x268   : > { %1440 = vst [vmem:[#allocation1 + $0x2] ss:$9 sm:$0xff] %v9635_v59 }
 0x26a   : > { %8492 = vmatmul.msk.f32.vlgmr.msra.gmra.mxu2 %vm580_vm0, %v9441_v26 }
 0x26f   : > { %v9922_v27 = vld [vmem:[#allocation1] sm:$0xff] }
 0x270   : > { %13532 = vst [vmem:[#allocation75_spill] sm:$0xff] %v9922_v27  ;;  %v917_v27 = vpop.permute.xlu2 %916 }
 0x271   : > { %1442 = vst [vmem:[#allocation1] ss:$9 sm:$0xff] %v9638_v60  ;;  %8495 = vmatpush.xpose.msk.msrb.mxu2 %vm580_vm0, %v917_v27  ;;  %v9961_v27 = vpop.permute.xlu1 %770 }
 0x272   : > { %1444 = vst [vmem:[#allocation1 + $0x1] ss:$9 sm:$0xff] %v9682_v6 }
 0x273   : > { %1446 = vst [vmem:[#allocation1 + $0x2] ss:$9 sm:$0xff] %v9635_v59 }
 0x274   : > { %8496 = vmatmul.msk.f32.vlgmr.msrb.gmra.mxu2 %vm580_vm0, %v9500_v34 }
 0x27a   : > { %v9931_v30 = vld [vmem:[#allocation1] sm:$0xff] }
 0x27b   : > { %1474 = vst [vmem:[#allocation1] ss:$9 sm:$0xff] %v9714_v15 }
 0x27c   : > { %1476 = vst [vmem:[#allocation1 + $0x1] ss:$9 sm:$0xff] %v9699_v10 }
 0x27d   : > { %1478 = vst [vmem:[#allocation1 + $0x2] ss:$9 sm:$0xff] %v9658_v0 }
 0x284   : > { %v9940_v59 = vld [vmem:[#allocation1] sm:$0xff] }
 0x285   : > { %1480 = vst [vmem:[#allocation1] ss:$9 sm:$0xff] %v9714_v15 }
 0x286   : > { %1482 = vst [vmem:[#allocation1 + $0x1] ss:$9 sm:$0xff] %v9699_v10 }
 0x287   : > { %1484 = vst [vmem:[#allocation1 + $0x2] ss:$9 sm:$0xff] %v9658_v0 }
 0x28e   : > { %v1485_v6 = vld [vmem:[#allocation1] sm:$0xff] }
 0x28f   : > { %1512 = vst [vmem:[#allocation1] ss:$9 sm:$0xff] %v9729_v31  ;;  %1486 = vrot.lane.b32.xlu1 %v1485_v6, %s13353_s18  ;;  %v9968_v6 = vpop.permute.xlu1 %776 }
 0x290   : > { %1514 = vst [vmem:[#allocation1 + $0x1] ss:$9 sm:$0xff] %v9716_v16 }
 0x291   : > { %1516 = vst [vmem:[#allocation1 + $0x2] ss:$9 sm:$0xff] %v9742_v14 }
 0x298   : > { %v9951_v21 = vld [vmem:[#allocation1] sm:$0xff] }
 0x299   : > { %1518 = vst [vmem:[#allocation1] ss:$9 sm:$0xff] %v9729_v31 }
 0x29a   : > { %1520 = vst [vmem:[#allocation1 + $0x1] ss:$9 sm:$0xff] %v9716_v16  ;;  %v9975_v16 = vpop.permute.xlu1 %814 }
 0x29b   : > { %1522 = vst [vmem:[#allocation1 + $0x2] ss:$9 sm:$0xff] %v9742_v14 }
 0x29c   : > { %13534 = vst [vmem:[#allocation77_spill] sm:$0xff] %v9975_v16 }
 0x2a2   : > { %v9956_v26 = vld [vmem:[#allocation1] sm:$0xff] }
 0x2a3   : > { %1550 = vst [vmem:[#allocation1] ss:$9 sm:$0xff] %v9818_v18 }
 0x2a4   : > { %1552 = vst [vmem:[#allocation1 + $0x1] ss:$9 sm:$0xff] %v9816_v49 }
 0x2a5   : > { %1554 = vst [vmem:[#allocation1 + $0x2] ss:$9 sm:$0xff] %v9811_v52 }
 0x2ac   : > { %v9963_v34 = vld [vmem:[#allocation1] sm:$0xff] }
 0x2ad   : > { %1556 = vst [vmem:[#allocation1] ss:$9 sm:$0xff] %v9818_v18  ;;  %v9986_v18 = vpop.permute.xlu0 %816 }
 0x2ae   : > { %1558 = vst [vmem:[#allocation1 + $0x1] ss:$9 sm:$0xff] %v9816_v49 }
 0x2af   : > { %1560 = vst [vmem:[#allocation1 + $0x2] ss:$9 sm:$0xff] %v9811_v52  ;;  %v9982_v52 = vpop.permute.xlu1 %818 }
 0x2b0   : > { %13535 = vst [vmem:[#allocation78_spill] sm:$0xff] %v9982_v52 }
 0x2b1   : > { %13536 = vst [vmem:[#allocation79_spill] sm:$0xff] %v9986_v18 }
 0x2b6   : > { %v9970_v14 = vld [vmem:[#allocation1] sm:$0xff] }
 0x2b7   : > { %1588 = vst [vmem:[#allocation1] ss:$9 sm:$0xff] %v9831_v19  ;;  %v9991_v0 = vpop.permute.xlu1 %826 }
 0x2b8   : > { %1590 = vst [vmem:[#allocation1 + $0x1] ss:$9 sm:$0xff] %v9827_v7 }
 0x2b9   : > { %1592 = vst [vmem:[#allocation1 + $0x2] ss:$9 sm:$0xff] %v9821_v61 }
 0x2ba   : > { %13537 = vst [vmem:[#allocation80_spill] sm:$0xff] %v9991_v0 }
 0x2c0   : > { %v9977_v31 = vld [vmem:[#allocation1] sm:$0xff] }
 0x2c1   : > { %1594 = vst [vmem:[#allocation1] ss:$9 sm:$0xff] %v9831_v19  ;;  %v9995_v19 = vpop.permute.xlu0 %824 }
 0x2c2   : > { %1596 = vst [vmem:[#allocation1 + $0x1] ss:$9 sm:$0xff] %v9827_v7 }
 0x2c3   : > { %1598 = vst [vmem:[#allocation1 + $0x2] ss:$9 sm:$0xff] %v9821_v61  ;;  %v879_v61 = vpop.permute.xlu1 %878 }
 0x2c4   : > { %13539 = vst [vmem:[#allocation82_spill] sm:$0xff] %v9995_v19  ;;  %8493 = vmatpush.xpose.msk.msra.mxu3 %vm580_vm0, %v879_v61 }
 0x2c7   : > { %8494 = vmatmul.msk.f32.vlgmr.msra.gmra.mxu3 %vm580_vm0, %v9470_v29 }
 0x2c9   : > { %v955_v15 = vpop.permute.xlu0 %954 }
 0x2ca   : > { %v9984_v49 = vld [vmem:[#allocation1] sm:$0xff]  ;;  %8497 = vmatpush.xpose.msk.msrb.mxu3 %vm580_vm0, %v955_v15 }
 0x2cb   : > { %1626 = vst [vmem:[#allocation1] ss:$9 sm:$0xff] %v9840_v4 }
 0x2cc   : > { %1628 = vst [vmem:[#allocation1 + $0x1] ss:$9 sm:$0xff] %v9869_v55 }
 0x2cd   : > { %1630 = vst [vmem:[#allocation1 + $0x2] ss:$9 sm:$0xff] %v9895_v40 }
 0x2cf   : > { %8498 = vmatmul.msk.f32.vlgmr.msrb.gmra.mxu3 %vm580_vm0, %v9535_v39 }
 0x2d1   : > { %v1107_v29 = vpop.permute.xlu0 %1106 }
 0x2d4   : > { %v9993_v10 = vld [vmem:[#allocation1] sm:$0xff] }
 0x2d5   : > { %13538 = vst [vmem:[#allocation81_spill] sm:$0xff] %v9993_v10  ;;  %v1031_v10 = vpop.permute.xlu2 %1030 }
 0x2d6   : > { %1632 = vst [vmem:[#allocation1] ss:$9 sm:$0xff] %v9840_v4  ;;  %v993_v4 = vpop.permute.xlu1 %992  ;;  %8501 = vmatpush.xpose.msk.msra.mxu3 %vm580_vm0, %v1031_v10 }
 0x2d7   : > { %1634 = vst [vmem:[#allocation1 + $0x1] ss:$9 sm:$0xff] %v9869_v55  ;;  %8499 = vmatpush.xpose.msk.msra.mxu2 %vm580_vm0, %v993_v4 }
 0x2d8   : > { %1636 = vst [vmem:[#allocation1 + $0x2] ss:$9 sm:$0xff] %v9895_v40 }
 0x2d9   : > { %8502 = vmatmul.msk.f32.vlgmr.msra.gmra.mxu3 %vm580_vm0, %v9605_v51  ;;  %v1145_v39 = vpop.permute.xlu0 %1144 }
 0x2da   : > { %8500 = vmatmul.msk.f32.vlgmr.msra.gmra.mxu2 %vm580_vm0, %v9571_v45  ;;  %8507 = vmatpush.xpose.msk.msrb.mxu3 %vm580_vm0, %v1145_v39 }
 0x2db   : > { %8505 = vmatpush.xpose.msk.msrb.mxu2 %vm580_vm0, %v1107_v29 }
 0x2dd   : > { %v1297_v45 = vpop.permute.xlu2 %1296 }
 0x2de   : > { %v1069_v15 = vpop.permute.xlu1 %1068  ;;  %8515 = vmatpush.xpose.msk.msra.mxu3 %vm580_vm0, %v1297_v45 }
 0x2df   : > { %v10003_v7 = vld [vmem:[#allocation1] sm:$0xff]  ;;  %8503 = vmatpush.xpose.msk.msrb.mxu0 %vm580_vm0, %v1069_v15 }
 0x2e0   : > { %1666 = vst [vmem:[#allocation1 + $0x1] ss:$9 sm:$0xff] %v9961_v27 }
 0x2e1   : > { %1668 = vst [vmem:[#allocation1 + $0x2] ss:$9 sm:$0xff] %v9905_v35  ;;  %8508 = vmatmul.msk.f32.vlgmr.msrb.gmra.mxu3 %vm580_vm0, %v9735_v17  ;;  %v1183_v51 = vpop.permute.xlu0 %1182 }
 0x2e2   : > { %1664 = vst [vmem:[#allocation1] ss:$9 sm:$0xff] %v9918_v32  ;;  %8504 = vmatmul.msk.f32.vlgmr.msrb.gmra.mxu0 %vm580_vm0, %v9656_v63  ;;  %8506 = vmatmul.msk.f32.vlgmr.msrb.gmra.mxu2 %vm580_vm0, %v9701_v12 }
 0x2e3   : > { %8509 = vmatpush.xpose.msk.msrb.mxu1 %vm580_vm0, %v1183_v51 }
 0x2e6   : > { %v1221_v4 = vpop.permute.xlu1 %1220  ;;  %8510 = vmatmul.msk.f32.vlgmr.msrb.gmra.mxu1 %vm580_vm0, %v9771_v54 }
 0x2e7   : > { %8511 = vmatpush.xpose.msk.msra.mxu0 %vm580_vm0, %v1221_v4 }
 0x2e9   : > { %v10016_v61 = vld [vmem:[#allocation1] sm:$0xff]  ;;  %8516 = vmatmul.msk.f32.vlgmr.msra.gmra.mxu3 %vm580_vm0, %v9850_v5  ;;  %v1335_v5 = vpop.permute.xlu0 %1334 }
 0x2ea   : > { %1670 = vst [vmem:[#allocation1] ss:$9 sm:$0xff] %v9918_v32  ;;  %8512 = vmatmul.msk.f32.vlgmr.msra.gmra.mxu0 %vm580_vm0, %v9804_v38  ;;  %8517 = vmatpush.xpose.msk.msra.mxu1 %vm580_vm0, %v1335_v5 }
 0x2eb   : > { %1672 = vst [vmem:[#allocation1 + $0x1] ss:$9 sm:$0xff] %v9961_v27 }
 0x2ec   : > { %1674 = vst [vmem:[#allocation1 + $0x2] ss:$9 sm:$0xff] %v9905_v35 }
 0x2ed   : > { %v10100_v4 = vpop.f32.mrf.mxu2 }
 0x2ee   : > { %v1259_v63 = vpop.permute.xlu1 %1258  ;;  %8518 = vmatmul.msk.f32.vlgmr.msra.gmra.mxu1 %vm580_vm0, %v9871_v33 }
 0x2ef   : > { %8513 = vmatpush.xpose.msk.msra.mxu2 %vm580_vm0, %v1259_v63 }
 0x2f2   : > { %8514 = vmatmul.msk.f32.vlgmr.msra.gmra.mxu2 %vm580_vm0, %v9829_v53 }
 0x2f3   : > { %v10031_v10 = vld [vmem:[#allocation1] sm:$0xff] }
 0x2f4   : > { %1706 = vst [vmem:[#allocation1 + $0x2] ss:$9 sm:$0xff] %v9912_v37 }
 0x2f5   : > { %1704 = vst [vmem:[#allocation1 + $0x1] ss:$9 sm:$0xff] %v9968_v6 }
 0x2f6   : > { %1702 = vst [vmem:[#allocation1] ss:$9 sm:$0xff] %v9927_v43  ;;  %v1373_v29 = vpop.permute.xlu1 %1372 }
 0x2f7   : > { %8519 = vmatpush.xpose.msk.msrb.mxu0 %vm580_vm0, %v1373_v29  ;;  %v10106_v51 = vpop.f32.mrf.mxu2 }
 0x2f8   : > { %v2051_v5 = vsel %vm2044_vm2, %v10106_v51, -inf }
 0x2f9   : > { %2052 = vmax.xlane.f32.xlu1 %v2051_v5 }
 0x2fa   : > { %8520 = vmatmul.msk.f32.vlgmr.msrb.gmra.mxu0 %vm580_vm0, %v9890_v42 }
 0x2fd   : > { %v10044_v12 = vld [vmem:[#allocation1] sm:$0xff] }
 0x2fe   : > { %1708 = vst [vmem:[#allocation1] ss:$9 sm:$0xff] %v9927_v43  ;;  %v1411_v39 = vpop.permute.xlu1 %1410 }
 0x2ff   : > { %1710 = vst [vmem:[#allocation1 + $0x1] ss:$9 sm:$0xff] %v9968_v6  ;;  %8521 = vmatpush.xpose.msk.msrb.mxu2 %vm580_vm0, %v1411_v39 }
 0x300   : > { %1712 = vst [vmem:[#allocation1 + $0x2] ss:$9 sm:$0xff] %v9912_v37 }
 0x302   : > { %8522 = vmatmul.msk.f32.vlgmr.msrb.gmra.mxu2 %vm580_vm0, %v9907_v36  ;;  %v2045_v36 = vsel %vm2044_vm2, %v10100_v4, -inf }
 0x303   : > { %2046 = vmax.xlane.f32.xlu2 %v2045_v36 }
 0x306   : > { %v1487_v29 = vpop.permute.xlu1 %1486 }
 0x307   : > { %v10053_v17 = vld [vmem:[#allocation1] sm:$0xff]  ;;  %8525 = vmatpush.xpose.msk.msrb.mxu1 %vm580_vm0, %v1487_v29 }
 0x308   : > { %1740 = vst [vmem:[#allocation1] ss:$9 sm:$0xff] %v9650_v62 }
 0x309   : > { %1742 = vst [vmem:[#allocation1 + $0x1] ss:$9 sm:$0xff] %v9733_v46 }
 0x30a   : > { %1744 = vst [vmem:[#allocation1 + $0x2] ss:$9 sm:$0xff] %v9686_v8  ;;  %8526 = vmatmul.msk.f32.vlgmr.msrb.gmra.mxu1 %vm580_vm0, %v9940_v59 }
 0x311   : > { %v10058_v54 = vld [vmem:[#allocation1] sm:$0xff] }
 0x312   : > { %1746 = vst [vmem:[#allocation1] ss:$9 sm:$0xff] %v9650_v62  ;;  %1562 = vrot.lane.b32.xlu1 %v9970_v14, %s13353_s18 }
 0x313   : > { %1748 = vst [vmem:[#allocation1 + $0x1] ss:$9 sm:$0xff] %v9733_v46 }
 0x314   : > { %1750 = vst [vmem:[#allocation1 + $0x2] ss:$9 sm:$0xff] %v9686_v8 }
 0x31b   : > { %v10066_v38 = vld [vmem:[#allocation1] sm:$0xff]  ;;  %1448 = vrot.lane.b32.xlu2 %v9931_v30, %s13353_s18 }
 0x31c   : > { %1778 = vst [vmem:[#allocation1] ss:$9 sm:$0xff] %v9745_v11 }
 0x31d   : > { %1780 = vst [vmem:[#allocation1 + $0x1] ss:$9 sm:$0xff] %v9754_v48 }
 0x31e   : > { %1782 = vst [vmem:[#allocation1 + $0x2] ss:$9 sm:$0xff] %v9703_v13 }
 0x323   : > { %1524 = vrot.lane.b32.xlu2 %v9956_v26, %s13353_s18 }
 0x325   : > { %v10071_v53 = vld [vmem:[#allocation1] sm:$0xff] }
 0x326   : > { %1784 = vst [vmem:[#allocation1] ss:$9 sm:$0xff] %v9745_v11 }
 0x327   : > { %1786 = vst [vmem:[#allocation1 + $0x1] ss:$9 sm:$0xff] %v9754_v48 }
 0x328   : > { %1788 = vst [vmem:[#allocation1 + $0x2] ss:$9 sm:$0xff] %v9703_v13 }
 0x32f   : > { %v10079_v33 = vld [vmem:[#allocation1] sm:$0xff] }
 0x330   : > { %1816 = vst [vmem:[#allocation1] ss:$9 sm:$0xff] %v9756_v47 }
 0x331   : > { %1818 = vst [vmem:[#allocation1 + $0x1] ss:$9 sm:$0xff] %v9769_v28 }
 0x332   : > { %1820 = vst [vmem:[#allocation1 + $0x2] ss:$9 sm:$0xff] %v9759_v3 }
 0x339   : > { %v10084_v15 = vld [vmem:[#allocation1] sm:$0xff] }
 0x33a   : > { %1822 = vst [vmem:[#allocation1] ss:$9 sm:$0xff] %v9756_v47 }
 0x33b   : > { %1824 = vst [vmem:[#allocation1 + $0x1] ss:$9 sm:$0xff] %v9769_v28 }
 0x33c   : > { %1826 = vst [vmem:[#allocation1 + $0x2] ss:$9 sm:$0xff] %v9759_v3 }
 0x343   : > { %v10092_v42 = vld [vmem:[#allocation1] sm:$0xff] }
 0x344   : > { %1854 = vst [vmem:[#allocation1] ss:$9 sm:$0xff] %v9852_v56 }
 0x345   : > { %1856 = vst [vmem:[#allocation1 + $0x1] ss:$9 sm:$0xff] %v9838_v58 }
 0x346   : > { %1858 = vst [vmem:[#allocation1 + $0x2] ss:$9 sm:$0xff] %v9834_v1 }
 0x34a   : > { %v10118_v39 = vpop.f32.mrf.mxu3 }
 0x34d   : > { %v10097_v45 = vld [vmem:[#allocation1] sm:$0xff] }
 0x34e   : > { %1860 = vst [vmem:[#allocation1] ss:$9 sm:$0xff] %v9852_v56 }
 0x34f   : > { %1862 = vst [vmem:[#allocation1 + $0x1] ss:$9 sm:$0xff] %v9838_v58 }
 0x350   : > { %1864 = vst [vmem:[#allocation1 + $0x2] ss:$9 sm:$0xff] %v9834_v1  ;;  %v2048_v1 = vsel %vm2044_vm2, %v10118_v39, -inf }
 0x351   : > { %2049 = vmax.xlane.f32.xlu0 %v2048_v1 }
 0x352   : > { %v10154_v14 = vpop.f32.mrf.mxu3 }
 0x357   : > { %v10108_v63 = vld [vmem:[#allocation1] sm:$0xff] }
 0x358   : > { %1892 = vst [vmem:[#allocation1] ss:$9 sm:$0xff] %v9861_v41 }
 0x359   : > { %1894 = vst [vmem:[#allocation1 + $0x1] ss:$9 sm:$0xff] %v9848_v57 }
 0x35a   : > { %1896 = vst [vmem:[#allocation1 + $0x2] ss:$9 sm:$0xff] %v9843_v2 }
 0x35f   : > { %v10129_v5 = vpop.f32.mrf.mxu0 }
 0x360   : > { %v2063_v29 = vsel %vm2044_vm2, %v10129_v5, -inf }
 0x361   : > { %v10120_v36 = vld [vmem:[#allocation1] sm:$0xff]  ;;  %2064 = vmax.xlane.f32.xlu0 %v2063_v29  ;;  %v10161_v29 = vpop.f32.mrf.mxu3 }
 0x362   : > { %1898 = vst [vmem:[#allocation1] ss:$9 sm:$0xff] %v9861_v41 }
 0x363   : > { %1900 = vst [vmem:[#allocation1 + $0x1] ss:$9 sm:$0xff] %v9848_v57 }
 0x364   : > { %1902 = vst [vmem:[#allocation1 + $0x2] ss:$9 sm:$0xff] %v9843_v2  ;;  %v13553_v2 = vld [vmem:[#allocation19_spill] sm:$0xff] }
 0x36b   : > { %v10131_v59 = vld [vmem:[#allocation1] sm:$0xff] }
 0x36c   : > { %1930 = vst [vmem:[#allocation1] ss:$9 sm:$0xff] %v9855_v44 }
 0x36d   : > { %1932 = vst [vmem:[#allocation1 + $0x1] ss:$9 sm:$0xff] %v9873_v50 }
 0x36e   : > { %1934 = vst [vmem:[#allocation1 + $0x2] ss:$9 sm:$0xff] %v9975_v16 }
 0x375   : > { %v10142_v1 = vld [vmem:[#allocation1] sm:$0xff]  ;;  %1676 = vrot.lane.b32.xlu0 %v10031_v10, %s13353_s18  ;;  %v10168_v10 = vpop.f32.mrf.mxu3 }
 0x376   : > { %13540 = vst [vmem:[#allocation83_spill] sm:$0xff] %v10142_v1 }
 0x377   : > { %1936 = vst [vmem:[#allocation1] ss:$9 sm:$0xff] %v9855_v44  ;;  %v13547_v44 = vld [vmem:[#allocation15_spill] sm:$0xff] }
 0x378   : > { %1938 = vst [vmem:[#allocation1 + $0x1] ss:$9 sm:$0xff] %v9873_v50 }
 0x379   : > { %1940 = vst [vmem:[#allocation1 + $0x2] ss:$9 sm:$0xff] %v9975_v16 }
 0x380   : > { %v10147_v30 = vld [vmem:[#allocation1] sm:$0xff] }
 0x381   : > { %1972 = vst [vmem:[#allocation1 + $0x2] ss:$9 sm:$0xff] %v9920_v24 }
 0x382   : > { %1970 = vst [vmem:[#allocation1 + $0x1] ss:$9 sm:$0xff] %v9982_v52 }
 0x383   : > { %1968 = vst [vmem:[#allocation1] ss:$9 sm:$0xff] %v9986_v18 }
 0x38a   : > { %v10156_v26 = vld [vmem:[#allocation1] sm:$0xff] }
 0x38b   : > { %13541 = vst [vmem:[#allocation84_spill] sm:$0xff] %v10156_v26  ;;  %v2054_v26 = vsel %vm2044_vm2, %v10154_v14, -inf }
 0x38c   : > { %1974 = vst [vmem:[#allocation1] ss:$9 sm:$0xff] %v9986_v18  ;;  %2055 = vmax.xlane.f32.xlu2 %v2054_v26 }
 0x38d   : > { %1976 = vst [vmem:[#allocation1 + $0x1] ss:$9 sm:$0xff] %v9982_v52  ;;  %v2069_v52 = vsel %vm2044_vm2, %v10168_v10, -inf }
 0x38e   : > { %1978 = vst [vmem:[#allocation1 + $0x2] ss:$9 sm:$0xff] %v9920_v24  ;;  %2070 = vmax.xlane.f32.xlu1 %v2069_v52  ;;  %v10174_v24 = vpop.f32.mrf.mxu2 }
 0x38f   : > { %v2057_v16 = vsel %vm2044_vm2, %v10174_v24, -inf }
 0x394   : > { %2058 = vmax.xlane.f32.xlu2 %v2057_v16  ;;  %v13543_v16 = vld [vmem:[#allocation12_spill] sm:$0xff] }
 0x395   : > { %v10163_v1 = vld [vmem:[#allocation1] sm:$0xff] }
 0x396   : > { %2006 = vst [vmem:[#allocation1] ss:$9 sm:$0xff] %v9929_v9  ;;  %v10183_v50 = vpop.f32.mrf.mxu2 }
 0x397   : > { %2010 = vst [vmem:[#allocation1 + $0x2] ss:$9 sm:$0xff] %v9991_v0  ;;  %v2066_v52 = vsel %vm2044_vm2, %v10183_v50, -inf }
 0x398   : > { %2008 = vst [vmem:[#allocation1 + $0x1] ss:$9 sm:$0xff] %v9995_v19 }
 0x39f   : > { %v10176_v18 = vld [vmem:[#allocation1] sm:$0xff]  ;;  %2067 = vmax.xlane.f32.xlu0 %v2066_v52 }
 0x3a0   : > { %2012 = vst [vmem:[#allocation1] ss:$9 sm:$0xff] %v9929_v9  ;;  %v13546_v9 = vld [vmem:[#allocation13_spill] sm:$0xff] }
 0x3a1   : > { %2014 = vst [vmem:[#allocation1 + $0x1] ss:$9 sm:$0xff] %v9995_v19  ;;  %v13550_v52 = vld [vmem:[#allocation17_spill] sm:$0xff] }
 0x3a2   : > { %2016 = vst [vmem:[#allocation1 + $0x2] ss:$9 sm:$0xff] %v9991_v0  ;;  %v13542_v0 = vld [vmem:[#allocation11_spill] sm:$0xff] }
 0x3a9   : > { %v10185_v26 = vld [vmem:[#allocation1] sm:$0xff] }
 0x3aa   : > { %2813 = vst [vmem:[#allocation1] ss:$9 sm:$0xff] %v9413_v20 }
 0x3ab   : > { %2815 = vst [vmem:[#allocation1 + $0x1] ss:$9 sm:$0xff] %v9425_v23  ;;  %v13545_v23 = vld [vmem:[#allocation14_spill] sm:$0xff] }
 0x3ac   : > { %2817 = vst [vmem:[#allocation1 + $0x2] ss:$9 sm:$0xff] %v9422_v22  ;;  %1600 = vrot.lane.b32.xlu2 %v9984_v49, %s13353_s18  ;;  %v10206_v22 = vpop.xlane.xlu2 %2046  ;;  %v13551_v49 = vld [vmem:[#allocation18_spill] sm:$0xff] }
 0x3b3   : > { %v10192_v19 = vld [vmem:[#allocation1] sm:$0xff]  ;;  %1752 = vrot.lane.b32.xlu0 %v10066_v38, %s13353_s18  ;;  %v13552_v38 = vld [vmem:[#allocation75_spill] sm:$0xff] }
 0x3b4   : > { %2848 = vst [vmem:[#allocation1] ss:$9 sm:$0xff] %v9439_v25 }
 0x3b5   : > { %2850 = vst [vmem:[#allocation1 + $0x1] ss:$9 sm:$0xff] %v13542_v0  ;;  %v13549_v0 = vld [vmem:[#allocation16_spill] sm:$0xff] }
 0x3b6   : > { %2852 = vst [vmem:[#allocation1 + $0x2] ss:$9 sm:$0xff] %v13543_v16  ;;  %v1449_v16 = vpop.permute.xlu2 %1448 }
 0x3b7   : > { %8523 = vmatpush.xpose.msk.msrb.mxu3 %vm580_vm0, %v1449_v16 }
 0x3ba   : > { %8524 = vmatmul.msk.f32.vlgmr.msrb.gmra.mxu3 %vm580_vm0, %v13552_v38  ;;  %v13558_v38 = vld [vmem:[#allocation23_spill] sm:$0xff] }
 0x3bd   : > { %v10199_v20 = vld [vmem:[#allocation1] sm:$0xff] }
 0x3be   : > { %13544 = vst [vmem:[#allocation11_spill] sm:$0xff] %v10199_v20  ;;  %v2053_v20 = vpop.xlane.xlu1 %2052 }
 0x3bf   : > { %2881 = vst [vmem:[#allocation1] ss:$9 sm:$0xff] %v13545_v23  ;;  %v2143_v23 = vsub.f32 %v10106_v51, %v2053_v20 }
 0x3c0   : > { %2883 = vst [vmem:[#allocation1 + $0x1] ss:$9 sm:$0xff] %v13546_v9 }
 0x3c1   : > { %2885 = vst [vmem:[#allocation1 + $0x2] ss:$9 sm:$0xff] %v13547_v44  ;;  %v2177_v44 = vmul.f32 1.442695, %v2143_v23  ;;  %v13557_v23 = vld [vmem:[#allocation22_spill] sm:$0xff] }
 0x3c3   : > { %8873 = vpow2.f32 %v2177_v44 }
 0x3c8   : > { %v10208_v25 = vld [vmem:[#allocation1] sm:$0xff] }
 0x3c9   : > { %13548 = vst [vmem:[#allocation12_spill] sm:$0xff] %v10208_v25  ;;  %v2050_v25 = vpop.xlane.xlu0 %2049  ;;  %v10223_v51 = vpop.eup %8873 }
 0x3ca   : > { %2914 = vst [vmem:[#allocation1] ss:$9 sm:$0xff] %v13549_v0  ;;  %v13554_v0 = vld [vmem:[#allocation20_spill] sm:$0xff]  ;;  %v2142_v20 = vsub.f32 %v10118_v39, %v2050_v25  ;;  %v2243_v16 = vsel %vm2044_vm2, %v10223_v51, 0.0 }
 0x3cb   : > { %2916 = vst [vmem:[#allocation1 + $0x1] ss:$9 sm:$0xff] %v13550_v52  ;;  %v13555_v52 = vld [vmem:[#allocation21_spill] sm:$0xff]  ;;  %2244 = vadd.xlane.f32.xlu1 %v2243_v16 }
 0x3cc   : > { %2918 = vst [vmem:[#allocation1 + $0x2] ss:$9 sm:$0xff] %v13551_v49  ;;  %v1525_v49 = vpop.permute.xlu2 %1524  ;;  %v2175_v44 = vmul.f32 1.442695, %v2142_v20  ;;  %v13561_v20 = vld [vmem:[#allocation29_spill] sm:$0xff] }
 0x3cd   : > { %8527 = vmatpush.xpose.msk.msra.mxu0 %vm580_vm0, %v1525_v49  ;;  %13556 = vst [vmem:[#allocation14_spill] sm:$0xff] %v10223_v51  ;;  %v1563_v49 = vpop.permute.xlu1 %1562  ;;  %v13569_v51 = vld [vmem:[#allocation37_spill] sm:$0xff] }
 0x3ce   : > { %8875 = vpow2.f32 %v2175_v44  ;;  %8529 = vmatpush.xpose.msk.msra.mxu2 %vm580_vm0, %v1563_v49  ;;  %v13563_v44 = vld [vmem:[#allocation31_spill] sm:$0xff]  ;;  %v13565_v49 = vld [vmem:[#allocation38_spill] sm:$0xff] }
 0x3d0   : > { %8528 = vmatmul.msk.f32.vlgmr.msra.gmra.mxu0 %vm580_vm0, %v9951_v21  ;;  %v2060_v21 = vsel %vm2044_vm2, %v10161_v29, -inf }
 0x3d1   : > { %8530 = vmatmul.msk.f32.vlgmr.msra.gmra.mxu2 %vm580_vm0, %v9963_v34 }
 0x3d3   : > { %v10215_v9 = vld [vmem:[#allocation1] sm:$0xff] }
 0x3d4   : > { %2947 = vst [vmem:[#allocation1] ss:$9 sm:$0xff] %v13553_v2  ;;  %v10243_v16 = vpop.eup %8875 }
 0x3d5   : > { %2949 = vst [vmem:[#allocation1 + $0x1] ss:$9 sm:$0xff] %v13554_v0  ;;  %v13559_v0 = vld [vmem:[#allocation24_spill] sm:$0xff]  ;;  %2061 = vmax.xlane.f32.xlu2 %v2060_v21 }
 0x3d6   : > { %2951 = vst [vmem:[#allocation1 + $0x2] ss:$9 sm:$0xff] %v13555_v52  ;;  %v10235_v52 = vpop.f32.mrf.mxu2 }
 0x3d7   : > { %v2078_v39 = vsel %vm2044_vm2, %v10235_v52, -inf  ;;  %13560 = vst [vmem:[#allocation13_spill] sm:$0xff] %v10243_v16 }
 0x3d8   : > { %2079 = vmax.xlane.f32.xlu1 %v2078_v39  ;;  %v10255_v39 = vpop.f32.mrf.mxu0 }
 0x3dd   : > { %v10230_v2 = vld [vmem:[#allocation1] sm:$0xff] }
 0x3de   : > { %2980 = vst [vmem:[#allocation1] ss:$9 sm:$0xff] %v13557_v23  ;;  %v13562_v23 = vld [vmem:[#allocation30_spill] sm:$0xff] }
 0x3df   : > { %2982 = vst [vmem:[#allocation1 + $0x1] ss:$9 sm:$0xff] %v13558_v38  ;;  %v2240_v38 = vsel %vm2044_vm2, %v10243_v16, 0.0  ;;  %v13568_v16 = vld [vmem:[#allocation27_spill] sm:$0xff] }
 0x3e0   : > { %2984 = vst [vmem:[#allocation1 + $0x2] ss:$9 sm:$0xff] %v13559_v0  ;;  %2241 = vadd.xlane.f32.xlu0 %v2240_v38  ;;  %v10253_v0 = vpop.xlane.xlu0 %2064 }
 0x3e7   : > { %v10241_v25 = vld [vmem:[#allocation1] sm:$0xff] }
 0x3e8   : > { %3013 = vst [vmem:[#allocation1] ss:$9 sm:$0xff] %v13561_v20  ;;  %v13564_v20 = vld [vmem:[#allocation36_spill] sm:$0xff]  ;;  %v1677_v34 = vpop.permute.xlu0 %1676 }
 0x3e9   : > { %3015 = vst [vmem:[#allocation1 + $0x1] ss:$9 sm:$0xff] %v13562_v23  ;;  %v2075_v23 = vsel %vm2044_vm2, %v10255_v39, -inf  ;;  %8535 = vmatpush.xpose.msk.msrb.mxu0 %vm580_vm0, %v1677_v34 }
 0x3ea   : > { %3017 = vst [vmem:[#allocation1 + $0x2] ss:$9 sm:$0xff] %v13563_v44  ;;  %v13566_v44 = vld [vmem:[#allocation39_spill] sm:$0xff]  ;;  %2076 = vmax.xlane.f32.xlu0 %v2075_v23  ;;  %v13571_v23 = vld [vmem:[#allocation33_spill] sm:$0xff] }
 0x3ec   : > { %8536 = vmatmul.msk.f32.vlgmr.msrb.gmra.mxu0 %vm580_vm0, %v10016_v61  ;;  %v13573_v61 = vld [vmem:[#allocation26_spill] sm:$0xff] }
 0x3ed   : > { %1638 = vrot.lane.b32.xlu2 %v10003_v7, %s13353_s18  ;;  %v13576_v7 = vld [vmem:[#allocation35_spill] sm:$0xff] }
 0x3f1   : > { %v10257_v21 = vld [vmem:[#allocation1] sm:$0xff] }
 0x3f2   : > { %3046 = vst [vmem:[#allocation1] ss:$9 sm:$0xff] %v13564_v20  ;;  %v13570_v20 = vld [vmem:[#allocation28_spill] sm:$0xff] }
 0x3f3   : > { %3048 = vst [vmem:[#allocation1 + $0x1] ss:$9 sm:$0xff] %v13565_v49 }
 0x3f4   : > { %3050 = vst [vmem:[#allocation1 + $0x2] ss:$9 sm:$0xff] %v13566_v44  ;;  %v13572_v44 = vld [vmem:[#allocation25_spill] sm:$0xff] }
 0x3f5   : > { %1714 = vrot.lane.b32.xlu2 %v10053_v17, %s13353_s18  ;;  %v13577_v17 = vld [vmem:[#allocation45_spill] sm:$0xff] }
 0x3fb   : > { %v10267_v38 = vld [vmem:[#allocation1] sm:$0xff] }
 0x3fc   : > { %13567 = vst [vmem:[#allocation15_spill] sm:$0xff] %v10267_v38  ;;  %v13581_v38 = vld [vmem:[#allocation49_spill] sm:$0xff] }
 0x3fd   : > { %3079 = vst [vmem:[#allocation1] ss:$9 sm:$0xff] %v13568_v16  ;;  %v13575_v16 = vld [vmem:[#allocation41_spill] sm:$0xff] }
 0x3fe   : > { %3081 = vst [vmem:[#allocation1 + $0x1] ss:$9 sm:$0xff] %v13569_v51  ;;  %1828 = vrot.lane.b32.xlu0 %v10092_v42, %s13353_s18  ;;  %v13578_v42 = vld [vmem:[#allocation48_spill] sm:$0xff] }
 0x3ff   : > { %3083 = vst [vmem:[#allocation1 + $0x2] ss:$9 sm:$0xff] %v13570_v20  ;;  %v2056_v34 = vpop.xlane.xlu2 %2055 }
 0x400   : > { %v2144_v20 = vsub.f32 %v10154_v14, %v2056_v34  ;;  %v2141_v14 = vsub.f32 %v10100_v4, %v10206_v22  ;;  %v13584_v4 = vld [vmem:[#allocation52_spill] sm:$0xff] }
 0x406   : > { %v10274_v49 = vld [vmem:[#allocation1] sm:$0xff]  ;;  %1866 = vrot.lane.b32.xlu0 %v10108_v63, %s13353_s18 }
 0x407   : > { %3112 = vst [vmem:[#allocation1] ss:$9 sm:$0xff] %v13571_v23  ;;  %v2179_v23 = vmul.f32 1.442695, %v2144_v20  ;;  %v2173_v20 = vmul.f32 1.442695, %v2141_v14 }
 0x408   : > { %3114 = vst [vmem:[#allocation1 + $0x1] ss:$9 sm:$0xff] %v13572_v44  ;;  %v10291_v44 = vpop.xlane.xlu2 %2058  ;;  %v13586_v14 = vld [vmem:[#allocation54_spill] sm:$0xff] }
 0x409   : > { %3116 = vst [vmem:[#allocation1 + $0x2] ss:$9 sm:$0xff] %v13573_v61  ;;  %8877 = vpow2.f32 %v2179_v23  ;;  %v13582_v23 = vld [vmem:[#allocation51_spill] sm:$0xff] }
 0x40a   : > { %8879 = vpow2.f32 %v2173_v20  ;;  %v10327_v20 = vpop.f32.mrf.mxu1 }
 0x410   : > { %v10283_v51 = vld [vmem:[#allocation1] sm:$0xff]  ;;  %v1601_v34 = vpop.permute.xlu2 %1600 }
 0x411   : > { %13574 = vst [vmem:[#allocation16_spill] sm:$0xff] %v10283_v51  ;;  %v10296_v51 = vpop.eup %8877  ;;  %8531 = vmatpush.xpose.msk.msra.mxu3 %vm580_vm0, %v1601_v34  ;;  %v13587_v34 = vld [vmem:[#allocation65_spill] sm:$0xff] }
 0x412   : > { %3145 = vst [vmem:[#allocation1] ss:$9 sm:$0xff] %v13575_v16  ;;  %v13580_v16 = vld [vmem:[#allocation50_spill] sm:$0xff]  ;;  %v2246_v63 = vsel %vm2044_vm2, %v10296_v51, 0.0  ;;  %v10316_v22 = vpop.eup %8879 }
 0x413   : > { %3147 = vst [vmem:[#allocation1 + $0x1] ss:$9 sm:$0xff] %v13576_v7  ;;  %2247 = vadd.xlane.f32.xlu1 %v2246_v63  ;;  %v10304_v7 = vpop.f32.mrf.mxu3 }
 0x414   : > { %3149 = vst [vmem:[#allocation1 + $0x2] ss:$9 sm:$0xff] %v13577_v17  ;;  %8532 = vmatmul.msk.f32.vlgmr.msra.gmra.mxu3 %vm580_vm0, %v9977_v31  ;;  %v2237_v31 = vsel %vm2044_vm2, %v10316_v22, 0.0 }
 0x415   : > { %13579 = vst [vmem:[#allocation17_spill] sm:$0xff] %v10296_v51  ;;  %v13594_v51 = vld [vmem:[#allocation73_spill] sm:$0xff] }
 0x41b   : > { %v10293_v61 = vld [vmem:[#allocation1] sm:$0xff] }
 0x41c   : > { %3178 = vst [vmem:[#allocation1] ss:$9 sm:$0xff] %v13578_v42  ;;  %v13583_v42 = vld [vmem:[#allocation53_spill] sm:$0xff] }
 0x41d   : > { %3180 = vst [vmem:[#allocation1 + $0x1] ss:$9 sm:$0xff] %v13580_v16  ;;  %v10318_v16 = vpop.xlane.xlu0 %2067 }
 0x41e   : > { %3182 = vst [vmem:[#allocation1 + $0x2] ss:$9 sm:$0xff] %v13581_v38  ;;  %v2081_v38 = vsel %vm2044_vm2, %v10304_v7, -inf  ;;  %2238 = vadd.xlane.f32.xlu2 %v2237_v31  ;;  %v13591_v31 = vld [vmem:[#allocation69_spill] sm:$0xff] }
 0x41f   : > { %2082 = vmax.xlane.f32.xlu1 %v2081_v38 }
 0x425   : > { %v10307_v17 = vld [vmem:[#allocation1] sm:$0xff]  ;;  %v1753_v38 = vpop.permute.xlu0 %1752 }
 0x426   : > { %3211 = vst [vmem:[#allocation1] ss:$9 sm:$0xff] %v13582_v23  ;;  %v13588_v23 = vld [vmem:[#allocation66_spill] sm:$0xff]  ;;  %8539 = vmatpush.xpose.msk.msrb.mxu3 %vm580_vm0, %v1753_v38 }
 0x427   : > { %3213 = vst [vmem:[#allocation1 + $0x1] ss:$9 sm:$0xff] %v13583_v42  ;;  %v10330_v42 = vpop.f32.mrf.mxu0 }
 0x428   : > { %3215 = vst [vmem:[#allocation1 + $0x2] ss:$9 sm:$0xff] %v13584_v4  ;;  %v2072_v4 = vsel %vm2044_vm2, %v10327_v20, -inf }
 0x429   : > { %13589 = vst [vmem:[#allocation75_spill] sm:$0xff] %v10330_v42  ;;  %2073 = vmax.xlane.f32.xlu2 %v2072_v4  ;;  %8540 = vmatmul.msk.f32.vlgmr.msrb.gmra.mxu3 %vm580_vm0, %v10058_v54  ;;  %v13595_v4 = vld [vmem:[#allocation72_spill] sm:$0xff] }
 0x42f   : > { %v10320_v63 = vld [vmem:[#allocation1] sm:$0xff] }
 0x430   : > { %13585 = vst [vmem:[#allocation18_spill] sm:$0xff] %v10320_v63 }
 0x431   : > { %3244 = vst [vmem:[#allocation1] ss:$9 sm:$0xff] %v13586_v14  ;;  %v13590_v14 = vld [vmem:[#allocation70_spill] sm:$0xff] }
 0x432   : > { %3246 = vst [vmem:[#allocation1 + $0x1] ss:$9 sm:$0xff] %v13587_v34  ;;  %v2087_v34 = vsel %vm2044_vm2, %v10330_v42, -inf  ;;  %v13599_v42 = vld [vmem:[#allocation32_spill] sm:$0xff] }
 0x433   : > { %3248 = vst [vmem:[#allocation1 + $0x2] ss:$9 sm:$0xff] %v13588_v23  ;;  %v13592_v23 = vld [vmem:[#allocation68_spill] sm:$0xff]  ;;  %2088 = vmax.xlane.f32.xlu0 %v2087_v34  ;;  %v13601_v34 = vld [vmem:[#allocation42_spill] sm:$0xff] }
 0x438   : > { %1904 = vrot.lane.b32.xlu1 %v10131_v59, %s13353_s18 }
 0x43a   : > { %v10334_v63 = vld [vmem:[#allocation1] sm:$0xff] }
 0x43b   : > { %3277 = vst [vmem:[#allocation1] ss:$9 sm:$0xff] %v13590_v14  ;;  %v13596_v14 = vld [vmem:[#allocation71_spill] sm:$0xff] }
 0x43c   : > { %3279 = vst [vmem:[#allocation1 + $0x1] ss:$9 sm:$0xff] %v13591_v31  ;;  %v13598_v31 = vld [vmem:[#allocation40_spill] sm:$0xff] }
 0x43d   : > { %3281 = vst [vmem:[#allocation1 + $0x2] ss:$9 sm:$0xff] %v13592_v23  ;;  %v13602_v23 = vld [vmem:[#allocation34_spill] sm:$0xff] }
 0x441   : > { %1790 = vrot.lane.b32.xlu2 %v10079_v33, %s13353_s18 }
 0x444   : > { %v10345_v38 = vld [vmem:[#allocation1] sm:$0xff] }
 0x445   : > { %13593 = vst [vmem:[#allocation19_spill] sm:$0xff] %v10345_v38  ;;  %v2071_v38 = vpop.xlane.xlu1 %2070 }
 0x446   : > { %3310 = vst [vmem:[#allocation1] ss:$9 sm:$0xff] %v13594_v51  ;;  %v13600_v51 = vld [vmem:[#allocation43_spill] sm:$0xff] }
 0x447   : > { %3312 = vst [vmem:[#allocation1 + $0x1] ss:$9 sm:$0xff] %v13595_v4  ;;  %2018 = vrot.lane.b32.xlu0 %v10185_v26, %s13353_s18  ;;  %v13604_v26 = vld [vmem:[#allocation44_spill] sm:$0xff] }
 0x448   : > { %3314 = vst [vmem:[#allocation1 + $0x2] ss:$9 sm:$0xff] %v13596_v14  ;;  %v2062_v4 = vpop.xlane.xlu2 %2061 }
 0x44f   : > { %v10350_v54 = vld [vmem:[#allocation1] sm:$0xff] }
 0x450   : > { %13597 = vst [vmem:[#allocation20_spill] sm:$0xff] %v10350_v54  ;;  %v1639_v33 = vpop.permute.xlu2 %1638  ;;  %v13605_v54 = vld [vmem:[#allocation47_spill] sm:$0xff] }
 0x451   : > { %3343 = vst [vmem:[#allocation1] ss:$9 sm:$0xff] %v9638_v60  ;;  %v2146_v60 = vsub.f32 %v10161_v29, %v2062_v4  ;;  %8533 = vmatpush.xpose.msk.msra.mxu1 %vm580_vm0, %v1639_v33  ;;  %v2145_v29 = vsub.f32 %v10174_v24, %v10291_v44 }
 0x452   : > { %3345 = vst [vmem:[#allocation1 + $0x1] ss:$9 sm:$0xff] %v13598_v31  ;;  %v13603_v31 = vld [vmem:[#allocation46_spill] sm:$0xff] }
 0x453   : > { %3347 = vst [vmem:[#allocation1 + $0x2] ss:$9 sm:$0xff] %v13599_v42  ;;  %v2183_v14 = vmul.f32 1.442695, %v2146_v60  ;;  %v10380_v60 = vpop.xlane.xlu0 %2241  ;;  %v2181_v33 = vmul.f32 1.442695, %v2145_v29 }
 0x454   : > { %v13610_v29 = vld [vmem:[#allocation60_spill] sm:$0xff]  ;;  %vm2353_vm14 = vweird.f32 %v10380_v60 }
 0x455   : > { %8881 = vpow2.f32 %v2183_v14 }
 0x45a   : > { %v10359_v59 = vld [vmem:[#allocation1] sm:$0xff] }
 0x45b   : > { %3376 = vst [vmem:[#allocation1] ss:$9 sm:$0xff] %v13600_v51  ;;  %v10371_v51 = vpop.eup %8881 }
 0x45c   : > { %3378 = vst [vmem:[#allocation1 + $0x1] ss:$9 sm:$0xff] %v13601_v34  ;;  %v2149_v34 = vsub.f32 %v10168_v10, %v2071_v38  ;;  %v2252_v4 = vsel %vm2044_vm2, %v10371_v51, 0.0  ;;  %v13608_v10 = vld [vmem:[#allocation56_spill] sm:$0xff]  ;;  %v13609_v38 = vld [vmem:[#allocation55_spill] sm:$0xff] }
 0x45d   : > { %3380 = vst [vmem:[#allocation1 + $0x2] ss:$9 sm:$0xff] %v13602_v23  ;;  %v13606_v23 = vld [vmem:[#allocation81_spill] sm:$0xff]  ;;  %v10390_v24 = vpop.xlane.xlu0 %2076 }
 0x45e   : > { %8534 = vmatmul.msk.f32.vlgmr.msra.gmra.mxu1 %vm580_vm0, %v13606_v23  ;;  %v2189_v14 = vmul.f32 1.442695, %v2149_v34 }
 0x460   : > { %8883 = vpow2.f32 %v2189_v14 }
 0x461   : > { %8885 = vpow2.f32 %v2181_v33 }
 0x462   : > { %2253 = vadd.xlane.f32.xlu1 %v2252_v4  ;;  %v10399_v4 = vpop.f32.mrf.mxu1 }
 0x464   : > { %v10365_v42 = vld [vmem:[#allocation1] sm:$0xff] }
 0x465   : > { %3409 = vst [vmem:[#allocation1] ss:$9 sm:$0xff] %v13603_v31  ;;  %v1715_v31 = vpop.permute.xlu2 %1714 }
 0x466   : > { %3411 = vst [vmem:[#allocation1 + $0x1] ss:$9 sm:$0xff] %v13604_v26  ;;  %v13607_v26 = vld [vmem:[#allocation57_spill] sm:$0xff]  ;;  %8537 = vmatpush.xpose.msk.msrb.mxu2 %vm580_vm0, %v1715_v31  ;;  %v10392_v44 = vpop.eup %8883  ;;  %v13611_v31 = vld [vmem:[#allocation59_spill] sm:$0xff] }
 0x467   : > { %3413 = vst [vmem:[#allocation1 + $0x2] ss:$9 sm:$0xff] %v13605_v54  ;;  %v10396_v23 = vpop.eup %8885  ;;  %v2261_v14 = vsel %vm2044_vm2, %v10392_v44, 0.0 }
 0x469   : > { %8538 = vmatmul.msk.f32.vlgmr.msrb.gmra.mxu2 %vm580_vm0, %v10044_v12  ;;  %v2249_v12 = vsel %vm2044_vm2, %v10396_v23, 0.0 }
 0x46a   : > { %2250 = vadd.xlane.f32.xlu2 %v2249_v12 }
 0x46e   : > { %v10382_v54 = vld [vmem:[#allocation1] sm:$0xff] }
 0x46f   : > { %3442 = vst [vmem:[#allocation1] ss:$9 sm:$0xff] %v13607_v26  ;;  %v13612_v26 = vld [vmem:[#allocation58_spill] sm:$0xff] }
 0x470   : > { %3444 = vst [vmem:[#allocation1 + $0x1] ss:$9 sm:$0xff] %v13608_v10  ;;  %v1829_v33 = vpop.permute.xlu0 %1828  ;;  %v10408_v10 = vpop.f32.mrf.mxu1 }
 0x471   : > { %3446 = vst [vmem:[#allocation1 + $0x2] ss:$9 sm:$0xff] %v13609_v38  ;;  %2262 = vadd.xlane.f32.xlu0 %v2261_v14  ;;  %8543 = vmatpush.xpose.msk.msra.mxu0 %vm580_vm0, %v1829_v33 }
 0x474   : > { %8544 = vmatmul.msk.f32.vlgmr.msra.gmra.mxu0 %vm580_vm0, %v10084_v15 }
 0x478   : > { %v10394_v34 = vld [vmem:[#allocation1] sm:$0xff]  ;;  %v1867_v12 = vpop.permute.xlu0 %1866 }
 0x479   : > { %3475 = vst [vmem:[#allocation1] ss:$9 sm:$0xff] %v13610_v29  ;;  %v13613_v29 = vld [vmem:[#allocation62_spill] sm:$0xff]  ;;  %8545 = vmatpush.xpose.msk.msra.mxu2 %vm580_vm0, %v1867_v12  ;;  %v13620_v12 = vld [vmem:[#allocation79_spill] sm:$0xff] }
 0x47a   : > { %3477 = vst [vmem:[#allocation1 + $0x1] ss:$9 sm:$0xff] %v13611_v31  ;;  %v2084_v31 = vsel %vm2044_vm2, %v10399_v4, -inf }
 0x47b   : > { %3479 = vst [vmem:[#allocation1 + $0x2] ss:$9 sm:$0xff] %v13612_v26  ;;  %v2096_v26 = vsel %vm2044_vm2, %v10408_v10, -inf  ;;  %2085 = vmax.xlane.f32.xlu2 %v2084_v31  ;;  %1980 = vrot.lane.b32.xlu1 %v10163_v1, %s13353_s18  ;;  %v13616_v31 = vld [vmem:[#allocation12_spill] sm:$0xff] }
 0x47c   : > { %2097 = vmax.xlane.f32.xlu0 %v2096_v26  ;;  %8546 = vmatmul.msk.f32.vlgmr.msra.gmra.mxu2 %vm580_vm0, %v10097_v45  ;;  %v13618_v26 = vld [vmem:[#allocation67_spill] sm:$0xff] }
 0x482   : > { %v10410_v38 = vld [vmem:[#allocation1] sm:$0xff] }
 0x483   : > { %3508 = vst [vmem:[#allocation1] ss:$9 sm:$0xff] %v13613_v29 }
 0x484   : > { %3510 = vst [vmem:[#allocation1 + $0x1] ss:$9 sm:$0xff] %v9869_v55 }
 0x485   : > { %3512 = vst [vmem:[#allocation1 + $0x2] ss:$9 sm:$0xff] %v9895_v40  ;;  %v10431_v40 = vpop.xlane.xlu1 %2244 }
 0x486   : > { %vm2368_vm8 = vweird.f32 %v10431_v40 }
 0x48c   : > { %v10426_v55 = vld [vmem:[#allocation1] sm:$0xff] }
 0x48d   : > { %3541 = vst [vmem:[#allocation1] ss:$9 sm:$0xff] %v9918_v32  ;;  %v10438_v1 = vpop.xlane.xlu1 %2079  ;;  %v2148_v32 = vsub.f32 %v10183_v50, %v10318_v16 }
 0x48e   : > { %3543 = vst [vmem:[#allocation1 + $0x1] ss:$9 sm:$0xff] %v9961_v27 }
 0x48f   : > { %3545 = vst [vmem:[#allocation1 + $0x2] ss:$9 sm:$0xff] %v9905_v35  ;;  %v2187_v35 = vmul.f32 1.442695, %v2148_v32  ;;  %v13621_v32 = vld [vmem:[#allocation78_spill] sm:$0xff] }
 0x491   : > { %8887 = vpow2.f32 %v2187_v35  ;;  %v13622_v35 = vld [vmem:[#allocation74_spill] sm:$0xff] }
 0x493   : > { %1942 = vrot.lane.b32.xlu2 %v10147_v30, %s13353_s18  ;;  %s13669_s18 = smov 120  }
 0x496   : > { %v10433_v15 = vld [vmem:[#allocation1] sm:$0xff] }
 0x497   : > { %3574 = vst [vmem:[#allocation1] ss:$9 sm:$0xff] %v9927_v43  ;;  %v10449_v43 = vpop.xlane.xlu1 %2247  ;;  %v10456_v45 = vpop.eup %8887 }
 0x498   : > { %3576 = vst [vmem:[#allocation1 + $0x1] ss:$9 sm:$0xff] %v9968_v6 }
 0x499   : > { %3578 = vst [vmem:[#allocation1 + $0x2] ss:$9 sm:$0xff] %v9912_v37  ;;  %v10451_v37 = vpop.xlane.xlu2 %2238 }
 0x49a   : > { %vm2338_vm4 = vweird.f32 %v10451_v37 }
 0x49f   : > { %v10460_v50 = vpop.xlane.xlu1 %2082 }
 0x4a0   : > { %v10444_v27 = vld [vmem:[#allocation1] sm:$0xff] }
 0x4a1   : > { %3607 = vst [vmem:[#allocation1] ss:$9 sm:$0xff] %v9650_v62  ;;  %v2074_v62 = vpop.xlane.xlu2 %2073 }
 0x4a2   : > { %3609 = vst [vmem:[#allocation1 + $0x1] ss:$9 sm:$0xff] %v9733_v46  ;;  %v2150_v46 = vsub.f32 %v10327_v20, %v2074_v62 }
 0x4a3   : > { %3611 = vst [vmem:[#allocation1 + $0x2] ss:$9 sm:$0xff] %v9686_v8  ;;  %v2258_v8 = vsel %vm2044_vm2, %v10456_v45, 0.0 }
 0x4a4   : > { %v2191_v30 = vmul.f32 1.442695, %v2150_v46  ;;  %v13624_v46 = vld [vmem:[#allocation76_spill] sm:$0xff] }
 0x4a5   : > { %2259 = vadd.xlane.f32.xlu1 %v2258_v8  ;;  %v13623_v8 = vld [vmem:[#allocation11_spill] sm:$0xff] }
 0x4a6   : > { %8889 = vpow2.f32 %v2191_v30  ;;  %v13625_v30 = vld [vmem:[#allocation82_spill] sm:$0xff] }
 0x4aa   : > { %v10453_v6 = vld [vmem:[#allocation1] sm:$0xff] }
 0x4ab   : > { %3640 = vst [vmem:[#allocation1] ss:$9 sm:$0xff] %v9745_v11  ;;  %v2147_v11 = vsub.f32 %v10129_v5, %v10253_v0  ;;  %v13614_v5 = vld [vmem:[#allocation61_spill] sm:$0xff] }
 0x4ac   : > { %3642 = vst [vmem:[#allocation1 + $0x1] ss:$9 sm:$0xff] %v9754_v48  ;;  %v1905_v48 = vpop.permute.xlu1 %1904  ;;  %v10476_v20 = vpop.eup %8889 }
 0x4ad   : > { %3644 = vst [vmem:[#allocation1 + $0x2] ss:$9 sm:$0xff] %v9703_v13  ;;  %8547 = vmatpush.xpose.msk.msra.mxu3 %vm580_vm0, %v1905_v48  ;;  %v1791_v13 = vpop.permute.xlu2 %1790  ;;  %v2185_v14 = vmul.f32 1.442695, %v2147_v11  ;;  %v13626_v11 = vld [vmem:[#allocation80_spill] sm:$0xff] }
 0x4ae   : > { %8541 = vmatpush.xpose.msk.msrb.mxu1 %vm580_vm0, %v1791_v13 }
 0x4af   : > { %8891 = vpow2.f32 %v2185_v14 }
 0x4b0   : > { %8548 = vmatmul.msk.f32.vlgmr.msra.gmra.mxu3 %vm580_vm0, %v10120_v36 }
 0x4b1   : > { %8542 = vmatmul.msk.f32.vlgmr.msrb.gmra.mxu1 %vm580_vm0, %v10071_v53 }
 0x4b4   : > { %v10465_v16 = vld [vmem:[#allocation1] sm:$0xff] }
 0x4b5   : > { %3673 = vst [vmem:[#allocation1] ss:$9 sm:$0xff] %v9756_v47  ;;  %v2264_v47 = vsel %vm2044_vm2, %v10476_v20, 0.0  ;;  %v10489_v36 = vpop.eup %8891 }
 0x4b6   : > { %3675 = vst [vmem:[#allocation1 + $0x1] ss:$9 sm:$0xff] %v9769_v28  ;;  %2265 = vadd.xlane.f32.xlu0 %v2264_v47  ;;  %v10482_v28 = vpop.xlane.xlu0 %2088  ;;  %v2255_v53 = vsel %vm2044_vm2, %v10489_v36, 0.0  ;;  %v10538_v47 = vpop.f32.mrf.mxu0 }
 0x4b7   : > { %3677 = vst [vmem:[#allocation1 + $0x2] ss:$9 sm:$0xff] %v9759_v3 }
 0x4bc   : > { %2256 = vadd.xlane.f32.xlu2 %v2255_v53 }
 0x4be   : > { %v10484_v3 = vld [vmem:[#allocation1] sm:$0xff]  ;;  %v2019_v0 = vpop.permute.xlu0 %2018  ;;  %2819 = vrot.lane.b32.xlu1 %v10192_v19, %s13351_s28 }
 0x4bf   : > { %3706 = vst [vmem:[#allocation1] ss:$9 sm:$0xff] %v9852_v56  ;;  %8553 = vmatpush.xpose.msk.msrb.mxu2 %vm580_vm0, %v2019_v0  ;;  %v10502_v56 = vpop.f32.mrf.mxu2  ;;  %v13619_v19 = vld [vmem:[#allocation77_spill] sm:$0xff] }
 0x4c0   : > { %3708 = vst [vmem:[#allocation1 + $0x1] ss:$9 sm:$0xff] %v9838_v58  ;;  %v13615_v58 = vld [vmem:[#allocation63_spill] sm:$0xff]  ;;  %v2090_v29 = vsel %vm2044_vm2, %v10502_v56, -inf }
 0x4c1   : > { %3710 = vst [vmem:[#allocation1 + $0x2] ss:$9 sm:$0xff] %v13614_v5  ;;  %v2152_v5 = vsub.f32 %v10235_v52, %v10438_v1 }
 0x4c2   : > { %8554 = vmatmul.msk.f32.vlgmr.msrb.gmra.mxu2 %vm580_vm0, %v10176_v18  ;;  %v13617_v18 = vld [vmem:[#allocation64_spill] sm:$0xff] }
 0x4c4   : > { %2091 = vmax.xlane.f32.xlu2 %v2090_v29  ;;  %v13627_v29 = vld [vmem:[#allocation84_spill] sm:$0xff] }
 0x4c8   : > { %v10494_v33 = vld [vmem:[#allocation1] sm:$0xff] }
 0x4c9   : > { %3739 = vst [vmem:[#allocation1] ss:$9 sm:$0xff] %v9861_v41 }
 0x4ca   : > { %3741 = vst [vmem:[#allocation1 + $0x1] ss:$9 sm:$0xff] %v9848_v57  ;;  %2887 = vrot.lane.b32.xlu0 %v13616_v31, %s13351_s28  ;;  %v10549_v31 = vpop.f32.mrf.mxu2 }
 0x4cb   : > { %3743 = vst [vmem:[#allocation1 + $0x2] ss:$9 sm:$0xff] %v13615_v58  ;;  %v2195_v58 = vmul.f32 1.442695, %v2152_v5  ;;  %v2102_v1 = vsel %vm2044_vm2, %v10549_v31, -inf }
 0x4cd   : > { %8893 = vpow2.f32 %v2195_v58 }
 0x4d2   : > { %v10509_v41 = vld [vmem:[#allocation1] sm:$0xff]  ;;  %2986 = vrot.lane.b32.xlu0 %v10241_v25, %s13351_s28  ;;  %v10530_v25 = vpop.f32.mrf.mxu3 }
 0x4d3   : > { %3772 = vst [vmem:[#allocation1] ss:$9 sm:$0xff] %v13617_v18  ;;  %v2093_v14 = vsel %vm2044_vm2, %v10530_v25, -inf  ;;  %v2153_v18 = vsub.f32 %v10304_v7, %v10460_v50 }
 0x4d4   : > { %3774 = vst [vmem:[#allocation1 + $0x1] ss:$9 sm:$0xff] %v13618_v26 }
 0x4d5   : > { %3776 = vst [vmem:[#allocation1 + $0x2] ss:$9 sm:$0xff] %v13619_v19  ;;  %v10532_v48 = vpop.xlane.xlu1 %2253  ;;  %v2197_v26 = vmul.f32 1.442695, %v2153_v18  ;;  %v13628_v19 = vld [vmem:[#allocation83_spill] sm:$0xff] }
 0x4d7   : > { %8895 = vpow2.f32 %v2197_v26 }
 0x4dc   : > { %v10516_v57 = vld [vmem:[#allocation1] sm:$0xff]  ;;  %2854 = vrot.lane.b32.xlu2 %v13623_v8, %s13351_s28 }
 0x4dd   : > { %3805 = vst [vmem:[#allocation1] ss:$9 sm:$0xff] %v13620_v12  ;;  %v10534_v13 = vpop.xlane.xlu2 %2250  ;;  %v2151_v12 = vsub.f32 %v10255_v39, %v10390_v24 }
 0x4de   : > { %3807 = vst [vmem:[#allocation1 + $0x1] ss:$9 sm:$0xff] %v13621_v32  ;;  %v10560_v32 = vpop.eup %8893 }
 0x4df   : > { %3809 = vst [vmem:[#allocation1 + $0x2] ss:$9 sm:$0xff] %v13622_v35  ;;  %v2193_v35 = vmul.f32 1.442695, %v2151_v12  ;;  %v2270_v7 = vsel %vm2044_vm2, %v10560_v32, 0.0  ;;  %v10564_v50 = vpop.eup %8895 }
 0x4e0   : > { %v2273_v8 = vsel %vm2044_vm2, %v10564_v50, 0.0 }
 0x4e1   : > { %8897 = vpow2.f32 %v2193_v35 }
 0x4e2   : > { %8899 = vrcp.f32 %v10451_v37 }
 0x4e3   : > { %8901 = vrcp.f32 %v10431_v40 }
 0x4e4   : > { %2920 = vrot.lane.b32.xlu2 %v10215_v9, %s13351_s28  ;;  %v2099_v9 = vsel %vm2044_vm2, %v10538_v47, -inf  ;;  %8903 = vrcp.f32 %v10380_v60 }
 0x4e5   : > { %8905 = vrcp.f32 %v10449_v43 }
 0x4e6   : > { %v10521_v62 = vld [vmem:[#allocation1] sm:$0xff]  ;;  %8907 = vrcp.f32 %v10532_v48 }
 0x4e7   : > { %3838 = vst [vmem:[#allocation1] ss:$9 sm:$0xff] %v13624_v46  ;;  %v10568_v46 = vpop.eup %8897 }
 0x4e8   : > { %3840 = vst [vmem:[#allocation1 + $0x1] ss:$9 sm:$0xff] %v13625_v30  ;;  %2094 = vmax.xlane.f32.xlu1 %v2093_v14  ;;  %v2267_v39 = vsel %vm2044_vm2, %v10568_v46, 0.0  ;;  %v8900_v24 = vpop.eup %8899  ;;  %v10581_v14 = vpop.xlane.xlu0 %2262 }
 0x4e9   : > { %3842 = vst [vmem:[#allocation1 + $0x2] ss:$9 sm:$0xff] %v13626_v11  ;;  %v2334_v30 = vmul.f32 %v8900_v24, %v10451_v37  ;;  %v8902_v11 = vpop.eup %8901  ;;  %vm2339_vm3 = vweird.f32 %v8900_v24 }
 0x4ea   : > { %v2364_v5 = vmul.f32 %v8902_v11, %v10431_v40  ;;  %vm2340_vm5 = vmor %vm2338_vm4, %vm2339_vm3  ;;  %vm2369_vm6 = vweird.f32 %v8902_v11 }
 0x4eb   : > { %vm10612_vm9 = vmor %vm2368_vm8, %vm2369_vm6  ;;  %vm2383_vm6 = vweird.f32 %v10449_v43  ;;  %vm2413_vm8 = vweird.f32 %v10532_v48 }
 0x4ed   : > { %v1981_v53 = vpop.permute.xlu1 %1980 }
 0x4ee   : > { %v10542_v0 = vpop.xlane.xlu2 %2085  ;;  %8551 = vmatpush.xpose.msk.msrb.mxu0 %vm580_vm0, %v1981_v53 }
 0x4f0   : > { %2100 = vmax.xlane.f32.xlu1 %v2099_v9  ;;  %v2365_v9 = vsub.f32 1.0, %v2364_v5  ;;  %v10594_v18 = vpop.xlane.xlu0 %2097 }
 0x4f1   : > { %8552 = vmatmul.msk.f32.vlgmr.msrb.gmra.mxu0 %vm580_vm0, %v13627_v29  ;;  %v2344_v29 = vand.u32 2147483648, %v10451_v37 }
 0x4f2   : > { %v2366_v58 = vmul.f32 %v8902_v11, %v2365_v9 }
 0x4f4   : > { %v2367_v26 = vadd.f32 %v8902_v11, %v2366_v58 }
 0x4f6   : > { %v1943_v52 = vpop.permute.xlu2 %1942 }
 0x4f7   : > { %8549 = vmatpush.xpose.msk.msra.mxu1 %vm580_vm0, %v1943_v52 }
 0x4fa   : > { %8550 = vmatmul.msk.f32.vlgmr.msra.gmra.mxu1 %vm580_vm0, %v13628_v19  ;;  %v2345_v19 = vor.u32 1.1754944e-38, %v2344_v29 }
 0x4fc   : > { %2103 = vmax.xlane.f32.xlu0 %v2102_v1 }
 0x504   : > { %2271 = vadd.xlane.f32.xlu0 %v2270_v7  ;;  %v13629_v7 = vld [vmem:[#allocation15_spill] sm:$0xff] }
 0x509   : > { %2953 = vrot.lane.b32.xlu1 %v10230_v2, %s13351_s28  ;;  %v2335_v2 = vsub.f32 1.0, %v2334_v30 }
 0x50b   : > { %v2336_v53 = vmul.f32 %v8900_v24, %v2335_v2  ;;  %v2371_v2 = vsel %vm10612_vm9, %v8902_v11, %v2367_v26 }
 0x50c   : > { %2274 = vadd.xlane.f32.xlu0 %v2273_v8 }
 0x50d   : > { %2268 = vadd.xlane.f32.xlu2 %v2267_v39 }
 0x511   : > { %3085 = vrot.lane.b32.xlu1 %v10274_v49, %s13351_s28  ;;  %v10589_v49 = vpop.eup %8903 }
 0x512   : > { %v2349_v52 = vmul.f32 %v10589_v49, %v10380_v60  ;;  %v10604_v12 = vpop.eup %8905  ;;  %vm2354_vm13 = vweird.f32 %v10589_v49 }
 0x513   : > { %v10608_v8 = vpop.eup %8907  ;;  %v2379_v9 = vmul.f32 %v10604_v12, %v10449_v43  ;;  %vm10638_vm15 = vmor %vm2353_vm14, %vm2354_vm13  ;;  %vm2384_vm4 = vweird.f32 %v10604_v12 }
 0x514   : > { %v2350_v35 = vsub.f32 1.0, %v2349_v52  ;;  %v13632_v52 = vld [vmem:[#allocation75_spill] sm:$0xff] }
 0x515   : > { %v2380_v26 = vsub.f32 1.0, %v2379_v9 }
 0x517   : > { %v2381_v9 = vmul.f32 %v10604_v12, %v2380_v26  ;;  %v2417_v26 = vand.u32 2147483647, %v10532_v48 }
 0x519   : > { %vm2418_vm13 = vcmp.eq.f32.partialorder %v2417_v26, 8.507059e+37 }
 0x520   : > { %3151 = vrot.lane.b32.xlu0 %v10293_v61, %s13351_s28  ;;  %v2337_v61 = vadd.f32 %v8900_v24, %v2336_v53  ;;  %v2351_v53 = vmul.f32 %v10589_v49, %v2350_v35  ;;  %v2359_v35 = vand.u32 2147483648, %v10380_v60 }
 0x522   : > { %v2341_v1 = vsel %vm2340_vm5, %v8900_v24, %v2337_v61  ;;  %v2409_v61 = vmul.f32 %v10608_v8, %v10532_v48  ;;  %vm2414_vm5 = vweird.f32 %v10608_v8 }
 0x523   : > { %vm10671_vm9 = vmor %vm2413_vm8, %vm2414_vm5 }
 0x525   : > { %3019 = vrot.lane.b32.xlu2 %v10257_v21, %s13351_s28  ;;  %v2342_v21 = vand.u32 2147483647, %v10451_v37  ;;  %v2374_v37 = vand.u32 2147483648, %v10431_v40 }
 0x527   : > { %vm2343_vm7 = vcmp.eq.f32.partialorder %v2342_v21, 8.507059e+37  ;;  %v2375_v29 = vor.u32 1.1754944e-38, %v2374_v37  ;;  %v2155_v21 = vsub.f32 %v13632_v52, %v10482_v28  ;;  %v2389_v52 = vand.u32 2147483648, %v10449_v43 }
 0x528   : > { %3184 = vrot.lane.b32.xlu0 %v10307_v17, %s13351_s28  ;;  %v10600_v17 = vpop.xlane.xlu1 %2259  ;;  %v2346_v39 = vsel %vm2343_vm7, %v2345_v19, %v2341_v1  ;;  %v2352_v1 = vadd.f32 %v10589_v49, %v2351_v53  ;;  %v2410_v19 = vsub.f32 1.0, %v2409_v61  ;;  %vm10661_vm7 = vmor %vm2383_vm6, %vm2384_vm4  ;;  %vm2458_vm6 = vweird.f32 %v10581_v14 }
 0x529   : > { %v10621_v5 = vpop.xlane.xlu0 %2265 }
 0x52a   : > { %v2356_v53 = vsel %vm10638_vm15, %v10589_v49, %v2352_v1  ;;  %v2411_v61 = vmul.f32 %v10608_v8, %v2410_v19  ;;  %v2382_v49 = vadd.f32 %v10604_v12, %v2381_v9  ;;  %v2387_v1 = vand.u32 2147483647, %v10449_v43 }
 0x52b   : > { %vm2398_vm15 = vweird.f32 %v10534_v13 }
 0x52c   : > { %v2386_v43 = vsel %vm10661_vm7, %v10604_v12, %v2382_v49 }
 0x52d   : > { %3052 = vrot.lane.b32.xlu2 %v13629_v7, %s13351_s28  ;;  %v2201_v7 = vmul.f32 1.442695, %v2155_v21  ;;  %v2419_v21 = vand.u32 2147483648, %v10532_v48 }
 0x52f   : > { %v10617_v30 = vpop.xlane.xlu2 %2256  ;;  %8909 = vpow2.f32 %v2201_v7 }
 0x530   : > { %3250 = vrot.lane.b32.xlu0 %v10334_v63, %s13351_s28  ;;  %v2372_v63 = vand.u32 2147483647, %v10431_v40  ;;  %v2820_v58 = vpop.permute.xlu1 %2819  ;;  %v2347_v40 = vmul.f32 %v10316_v22, %v2346_v39  ;;  %v2357_v22 = vand.u32 2147483647, %v10380_v60  ;;  %v10642_v39 = vpop.f32.mrf.mxu1  ;;  %v2360_v60 = vor.u32 1.1754944e-38, %v2359_v35  ;;  %v13638_v35 = vld [vmem:[#allocation13_spill] sm:$0xff] }
 0x531   : > { %8555 = vmatpush.msk.msrb.mxu3 %vm2825_vm10, %v2820_v58  ;;  %v2108_v58 = vsel %vm2044_vm2, %v10642_v39, -inf }
 0x532   : > { %vm2373_vm12 = vcmp.eq.f32.partialorder %v2372_v63, 8.507059e+37  ;;  %8556 = vmatmul.msk.f32.vlgmr.msrb.gmra.mxu3 %vm2821_vm11, %v2347_v40  ;;  %v13635_v63 = vld [vmem:[#allocation14_spill] sm:$0xff]  ;;  %vm2358_vm3 = vcmp.eq.f32.partialorder %v2357_v22, 8.507059e+37 }
 0x533   : > { %v2376_v11 = vsel %vm2373_vm12, %v2375_v29, %v2371_v2  ;;  %v2361_v40 = vsel %vm2358_vm3, %v2360_v60, %v2356_v53  ;;  %v2412_v29 = vadd.f32 %v10608_v8, %v2411_v61  ;;  %vm2388_vm12 = vcmp.eq.f32.partialorder %v2387_v1, 8.507059e+37 }
 0x534   : > { %v2377_v2 = vmul.f32 %v13635_v63, %v2376_v11  ;;  %v2362_v7 = vmul.f32 %v13638_v35, %v2361_v40  ;;  %v2390_v63 = vor.u32 1.1754944e-38, %v2389_v52  ;;  %v10694_v52 = vpop.f32.mrf.mxu3 }
 0x535   : > { %v10669_v22 = vpop.eup %8909  ;;  %v2416_v48 = vsel %vm10671_vm9, %v10608_v8, %v2412_v29 }
 0x536   : > { %v2279_v53 = vsel %vm2044_vm2, %v10669_v22, 0.0  ;;  %v2391_v61 = vsel %vm2388_vm12, %v2390_v63, %v2386_v43  ;;  %vm2428_vm12 = vweird.f32 %v10617_v30 }
 0x537   : > { %v2092_v28 = vpop.xlane.xlu2 %2091 }
 0x538   : > { %v2156_v9 = vsub.f32 %v10502_v56, %v2092_v28  ;;  %v2105_v56 = vsel %vm2044_vm2, %v10694_v52, -inf }
 0x53a   : > { %v2203_v49 = vmul.f32 1.442695, %v2156_v9  ;;  %v2404_v9 = vand.u32 2147483648, %v10534_v13 }
 0x53b   : > { %2109 = vmax.xlane.f32.xlu1 %v2108_v58  ;;  %v13641_v58 = vld [vmem:[#allocation17_spill] sm:$0xff] }
 0x53c   : > { %v2888_v24 = vpop.permute.xlu0 %2887  ;;  %v2392_v40 = vmul.f32 %v13641_v58, %v2391_v61  ;;  %8911 = vpow2.f32 %v2203_v49  ;;  %v2402_v61 = vand.u32 2147483647, %v10534_v13 }
 0x53d   : > { %8559 = vmatpush.msk.msra.mxu0 %vm2825_vm10, %v2888_v24  ;;  %8913 = vrcp.f32 %v10534_v13 }
 0x53e   : > { %8560 = vmatmul.msk.f32.vlgmr.msra.gmra.mxu0 %vm2821_vm11, %v2377_v2  ;;  %v2420_v2 = vor.u32 1.1754944e-38, %v2419_v21  ;;  %v13642_v21 = vld [vmem:[#allocation18_spill] sm:$0xff]  ;;  %8915 = vrcp.f32 %v10581_v14  ;;  %vm2403_vm4 = vcmp.eq.f32.partialorder %v2402_v61, 8.507059e+37 }
 0x53f   : > { %v2855_v19 = vpop.permute.xlu2 %2854  ;;  %8917 = vrcp.f32 %v10617_v30 }
 0x540   : > { %8557 = vmatpush.msk.msrb.mxu1 %vm2825_vm10, %v2855_v19  ;;  %v2421_v12 = vsel %vm2418_vm13, %v2420_v2, %v2416_v48  ;;  %v13643_v48 = vld [vmem:[#allocation16_spill] sm:$0xff]  ;;  %8919 = vrcp.f32 %v10600_v17 }
 0x541   : > { %8558 = vmatmul.msk.f32.vlgmr.msrb.gmra.mxu1 %vm2821_vm11, %v2362_v7  ;;  %v2422_v8 = vmul.f32 %v10371_v51, %v2421_v12  ;;  %v10700_v51 = vpop.f32.mrf.mxu3 }
 0x542   : > { %v10692_v29 = vpop.eup %8911  ;;  %v2117_v11 = vsel %vm2044_vm2, %v10700_v51, -inf }
 0x543   : > { %2280 = vadd.xlane.f32.xlu1 %v2279_v53  ;;  %v2282_v28 = vsel %vm2044_vm2, %v10692_v29, 0.0  ;;  %v8914_v1 = vpop.eup %8913 }
 0x544   : > { %v2987_v24 = vpop.permute.xlu0 %2986  ;;  %v2394_v26 = vmul.f32 %v8914_v1, %v10534_v13  ;;  %v8916_v7 = vpop.eup %8915  ;;  %vm2399_vm14 = vweird.f32 %v8914_v1 }
 0x545   : > { %8565 = vmatpush.msk.msra.mxu1 %vm2825_vm10, %v2987_v24  ;;  %v2454_v43 = vmul.f32 %v8916_v7, %v10581_v14  ;;  %v10717_v63 = vpop.eup %8917  ;;  %vm2400_vm3 = vmor %vm2398_vm15, %vm2399_vm14  ;;  %vm2459_vm5 = vweird.f32 %v8916_v7 }
 0x546   : > { %v2395_v19 = vsub.f32 1.0, %v2394_v26  ;;  %v2424_v53 = vmul.f32 %v10717_v63, %v10617_v30  ;;  %vm10742_vm7 = vmor %vm2458_vm6, %vm2459_vm5  ;;  %vm2429_vm8 = vweird.f32 %v10717_v63 }
 0x547   : > { %v2921_v60 = vpop.permute.xlu2 %2920  ;;  %v2455_v2 = vsub.f32 1.0, %v2454_v43  ;;  %vm2430_vm13 = vmor %vm2428_vm12, %vm2429_vm8 }
 0x548   : > { %8561 = vmatpush.msk.msra.mxu2 %vm2825_vm10, %v2921_v60  ;;  %v2396_v24 = vmul.f32 %v8914_v1, %v2395_v19  ;;  %v10729_v60 = vpop.eup %8919 }
 0x549   : > { %8562 = vmatmul.msk.f32.vlgmr.msra.gmra.mxu2 %vm2821_vm11, %v2392_v40  ;;  %8566 = vmatmul.msk.f32.vlgmr.msra.gmra.mxu1 %vm2821_vm11, %v2422_v8  ;;  %v2456_v40 = vmul.f32 %v8916_v7, %v2455_v2  ;;  %v2425_v8 = vsub.f32 1.0, %v2424_v53  ;;  %vm2444_vm15 = vweird.f32 %v10729_v60 }
 0x54b   : > { %v2426_v13 = vmul.f32 %v10717_v63, %v2425_v8 }
 0x54d   : > { %v2427_v2 = vadd.f32 %v10717_v63, %v2426_v13 }
 0x556   : > { %2106 = vmax.xlane.f32.xlu2 %v2105_v56  ;;  %v2405_v56 = vor.u32 1.1754944e-38, %v2404_v9 }
 0x55a   : > { %2283 = vadd.xlane.f32.xlu0 %v2282_v28 }
 0x55b   : > { %v2095_v35 = vpop.xlane.xlu1 %2094 }
 0x55c   : > { %3217 = vrot.lane.b32.xlu1 %v13642_v21, %s13351_s28  ;;  %v2457_v21 = vadd.f32 %v8916_v7, %v2456_v40  ;;  %v2157_v26 = vsub.f32 %v10530_v25, %v2095_v35  ;;  %v2432_v35 = vand.u32 2147483647, %v10617_v30 }
 0x55e   : > { %v2205_v53 = vmul.f32 1.442695, %v2157_v26  ;;  %vm2433_vm14 = vcmp.eq.f32.partialorder %v2432_v35, 8.507059e+37 }
 0x562   : > { %2118 = vmax.xlane.f32.xlu0 %v2117_v11  ;;  %v2464_v11 = vand.u32 2147483648, %v10581_v14 }
 0x563   : > { %v10727_v12 = vpop.xlane.xlu1 %2100 }
 0x564   : > { %3349 = vrot.lane.b32.xlu1 %v10359_v59, %s13351_s28  ;;  %v2397_v59 = vadd.f32 %v8914_v1, %v2396_v24 }
 0x566   : > { %v2401_v58 = vsel %vm2400_vm3, %v8914_v1, %v2397_v59  ;;  %v2462_v1 = vand.u32 2147483647, %v10581_v14  ;;  %v2461_v59 = vsel %vm10742_vm7, %v8916_v7, %v2457_v21  ;;  %v2465_v14 = vor.u32 1.1754944e-38, %v2464_v11 }
 0x567   : > { %v2406_v28 = vsel %vm2403_vm4, %v2405_v56, %v2401_v58  ;;  %v2431_v58 = vsel %vm2430_vm13, %v10717_v63, %v2427_v2  ;;  %v2449_v63 = vand.u32 2147483648, %v10600_v17  ;;  %vm2443_vm3 = vweird.f32 %v10600_v17 }
 0x568   : > { %v2407_v24 = vmul.f32 %v10396_v23, %v2406_v28  ;;  %v2434_v23 = vand.u32 2147483648, %v10617_v30  ;;  %vm2463_vm9 = vcmp.eq.f32.partialorder %v2462_v1, 8.507059e+37  ;;  %v2154_v30 = vsub.f32 %v10399_v4, %v10542_v0  ;;  %vm10773_vm4 = vmor %vm2443_vm3, %vm2444_vm15 }
 0x569   : > { %v2466_v61 = vsel %vm2463_vm9, %v2465_v14, %v2461_v59  ;;  %v2450_v59 = vor.u32 1.1754944e-38, %v2449_v63 }
 0x56a   : > { %v2435_v8 = vor.u32 1.1754944e-38, %v2434_v23  ;;  %v10786_v23 = vpop.f32.mrf.mxu0 }
 0x56c   : > { %v2436_v21 = vsel %vm2433_vm14, %v2435_v8, %v2431_v58 }
 0x56e   : > { %3118 = vrot.lane.b32.xlu2 %v13643_v48, %s13351_s28 }
 0x56f   : > { %v10712_v37 = vpop.xlane.xlu0 %2103 }
 0x576   : > { %3382 = vrot.lane.b32.xlu0 %v10365_v42, %s13351_s28  ;;  %v2439_v42 = vmul.f32 %v10729_v60, %v10600_v17 }
 0x577   : > { %v10731_v49 = vpop.xlane.xlu0 %2271 }
 0x578   : > { %8921 = vrcp.f32 %v10731_v49  ;;  %v2440_v48 = vsub.f32 1.0, %v2439_v42  ;;  %v2467_v42 = vmul.f32 %v10392_v44, %v2466_v61  ;;  %v2447_v44 = vand.u32 2147483647, %v10600_v17 }
 0x579   : > { %v2509_v8 = vand.u32 2147483648, %v10731_v49  ;;  %vm2503_vm12 = vweird.f32 %v10731_v49 }
 0x57a   : > { %v2441_v7 = vmul.f32 %v10729_v60, %v2440_v48  ;;  %vm2448_vm5 = vcmp.eq.f32.partialorder %v2447_v44, 8.507059e+37 }
 0x57b   : > { %v2954_v19 = vpop.permute.xlu1 %2953 }
 0x57c   : > { %8563 = vmatpush.msk.msra.mxu3 %vm2825_vm10, %v2954_v19  ;;  %v2442_v28 = vadd.f32 %v10729_v60, %v2441_v7  ;;  %v2437_v19 = vmul.f32 %v10489_v36, %v2436_v21 }
 0x57d   : > { %8564 = vmatmul.msk.f32.vlgmr.msra.gmra.mxu3 %vm2821_vm11, %v2407_v24  ;;  %v2199_v24 = vmul.f32 1.442695, %v2154_v30 }
 0x57e   : > { %v10752_v25 = vpop.eup %8921  ;;  %v2446_v43 = vsel %vm10773_vm4, %v10729_v60, %v2442_v28  ;;  %v2159_v60 = vsub.f32 %v10538_v47, %v10727_v12  ;;  %v2507_v47 = vand.u32 2147483647, %v10731_v49 }
 0x57f   : > { %v2499_v40 = vmul.f32 %v10752_v25, %v10731_v49  ;;  %v10768_v11 = vpop.xlane.xlu0 %2274  ;;  %vm2504_vm7 = vweird.f32 %v10752_v25  ;;  %v10807_v49 = vpop.f32.mrf.mxu0 }
 0x580   : > { %v2269_v9 = vpop.xlane.xlu2 %2268  ;;  %vm2505_vm14 = vmor %vm2503_vm12, %vm2504_vm7  ;;  %v2209_v28 = vmul.f32 1.442695, %v2159_v60  ;;  %vm2508_vm15 = vcmp.eq.f32.partialorder %v2507_v47, 8.507059e+37  ;;  %vm2473_vm7 = vweird.f32 %v10621_v5 }
 0x581   : > { %8923 = vrcp.f32 %v2269_v9  ;;  %v2500_v13 = vsub.f32 1.0, %v2499_v40  ;;  %v2494_v14 = vand.u32 2147483648, %v2269_v9  ;;  %v2492_v35 = vand.u32 2147483647, %v2269_v9 }
 0x582   : > { %8925 = vpow2.f32 %v2205_v53  ;;  %v2451_v53 = vsel %vm2448_vm5, %v2450_v59, %v2446_v43  ;;  %vm2488_vm8 = vweird.f32 %v2269_v9  ;;  %v10827_v59 = vpop.f32.mrf.mxu3  ;;  %vm2518_vm5 = vweird.f32 %v10768_v11 }
 0x583   : > { %v3086_v56 = vpop.permute.xlu1 %3085  ;;  %v2501_v17 = vmul.f32 %v10752_v25, %v2500_v13  ;;  %8927 = vpow2.f32 %v2199_v24  ;;  %vm2493_vm13 = vcmp.eq.f32.partialorder %v2492_v35, 8.507059e+37  ;;  %v2510_v13 = vor.u32 1.1754944e-38, %v2509_v8 }
 0x584   : > { %8571 = vmatpush.msk.msrb.mxu3 %vm2825_vm10, %v3086_v56  ;;  %v2495_v56 = vor.u32 1.1754944e-38, %v2494_v14  ;;  %8929 = vpow2.f32 %v2209_v28  ;;  %v2111_v24 = vsel %vm2044_vm2, %v10786_v23, -inf  ;;  %v2524_v8 = vand.u32 2147483648, %v10768_v11 }
 0x585   : > { %8572 = vmatmul.msk.f32.vlgmr.msrb.gmra.mxu3 %vm2821_vm11, %v2467_v42  ;;  %v2502_v61 = vadd.f32 %v10752_v25, %v2501_v17  ;;  %v2452_v42 = vmul.f32 %v10456_v45, %v2451_v53  ;;  %8931 = vrcp.f32 %v10768_v11 }
 0x586   : > { %8933 = vrcp.f32 %v10621_v5  ;;  %v2525_v28 = vor.u32 1.1754944e-38, %v2524_v8 }
 0x587   : > { %v8924_v1 = vpop.eup %8923  ;;  %v2506_v21 = vsel %vm2505_vm14, %v10752_v25, %v2502_v61  ;;  %v10815_v25 = vpop.f32.mrf.mxu1 }
 0x588   : > { %v2484_v0 = vmul.f32 %v8924_v1, %v2269_v9  ;;  %v3020_v26 = vpop.permute.xlu2 %3019  ;;  %v10782_v48 = vpop.eup %8925  ;;  %vm2489_vm6 = vweird.f32 %v8924_v1 }
 0x589   : > { %8567 = vmatpush.msk.msrb.mxu0 %vm2825_vm10, %v3020_v26  ;;  %v2285_v7 = vsel %vm2044_vm2, %v10782_v48, 0.0  ;;  %vm2490_vm9 = vmor %vm2488_vm8, %vm2489_vm6  ;;  %v10805_v63 = vpop.eup %8927  ;;  %v2120_v26 = vsel %vm2044_vm2, %v10815_v25, -inf }
 0x58a   : > { %v2485_v2 = vsub.f32 1.0, %v2484_v0  ;;  %8568 = vmatmul.msk.f32.vlgmr.msrb.gmra.mxu0 %vm2821_vm11, %v2437_v19  ;;  %v2276_v4 = vsel %vm2044_vm2, %v10805_v63, 0.0  ;;  %v10821_v19 = vpop.eup %8929 }
 0x58b   : > { %v2291_v43 = vsel %vm2044_vm2, %v10821_v19, 0.0  ;;  %v8932_v17 = vpop.eup %8931 }
 0x58c   : > { %v2486_v36 = vmul.f32 %v8924_v1, %v2485_v2  ;;  %v13648_v2 = vld [vmem:[#allocation19_spill] sm:$0xff]  ;;  %v8934_v14 = vpop.eup %8933  ;;  %vm2519_vm3 = vweird.f32 %v8932_v17 }
 0x58d   : > { %v2469_v35 = vmul.f32 %v8934_v14, %v10621_v5  ;;  %vm2474_vm4 = vweird.f32 %v8934_v14  ;;  %vm2520_vm6 = vmor %vm2518_vm5, %vm2519_vm3 }
 0x58e   : > { %v2487_v58 = vadd.f32 %v8924_v1, %v2486_v36  ;;  %2286 = vadd.xlane.f32.xlu1 %v2285_v7  ;;  %v2514_v36 = vmul.f32 %v8932_v17, %v10768_v11  ;;  %vm2475_vm8 = vmor %vm2473_vm7, %vm2474_vm4 }
 0x58f   : > { %v2470_v7 = vsub.f32 1.0, %v2469_v35 }
 0x590   : > { %v2491_v12 = vsel %vm2490_vm9, %v8924_v1, %v2487_v58  ;;  %v3053_v30 = vpop.permute.xlu2 %3052  ;;  %v2511_v1 = vsel %vm2508_vm15, %v2510_v13, %v2506_v21  ;;  %v2515_v53 = vsub.f32 1.0, %v2514_v36 }
 0x591   : > { %8569 = vmatpush.msk.msrb.mxu2 %vm2825_vm10, %v3053_v30  ;;  %v2496_v9 = vsel %vm2493_vm13, %v2495_v56, %v2491_v12  ;;  %v2512_v0 = vmul.f32 %v10560_v32, %v2511_v1  ;;  %v2129_v32 = vsel %vm2044_vm2, %v10827_v59, -inf  ;;  %v2471_v58 = vmul.f32 %v8934_v14, %v2470_v7 }
 0x592   : > { %v3152_v40 = vpop.permute.xlu0 %3151  ;;  %8570 = vmatmul.msk.f32.vlgmr.msrb.gmra.mxu2 %vm2821_vm11, %v2452_v42  ;;  %v2497_v45 = vmul.f32 %v10568_v46, %v2496_v9  ;;  %v2123_v46 = vsel %vm2044_vm2, %v10807_v49, -inf  ;;  %v2516_v61 = vmul.f32 %v8932_v17, %v2515_v53  ;;  %v2522_v42 = vand.u32 2147483647, %v10768_v11 }
 0x593   : > { %8575 = vmatpush.msk.msra.mxu0 %vm2825_vm10, %v3152_v40  ;;  %v2472_v56 = vadd.f32 %v8934_v14, %v2471_v58  ;;  %v2477_v12 = vand.u32 2147483647, %v10621_v5 }
 0x594   : > { %8576 = vmatmul.msk.f32.vlgmr.msra.gmra.mxu0 %vm2821_vm11, %v2497_v45  ;;  %v2517_v40 = vadd.f32 %v8932_v17, %v2516_v61  ;;  %vm2523_vm9 = vcmp.eq.f32.partialorder %v2522_v42, 8.507059e+37 }
 0x595   : > { %v2476_v13 = vsel %vm2475_vm8, %v8934_v14, %v2472_v56  ;;  %vm2478_vm12 = vcmp.eq.f32.partialorder %v2477_v12, 8.507059e+37  ;;  %v2160_v14 = vsub.f32 %v10549_v31, %v10712_v37 }
 0x596   : > { %2124 = vmax.xlane.f32.xlu1 %v2123_v46  ;;  %v2521_v30 = vsel %vm2520_vm6, %v8932_v17, %v2517_v40 }
 0x597   : > { %2277 = vadd.xlane.f32.xlu2 %v2276_v4  ;;  %v2211_v53 = vmul.f32 1.442695, %v2160_v14 }
 0x59a   : > { %v3185_v44 = vpop.permute.xlu0 %3184 }
 0x59b   : > { %8577 = vmatpush.msk.msra.mxu2 %vm2825_vm10, %v3185_v44  ;;  %v2526_v44 = vsel %vm2523_vm9, %v2525_v28, %v2521_v30 }
 0x59c   : > { %8578 = vmatmul.msk.f32.vlgmr.msra.gmra.mxu2 %vm2821_vm11, %v2512_v0  ;;  %v2527_v0 = vmul.f32 %v10564_v50, %v2526_v44 }
 0x59e   : > { %2292 = vadd.xlane.f32.xlu1 %v2291_v43 }
 0x59f   : > { %2112 = vmax.xlane.f32.xlu2 %v2111_v24 }
 0x5a0   : > { %2121 = vmax.xlane.f32.xlu0 %v2120_v26 }
 0x5a2   : > { %v3251_v21 = vpop.permute.xlu0 %3250 }
 0x5a8   : > { %2130 = vmax.xlane.f32.xlu0 %v2129_v32  ;;  %v2158_v32 = vsub.f32 %v10408_v10, %v10594_v18 }
 0x5aa   : > { %v2207_v36 = vmul.f32 1.442695, %v2158_v32 }
 0x5ae   : > { %v2110_v60 = vpop.xlane.xlu1 %2109 }
 0x5af   : > { %v2162_v43 = vsub.f32 %v10642_v39, %v2110_v60  ;;  %v10869_v39 = vpop.f32.mrf.mxu1 }
 0x5b0   : > { %v2132_v60 = vsel %vm2044_vm2, %v10869_v39, -inf }
 0x5b6   : > { %v10842_v47 = vpop.xlane.xlu1 %2280 }
 0x5b7   : > { %3283 = vrot.lane.b32.xlu2 %v13648_v2, %s13351_s28  ;;  %3481 = vrot.lane.b32.xlu1 %v10410_v38, %s13351_s28  ;;  %v2479_v38 = vand.u32 2147483648, %v10621_v5  ;;  %v2215_v2 = vmul.f32 1.442695, %v2162_v43  ;;  %vm2548_vm3 = vweird.f32 %v10842_v47  ;;  %v2554_v32 = vand.u32 2147483648, %v10842_v47 }
 0x5b9   : > { %v2480_v1 = vor.u32 1.1754944e-38, %v2479_v38 }
 0x5bb   : > { %v2481_v4 = vsel %vm2478_vm12, %v2480_v1, %v2476_v13 }
 0x5bc   : > { %v2482_v26 = vmul.f32 %v10476_v20, %v2481_v4  ;;  %v10864_v20 = vpop.f32.mrf.mxu2 }
 0x5bd   : > { %v2114_v18 = vsel %vm2044_vm2, %v10864_v20, -inf }
 0x5c4   : > { %v10873_v10 = vpop.f32.mrf.mxu2 }
 0x5c5   : > { %v2126_v7 = vsel %vm2044_vm2, %v10873_v10, -inf }
 0x5c9   : > { %v2107_v9 = vpop.xlane.xlu2 %2106 }
 0x5ca   : > { %v2161_v45 = vsub.f32 %v10694_v52, %v2107_v9 }
 0x5cc   : > { %v2213_v11 = vmul.f32 1.442695, %v2161_v45 }
 0x5cd   : > { %v10852_v24 = vpop.xlane.xlu0 %2283 }
 0x5ce   : > { %8935 = vpow2.f32 %v2213_v11  ;;  %v3218_v46 = vpop.permute.xlu1 %3217 }
 0x5cf   : > { %8579 = vmatpush.msk.msra.mxu3 %vm2825_vm10, %v3218_v46  ;;  %8937 = vpow2.f32 %v2215_v2 }
 0x5d0   : > { %8580 = vmatmul.msk.f32.vlgmr.msra.gmra.mxu3 %vm2821_vm11, %v2527_v0  ;;  %8939 = vpow2.f32 %v2207_v36 }
 0x5d1   : > { %v3119_v5 = vpop.permute.xlu2 %3118  ;;  %8941 = vpow2.f32 %v2211_v53 }
 0x5d2   : > { %8573 = vmatpush.msk.msrb.mxu1 %vm2825_vm10, %v3119_v5 }
 0x5d3   : > { %8574 = vmatmul.msk.f32.vlgmr.msrb.gmra.mxu1 %vm2821_vm11, %v2482_v26 }
 0x5d4   : > { %v10856_v52 = vpop.eup %8935  ;;  %8581 = vmatpush.msk.msra.mxu1 %vm2825_vm10, %v3251_v21 }
 0x5d5   : > { %v2297_v50 = vsel %vm2044_vm2, %v10856_v52, 0.0  ;;  %v2119_v35 = vpop.xlane.xlu0 %2118  ;;  %v10878_v37 = vpop.eup %8937 }
 0x5d6   : > { %2298 = vadd.xlane.f32.xlu0 %v2297_v50  ;;  %v3350_v17 = vpop.permute.xlu1 %3349  ;;  %v2165_v31 = vsub.f32 %v10700_v51, %v2119_v35  ;;  %v10882_v61 = vpop.eup %8939  ;;  %v2300_v8 = vsel %vm2044_vm2, %v10878_v37, 0.0 }
 0x5d7   : > { %8587 = vmatpush.msk.msrb.mxu3 %vm2825_vm10, %v3350_v17  ;;  %v10887_v56 = vpop.eup %8941  ;;  %v2288_v51 = vsel %vm2044_vm2, %v10882_v61, 0.0  ;;  %v2552_v17 = vand.u32 2147483647, %v10842_v47 }
 0x5d8   : > { %v2221_v40 = vmul.f32 1.442695, %v2165_v31  ;;  %v2294_v42 = vsel %vm2044_vm2, %v10887_v56, 0.0 }
 0x5d9   : > { %vm2553_vm7 = vcmp.eq.f32.partialorder %v2552_v17, 8.507059e+37 }
 0x5da   : > { %8943 = vpow2.f32 %v2221_v40 }
 0x5db   : > { %8945 = vrcp.f32 %v10842_v47 }
 0x5de   : > { %2133 = vmax.xlane.f32.xlu0 %v2132_v60 }
 0x5e0   : > { %2115 = vmax.xlane.f32.xlu2 %v2114_v18  ;;  %v10893_v38 = vpop.eup %8943  ;;  %v2555_v18 = vor.u32 1.1754944e-38, %v2554_v32  ;;  %v10944_v32 = vpop.f32.mrf.mxu2 }
 0x5e1   : > { %2127 = vmax.xlane.f32.xlu1 %v2126_v7  ;;  %v2309_v12 = vsel %vm2044_vm2, %v10893_v38, 0.0  ;;  %v8946_v30 = vpop.eup %8945 }
 0x5e2   : > { %v2544_v28 = vmul.f32 %v8946_v30, %v10842_v47  ;;  %vm2549_vm14 = vweird.f32 %v8946_v30 }
 0x5e3   : > { %vm2550_vm6 = vmor %vm2548_vm3, %vm2549_vm14 }
 0x5e4   : > { %v2545_v21 = vsub.f32 1.0, %v2544_v28 }
 0x5e6   : > { %2301 = vadd.xlane.f32.xlu0 %v2300_v8  ;;  %v2546_v44 = vmul.f32 %v8946_v30, %v2545_v21 }
 0x5e8   : > { %v3383_v58 = vpop.permute.xlu0 %3382  ;;  %2289 = vadd.xlane.f32.xlu2 %v2288_v51  ;;  %v2547_v43 = vadd.f32 %v8946_v30, %v2546_v44 }
 0x5e9   : > { %8589 = vmatpush.msk.msrb.mxu1 %vm2825_vm10, %v3383_v58  ;;  %2295 = vadd.xlane.f32.xlu1 %v2294_v42 }
 0x5ea   : > { %v2551_v53 = vsel %vm2550_vm6, %v8946_v30, %v2547_v43 }
 0x5eb   : > { %v2556_v8 = vsel %vm2553_vm7, %v2555_v18, %v2551_v53  ;;  %v2138_v18 = vsel %vm2044_vm2, %v10944_v32, -inf }
 0x5ec   : > { %v2557_v30 = vmul.f32 %v10669_v22, %v2556_v8  ;;  %v13649_v22 = vld [vmem:[#allocation20_spill] sm:$0xff] }
 0x5f1   : > { %2310 = vadd.xlane.f32.xlu1 %v2309_v12 }
 0x600   : > { %3415 = vrot.lane.b32.xlu2 %v10382_v54, %s13351_s28 }
 0x601   : > { %v2287_v9 = vpop.xlane.xlu1 %2286 }
 0x602   : > { %8947 = vrcp.f32 %v2287_v9  ;;  %v2584_v0 = vand.u32 2147483648, %v2287_v9  ;;  %v2582_v5 = vand.u32 2147483647, %v2287_v9  ;;  %vm2578_vm15 = vweird.f32 %v2287_v9 }
 0x604   : > { %vm2583_vm5 = vcmp.eq.f32.partialorder %v2582_v5, 8.507059e+37 }
 0x608   : > { %3514 = vrot.lane.b32.xlu2 %v10426_v55, %s13351_s28  ;;  %v8948_v45 = vpop.eup %8947 }
 0x609   : > { %v2574_v13 = vmul.f32 %v8948_v45, %v2287_v9  ;;  %v2125_v11 = vpop.xlane.xlu1 %2124  ;;  %vm2579_vm13 = vweird.f32 %v8948_v45 }
 0x60a   : > { %v2278_v1 = vpop.xlane.xlu2 %2277  ;;  %v2167_v46 = vsub.f32 %v10807_v49, %v2125_v11  ;;  %vm2580_vm4 = vmor %vm2578_vm15, %vm2579_vm13  ;;  %v2585_v49 = vor.u32 1.1754944e-38, %v2584_v0 }
 0x60b   : > { %8949 = vrcp.f32 %v2278_v1  ;;  %v2575_v4 = vsub.f32 1.0, %v2574_v13  ;;  %v2537_v40 = vand.u32 2147483647, %v2278_v1  ;;  %vm2533_vm9 = vweird.f32 %v2278_v1 }
 0x60c   : > { %v2225_v26 = vmul.f32 1.442695, %v2167_v46 }
 0x60d   : > { %v2576_v54 = vmul.f32 %v8948_v45, %v2575_v4  ;;  %vm2538_vm13 = vcmp.eq.f32.partialorder %v2537_v40, 8.507059e+37 }
 0x60e   : > { %8951 = vpow2.f32 %v2225_v26 }
 0x60f   : > { %v2577_v50 = vadd.f32 %v8948_v45, %v2576_v54 }
 0x610   : > { %3547 = vrot.lane.b32.xlu2 %v10433_v15, %s13351_s28  ;;  %v2539_v15 = vand.u32 2147483648, %v2278_v1 }
 0x611   : > { %v8950_v55 = vpop.eup %8949  ;;  %v2581_v2 = vsel %vm2580_vm4, %v8948_v45, %v2577_v50 }
 0x612   : > { %v2529_v14 = vmul.f32 %v8950_v55, %v2278_v1  ;;  %v2113_v36 = vpop.xlane.xlu2 %2112  ;;  %v2586_v35 = vsel %vm2583_vm5, %v2585_v49, %v2581_v2  ;;  %vm2534_vm8 = vweird.f32 %v8950_v55 }
 0x613   : > { %v2587_v31 = vmul.f32 %v10782_v48, %v2586_v35  ;;  %vm2535_vm12 = vmor %vm2533_vm9, %vm2534_vm8  ;;  %v2540_v48 = vor.u32 1.1754944e-38, %v2539_v15  ;;  %v2122_v45 = vpop.xlane.xlu0 %2121  ;;  %v2163_v13 = vsub.f32 %v10786_v23, %v2113_v36  ;;  %v10949_v35 = vpop.f32.mrf.mxu0 }
 0x614   : > { %v2530_v60 = vsub.f32 1.0, %v2529_v14  ;;  %v10911_v7 = vpop.eup %8951  ;;  %v2166_v4 = vsub.f32 %v10815_v25, %v2122_v45 }
 0x615   : > { %8588 = vmatmul.msk.f32.vlgmr.msrb.gmra.mxu3 %vm2821_vm11, %v2587_v31  ;;  %v2315_v47 = vsel %vm2044_vm2, %v10911_v7, 0.0  ;;  %v2217_v1 = vmul.f32 1.442695, %v2163_v13 }
 0x616   : > { %v2531_v58 = vmul.f32 %v8950_v55, %v2530_v60  ;;  %2316 = vadd.xlane.f32.xlu1 %v2315_v47  ;;  %v2223_v26 = vmul.f32 1.442695, %v2166_v4  ;;  %v2135_v47 = vsel %vm2044_vm2, %v10949_v35, -inf }
 0x618   : > { %v2532_v51 = vadd.f32 %v8950_v55, %v2531_v58  ;;  %3613 = vrot.lane.b32.xlu2 %v10453_v6, %s13351_s28  ;;  %v10925_v6 = vpop.xlane.xlu1 %2292 }
 0x619   : > { %8953 = vrcp.f32 %v10925_v6  ;;  %vm2608_vm6 = vweird.f32 %v10925_v6  ;;  %v2612_v8 = vand.u32 2147483647, %v10925_v6 }
 0x61a   : > { %v2536_v42 = vsel %vm2535_vm12, %v8950_v55, %v2532_v51  ;;  %v3284_v12 = vpop.permute.xlu2 %3283  ;;  %8955 = vpow2.f32 %v2217_v1 }
 0x61b   : > { %8583 = vmatpush.msk.msrb.mxu0 %vm2825_vm10, %v3284_v12  ;;  %v2541_v9 = vsel %vm2538_vm13, %v2540_v48, %v2536_v42  ;;  %vm2613_vm8 = vcmp.eq.f32.partialorder %v2612_v8, 8.507059e+37 }
 0x61c   : > { %8584 = vmatmul.msk.f32.vlgmr.msrb.gmra.mxu0 %vm2821_vm11, %v2557_v30  ;;  %v2542_v28 = vmul.f32 %v10805_v63, %v2541_v9  ;;  %v2131_v63 = vpop.xlane.xlu0 %2130 }
 0x61d   : > { %v2169_v53 = vsub.f32 %v10827_v59, %v2131_v63  ;;  %v2614_v59 = vand.u32 2147483648, %v10925_v6 }
 0x61e   : > { %8582 = vmatmul.msk.f32.vlgmr.msra.gmra.mxu1 %vm2821_vm11, %v2542_v28 }
 0x61f   : > { %v10934_v11 = vpop.eup %8953  ;;  %v2229_v51 = vmul.f32 1.442695, %v2169_v53 }
 0x620   : > { %3646 = vrot.lane.b32.xlu2 %v10465_v16, %s13351_s28  ;;  %v10936_v44 = vpop.eup %8955  ;;  %vm2609_vm4 = vweird.f32 %v10934_v11 }
 0x621   : > { %v2303_v23 = vsel %vm2044_vm2, %v10936_v44, 0.0  ;;  %vm10972_vm7 = vmor %vm2608_vm6, %vm2609_vm4 }
 0x628   : > { %3679 = vrot.lane.b32.xlu2 %v10484_v3, %s13351_s28  ;;  %v2604_v3 = vmul.f32 %v10934_v11, %v10925_v6 }
 0x629   : > { %v3482_v21 = vpop.permute.xlu1 %3481 }
 0x62a   : > { %8595 = vmatpush.msk.msra.mxu3 %vm2825_vm10, %v3482_v21  ;;  %v2605_v0 = vsub.f32 1.0, %v2604_v3  ;;  %v2615_v21 = vor.u32 1.1754944e-38, %v2614_v59 }
 0x62c   : > { %v2606_v49 = vmul.f32 %v10934_v11, %v2605_v0 }
 0x62e   : > { %v2607_v15 = vadd.f32 %v10934_v11, %v2606_v49 }
 0x62f   : > { %3316 = vrot.lane.b32.xlu1 %v13649_v22, %s13351_s28 }
 0x630   : > { %v2611_v9 = vsel %vm10972_vm7, %v10934_v11, %v2607_v15 }
 0x649   : > { %v2299_v16 = vpop.xlane.xlu0 %2298 }
 0x64a   : > { %8957 = vrcp.f32 %v2299_v16  ;;  %v2644_v25 = vand.u32 2147483648, %v2299_v16  ;;  %v2642_v2 = vand.u32 2147483647, %v2299_v16  ;;  %vm2638_vm15 = vweird.f32 %v2299_v16 }
 0x64b   : > { %8959 = vpow2.f32 %v2223_v26 }
 0x64c   : > { %v2645_v58 = vor.u32 1.1754944e-38, %v2644_v25  ;;  %vm2643_vm5 = vcmp.eq.f32.partialorder %v2642_v2, 8.507059e+37 }
 0x650   : > { %v8958_v46 = vpop.eup %8957 }
 0x651   : > { %v2634_v54 = vmul.f32 %v8958_v46, %v2299_v16  ;;  %v2134_v5 = vpop.xlane.xlu0 %2133  ;;  %2304 = vadd.xlane.f32.xlu2 %v2303_v23  ;;  %vm2639_vm14 = vweird.f32 %v8958_v46  ;;  %v10976_v30 = vpop.eup %8959  ;;  %v2616_v16 = vsel %vm2613_vm8, %v2615_v21, %v2611_v9 }
 0x652   : > { %vm10952_vm3 = vmor %vm2638_vm15, %vm2639_vm14  ;;  %v2170_v22 = vsub.f32 %v10869_v39, %v2134_v5  ;;  %v2312_v1 = vsel %vm2044_vm2, %v10976_v30, 0.0  ;;  %v2617_v23 = vmul.f32 %v10821_v19, %v2616_v16 }
 0x653   : > { %v2635_v43 = vsub.f32 1.0, %v2634_v54  ;;  %v2116_v50 = vpop.xlane.xlu2 %2115 }
 0x654   : > { %v2164_v55 = vsub.f32 %v10864_v20, %v2116_v50  ;;  %v10947_v36 = vpop.xlane.xlu1 %2127  ;;  %v2231_v39 = vmul.f32 1.442695, %v2170_v22 }
 0x655   : > { %v2636_v17 = vmul.f32 %v8958_v46, %v2635_v43 }
 0x656   : > { %v2219_v14 = vmul.f32 1.442695, %v2164_v55 }
 0x657   : > { %v2637_v60 = vadd.f32 %v8958_v46, %v2636_v17 }
 0x658   : > { %8961 = vpow2.f32 %v2219_v14 }
 0x659   : > { %v2641_v31 = vsel %vm10952_vm3, %v8958_v46, %v2637_v60  ;;  %v10962_v40 = vpop.xlane.xlu0 %2301  ;;  %2139 = vmax.xlane.f32.xlu2 %v2138_v18  ;;  %2136 = vmax.xlane.f32.xlu1 %v2135_v47 }
 0x65a   : > { %8963 = vrcp.f32 %v10962_v40  ;;  %v2646_v42 = vsel %vm2643_vm5, %v2645_v58, %v2641_v31  ;;  %v2659_v60 = vand.u32 2147483648, %v10962_v40  ;;  %vm2653_vm3 = vweird.f32 %v10962_v40 }
 0x65b   : > { %v2290_v48 = vpop.xlane.xlu2 %2289  ;;  %v2647_v28 = vmul.f32 %v10856_v52, %v2646_v42  ;;  %v2657_v15 = vand.u32 2147483647, %v10962_v40 }
 0x65c   : > { %8965 = vrcp.f32 %v2290_v48  ;;  %v10985_v45 = vpop.xlane.xlu1 %2295  ;;  %v2597_v5 = vand.u32 2147483647, %v2290_v48  ;;  %v2599_v26 = vand.u32 2147483648, %v2290_v48  ;;  %vm2593_vm12 = vweird.f32 %v2290_v48 }
 0x65d   : > { %8967 = vpow2.f32 %v2229_v51  ;;  %8596 = vmatmul.msk.f32.vlgmr.msra.gmra.mxu3 %vm2821_vm11, %v2647_v28  ;;  %v2660_v47 = vor.u32 1.1754944e-38, %v2659_v60  ;;  %vm2658_vm5 = vcmp.eq.f32.partialorder %v2657_v15, 8.507059e+37 }
 0x65e   : > { %v10982_v6 = vpop.eup %8961  ;;  %8969 = vpow2.f32 %v2231_v39  ;;  %v2600_v19 = vor.u32 1.1754944e-38, %v2599_v26  ;;  %vm2598_vm15 = vcmp.eq.f32.partialorder %v2597_v5, 8.507059e+37 }
 0x65f   : > { %v2306_v63 = vsel %vm2044_vm2, %v10982_v6, 0.0 }
 0x660   : > { %v8964_v13 = vpop.eup %8963  ;;  %2307 = vadd.xlane.f32.xlu0 %v2306_v63 }
 0x661   : > { %v2649_v52 = vmul.f32 %v8964_v13, %v10962_v40  ;;  %2313 = vadd.xlane.f32.xlu2 %v2312_v1  ;;  %vm2654_vm14 = vweird.f32 %v8964_v13  ;;  %v3843_v1 = vld [vmem:[#allocation1] sm:$0xff] }
 0x662   : > { %v8966_v11 = vpop.eup %8965  ;;  %vm2655_vm4 = vmor %vm2653_vm3, %vm2654_vm14 }
 0x663   : > { %v2650_v3 = vsub.f32 1.0, %v2649_v52  ;;  %v2589_v4 = vmul.f32 %v8966_v11, %v2290_v48  ;;  %v3416_v46 = vpop.permute.xlu2 %3415  ;;  %v10995_v0 = vpop.eup %8967  ;;  %vm2594_vm9 = vweird.f32 %v8966_v11 }
 0x664   : > { %8591 = vmatpush.msk.msra.mxu0 %vm2825_vm10, %v3416_v46  ;;  %v2311_v43 = vpop.xlane.xlu1 %2310  ;;  %v2321_v49 = vsel %vm2044_vm2, %v10995_v0, 0.0  ;;  %vm2595_vm13 = vmor %vm2593_vm12, %vm2594_vm9  ;;  %v11000_v53 = vpop.eup %8969 }
 0x665   : > { %v2590_v54 = vsub.f32 1.0, %v2589_v4  ;;  %8592 = vmatmul.msk.f32.vlgmr.msra.gmra.mxu0 %vm2821_vm11, %v2617_v23  ;;  %v2651_v50 = vmul.f32 %v8964_v13, %v2650_v3  ;;  %8971 = vrcp.f32 %v2311_v43  ;;  %v2324_v51 = vsel %vm2044_vm2, %v11000_v53, 0.0 }
 0x666   : > { %v2704_v42 = vand.u32 2147483648, %v2311_v43  ;;  %v2702_v9 = vand.u32 2147483647, %v2311_v43  ;;  %vm2698_vm7 = vweird.f32 %v2311_v43  ;;  %8973 = vrcp.f32 %v10852_v24 }
 0x667   : > { %v2591_v55 = vmul.f32 %v8966_v11, %v2590_v54  ;;  %v2652_v25 = vadd.f32 %v8964_v13, %v2651_v50  ;;  %v2168_v3 = vsub.f32 %v10873_v10, %v10947_v36  ;;  %v2569_v54 = vand.u32 2147483648, %v10852_v24 }
 0x668   : > { %v2705_v22 = vor.u32 1.1754944e-38, %v2704_v42  ;;  %vm2703_vm9 = vcmp.eq.f32.partialorder %v2702_v9, 8.507059e+37 }
 0x669   : > { %v2592_v17 = vadd.f32 %v8966_v11, %v2591_v55  ;;  %2322 = vadd.xlane.f32.xlu2 %v2321_v49  ;;  %v2656_v59 = vsel %vm2655_vm4, %v8964_v13, %v2652_v25  ;;  %v11017_v13 = vpop.f32.mrf.mxu3  ;;  %v2570_v36 = vor.u32 1.1754944e-38, %v2569_v54 }
 0x66a   : > { %v2661_v12 = vsel %vm2658_vm5, %v2660_v47, %v2656_v59 }
 0x66b   : > { %v2596_v2 = vsel %vm2595_vm13, %v8966_v11, %v2592_v17  ;;  %v3515_v14 = vpop.permute.xlu2 %3514  ;;  %v8972_v18 = vpop.eup %8971  ;;  %vm2563_vm13 = vweird.f32 %v10852_v24 }
 0x66c   : > { %8597 = vmatpush.msk.msra.mxu1 %vm2825_vm10, %v3515_v14  ;;  %v2601_v20 = vsel %vm2598_vm15, %v2600_v19, %v2596_v2  ;;  %v2694_v58 = vmul.f32 %v8972_v18, %v2311_v43  ;;  %vm2699_vm6 = vweird.f32 %v8972_v18  ;;  %v2567_v43 = vand.u32 2147483647, %v10852_v24  ;;  %v11059_v2 = vpop.f32.mrf.mxu1 }
 0x66d   : > { %v2602_v31 = vmul.f32 %v10882_v61, %v2601_v20  ;;  %vm2700_vm8 = vmor %vm2698_vm7, %vm2699_vm6  ;;  %v2662_v61 = vmul.f32 %v10878_v37, %v2661_v12  ;;  %v11069_v12 = vpop.f32.mrf.mxu0 }
 0x66e   : > { %v2695_v8 = vsub.f32 1.0, %v2694_v58  ;;  %vm2568_vm15 = vcmp.eq.f32.partialorder %v2567_v43, 8.507059e+37 }
 0x66f   : > { %8590 = vmatmul.msk.f32.vlgmr.msrb.gmra.mxu1 %vm2821_vm11, %v2602_v31 }
 0x670   : > { %v2696_v48 = vmul.f32 %v8972_v18, %v2695_v8 }
 0x671   : > { %2325 = vadd.xlane.f32.xlu2 %v2324_v51 }
 0x672   : > { %v2697_v28 = vadd.f32 %v8972_v18, %v2696_v48  ;;  %3778 = vrot.lane.b32.xlu1 %v10516_v57, %s13351_s28 }
 0x673   : > { %v3548_v40 = vpop.permute.xlu2 %3547 }
 0x674   : > { %8599 = vmatpush.msk.msrb.mxu0 %vm2825_vm10, %v3548_v40  ;;  %3448 = vrot.lane.b32.xlu0 %v10394_v34, %s13351_s28  ;;  %v2701_v21 = vsel %vm2700_vm8, %v8972_v18, %v2697_v28  ;;  %v11023_v34 = vpop.f32.mrf.mxu3 }
 0x675   : > { %v2706_v63 = vsel %vm2703_vm9, %v2705_v22, %v2701_v21 }
 0x676   : > { %v2707_v57 = vmul.f32 %v10893_v38, %v2706_v63  ;;  %v8974_v38 = vpop.eup %8973 }
 0x677   : > { %8598 = vmatmul.msk.f32.vlgmr.msra.gmra.mxu1 %vm2821_vm11, %v2662_v61  ;;  %v2559_v39 = vmul.f32 %v8974_v38, %v10852_v24  ;;  %vm2564_vm12 = vweird.f32 %v8974_v38 }
 0x678   : > { %vm2565_vm14 = vmor %vm2563_vm13, %vm2564_vm12 }
 0x679   : > { %v2560_v4 = vsub.f32 1.0, %v2559_v39 }
 0x67a   : > { %3844 = vrot.lane.b32.xlu1 %v3843_v1, %s13351_s28 }
 0x67b   : > { %v3614_v16 = vpop.permute.xlu2 %3613  ;;  %v2561_v23 = vmul.f32 %v8974_v38, %v2560_v4 }
 0x67c   : > { %8603 = vmatpush.msk.msrb.mxu3 %vm2825_vm10, %v3614_v16  ;;  %v3109_v52 = vpop.f32.mrf.mxu3 }
 0x67d   : > { %8604 = vmatmul.msk.f32.vlgmr.msrb.gmra.mxu3 %vm2821_vm11, %v2707_v57 }
 0x682   : > { %3811 = vrot.lane.b32.xlu1 %v10521_v62, %s13351_s28  ;;  %v2227_v62 = vmul.f32 1.442695, %v2168_v3 }
 0x683   : > { %v3647_v37 = vpop.permute.xlu2 %3646 }
 0x684   : > { %8605 = vmatpush.msk.msrb.mxu1 %vm2825_vm10, %v3647_v37  ;;  %v11036_v46 = vpop.f32.mrf.mxu3  ;;  %8975 = vpow2.f32 %v2227_v62 }
 0x689   : > { %3580 = vrot.lane.b32.xlu2 %v10444_v27, %s13351_s28  ;;  %v2562_v27 = vadd.f32 %v8974_v38, %v2561_v23  ;;  %v11043_v50 = vpop.xlane.xlu1 %2316  ;;  %v11104_v23 = vpop.f32.mrf.mxu0 }
 0x68a   : > { %3879 = vrot.lane.b32.xlu1 %v3109_v52, %s13359_s19  ;;  %v11039_v26 = vpop.eup %8975  ;;  %8977 = vrcp.f32 %v11043_v50  ;;  %vm2728_vm8 = vweird.f32 %v11043_v50 }
 0x68b   : > { %v3680_v11 = vpop.permute.xlu2 %3679  ;;  %v2566_v10 = vsel %vm2565_vm14, %v8974_v38, %v2562_v27  ;;  %v2318_v55 = vsel %vm2044_vm2, %v11039_v26, 0.0  ;;  %v2732_v38 = vand.u32 2147483647, %v11043_v50  ;;  %vm2623_vm14 = vweird.f32 %v10985_v45 }
 0x68c   : > { %8607 = vmatpush.msk.msra.mxu0 %vm2825_vm10, %v3680_v11  ;;  %v2571_v49 = vsel %vm2568_vm15, %v2570_v36, %v2566_v10 }
 0x68d   : > { %v2572_v19 = vmul.f32 %v10692_v29, %v2571_v49  ;;  %vm2733_vm12 = vcmp.eq.f32.partialorder %v2732_v38, 8.507059e+37 }
 0x690   : > { %v11056_v25 = vpop.eup %8977 }
 0x691   : > { %v2724_v29 = vmul.f32 %v11056_v25, %v11043_v50  ;;  %vm2729_vm6 = vweird.f32 %v11056_v25 }
 0x692   : > { %vm11094_vm9 = vmor %vm2728_vm8, %vm2729_vm6 }
 0x698   : > { %v3373_v5 = vpop.f32.mrf.mxu3 }
 0x699   : > { %3911 = vrot.lane.b32.xlu1 %v3373_v5, %s13365_s22 }
 0x69e   : > { %2319 = vadd.xlane.f32.xlu0 %v2318_v55  ;;  %v2629_v55 = vand.u32 2147483648, %v10985_v45 }
 0x6a1   : > { %v3317_v17 = vpop.permute.xlu1 %3316 }
 0x6a2   : > { %8585 = vmatpush.msk.msrb.mxu2 %vm2825_vm10, %v3317_v17  ;;  %v2627_v17 = vand.u32 2147483647, %v10985_v45 }
 0x6a3   : > { %8586 = vmatmul.msk.f32.vlgmr.msrb.gmra.mxu2 %vm2821_vm11, %v2572_v19 }
 0x6b2   : > { %3712 = vrot.lane.b32.xlu0 %v10494_v33, %s13351_s28 }
 0x6ba   : > { %3745 = vrot.lane.b32.xlu0 %v10509_v41, %s13351_s28  ;;  %v2725_v41 = vsub.f32 1.0, %v2724_v29  ;;  %s13756_s28 = smov 64  }
 0x6bc   : > { %v2726_v51 = vmul.f32 %v11056_v25, %v2725_v41 }
 0x6be   : > { %v2727_v1 = vadd.f32 %v11056_v25, %v2726_v51 }
 0x6c0   : > { %v2731_v4 = vsel %vm11094_vm9, %v11056_v25, %v2727_v1 }
 0x6c4   : > { %v2305_v24 = vpop.xlane.xlu2 %2304 }
 0x6c5   : > { %8979 = vrcp.f32 %v2305_v24  ;;  %v2674_v8 = vand.u32 2147483648, %v2305_v24  ;;  %vm2668_vm4 = vweird.f32 %v2305_v24  ;;  %v2672_v42 = vand.u32 2147483647, %v2305_v24 }
 0x6c6   : > { %8981 = vrcp.f32 %v10985_v45 }
 0x6c7   : > { %v2675_v63 = vor.u32 1.1754944e-38, %v2674_v8  ;;  %vm2673_vm7 = vcmp.eq.f32.partialorder %v2672_v42, 8.507059e+37 }
 0x6cb   : > { %v8980_v14 = vpop.eup %8979 }
 0x6cc   : > { %v2664_v60 = vmul.f32 %v8980_v14, %v2305_v24  ;;  %v2140_v20 = vpop.xlane.xlu2 %2139  ;;  %v11064_v18 = vpop.eup %8981  ;;  %vm2669_vm3 = vweird.f32 %v8980_v14 }
 0x6cd   : > { %v2172_v33 = vsub.f32 %v10944_v32, %v2140_v20  ;;  %v2137_v59 = vpop.xlane.xlu1 %2136  ;;  %v2619_v47 = vmul.f32 %v11064_v18, %v10985_v45  ;;  %v11071_v32 = vpop.f32.mrf.mxu1  ;;  %vm11073_vm5 = vmor %vm2668_vm4, %vm2669_vm3  ;;  %vm2624_vm13 = vweird.f32 %v11064_v18  ;;  %v2630_v45 = vor.u32 1.1754944e-38, %v2629_v55 }
 0x6ce   : > { %v2665_v15 = vsub.f32 1.0, %v2664_v60  ;;  %v2171_v40 = vsub.f32 %v10949_v35, %v2137_v59  ;;  %v2734_v35 = vand.u32 2147483648, %v11043_v50  ;;  %vm11117_vm15 = vmor %vm2623_vm14, %vm2624_vm13  ;;  %vm2628_vm4 = vcmp.eq.f32.partialorder %v2627_v17, 8.507059e+37 }
 0x6cf   : > { %v2235_v31 = vmul.f32 1.442695, %v2172_v33  ;;  %v2620_v22 = vsub.f32 1.0, %v2619_v47 }
 0x6d0   : > { %v2666_v58 = vmul.f32 %v8980_v14, %v2665_v15  ;;  %v2233_v57 = vmul.f32 1.442695, %v2171_v40  ;;  %v11129_v15 = vpop.f32.mrf.mxu0 }
 0x6d1   : > { %8983 = vpow2.f32 %v2235_v31  ;;  %v2621_v39 = vmul.f32 %v11064_v18, %v2620_v22 }
 0x6d2   : > { %v2667_v48 = vadd.f32 %v8980_v14, %v2666_v58 }
 0x6d3   : > { %v11080_v61 = vpop.xlane.xlu0 %2307  ;;  %v2622_v50 = vadd.f32 %v11064_v18, %v2621_v39 }
 0x6d4   : > { %v2671_v28 = vsel %vm11073_vm5, %v8980_v14, %v2667_v48  ;;  %v2314_v21 = vpop.xlane.xlu2 %2313  ;;  %8985 = vrcp.f32 %v11080_v61  ;;  %v2689_v48 = vand.u32 2147483648, %v11080_v61  ;;  %vm2683_vm9 = vweird.f32 %v11080_v61 }
 0x6d5   : > { %8987 = vrcp.f32 %v2314_v21  ;;  %v2676_v37 = vsel %vm2673_vm7, %v2675_v63, %v2671_v28  ;;  %v11106_v54 = vpop.f32.mrf.mxu1  ;;  %v2717_v25 = vand.u32 2147483647, %v2314_v21  ;;  %v2719_v29 = vand.u32 2147483648, %v2314_v21 }
 0x6d6   : > { %v2677_v52 = vmul.f32 %v10936_v44, %v2676_v37  ;;  %v2735_v44 = vor.u32 1.1754944e-38, %v2734_v35  ;;  %8989 = vpow2.f32 %v2233_v57  ;;  %v2626_v20 = vsel %vm11117_vm15, %v11064_v18, %v2622_v50 }
 0x6d7   : > { %v11085_v16 = vpop.eup %8983  ;;  %vm2713_vm5 = vweird.f32 %v2314_v21  ;;  %vm2718_vm7 = vcmp.eq.f32.partialorder %v2717_v25, 8.507059e+37  ;;  %v2631_v47 = vsel %vm2628_vm4, %v2630_v45, %v2626_v20  ;;  %v2687_v40 = vand.u32 2147483647, %v11080_v61 }
 0x6d8   : > { %v2330_v11 = vsel %vm2044_vm2, %v11085_v16, 0.0  ;;  %8600 = vmatmul.msk.f32.vlgmr.msrb.gmra.mxu0 %vm2821_vm11, %v2677_v52  ;;  %v2736_v36 = vsel %vm2733_vm12, %v2735_v44, %v2731_v4  ;;  %v2690_v1 = vor.u32 1.1754944e-38, %v2689_v48  ;;  %v11147_v57 = vpop.f32.mrf.mxu0 }
 0x6d9   : > { %2331 = vadd.xlane.f32.xlu2 %v2330_v11  ;;  %v2737_v14 = vmul.f32 %v10911_v7, %v2736_v36  ;;  %v2720_v7 = vor.u32 1.1754944e-38, %v2719_v29  ;;  %vm2688_vm13 = vcmp.eq.f32.partialorder %v2687_v40, 8.507059e+37 }
 0x6da   : > { %v11102_v62 = vpop.eup %8985 }
 0x6db   : > { %v8988_v27 = vpop.eup %8987  ;;  %v2679_v5 = vmul.f32 %v11102_v62, %v11080_v61  ;;  %vm2684_vm8 = vweird.f32 %v11102_v62 }
 0x6dc   : > { %v11110_v43 = vpop.xlane.xlu2 %2322  ;;  %v2709_v10 = vmul.f32 %v8988_v27, %v2314_v21  ;;  %v11122_v60 = vpop.eup %8989  ;;  %vm2714_vm3 = vweird.f32 %v8988_v27  ;;  %v2632_v21 = vmul.f32 %v10887_v56, %v2631_v47  ;;  %vm2685_vm12 = vmor %vm2683_vm9, %vm2684_vm8 }
 0x6dd   : > { %v2680_v49 = vsub.f32 1.0, %v2679_v5  ;;  %v11131_v58 = vpop.f32.mrf.mxu1  ;;  %vm2715_vm6 = vmor %vm2713_vm5, %vm2714_vm3  ;;  %v2327_v18 = vsel %vm2044_vm2, %v11122_v60, 0.0  ;;  %v2762_v48 = vand.u32 2147483647, %v11110_v43 }
 0x6de   : > { %v2710_v19 = vsub.f32 1.0, %v2709_v10  ;;  %v11158_v10 = vpop.f32.mrf.mxu2 }
 0x6df   : > { %v2681_v33 = vmul.f32 %v11102_v62, %v2680_v49 }
 0x6e0   : > { %v2711_v41 = vmul.f32 %v8988_v27, %v2710_v19  ;;  %8608 = vmatmul.msk.f32.vlgmr.msra.gmra.mxu0 %vm2821_vm11, %v2737_v14  ;;  %v3505_v55 = vpop.f32.mrf.mxu3 }
 0x6e1   : > { %v2682_v8 = vadd.f32 %v11102_v62, %v2681_v33 }
 0x6e2   : > { %v2712_v31 = vadd.f32 %v8988_v27, %v2711_v41 }
 0x6e3   : > { %v2686_v63 = vsel %vm2685_vm12, %v11102_v62, %v2682_v8  ;;  %v2764_v8 = vand.u32 2147483648, %v11110_v43  ;;  %vm2758_vm12 = vweird.f32 %v11110_v43 }
 0x6e4   : > { %v2326_v59 = vpop.xlane.xlu2 %2325  ;;  %v2716_v51 = vsel %vm2715_vm6, %v8988_v27, %v2712_v31  ;;  %2328 = vadd.xlane.f32.xlu0 %v2327_v18  ;;  %v3779_v42 = vpop.permute.xlu1 %3778  ;;  %v2691_v56 = vsel %vm2688_vm13, %v2690_v1, %v2686_v63 }
 0x6e5   : > { %8991 = vrcp.f32 %v2326_v59  ;;  %v2721_v9 = vsel %vm2718_vm7, %v2720_v7, %v2716_v51  ;;  %8613 = vmatpush.msk.msra.mxu1 %vm2825_vm10, %v3779_v42  ;;  %v2779_v11 = vand.u32 2147483648, %v2326_v59  ;;  %v2692_v39 = vmul.f32 %v10982_v6, %v2691_v56  ;;  %v3439_v27 = vpop.f32.mrf.mxu0 }
 0x6e6   : > { %v3449_v28 = vpop.permute.xlu0 %3448  ;;  %v2722_v22 = vmul.f32 %v10976_v30, %v2721_v9  ;;  %v2777_v4 = vand.u32 2147483647, %v2326_v59  ;;  %vm2773_vm15 = vweird.f32 %v2326_v59  ;;  %8993 = vrcp.f32 %v11110_v43 }
 0x6e7   : > { %8593 = vmatpush.msk.msra.mxu2 %vm2825_vm10, %v3449_v28  ;;  %v2780_v44 = vor.u32 1.1754944e-38, %v2779_v11  ;;  %v2765_v40 = vor.u32 1.1754944e-38, %v2764_v8  ;;  %v4017_v8 = vld [vmem:[%s13260_s5] sm:$0xff] }
 0x6e8   : > { %8594 = vmatmul.msk.f32.vlgmr.msra.gmra.mxu2 %vm2821_vm11, %v2632_v21  ;;  %8606 = vmatmul.msk.f32.vlgmr.msrb.gmra.mxu1 %vm2821_vm11, %v2722_v22  ;;  %vm2778_vm4 = vcmp.eq.f32.partialorder %v2777_v4, 8.507059e+37 }
 0x6eb   : > { %v8992_v35 = vpop.eup %8991 }
 0x6ec   : > { %v2769_v61 = vmul.f32 %v8992_v35, %v2326_v59  ;;  %v3406_v37 = vpop.f32.mrf.mxu1  ;;  %v3581_v38 = vpop.permute.xlu2 %3580  ;;  %vm2774_vm14 = vweird.f32 %v8992_v35 }
 0x6ed   : > { %8601 = vmatpush.msk.msrb.mxu2 %vm2825_vm10, %v3581_v38  ;;  %3913 = vrot.lane.b32.xlu1 %v3406_v37, %s13365_s22  ;;  %v11151_v52 = vpop.permute.xlu1 %3844  ;;  %vm2775_vm3 = vmor %vm2773_vm15, %vm2774_vm14  ;;  %v8994_v19 = vpop.eup %8993  ;;  %vm2763_vm14 = vcmp.eq.f32.partialorder %v2762_v48, 8.507059e+37 }
 0x6ee   : > { %v2770_v30 = vsub.f32 1.0, %v2769_v61  ;;  %v2754_v24 = vmul.f32 %v8994_v19, %v11110_v43  ;;  %vm2759_vm9 = vweird.f32 %v8994_v19 }
 0x6ef   : > { %vm2760_vm13 = vmor %vm2758_vm12, %vm2759_vm9 }
 0x6f0   : > { %v2771_v3 = vmul.f32 %v8992_v35, %v2770_v30  ;;  %8602 = vmatmul.msk.f32.vlgmr.msrb.gmra.mxu2 %vm2821_vm11, %v2692_v39  ;;  %v2755_v14 = vsub.f32 1.0, %v2754_v24 }
 0x6f1   : > { %3881 = vrot.lane.b32.xlu2 %v11106_v54, %s13359_s19  ;;  %v11165_v54 = vpop.f32.mrf.mxu2 }
 0x6f2   : > { %v2772_v62 = vadd.f32 %v8992_v35, %v2771_v3 }
 0x6f4   : > { %v2776_v5 = vsel %vm2775_vm3, %v8992_v35, %v2772_v62  ;;  %vm3975_vm3 = vcmask 130048  }
 0x6f5   : > { %3915 = vrot.lane.b32.xlu1 %v3439_v27, %s13365_s22  ;;  %v2781_v50 = vsel %vm2778_vm4, %v2780_v44, %v2776_v5  ;;  %v3812_v6 = vpop.permute.xlu1 %3811 }
 0x6f6   : > { %v2782_v36 = vmul.f32 %v11000_v53, %v2781_v50  ;;  %8615 = vmatpush.msk.msrb.mxu0 %vm2825_vm10, %v3812_v6  ;;  %v3538_v50 = vpop.f32.mrf.mxu1 }
 0x6f8   : > { %8614 = vmatmul.msk.f32.vlgmr.msra.gmra.mxu1 %vm2821_vm11, %v2782_v36  ;;  %3883 = vrot.lane.b32.xlu0 %v11129_v15, %s13359_s19  ;;  %v2756_v15 = vmul.f32 %v8994_v19, %v2755_v14 }
 0x6f9   : > { %v3208_v17 = vpop.f32.mrf.mxu2 }
 0x6fa   : > { %v2757_v18 = vadd.f32 %v8994_v19, %v2756_v15 }
 0x6fc   : > { %v2761_v9 = vsel %vm2760_vm13, %v8994_v19, %v2757_v18  ;;  %v4019_v18 = vld [vmem:[%s13260_s5 + $0x10] sm:$0xff] }
 0x6fd   : > { %v2766_v28 = vsel %vm2763_vm14, %v2765_v40, %v2761_v9  ;;  %v3880_v22 = vpop.permute.xlu1 %3879 }
 0x6fe   : > { %v3967_v39 = vsel %vm580_vm0, %v11017_v13, %v3880_v22 }
 0x700   : > { %v3637_v49 = vpop.f32.mrf.mxu3 }
 0x701   : > { %3943 = vrot.lane.b32.xlu2 %v3637_v49, %s13363_s23 }
 0x709   : > { %3885 = vrot.lane.b32.xlu2 %v3208_v17, %s13359_s19 }
 0x711   : > { %3919 = vrot.lane.b32.xlu2 %v3505_v55, %s13365_s22  ;;  %v2320_v53 = vpop.xlane.xlu0 %2319 }
 0x712   : > { %8995 = vrcp.f32 %v2320_v53  ;;  %v2749_v33 = vand.u32 2147483648, %v2320_v53  ;;  %v2747_v45 = vand.u32 2147483647, %v2320_v53  ;;  %vm2743_vm6 = vweird.f32 %v2320_v53 }
 0x714   : > { %v2750_v7 = vor.u32 1.1754944e-38, %v2749_v33  ;;  %vm2748_vm8 = vcmp.eq.f32.partialorder %v2747_v45, 8.507059e+37 }
 0x718   : > { %v8996_v25 = vpop.eup %8995 }
 0x719   : > { %v2739_v29 = vmul.f32 %v8996_v25, %v2320_v53  ;;  %vm2744_vm5 = vweird.f32 %v8996_v25 }
 0x71a   : > { %vm2745_vm7 = vmor %vm2743_vm6, %vm2744_vm5  ;;  %vm3984_vm5 = vcmask 195584  }
 0x71b   : > { %v2740_v20 = vsub.f32 1.0, %v2739_v29 }
 0x71d   : > { %v2741_v41 = vmul.f32 %v8996_v25, %v2740_v20 }
 0x71f   : > { %v2742_v31 = vadd.f32 %v8996_v25, %v2741_v41 }
 0x721   : > { %v2746_v59 = vsel %vm2745_vm7, %v8996_v25, %v2742_v31 }
 0x722   : > { %v2751_v47 = vsel %vm2748_vm8, %v2750_v7, %v2746_v59 }
 0x723   : > { %v2752_v51 = vmul.f32 %v11039_v26, %v2751_v47  ;;  %v2767_v26 = vmul.f32 %v10995_v0, %v2766_v28  ;;  %v3912_v0 = vpop.permute.xlu1 %3911  ;;  %v4018_v47 = vld [vmem:[%s13260_s5 + $0x8] sm:$0xff] }
 0x724   : > { %v3713_v42 = vpop.permute.xlu0 %3712  ;;  %v3976_v4 = vsel %vm3975_vm3, %v3967_v39, %v3912_v0 }
 0x725   : > { %8609 = vmatpush.msk.msra.mxu2 %vm2825_vm10, %v3713_v42 }
 0x726   : > { %8610 = vmatmul.msk.f32.vlgmr.msra.gmra.mxu2 %vm2821_vm11, %v2752_v51  ;;  %v3340_v24 = vpop.f32.mrf.mxu2 }
 0x727   : > { %8617 = vmatpush.msk.msrb.mxu2 %vm2825_vm10, %v11151_v52 }
 0x72c   : > { %v3746_v21 = vpop.permute.xlu0 %3745 }
 0x72d   : > { %8611 = vmatpush.msk.msra.mxu3 %vm2825_vm10, %v3746_v21 }
 0x72e   : > { %8612 = vmatmul.msk.f32.vlgmr.msra.gmra.mxu3 %vm2821_vm11, %v2767_v26 }
 0x74c   : > { %v2332_v43 = vpop.xlane.xlu2 %2331 }
 0x74d   : > { %8997 = vrcp.f32 %v2332_v43  ;;  %v2809_v37 = vand.u32 2147483648, %v2332_v43  ;;  %v2807_v30 = vand.u32 2147483647, %v2332_v43  ;;  %vm2803_vm4 = vweird.f32 %v2332_v43 }
 0x74f   : > { %v2810_v3 = vor.u32 1.1754944e-38, %v2809_v37  ;;  %vm2808_vm7 = vcmp.eq.f32.partialorder %v2807_v30, 8.507059e+37 }
 0x753   : > { %v8998_v63 = vpop.eup %8997 }
 0x754   : > { %v2799_v1 = vmul.f32 %v8998_v63, %v2332_v43  ;;  %v11183_v35 = vpop.permute.xlu2 %3881  ;;  %vm2804_vm15 = vweird.f32 %v8998_v63 }
 0x755   : > { %v3571_v38 = vpop.f32.mrf.mxu0  ;;  %vm2805_vm6 = vmor %vm2803_vm4, %vm2804_vm15  ;;  %v3968_v21 = vsel %vm580_vm0, %v11059_v2, %v11183_v35 }
 0x756   : > { %v2800_v61 = vsub.f32 1.0, %v2799_v1 }
 0x757   : > { %v2329_v52 = vpop.xlane.xlu0 %2328 }
 0x758   : > { %v2801_v56 = vmul.f32 %v8998_v63, %v2800_v61  ;;  %8999 = vrcp.f32 %v2329_v52  ;;  %v2794_v19 = vand.u32 2147483648, %v2329_v52  ;;  %v2792_v29 = vand.u32 2147483647, %v2329_v52 }
 0x759   : > { %vm2788_vm9 = vweird.f32 %v2329_v52 }
 0x75a   : > { %v2802_v11 = vadd.f32 %v8998_v63, %v2801_v56  ;;  %vm2793_vm13 = vcmp.eq.f32.partialorder %v2792_v29, 8.507059e+37 }
 0x75c   : > { %v2806_v62 = vsel %vm2805_vm6, %v8998_v63, %v2802_v11  ;;  %v3944_v44 = vpop.permute.xlu2 %3943 }
 0x75d   : > { %v3985_v27 = vsel %vm3984_vm5, %v3976_v4, %v3944_v44  ;;  %v2811_v5 = vsel %vm2808_vm7, %v2810_v3, %v2806_v62  ;;  %v3703_v17 = vpop.f32.mrf.mxu0 }
 0x75e   : > { %v4001_v6 = vrot.slane %v3985_v27, 1  ;;  %v4002_v36 = vrot.slane %v3985_v27, 2  ;;  %4025 = vst [vmem:[#allocation1] ss:$9 sm:$0xff] %v3985_v27  ;;  %v2812_v55 = vmul.f32 %v11085_v16, %v2811_v5  ;;  %v9000_v49 = vpop.eup %8999  ;;  %3947 = vrot.lane.b32.xlu1 %v3703_v17, %s13363_s23  ;;  %v2795_v16 = vor.u32 1.1754944e-38, %v2794_v19 }
 0x75f   : > { %v2784_v53 = vmul.f32 %v9000_v49, %v2329_v52  ;;  %vm2789_vm8 = vweird.f32 %v9000_v49 }
 0x760   : > { %4027 = vst [vmem:[#allocation1 + $0x1] ss:$9 sm:$0xff] %v4001_v6  ;;  %8618 = vmatmul.msk.f32.vlgmr.msrb.gmra.mxu2 %vm2821_vm11, %v2812_v55  ;;  %vm2790_vm12 = vmor %vm2788_vm9, %vm2789_vm8 }
 0x761   : > { %4029 = vst [vmem:[#allocation1 + $0x2] ss:$9 sm:$0xff] %v4002_v36  ;;  %v2785_v13 = vsub.f32 1.0, %v2784_v53 }
 0x763   : > { %v2786_v25 = vmul.f32 %v9000_v49, %v2785_v13 }
 0x764   : > { %v3886_v2 = vpop.permute.xlu2 %3885 }
 0x765   : > { %v2787_v14 = vadd.f32 %v9000_v49, %v2786_v25  ;;  %v3670_v20 = vpop.f32.mrf.mxu1  ;;  %v3970_v44 = vsel %vm580_vm0, %v11158_v10, %v3886_v2 }
 0x766   : > { %3945 = vrot.lane.b32.xlu0 %v3670_v20, %s13363_s23 }
 0x767   : > { %v2791_v33 = vsel %vm2790_vm12, %v9000_v49, %v2787_v14 }
 0x768   : > { %v2796_v41 = vsel %vm2793_vm13, %v2795_v16, %v2791_v33 }
 0x769   : > { %v2797_v45 = vmul.f32 %v11122_v60, %v2796_v41 }
 0x76a   : > { %v3884_v51 = vpop.permute.xlu0 %3883 }
 0x76b   : > { %v3472_v15 = vpop.f32.mrf.mxu2  ;;  %8616 = vmatmul.msk.f32.vlgmr.msrb.gmra.mxu0 %vm2821_vm11, %v2797_v45  ;;  %v3969_v48 = vsel %vm580_vm0, %v11069_v12, %v3884_v51 }
 0x76c   : > { %3917 = vrot.lane.b32.xlu1 %v3472_v15, %s13365_s22  ;;  %v3920_v35 = vpop.permute.xlu2 %3919 }
 0x76e   : > { %3887 = vrot.lane.b32.xlu0 %v11036_v46, %s13359_s19  ;;  %v3914_v46 = vpop.permute.xlu1 %3913 }
 0x76f   : > { %v3977_v26 = vsel %vm3975_vm3, %v3968_v21, %v3914_v46  ;;  %v8857_v46 = vld [vmem:[%s13261_s6] ss:$0 sm:$0xff] }
 0x773   : > { %v3604_v31 = vpop.f32.mrf.mxu2 }
 0x775   : > { %v3802_v60 = vpop.f32.mrf.mxu1 }
 0x776   : > { %3889 = vrot.lane.b32.xlu0 %v11131_v58, %s13359_s19  ;;  %v4020_v58 = vld [vmem:[%s13260_s5 + $0x18] sm:$0xff] }
 0x777   : > { %4077 = vmatpush.msrb.mxu3 %v4020_v58 }
 0x779   : > { %4078 = vmatpush.msrb.mxu3 %v4019_v18 }
 0x77b   : > { %4079 = vmatpush.msrb.mxu3 %v4018_v47  ;;  %v13660_v47 = vld [vmem:[#allocation8_spill] sm:$0xff] }
 0x77d   : > { %4080 = vmatpush.msrb.mxu3 %v4017_v8 }
 0x77e   : > { %3921 = vrot.lane.b32.xlu0 %v3538_v50, %s13365_s22 }
 0x786   : > { %3893 = vrot.lane.b32.xlu0 %v3340_v24, %s13359_s19 }
 0x7a9   : > { %v3736_v7 = vpop.f32.mrf.mxu2 }
 0x7aa   : > { %3949 = vrot.lane.b32.xlu1 %v3736_v7, %s13363_s23 }
 0x7b1   : > { %v3769_v59 = vpop.f32.mrf.mxu3 }
 0x7b2   : > { %3951 = vrot.lane.b32.xlu2 %v3769_v59, %s13363_s23  ;;  %3953 = vrot.lane.b32.xlu1 %v3802_v60, %s13363_s23 }
 0x7ba   : > { %3891 = vrot.lane.b32.xlu2 %v11147_v57, %s13359_s19  ;;  %3923 = vrot.lane.b32.xlu1 %v3571_v38, %s13365_s22  ;;  %v3916_v57 = vpop.permute.xlu1 %3915  ;;  %s13840_s19 = smov 8  }
 0x7bb   : > { %v3978_v42 = vsel %vm3975_vm3, %v3969_v48, %v3916_v57 }
 0x7c2   : > { %3925 = vrot.lane.b32.xlu2 %v3604_v31, %s13365_s22  ;;  %s13671_s22 = smov 104  }
 0x7d0   : > { %v3948_v9 = vpop.permute.xlu1 %3947 }
 0x7d1   : > { %v3987_v40 = vsel %vm3984_vm5, %v3978_v42, %v3948_v9  ;;  %v13661_v42 = vld [vmem:[#allocation9_spill] sm:$0xff] }
 0x7d2   : > { %v4005_v28 = vrot.slane %v3987_v40, 1  ;;  %4037 = vst [vmem:[#allocation1 + $0x6] ss:$9 sm:$0xff] %v3987_v40  ;;  %v4006_v61 = vrot.slane %v3987_v40, 2 }
 0x7d4   : > { %4039 = vst [vmem:[#allocation1 + $0x7] ss:$9 sm:$0xff] %v4005_v28  ;;  %v9227_v28 = vmov 32.0  }
 0x7d5   : > { %9001 = vrcp.f32 %v9227_v28  ;;  %v4229_v28 = vld [vmem:[%s13266_s11 + $0x10] sm:$0xff] }
 0x7d8   : > { %v3946_v43 = vpop.permute.xlu0 %3945 }
 0x7d9   : > { %v3986_v22 = vsel %vm3984_vm5, %v3977_v26, %v3946_v43 }
 0x7da   : > { %v4003_v63 = vrot.slane %v3986_v22, 1  ;;  %v4004_v1 = vrot.slane %v3986_v22, 2  ;;  %4031 = vst [vmem:[#allocation1 + $0x3] ss:$9 sm:$0xff] %v3986_v22 }
 0x7db   : > { %v9002_v21 = vpop.eup %9001 }
 0x7dc   : > { %4033 = vst [vmem:[#allocation1 + $0x4] ss:$9 sm:$0xff] %v4003_v63  ;;  %v4106_v26 = vmul.f32 32.0, %v9002_v21  ;;  %vm4110_vm14 = vweird.f32 %v9002_v21 }
 0x7dd   : > { %4035 = vst [vmem:[#allocation1 + $0x5] ss:$9 sm:$0xff] %v4004_v1 }
 0x7de   : > { %v3918_v4 = vpop.permute.xlu1 %3917  ;;  %v4107_v43 = vsub.f32 1.0, %v4106_v26 }
 0x7df   : > { %v3979_v27 = vsel %vm3975_vm3, %v3970_v44, %v3918_v4  ;;  %v4184_v44 = vld [vmem:[%s13264_s9 + $0x18] sm:$0xff] }
 0x7e0   : > { %v3888_v56 = vpop.permute.xlu0 %3887  ;;  %v4108_v22 = vmul.f32 %v9002_v21, %v4107_v43  ;;  %4210 = vmatpush.msrb.mxu1 %v4184_v44  ;;  %v4227_v43 = vld [vmem:[%s13266_s11] sm:$0xff] }
 0x7e1   : > { %v3971_v30 = vsel %vm580_vm0, %v11023_v34, %v3888_v56 }
 0x7e2   : > { %v3980_v0 = vsel %vm3975_vm3, %v3971_v30, %v3920_v35  ;;  %v4109_v63 = vadd.f32 %v9002_v21, %v4108_v22  ;;  %v13663_v30 = vld [vmem:[#allocation10_spill] sm:$0xff] }
 0x7e3   : > { %v3868_v12 = vpop.f32.mrf.mxu2 }
 0x7e4   : > { %3957 = vrot.lane.b32.xlu1 %v3868_v12, %s13363_s23  ;;  %v4040_v37 = vld [vmem:[#allocation1] sm:$0xff]  ;;  %v11262_v1 = vsel %vm4110_vm14, %v9002_v21, %v4109_v63  ;;  %v4228_v21 = vld [vmem:[%s13266_s11 + $0x8] sm:$0xff] }
 0x7e5   : > { %4041 = vst [vmem:[#allocation1] ss:$9 sm:$0xff] %v4006_v61  ;;  %8619 = vmatmul.msk.f32.vlgmr.msrb.gmra.mxu3 %vm624_vm1, %v4040_v37 }
 0x7e6   : > { %13662 = vst [vmem:[#allocation21_spill] sm:$0xff] %v11262_v1 }
 0x7e8   : > { %v3835_v38 = vpop.f32.mrf.mxu0  ;;  %v3890_v62 = vpop.permute.xlu0 %3889 }
 0x7e9   : > { %3955 = vrot.lane.b32.xlu0 %v3835_v38, %s13363_s23  ;;  %v3972_v55 = vsel %vm580_vm0, %v11071_v32, %v3890_v62  ;;  %s13676_s23 = smov 96  }
 0x7f0   : > { %v3922_v36 = vpop.permute.xlu0 %3921 }
 0x7f1   : > { %v3981_v49 = vsel %vm3975_vm3, %v3972_v55, %v3922_v36 }
 0x7f8   : > { %v3894_v29 = vpop.permute.xlu0 %3893 }
 0x7f9   : > { %v3974_v32 = vsel %vm580_vm0, %v11165_v54, %v3894_v29 }
 0x80c   : > { %v3952_v52 = vpop.permute.xlu2 %3951 }
 0x80d   : > { %v3989_v11 = vsel %vm3984_vm5, %v3980_v0, %v3952_v52 }
 0x80e   : > { %v4009_v39 = vrot.slane %v3989_v11, 1  ;;  %v4010_v3 = vrot.slane %v3989_v11, 2  ;;  %4045 = vst [vmem:[#allocation1 + $0x4] ss:$9 sm:$0xff] %v3989_v11 }
 0x810   : > { %4046 = vst [vmem:[#allocation1 + $0x5] ss:$9 sm:$0xff] %v4009_v39 }
 0x811   : > { %4047 = vst [vmem:[#allocation1 + $0x6] ss:$9 sm:$0xff] %v4010_v3 }
 0x814   : > { %v3892_v24 = vpop.permute.xlu2 %3891 }
 0x815   : > { %v3973_v15 = vsel %vm580_vm0, %v11104_v23, %v3892_v24 }
 0x81c   : > { %v3950_v5 = vpop.permute.xlu1 %3949  ;;  %v3926_v14 = vpop.permute.xlu2 %3925 }
 0x81d   : > { %v3988_v34 = vsel %vm3984_vm5, %v3979_v27, %v3950_v5  ;;  %v3983_v20 = vsel %vm3975_vm3, %v3974_v32, %v3926_v14  ;;  %v4183_v27 = vld [vmem:[%s13264_s9 + $0x10] sm:$0xff]  ;;  %v4182_v5 = vld [vmem:[%s13264_s9 + $0x8] sm:$0xff]  ;;  %v8858_v32 = vld [vmem:[%s13262_s7] ss:$0 sm:$0xff] }
 0x81e   : > { %v4007_v50 = vrot.slane %v3988_v34, 1  ;;  %v4008_v6 = vrot.slane %v3988_v34, 2  ;;  %4042 = vst [vmem:[#allocation1 + $0x1] ss:$9 sm:$0xff] %v3988_v34  ;;  %4211 = vmatpush.msrb.mxu1 %v4183_v27  ;;  %v4181_v34 = vld [vmem:[%s13264_s9] sm:$0xff] }
 0x820   : > { %4043 = vst [vmem:[#allocation1 + $0x2] ss:$9 sm:$0xff] %v4007_v50  ;;  %4212 = vmatpush.msrb.mxu1 %v4182_v5  ;;  %v8861_v5 = vld [vmem:[%s13267_s12] ss:$0 sm:$0xff] }
 0x821   : > { %4044 = vst [vmem:[#allocation1 + $0x3] ss:$9 sm:$0xff] %v4008_v6 }
 0x822   : > { %4213 = vmatpush.msrb.mxu1 %v4181_v34 }
 0x824   : > { %v3954_v17 = vpop.permute.xlu1 %3953 }
 0x825   : > { %v3990_v53 = vsel %vm3984_vm5, %v3981_v49, %v3954_v17 }
 0x826   : > { %4048 = vst [vmem:[#allocation1 + $0x7] ss:$9 sm:$0xff] %v3990_v53  ;;  %v4011_v10 = vrot.slane %v3990_v53, 1  ;;  %v4012_v13 = vrot.slane %v3990_v53, 2 }
 0x82c   : > { %v3924_v25 = vpop.permute.xlu1 %3923 }
 0x82d   : > { %v4049_v19 = vld [vmem:[#allocation1] sm:$0xff]  ;;  %v3982_v31 = vsel %vm3975_vm3, %v3973_v15, %v3924_v25 }
 0x82e   : > { %4050 = vst [vmem:[#allocation1] ss:$9 sm:$0xff] %v4011_v10  ;;  %8620 = vmatmul.msk.f32.gmra.mxu3 %vm624_vm1, %v4049_v19 }
 0x82f   : > { %4051 = vst [vmem:[#allocation1 + $0x1] ss:$9 sm:$0xff] %v4012_v13 }
 0x856   : > { %v3958_v16 = vpop.permute.xlu1 %3957 }
 0x857   : > { %v3992_v33 = vsel %vm3984_vm5, %v3983_v20, %v3958_v16 }
 0x858   : > { %v4015_v41 = vrot.slane %v3992_v33, 1  ;;  %v4016_v45 = vrot.slane %v3992_v33, 2  ;;  %4055 = vst [vmem:[#allocation1 + $0x5] ss:$9 sm:$0xff] %v3992_v33  ;;  %v8859_v33 = vld [vmem:[%s13263_s8] ss:$0 sm:$0xff] }
 0x85a   : > { %4056 = vst [vmem:[#allocation1 + $0x6] ss:$9 sm:$0xff] %v4015_v41 }
 0x85b   : > { %4057 = vst [vmem:[#allocation1 + $0x7] ss:$9 sm:$0xff] %v4016_v45  ;;  %v3956_v7 = vpop.permute.xlu0 %3955 }
 0x85c   : > { %v3991_v60 = vsel %vm3984_vm5, %v3982_v31, %v3956_v7 }
 0x85d   : > { %v4013_v59 = vrot.slane %v3991_v60, 1  ;;  %v4014_v54 = vrot.slane %v3991_v60, 2  ;;  %4052 = vst [vmem:[#allocation1 + $0x2] ss:$9 sm:$0xff] %v3991_v60 }
 0x85f   : > { %4053 = vst [vmem:[#allocation1 + $0x3] ss:$9 sm:$0xff] %v4013_v59 }
 0x860   : > { %4054 = vst [vmem:[#allocation1 + $0x4] ss:$9 sm:$0xff] %v4014_v54 }
 0x867   : > { %v4058_v58 = vld [vmem:[#allocation1] sm:$0xff] }
 0x868   : > { %v4082_v18 = vpop.f32.mrf.mxu3  ;;  %8621 = vmatmul.msk.f32.gmra.mxu3 %vm624_vm1, %v4058_v58 }
 0x869   : > { %v4083_v23 = vadd.f32 %v8857_v46, %v4082_v18 }
 0x86b   : > { %v4091_v57 = vadd.f32 %v4083_v23, %v13660_v47 }
 0x86d   : > { %v4096_v8 = vsel %vm624_vm1, %v4091_v57, 0.0 }
 0x86e   : > { %4097 = vadd.xlane.f32.xlu2 %v4096_v8 }
 0x8b1   : > { %v4085_v51 = vpop.f32.mrf.mxu3 }
 0x8b2   : > { %v4086_v48 = vadd.f32 %v8857_v46, %v4085_v51  ;;  %v4234_v51 = vld [vmem:[%s13266_s11 + $0x38] sm:$0xff] }
 0x8b3   : > { %4257 = vmatpush.msra.mxu0 %v4234_v51 }
 0x8b4   : > { %v4092_v9 = vadd.f32 %v4086_v48, %v13661_v42  ;;  %v4233_v48 = vld [vmem:[%s13266_s11 + $0x30] sm:$0xff]  ;;  %v4232_v42 = vld [vmem:[%s13266_s11 + $0x28] sm:$0xff] }
 0x8b5   : > { %4258 = vmatpush.msra.mxu0 %v4233_v48 }
 0x8b6   : > { %v4099_v40 = vsel %vm624_vm1, %v4092_v9, 0.0 }
 0x8b7   : > { %4100 = vadd.xlane.f32.xlu0 %v4099_v40  ;;  %4259 = vmatpush.msra.mxu0 %v4232_v42  ;;  %v4230_v40 = vld [vmem:[%s13266_s11 + $0x18] sm:$0xff] }
 0x8e1   : > { %v4098_v12 = vpop.xlane.xlu2 %4097 }
 0x8e2   : > { %v4112_v61 = vmul.f32 %v11262_v1, %v4098_v12 }
 0x8e4   : > { %v4115_v37 = vsub.f32 %v4091_v57, %v4112_v61 }
 0x8e6   : > { %v4118_v38 = vmul.f32 %v4115_v37, %v4115_v37 }
 0x8e8   : > { %v4121_v2 = vsel %vm624_vm1, %v4118_v38, 0.0 }
 0x8e9   : > { %4122 = vadd.xlane.f32.xlu1 %v4121_v2 }
 0x8eb   : > { %v4088_v35 = vpop.f32.mrf.mxu3 }
 0x8ec   : > { %v4089_v56 = vadd.f32 %v8857_v46, %v4088_v35 }
 0x8ee   : > { %v4093_v52 = vadd.f32 %v4089_v56, %v13663_v30  ;;  %v8860_v56 = vld [vmem:[%s13265_s10] ss:$0 sm:$0xff] }
 0x8f0   : > { %v4102_v0 = vsel %vm624_vm1, %v4093_v52, 0.0 }
 0x8f1   : > { %4103 = vadd.xlane.f32.xlu2 %v4102_v0 }
 0x92a   : > { %v4101_v11 = vpop.xlane.xlu0 %4100 }
 0x92b   : > { %v4113_v39 = vmul.f32 %v11262_v1, %v4101_v11 }
 0x92d   : > { %v4116_v3 = vsub.f32 %v4092_v9, %v4113_v39  ;;  %v4231_v9 = vld [vmem:[%s13266_s11 + $0x20] sm:$0xff] }
 0x92e   : > { %4260 = vmatpush.msra.mxu0 %v4231_v9 }
 0x92f   : > { %v4119_v4 = vmul.f32 %v4116_v3, %v4116_v3 }
 0x930   : > { %4261 = vmatpush.msra.mxu0 %v4230_v40 }
 0x931   : > { %v4124_v62 = vsel %vm624_vm1, %v4119_v4, 0.0 }
 0x932   : > { %4125 = vadd.xlane.f32.xlu0 %v4124_v62  ;;  %4262 = vmatpush.msra.mxu0 %v4229_v28 }
 0x934   : > { %4263 = vmatpush.msra.mxu0 %v4228_v21 }
 0x936   : > { %4264 = vmatpush.msra.mxu0 %v4227_v43 }
 0x95c   : > { %v4123_v50 = vpop.xlane.xlu1 %4122 }
 0x95d   : > { %v4130_v6 = vmul.f32 %v4123_v50, %v11262_v1 }
 0x95f   : > { %v4133_v36 = vadd.f32 1e-05, %v4130_v6 }
 0x961   : > { %9003 = vrsqrt.f32 %v4133_v36  ;;  %vm4142_vm4 = vweird.f32 %v4133_v36 }
 0x964   : > { %v4104_v55 = vpop.xlane.xlu2 %4103 }
 0x965   : > { %v4114_v49 = vmul.f32 %v11262_v1, %v4104_v55 }
 0x967   : > { %v9004_v17 = vpop.eup %9003  ;;  %v11284_v53 = vsub.f32 %v4093_v52, %v4114_v49 }
 0x968   : > { %v4137_v10 = vmul.f32 %v9004_v17, %v4133_v36  ;;  %vm4143_vm15 = vweird.f32 %v9004_v17 }
 0x969   : > { %v4120_v13 = vmul.f32 %v11284_v53, %v11284_v53  ;;  %vm4144_vm6 = vmor %vm4142_vm4, %vm4143_vm15  ;;  %vm4239_vm15 = vcmask 523264  }
 0x96a   : > { %v4138_v19 = vmul.f32 %v9004_v17, %v4137_v10 }
 0x96b   : > { %v4127_v24 = vsel %vm624_vm1, %v4120_v13, 0.0 }
 0x96c   : > { %v4139_v25 = vmul.f32 0.5, %v4138_v19  ;;  %4128 = vadd.xlane.f32.xlu1 %v4127_v24 }
 0x96e   : > { %v4140_v29 = vsub.f32 1.5, %v4139_v25 }
 0x970   : > { %v4141_v14 = vmul.f32 %v9004_v17, %v4140_v29 }
 0x972   : > { %v4145_v20 = vsel %vm4144_vm6, %v9004_v17, %v4141_v14 }
 0x973   : > { %v4166_v16 = vmul.f32 %v4145_v20, %v4115_v37 }
 0x975   : > { %v4172_v41 = vmul.f32 %v8858_v32, %v4166_v16 }
 0x977   : > { %v11295_v45 = vadd.f32 %v8859_v33, %v4172_v41 }
 0x979   : > { %8622 = vmatmul.msk.f32.vlgmr.msrb.gmra.mxu1 %vm624_vm1, %v11295_v45 }
 0x9a5   : > { %v4126_v15 = vpop.xlane.xlu0 %4125 }
 0x9a6   : > { %v4131_v31 = vmul.f32 %v4126_v15, %v11262_v1 }
 0x9a8   : > { %v4134_v7 = vadd.f32 1e-05, %v4131_v31 }
 0x9aa   : > { %9005 = vrsqrt.f32 %v4134_v7  ;;  %vm4152_vm8 = vweird.f32 %v4134_v7 }
 0x9b0   : > { %v9006_v60 = vpop.eup %9005 }
 0x9b1   : > { %v4147_v59 = vmul.f32 %v9006_v60, %v4134_v7  ;;  %vm4153_vm7 = vweird.f32 %v9006_v60 }
 0x9b2   : > { %vm4154_vm9 = vmor %vm4152_vm8, %vm4153_vm7 }
 0x9b3   : > { %v4148_v54 = vmul.f32 %v9006_v60, %v4147_v59  ;;  %v8631_v59 = vld [vmem:[%s13462_s3 + $0x38] sm:$0xff] }
 0x9b4   : > { %4389 = vmatpush.msra.mxu2 %v8631_v59  ;;  %8800 = vmatpush.msra.mxu3 %v8631_v59 }
 0x9b5   : > { %v4149_v46 = vmul.f32 0.5, %v4148_v54  ;;  %v8630_v54 = vld [vmem:[%s13462_s3 + $0x30] sm:$0xff] }
 0x9b6   : > { %4390 = vmatpush.msra.mxu2 %v8630_v54  ;;  %8801 = vmatpush.msra.mxu3 %v8630_v54 }
 0x9b7   : > { %v4150_v58 = vsub.f32 1.5, %v4149_v46  ;;  %v8629_v46 = vld [vmem:[%s13462_s3 + $0x28] sm:$0xff] }
 0x9b8   : > { %4391 = vmatpush.msra.mxu2 %v8629_v46  ;;  %8802 = vmatpush.msra.mxu3 %v8629_v46 }
 0x9b9   : > { %v4151_v18 = vmul.f32 %v9006_v60, %v4150_v58  ;;  %v8628_v58 = vld [vmem:[%s13462_s3 + $0x20] sm:$0xff] }
 0x9ba   : > { %4392 = vmatpush.msra.mxu2 %v8628_v58  ;;  %8803 = vmatpush.msra.mxu3 %v8628_v58 }
 0x9bb   : > { %v4155_v23 = vsel %vm4154_vm9, %v9006_v60, %v4151_v18 }
 0x9bc   : > { %v4167_v47 = vmul.f32 %v4155_v23, %v4116_v3 }
 0x9be   : > { %v4173_v57 = vmul.f32 %v8858_v32, %v4167_v47 }
 0x9c0   : > { %v4179_v8 = vadd.f32 %v8859_v33, %v4173_v57 }
 0x9c2   : > { %8623 = vmatmul.msk.f32.gmra.mxu1 %vm624_vm1, %v4179_v8 }
 0x9df   : > { %v4129_v26 = vpop.xlane.xlu1 %4128 }
 0x9e0   : > { %v4132_v22 = vmul.f32 %v4129_v26, %v11262_v1 }
 0x9e2   : > { %v4135_v63 = vadd.f32 1e-05, %v4132_v22  ;;  %v8862_v22 = vld [vmem:[%s13268_s13] ss:$0 sm:$0xff] }
 0x9e4   : > { %9007 = vrsqrt.f32 %v4135_v63  ;;  %vm4162_vm13 = vweird.f32 %v4135_v63 }
 0x9ea   : > { %v9008_v12 = vpop.eup %9007 }
 0x9eb   : > { %v4157_v61 = vmul.f32 %v9008_v12, %v4135_v63  ;;  %vm4163_vm12 = vweird.f32 %v9008_v12 }
 0x9ec   : > { %vm4164_vm14 = vmor %vm4162_vm13, %vm4163_vm12 }
 0x9ed   : > { %v4158_v37 = vmul.f32 %v9008_v12, %v4157_v61  ;;  %v8863_v61 = vld [vmem:[%s13269_s14] ss:$0 sm:$0xff] }
 0x9ef   : > { %v4159_v38 = vmul.f32 0.5, %v4158_v37 }
 0x9f1   : > { %v4160_v2 = vsub.f32 1.5, %v4159_v38 }
 0x9f3   : > { %v4161_v35 = vmul.f32 %v9008_v12, %v4160_v2 }
 0x9f5   : > { %v4165_v30 = vsel %vm4164_vm14, %v9008_v12, %v4161_v35 }
 0x9f6   : > { %v4215_v52 = vpop.f32.mrf.mxu1  ;;  %v4168_v0 = vmul.f32 %v4165_v30, %v11284_v53 }
 0x9f7   : > { %v4216_v11 = vadd.f32 %v8860_v56, %v4215_v52 }
 0x9f8   : > { %v4174_v39 = vmul.f32 %v8858_v32, %v4168_v0 }
 0x9f9   : > { %v4224_v3 = vmax.f32 %v4216_v11, 0.0 }
 0x9fa   : > { %v4180_v4 = vadd.f32 %v8859_v33, %v4174_v39 }
 0x9fb   : > { %8625 = vmatmul.msk.f32.vlgmr.msra.gmra.mxu0 %vm4239_vm15, %v4224_v3 }
 0x9fc   : > { %8624 = vmatmul.msk.f32.gmra.mxu1 %vm624_vm1, %v4180_v4 }
 0xa3f   : > { %v4218_v62 = vpop.f32.mrf.mxu1 }
 0xa40   : > { %v4219_v44 = vadd.f32 %v8860_v56, %v4218_v62 }
 0xa42   : > { %v4225_v27 = vmax.f32 %v4219_v44, 0.0 }
 0xa44   : > { %8626 = vmatmul.msk.f32.gmra.mxu0 %vm4239_vm15, %v4225_v27 }
 0xa78   : > { %v4266_v34 = vpop.f32.mrf.mxu0 }
 0xa79   : > { %v4267_v50 = vadd.f32 %v8861_v5, %v4266_v34  ;;  %v4221_v6 = vpop.f32.mrf.mxu1 }
 0xa7a   : > { %v4222_v36 = vadd.f32 %v8860_v56, %v4221_v6 }
 0xa7b   : > { %v4275_v55 = vadd.f32 %v4267_v50, %v11295_v45 }
 0xa7c   : > { %v4226_v49 = vmax.f32 %v4222_v36, 0.0 }
 0xa7d   : > { %v4280_v17 = vsel %vm624_vm1, %v4275_v55, 0.0 }
 0xa7e   : > { %4281 = vadd.xlane.f32.xlu2 %v4280_v17  ;;  %8627 = vmatmul.msk.f32.gmra.mxu0 %vm4239_vm15, %v4226_v49 }
 0xac1   : > { %v4269_v53 = vpop.f32.mrf.mxu0 }
 0xac2   : > { %v4270_v10 = vadd.f32 %v8861_v5, %v4269_v53 }
 0xac4   : > { %v4276_v13 = vadd.f32 %v4270_v10, %v4179_v8 }
 0xac6   : > { %v4283_v19 = vsel %vm624_vm1, %v4276_v13, 0.0 }
 0xac7   : > { %4284 = vadd.xlane.f32.xlu0 %v4283_v19 }
 0xaf1   : > { %v4282_v24 = vpop.xlane.xlu2 %4281 }
 0xaf2   : > { %v4289_v25 = vmul.f32 %v4282_v24, %v11262_v1  ;;  %v11379_v24 = vld [vmem:[%s13259_s4 + $0x1] ss:$0 sm:$0xff] }
 0xaf4   : > { %v4292_v29 = vsub.f32 %v4275_v55, %v4289_v25 }
 0xaf6   : > { %v4295_v14 = vmul.f32 %v4292_v29, %v4292_v29 }
 0xaf8   : > { %v4298_v32 = vsel %vm624_vm1, %v4295_v14, 0.0 }
 0xaf9   : > { %4299 = vadd.xlane.f32.xlu1 %v4298_v32 }
 0xafb   : > { %v4272_v20 = vpop.f32.mrf.mxu0 }
 0xafc   : > { %v4273_v16 = vadd.f32 %v8861_v5, %v4272_v20 }
 0xafe   : > { %v4277_v33 = vadd.f32 %v4273_v16, %v4180_v4 }
 0xb00   : > { %v4286_v41 = vsel %vm624_vm1, %v4277_v33, 0.0 }
 0xb01   : > { %4287 = vadd.xlane.f32.xlu2 %v4286_v41 }
 0xb3a   : > { %v4285_v45 = vpop.xlane.xlu0 %4284 }
 0xb3b   : > { %v4290_v15 = vmul.f32 %v4285_v45, %v11262_v1 }
 0xb3d   : > { %v4293_v31 = vsub.f32 %v4276_v13, %v4290_v15 }
 0xb3f   : > { %v4296_v7 = vmul.f32 %v4293_v31, %v4293_v31 }
 0xb41   : > { %v4301_v60 = vsel %vm624_vm1, %v4296_v7, 0.0 }
 0xb42   : > { %4302 = vadd.xlane.f32.xlu0 %v4301_v60 }
 0xb6c   : > { %v4300_v18 = vpop.xlane.xlu1 %4299 }
 0xb6d   : > { %v4307_v23 = vmul.f32 %v4300_v18, %v11262_v1 }
 0xb6f   : > { %v4310_v47 = vadd.f32 1e-05, %v4307_v23 }
 0xb71   : > { %9009 = vrsqrt.f32 %v4310_v47  ;;  %vm4319_vm6 = vweird.f32 %v4310_v47 }
 0xb74   : > { %v4288_v57 = vpop.xlane.xlu2 %4287 }
 0xb75   : > { %v4291_v8 = vmul.f32 %v4288_v57, %v11262_v1 }
 0xb77   : > { %v9010_v51 = vpop.eup %9009  ;;  %v4294_v48 = vsub.f32 %v4277_v33, %v4291_v8 }
 0xb78   : > { %v4314_v42 = vmul.f32 %v9010_v51, %v4310_v47  ;;  %vm4320_vm4 = vweird.f32 %v9010_v51 }
 0xb79   : > { %v4297_v9 = vmul.f32 %v4294_v48, %v4294_v48  ;;  %vm4321_vm7 = vmor %vm4319_vm6, %vm4320_vm4 }
 0xb7a   : > { %v4315_v40 = vmul.f32 %v9010_v51, %v4314_v42 }
 0xb7b   : > { %v4304_v28 = vsel %vm624_vm1, %v4297_v9, 0.0 }
 0xb7c   : > { %v4316_v21 = vmul.f32 0.5, %v4315_v40  ;;  %4305 = vadd.xlane.f32.xlu1 %v4304_v28 }
 0xb7e   : > { %v4317_v26 = vsub.f32 1.5, %v4316_v21 }
 0xb80   : > { %v4318_v43 = vmul.f32 %v9010_v51, %v4317_v26 }
 0xb82   : > { %v4322_v63 = vsel %vm4321_vm7, %v9010_v51, %v4318_v43 }
 0xb83   : > { %v4343_v12 = vmul.f32 %v4322_v63, %v4292_v29 }
 0xb85   : > { %v4349_v37 = vmul.f32 %v8862_v22, %v4343_v12 }
 0xb87   : > { %v11366_v38 = vadd.f32 %v8863_v61, %v4349_v37 }
 0xb89   : > { %13664 = vst [vmem:[#allocation22_spill] sm:$0xff] %v11366_v38  ;;  %8633 = vmatmul.msk.f32.vlgmr.msra.gmra.mxu2 %vm624_vm1, %v11366_v38 }
 0xbb5   : > { %v4303_v2 = vpop.xlane.xlu0 %4302 }
 0xbb6   : > { %v4308_v35 = vmul.f32 %v4303_v2, %v11262_v1 }
 0xbb8   : > { %v4311_v56 = vadd.f32 1e-05, %v4308_v35 }
 0xbba   : > { %9011 = vrsqrt.f32 %v4311_v56  ;;  %vm4329_vm9 = vweird.f32 %v4311_v56 }
 0xbc0   : > { %v9012_v30 = vpop.eup %9011 }
 0xbc1   : > { %v4324_v52 = vmul.f32 %v9012_v30, %v4311_v56  ;;  %vm4330_vm8 = vweird.f32 %v9012_v30 }
 0xbc2   : > { %vm4331_vm12 = vmor %vm4329_vm9, %vm4330_vm8 }
 0xbc3   : > { %v4325_v0 = vmul.f32 %v9012_v30, %v4324_v52 }
 0xbc5   : > { %v4326_v11 = vmul.f32 0.5, %v4325_v0 }
 0xbc7   : > { %v4327_v39 = vsub.f32 1.5, %v4326_v11 }
 0xbc9   : > { %v4328_v3 = vmul.f32 %v9012_v30, %v4327_v39 }
 0xbcb   : > { %v4332_v4 = vsel %vm4331_vm12, %v9012_v30, %v4328_v3 }
 0xbcc   : > { %v4344_v62 = vmul.f32 %v4332_v4, %v4293_v31 }
 0xbce   : > { %v4350_v44 = vmul.f32 %v8862_v22, %v4344_v62 }
 0xbd0   : > { %v11371_v27 = vadd.f32 %v8863_v61, %v4350_v44 }
 0xbd2   : > { %13665 = vst [vmem:[#allocation23_spill] sm:$0xff] %v11371_v27  ;;  %8634 = vmatmul.msk.f32.vlgmr.msra.gmra.mxu3 %vm624_vm1, %v11371_v27 }
 0xbef   : > { %v4306_v5 = vpop.xlane.xlu1 %4305 }
 0xbf0   : > { %v4309_v34 = vmul.f32 %v4306_v5, %v11262_v1 }
 0xbf2   : > { %v4312_v50 = vadd.f32 1e-05, %v4309_v34 }
 0xbf4   : > { %9013 = vrsqrt.f32 %v4312_v50  ;;  %vm4339_vm14 = vweird.f32 %v4312_v50 }
 0xbfa   : > { %v9014_v6 = vpop.eup %9013 }
 0xbfb   : > { %v4334_v36 = vmul.f32 %v9014_v6, %v4312_v50  ;;  %vm4340_vm13 = vweird.f32 %v9014_v6 }
 0xbfc   : > { %vm4341_vm4 = vmor %vm4339_vm14, %vm4340_vm13 }
 0xbfd   : > { %v4335_v55 = vmul.f32 %v9014_v6, %v4334_v36 }
 0xbff   : > { %v4336_v49 = vmul.f32 0.5, %v4335_v55 }
 0xc01   : > { %v4337_v17 = vsub.f32 1.5, %v4336_v49 }
 0xc03   : > { %v4338_v53 = vmul.f32 %v9014_v6, %v4337_v17 }
 0xc05   : > { %v4342_v10 = vsel %vm4341_vm4, %v9014_v6, %v4338_v53 }
 0xc06   : > { %v4345_v13 = vmul.f32 %v4342_v10, %v4294_v48 }
 0xc08   : > { %v4351_v19 = vmul.f32 %v8862_v22, %v4345_v13 }
 0xc0a   : > { %v11381_v25 = vadd.f32 %v8863_v61, %v4351_v19 }
 0xc0c   : > { %13666 = vst [vmem:[#allocation24_spill] sm:$0xff] %v11381_v25  ;;  %v4394_v29 = vpop.f32.mrf.mxu2  ;;  %8635 = vmatmul.msk.f32.gmra.mxu3 %vm624_vm1, %v11381_v25 }
 0xc0d   : > { %v11386_v14 = vadd.f32 %v11379_v24, %v4394_v29 }
 0xc0f   : > { %v11389_v32 = vrot.slane %v11386_v14, 1  ;;  %v11392_v20 = vrot.slane %v11386_v14, 2  ;;  %4571 = vst [vmem:[#allocation1] ss:$9 sm:$0xff] %v11386_v14  ;;  %4475 = vrot.lane.b32.xlu1 %v11386_v14, %s13668_s24  ;;  %4427 = vrot.lane.b32.xlu2 %v11386_v14, %s13669_s18  ;;  %v11404_v16 = vrot.slane %v11386_v14, 4  ;;  %v11411_v33 = vrot.slane %v11386_v14, 3 }
 0xc10   : > { %v11421_v45 = vrot.slane %v11386_v14, 7  ;;  %v11424_v15 = vrot.slane %v11386_v14, 5  ;;  %v11435_v7 = vrot.slane %v11386_v14, 6 }
 0xc11   : > { %13667 = vst [vmem:[#allocation29_spill] sm:$0xff] %v11392_v20  ;;  %4429 = vrot.lane.b32.xlu0 %v11389_v32, %s13669_s18 }
 0xc12   : > { %4573 = vst [vmem:[#allocation1 + $0x1] ss:$9 sm:$0xff] %v11389_v32 }
 0xc13   : > { %4575 = vst [vmem:[#allocation1 + $0x2] ss:$9 sm:$0xff] %v11392_v20 }
 0xc14   : > { %13670 = vst [vmem:[#allocation30_spill] sm:$0xff] %v11404_v16 }
 0xc15   : > { %13672 = vst [vmem:[#allocation31_spill] sm:$0xff] %v11411_v33 }
 0xc16   : > { %13673 = vst [vmem:[#allocation36_spill] sm:$0xff] %v11421_v45 }
 0xc17   : > { %4523 = vrot.lane.b32.xlu1 %v11386_v14, %s13671_s22  ;;  %4435 = vrot.lane.b32.xlu2 %v11404_v16, %s13669_s18  ;;  %13674 = vst [vmem:[#allocation38_spill] sm:$0xff] %v11424_v15 }
 0xc18   : > { %13675 = vst [vmem:[#allocation39_spill] sm:$0xff] %v11435_v7 }
 0xc19   : > { %4433 = vrot.lane.b32.xlu0 %v11411_v33, %s13669_s18 }
 0xc1a   : > { %v11413_v41 = vld [vmem:[#allocation1] sm:$0xff] }
 0xc1b   : > { %4577 = vst [vmem:[#allocation1] ss:$9 sm:$0xff] %v11386_v14 }
 0xc1c   : > { %4579 = vst [vmem:[#allocation1 + $0x1] ss:$9 sm:$0xff] %v11389_v32 }
 0xc1d   : > { %4581 = vst [vmem:[#allocation1 + $0x2] ss:$9 sm:$0xff] %v11392_v20 }
 0xc1f   : > { %4441 = vrot.lane.b32.xlu2 %v11421_v45, %s13669_s18  ;;  %4431 = vrot.lane.b32.xlu1 %v11392_v20, %s13669_s18 }
 0xc21   : > { %4437 = vrot.lane.b32.xlu0 %v11424_v15, %s13669_s18 }
 0xc24   : > { %v4582_v31 = vld [vmem:[#allocation1] sm:$0xff] }
 0xc25   : > { %4609 = vst [vmem:[#allocation1] ss:$9 sm:$0xff] %v11411_v33 }
 0xc26   : > { %4611 = vst [vmem:[#allocation1 + $0x1] ss:$9 sm:$0xff] %v11404_v16 }
 0xc27   : > { %4613 = vst [vmem:[#allocation1 + $0x2] ss:$9 sm:$0xff] %v11424_v15  ;;  %4439 = vrot.lane.b32.xlu1 %v11435_v7, %s13669_s18  ;;  %4477 = vrot.lane.b32.xlu2 %v11389_v32, %s13668_s24 }
 0xc29   : > { %4479 = vrot.lane.b32.xlu0 %v11392_v20, %s13668_s24 }
 0xc2e   : > { %v11444_v60 = vld [vmem:[#allocation1] sm:$0xff] }
 0xc2f   : > { %4617 = vst [vmem:[#allocation1 + $0x1] ss:$9 sm:$0xff] %v11404_v16  ;;  %4481 = vrot.lane.b32.xlu1 %v11411_v33, %s13668_s24  ;;  %4483 = vrot.lane.b32.xlu2 %v11404_v16, %s13668_s24 }
 0xc30   : > { %4615 = vst [vmem:[#allocation1] ss:$9 sm:$0xff] %v11411_v33 }
 0xc31   : > { %4619 = vst [vmem:[#allocation1 + $0x2] ss:$9 sm:$0xff] %v11424_v15  ;;  %4485 = vrot.lane.b32.xlu0 %v11424_v15, %s13668_s24 }
 0xc37   : > { %4487 = vrot.lane.b32.xlu1 %v11435_v7, %s13668_s24  ;;  %4489 = vrot.lane.b32.xlu2 %v11421_v45, %s13668_s24 }
 0xc38   : > { %v4620_v59 = vld [vmem:[#allocation1] sm:$0xff] }
 0xc39   : > { %4649 = vst [vmem:[#allocation1 + $0x1] ss:$9 sm:$0xff] %v11421_v45  ;;  %4527 = vrot.lane.b32.xlu0 %v11392_v20, %s13671_s22 }
 0xc3a   : > { %4647 = vst [vmem:[#allocation1] ss:$9 sm:$0xff] %v11435_v7 }
 0xc3f   : > { %4529 = vrot.lane.b32.xlu1 %v11411_v33, %s13671_s22  ;;  %4525 = vrot.lane.b32.xlu2 %v11389_v32, %s13671_s22 }
 0xc41   : > { %4533 = vrot.lane.b32.xlu0 %v11424_v15, %s13671_s22 }
 0xc47   : > { %4535 = vrot.lane.b32.xlu1 %v11435_v7, %s13671_s22  ;;  %4531 = vrot.lane.b32.xlu2 %v11404_v16, %s13671_s22 }
 0xc4f   : > { %4537 = vrot.lane.b32.xlu2 %v11421_v45, %s13671_s22  ;;  %4621 = vrot.lane.b32.xlu1 %v4620_v59, %s13676_s23 }
 0xc55   : > { %v4397_v54 = vpop.f32.mrf.mxu3 }
 0xc56   : > { %v11477_v46 = vadd.f32 %v11379_v24, %v4397_v54 }
 0xc57   : > { %4583 = vrot.lane.b32.xlu2 %v4582_v31, %s13676_s23 }
 0xc58   : > { %13677 = vst [vmem:[#allocation27_spill] sm:$0xff] %v11477_v46  ;;  %4443 = vrot.lane.b32.xlu0 %v11477_v46, %s13669_s18  ;;  %v11484_v58 = vrot.slane %v11477_v46, 1  ;;  %v11489_v18 = vrot.slane %v11477_v46, 2  ;;  %v11499_v47 = vrot.slane %v11477_v46, 4  ;;  %v11506_v57 = vrot.slane %v11477_v46, 5 }
 0xc59   : > { %4651 = vst [vmem:[#allocation1 + $0x2] ss:$9 sm:$0xff] %v11477_v46  ;;  %v11513_v8 = vrot.slane %v11477_v46, 7  ;;  %v11520_v42 = vrot.slane %v11477_v46, 3  ;;  %v11541_v28 = vrot.slane %v11477_v46, 6 }
 0xc5a   : > { %13678 = vst [vmem:[#allocation37_spill] sm:$0xff] %v11484_v58  ;;  %4445 = vrot.lane.b32.xlu1 %v11484_v58, %s13669_s18 }
 0xc5b   : > { %13679 = vst [vmem:[#allocation28_spill] sm:$0xff] %v11489_v18 }
 0xc5c   : > { %13680 = vst [vmem:[#allocation33_spill] sm:$0xff] %v11499_v47 }
 0xc5d   : > { %13681 = vst [vmem:[#allocation25_spill] sm:$0xff] %v11506_v57 }
 0xc5e   : > { %13682 = vst [vmem:[#allocation26_spill] sm:$0xff] %v11513_v8 }
 0xc5f   : > { %4447 = vrot.lane.b32.xlu2 %v11489_v18, %s13669_s18  ;;  %13684 = vst [vmem:[#allocation35_spill] sm:$0xff] %v11520_v42 }
 0xc60   : > { %v11491_v23 = vld [vmem:[#allocation1] sm:$0xff]  ;;  %4491 = vrot.lane.b32.xlu0 %v11477_v46, %s13668_s24  ;;  %13686 = vst [vmem:[#allocation48_spill] sm:$0xff] %v11541_v28 }
 0xc61   : > { %4653 = vst [vmem:[#allocation1] ss:$9 sm:$0xff] %v11435_v7 }
 0xc62   : > { %4655 = vst [vmem:[#allocation1 + $0x1] ss:$9 sm:$0xff] %v11421_v45  ;;  %4451 = vrot.lane.b32.xlu1 %v11499_v47, %s13669_s18 }
 0xc63   : > { %4657 = vst [vmem:[#allocation1 + $0x2] ss:$9 sm:$0xff] %v11477_v46 }
 0xc67   : > { %4453 = vrot.lane.b32.xlu2 %v11506_v57, %s13669_s18 }
 0xc68   : > { %4539 = vrot.lane.b32.xlu0 %v11477_v46, %s13671_s22 }
 0xc69   : > { %v11517_v48 = vpop.permute.xlu2 %4427 }
 0xc6a   : > { %v11515_v51 = vld [vmem:[#allocation1] sm:$0xff]  ;;  %13683 = vst [vmem:[#allocation41_spill] sm:$0xff] %v11517_v48  ;;  %4457 = vrot.lane.b32.xlu1 %v11513_v8, %s13669_s18 }
 0xc6b   : > { %4685 = vst [vmem:[#allocation1] ss:$9 sm:$0xff] %v11484_v58 }
 0xc6c   : > { %4687 = vst [vmem:[#allocation1 + $0x1] ss:$9 sm:$0xff] %v11489_v18 }
 0xc6d   : > { %4689 = vst [vmem:[#allocation1 + $0x2] ss:$9 sm:$0xff] %v11520_v42 }
 0xc6f   : > { %4495 = vrot.lane.b32.xlu2 %v11489_v18, %s13668_s24 }
 0xc70   : > { %4449 = vrot.lane.b32.xlu0 %v11520_v42, %s13669_s18 }
 0xc71   : > { %v11531_v9 = vpop.permute.xlu2 %4435 }
 0xc72   : > { %13685 = vst [vmem:[#allocation45_spill] sm:$0xff] %v11531_v9  ;;  %4493 = vrot.lane.b32.xlu1 %v11484_v58, %s13668_s24 }
 0xc74   : > { %v11535_v40 = vld [vmem:[#allocation1] sm:$0xff] }
 0xc75   : > { %4691 = vst [vmem:[#allocation1] ss:$9 sm:$0xff] %v11484_v58 }
 0xc76   : > { %4693 = vst [vmem:[#allocation1 + $0x1] ss:$9 sm:$0xff] %v11489_v18 }
 0xc77   : > { %4695 = vst [vmem:[#allocation1 + $0x2] ss:$9 sm:$0xff] %v11520_v42  ;;  %4501 = vrot.lane.b32.xlu2 %v11506_v57, %s13668_s24 }
 0xc78   : > { %4455 = vrot.lane.b32.xlu0 %v11541_v28, %s13669_s18 }
 0xc79   : > { %v11547_v21 = vpop.permute.xlu2 %4441 }
 0xc7a   : > { %13687 = vst [vmem:[#allocation50_spill] sm:$0xff] %v11547_v21  ;;  %4499 = vrot.lane.b32.xlu1 %v11499_v47, %s13668_s24 }
 0xc7e   : > { %v4696_v26 = vld [vmem:[#allocation1] sm:$0xff] }
 0xc7f   : > { %4723 = vst [vmem:[#allocation1] ss:$9 sm:$0xff] %v11499_v47  ;;  %4543 = vrot.lane.b32.xlu2 %v11489_v18, %s13671_s22 }
 0xc80   : > { %4725 = vst [vmem:[#allocation1 + $0x1] ss:$9 sm:$0xff] %v11506_v57  ;;  %4497 = vrot.lane.b32.xlu0 %v11520_v42, %s13668_s24 }
 0xc81   : > { %4727 = vst [vmem:[#allocation1 + $0x2] ss:$9 sm:$0xff] %v11541_v28  ;;  %v11558_v43 = vpop.permute.xlu2 %4477  ;;  %v11560_v22 = vpop.permute.xlu1 %4475 }
 0xc82   : > { %13688 = vst [vmem:[#allocation49_spill] sm:$0xff] %v11558_v43  ;;  %4505 = vrot.lane.b32.xlu1 %v11513_v8, %s13668_s24 }
 0xc83   : > { %13689 = vst [vmem:[#allocation51_spill] sm:$0xff] %v11560_v22  ;;  %v11564_v63 = vpop.permute.xlu0 %4429 }
 0xc84   : > { %13690 = vst [vmem:[#allocation53_spill] sm:$0xff] %v11564_v63 }
 0xc87   : > { %4549 = vrot.lane.b32.xlu2 %v11506_v57, %s13671_s22 }
 0xc88   : > { %v11566_v12 = vld [vmem:[#allocation1] sm:$0xff]  ;;  %4503 = vrot.lane.b32.xlu0 %v11541_v28, %s13668_s24 }
 0xc89   : > { %4729 = vst [vmem:[#allocation1] ss:$9 sm:$0xff] %v11499_v47  ;;  %v11574_v61 = vpop.permute.xlu2 %4483  ;;  %v11576_v37 = vpop.permute.xlu1 %4523 }
 0xc8a   : > { %4731 = vst [vmem:[#allocation1 + $0x1] ss:$9 sm:$0xff] %v11506_v57  ;;  %4541 = vrot.lane.b32.xlu1 %v11484_v58, %s13671_s22 }
 0xc8b   : > { %4733 = vst [vmem:[#allocation1 + $0x2] ss:$9 sm:$0xff] %v11541_v28  ;;  %v11581_v35 = vpop.permute.xlu0 %4433 }
 0xc8c   : > { %13691 = vst [vmem:[#allocation52_spill] sm:$0xff] %v11581_v35 }
 0xc8f   : > { %v4400_v2 = vpop.f32.mrf.mxu3 }
 0xc90   : > { %v11584_v56 = vadd.f32 %v11379_v24, %v4400_v2  ;;  %4545 = vrot.lane.b32.xlu0 %v11520_v42, %s13671_s22 }
 0xc91   : > { %v11590_v52 = vpop.permute.xlu2 %4489  ;;  %v11592_v0 = vpop.permute.xlu1 %4431 }
 0xc92   : > { %13692 = vst [vmem:[#allocation54_spill] sm:$0xff] %v11584_v56  ;;  %v11588_v30 = vld [vmem:[#allocation1] sm:$0xff]  ;;  %v11596_v11 = vrot.slane %v11584_v56, 1  ;;  %4459 = vrot.lane.b32.xlu2 %v11584_v56, %s13669_s18  ;;  %4547 = vrot.lane.b32.xlu1 %v11499_v47, %s13671_s22  ;;  %v11633_v50 = vrot.slane %v11584_v56, 2  ;;  %v11638_v36 = vrot.slane %v11584_v56, 3  ;;  %v11641_v55 = vrot.slane %v11584_v56, 4 }
 0xc93   : > { %13693 = vst [vmem:[#allocation65_spill] sm:$0xff] %v11592_v0  ;;  %v11610_v4 = vpop.permute.xlu0 %4437  ;;  %v11664_v13 = vrot.slane %v11584_v56, 6  ;;  %v11670_v29 = vrot.slane %v11584_v56, 5  ;;  %v11681_v31 = vrot.slane %v11584_v56, 7 }
 0xc94   : > { %4761 = vst [vmem:[#allocation1] ss:$9 sm:$0xff] %v11513_v8 }
 0xc95   : > { %13694 = vst [vmem:[#allocation66_spill] sm:$0xff] %v11596_v11 }
 0xc96   : > { %4763 = vst [vmem:[#allocation1 + $0x1] ss:$9 sm:$0xff] %v11584_v56 }
 0xc97   : > { %4765 = vst [vmem:[#allocation1 + $0x2] ss:$9 sm:$0xff] %v11596_v11 }
 0xc98   : > { %4551 = vrot.lane.b32.xlu0 %v11541_v28, %s13671_s22  ;;  %13696 = vst [vmem:[#allocation69_spill] sm:$0xff] %v11610_v4 }
 0xc99   : > { %v11606_v39 = vpop.permute.xlu2 %4525  ;;  %v11608_v3 = vpop.permute.xlu1 %4439  ;;  %13699 = vst [vmem:[#allocation72_spill] sm:$0xff] %v11633_v50 }
 0xc9a   : > { %13695 = vst [vmem:[#allocation70_spill] sm:$0xff] %v11608_v3  ;;  %4507 = vrot.lane.b32.xlu2 %v11584_v56, %s13668_s24  ;;  %4553 = vrot.lane.b32.xlu1 %v11513_v8, %s13671_s22 }
 0xc9b   : > { %v11630_v34 = vpop.permute.xlu0 %4479  ;;  %13700 = vst [vmem:[#allocation71_spill] sm:$0xff] %v11638_v36 }
 0xc9c   : > { %13698 = vst [vmem:[#allocation73_spill] sm:$0xff] %v11630_v34 }
 0xc9d   : > { %13701 = vst [vmem:[#allocation40_spill] sm:$0xff] %v11641_v55 }
 0xc9e   : > { %v11616_v62 = vld [vmem:[#allocation1] sm:$0xff]  ;;  %13703 = vst [vmem:[#allocation43_spill] sm:$0xff] %v11664_v13 }
 0xc9f   : > { %4769 = vst [vmem:[#allocation1 + $0x1] ss:$9 sm:$0xff] %v11584_v56 }
 0xca0   : > { %4767 = vst [vmem:[#allocation1] ss:$9 sm:$0xff] %v11513_v8  ;;  %4697 = vrot.lane.b32.xlu0 %v4696_v26, %s13676_s23 }
 0xca1   : > { %4771 = vst [vmem:[#allocation1 + $0x2] ss:$9 sm:$0xff] %v11596_v11  ;;  %v11622_v44 = vpop.permute.xlu2 %4531  ;;  %v11624_v5 = vpop.permute.xlu1 %4481 }
 0xca2   : > { %13697 = vst [vmem:[#allocation68_spill] sm:$0xff] %v11622_v44  ;;  %4555 = vrot.lane.b32.xlu2 %v11584_v56, %s13671_s22  ;;  %4659 = vrot.lane.b32.xlu1 %v11515_v51, %s13676_s23 }
 0xca3   : > { %v11656_v53 = vpop.permute.xlu0 %4485  ;;  %13704 = vst [vmem:[#allocation42_spill] sm:$0xff] %v11670_v29 }
 0xca4   : > { %13705 = vst [vmem:[#allocation34_spill] sm:$0xff] %v11681_v31 }
 0xca8   : > { %v11635_v6 = vld [vmem:[#allocation1] sm:$0xff]  ;;  %4461 = vrot.lane.b32.xlu0 %v11596_v11, %s13669_s18 }
 0xca9   : > { %4799 = vst [vmem:[#allocation1] ss:$9 sm:$0xff] %v11633_v50  ;;  %v11648_v49 = vpop.permute.xlu2 %4537  ;;  %v11650_v17 = vpop.permute.xlu1 %4487 }
 0xcaa   : > { %4801 = vst [vmem:[#allocation1 + $0x1] ss:$9 sm:$0xff] %v11638_v36  ;;  %4465 = vrot.lane.b32.xlu2 %v11638_v36, %s13669_s18  ;;  %4463 = vrot.lane.b32.xlu1 %v11633_v50, %s13669_s18 }
 0xcab   : > { %4803 = vst [vmem:[#allocation1 + $0x2] ss:$9 sm:$0xff] %v11641_v55  ;;  %v11683_v59 = vpop.permute.xlu0 %4527 }
 0xcac   : > { %13702 = vst [vmem:[#allocation32_spill] sm:$0xff] %v11648_v49 }
 0xcad   : > { %13706 = vst [vmem:[#allocation46_spill] sm:$0xff] %v11683_v59 }
 0xcb0   : > { %4467 = vrot.lane.b32.xlu0 %v11641_v55, %s13669_s18 }
 0xcb1   : > { %v4584_v19 = vpop.permute.xlu2 %4583  ;;  %v11667_v24 = vpop.permute.xlu1 %4529 }
 0xcb2   : > { %v11658_v10 = vld [vmem:[#allocation1] sm:$0xff]  ;;  %8636 = vmatpush.xpose.msk.msrb.mxu3 %vm580_vm0, %v4584_v19  ;;  %4471 = vrot.lane.b32.xlu2 %v11664_v13, %s13669_s18 }
 0xcb3   : > { %4807 = vst [vmem:[#allocation1 + $0x1] ss:$9 sm:$0xff] %v11638_v36  ;;  %4469 = vrot.lane.b32.xlu1 %v11670_v29, %s13669_s18  ;;  %v11700_v2 = vpop.permute.xlu0 %4533 }
 0xcb4   : > { %4805 = vst [vmem:[#allocation1] ss:$9 sm:$0xff] %v11633_v50 }
 0xcb5   : > { %4809 = vst [vmem:[#allocation1 + $0x2] ss:$9 sm:$0xff] %v11641_v55  ;;  %8637 = vmatmul.msk.f32.vlgmr.msrb.gmra.mxu3 %vm580_vm0, %v11413_v41 }
 0xcb6   : > { %13708 = vst [vmem:[#allocation47_spill] sm:$0xff] %v11700_v2 }
 0xcb8   : > { %4473 = vrot.lane.b32.xlu0 %v11681_v31, %s13669_s18  ;;  %s8402_s18 = scalar_lea.hbm %s13272_s17, %s8797_s25 }
 0xcb9   : > { %v11687_v51 = vpop.permute.xlu1 %4535  ;;  %v11690_v26 = vpop.permute.xlu2 %4447  ;;  %s8406_s16 = sshll.u32 %s8402_s18, 4  ;;  %s8407_s16 = int_to_ptr.hbm [resolvable:$true] %s8406_s16 }
 0xcba   : > { %13707 = vst [vmem:[#allocation44_spill] sm:$0xff] %v11690_v26  ;;  %4513 = vrot.lane.b32.xlu2 %v11638_v36, %s13668_s24 }
 0xcbb   : > { %4511 = vrot.lane.b32.xlu1 %v11633_v50, %s13668_s24 }
 0xcbc   : > { %v4810_v54 = vld [vmem:[#allocation1] sm:$0xff] }
 0xcbd   : > { %4837 = vst [vmem:[#allocation1] ss:$9 sm:$0xff] %v11670_v29 }
 0xcbe   : > { %4839 = vst [vmem:[#allocation1 + $0x1] ss:$9 sm:$0xff] %v11664_v13 }
 0xcbf   : > { %4841 = vst [vmem:[#allocation1 + $0x2] ss:$9 sm:$0xff] %v11681_v31 }
 0xcc0   : > { %4509 = vrot.lane.b32.xlu0 %v11596_v11, %s13668_s24 }
 0xcc1   : > { %v4622_v41 = vpop.permute.xlu1 %4621  ;;  %v11710_v1 = vpop.permute.xlu2 %4453 }
 0xcc2   : > { %4519 = vrot.lane.b32.xlu2 %v11664_v13, %s13668_s24  ;;  %8638 = vmatpush.xpose.msk.msra.mxu1 %vm580_vm0, %v4622_v41  ;;  %13709 = vst [vmem:[#allocation81_spill] sm:$0xff] %v11710_v1 }
 0xcc3   : > { %4517 = vrot.lane.b32.xlu1 %v11670_v29, %s13668_s24 }
 0xcc5   : > { %8639 = vmatmul.msk.f32.vlgmr.msra.gmra.mxu1 %vm580_vm0, %v11444_v60 }
 0xcc6   : > { %v11705_v19 = vld [vmem:[#allocation1] sm:$0xff] }
 0xcc7   : > { %4843 = vst [vmem:[#allocation1] ss:$9 sm:$0xff] %v11670_v29 }
 0xcc8   : > { %4845 = vst [vmem:[#allocation1 + $0x1] ss:$9 sm:$0xff] %v11664_v13  ;;  %4515 = vrot.lane.b32.xlu0 %v11641_v55, %s13668_s24 }
 0xcc9   : > { %4847 = vst [vmem:[#allocation1 + $0x2] ss:$9 sm:$0xff] %v11681_v31  ;;  %v11727_v38 = vpop.permute.xlu2 %4495 }
 0xcca   : > { %4563 = vrot.lane.b32.xlu2 %v11641_v55, %s13671_s22  ;;  %v11720_v41 = vpop.permute.xlu0 %4443 }
 0xccb   : > { %13710 = vst [vmem:[#allocation57_spill] sm:$0xff] %v11720_v41  ;;  %4561 = vrot.lane.b32.xlu1 %v11638_v36, %s13671_s22 }
 0xccc   : > { %v11724_v25 = vpop.permute.xlu1 %4445 }
 0xccd   : > { %13711 = vst [vmem:[#allocation56_spill] sm:$0xff] %v11724_v25 }
 0xcd0   : > { %v4848_v27 = vld [vmem:[#allocation1] sm:$0xff]  ;;  %4521 = vrot.lane.b32.xlu0 %v11681_v31, %s13668_s24  ;;  %s9175_s24 = scalar_lea.hbm %s13272_s17, 16 }
 0xcd1   : > { %4875 = vst [vmem:[#allocation1] ss:$9 sm:$0xff] %v11517_v48  ;;  %v11744_v56 = vpop.permute.xlu2 %4501 }
 0xcd2   : > { %4877 = vst [vmem:[#allocation1 + $0x1] ss:$9 sm:$0xff] %v11564_v63  ;;  %4569 = vrot.lane.b32.xlu2 %v11681_v31, %s13671_s22  ;;  %v11735_v60 = vpop.permute.xlu0 %4491 }
 0xcd3   : > { %4879 = vst [vmem:[#allocation1 + $0x2] ss:$9 sm:$0xff] %v11592_v0  ;;  %4735 = vrot.lane.b32.xlu1 %v11588_v30, %s13676_s23 }
 0xcd4   : > { %v11739_v55 = vpop.permute.xlu1 %4451 }
 0xcd5   : > { %13712 = vst [vmem:[#allocation55_spill] sm:$0xff] %v11739_v55 }
 0xcd8   : > { %4557 = vrot.lane.b32.xlu0 %v11596_v11, %s13671_s22 }
 0xcd9   : > { %v11761_v11 = vpop.permute.xlu2 %4543 }
 0xcda   : > { %v11741_v36 = vld [vmem:[#allocation1] sm:$0xff]  ;;  %4773 = vrot.lane.b32.xlu2 %v11635_v6, %s13676_s23  ;;  %v11752_v31 = vpop.permute.xlu0 %4539  ;;  %13715 = vst [vmem:[#allocation58_spill] sm:$0xff] %v11761_v11 }
 0xcdb   : > { %4881 = vst [vmem:[#allocation1] ss:$9 sm:$0xff] %v11517_v48  ;;  %4567 = vrot.lane.b32.xlu1 %v11664_v13, %s13671_s22 }
 0xcdc   : > { %4883 = vst [vmem:[#allocation1 + $0x1] ss:$9 sm:$0xff] %v11564_v63  ;;  %v11756_v30 = vpop.permute.xlu1 %4457 }
 0xcdd   : > { %4885 = vst [vmem:[#allocation1 + $0x2] ss:$9 sm:$0xff] %v11592_v0 }
 0xcde   : > { %13713 = vst [vmem:[#allocation60_spill] sm:$0xff] %v11752_v31 }
 0xcdf   : > { %13714 = vst [vmem:[#allocation59_spill] sm:$0xff] %v11756_v30 }
 0xce0   : > { %4559 = vrot.lane.b32.xlu0 %v11633_v50, %s13671_s22 }
 0xce2   : > { %v11764_v0 = vpop.permute.xlu0 %4449 }
 0xce3   : > { %13716 = vst [vmem:[#allocation62_spill] sm:$0xff] %v11764_v0  ;;  %4849 = vrot.lane.b32.xlu1 %v4848_v27, %s13676_s23 }
 0xce4   : > { %v4886_v48 = vld [vmem:[#allocation1] sm:$0xff]  ;;  %v11769_v6 = vpop.permute.xlu1 %4493 }
 0xce5   : > { %4915 = vst [vmem:[#allocation1 + $0x1] ss:$9 sm:$0xff] %v11531_v9  ;;  %4887 = vrot.lane.b32.xlu2 %v4886_v48, %s13676_s23  ;;  %v11778_v48 = vpop.permute.xlu2 %4549 }
 0xce6   : > { %4913 = vst [vmem:[#allocation1] ss:$9 sm:$0xff] %v11581_v35 }
 0xce7   : > { %4917 = vst [vmem:[#allocation1 + $0x2] ss:$9 sm:$0xff] %v11610_v4 }
 0xce8   : > { %4565 = vrot.lane.b32.xlu0 %v11670_v29, %s13671_s22  ;;  %13718 = vst [vmem:[#allocation63_spill] sm:$0xff] %v11778_v48 }
 0xcea   : > { %v11773_v63 = vpop.permute.xlu0 %4455 }
 0xceb   : > { %13717 = vst [vmem:[#allocation61_spill] sm:$0xff] %v11773_v63 }
 0xcec   : > { %v11780_v50 = vpop.permute.xlu1 %4499 }
 0xced   : > { %v11787_v8 = vpop.permute.xlu2 %4459 }
 0xcee   : > { %v11775_v13 = vld [vmem:[#allocation1] sm:$0xff]  ;;  %13719 = vst [vmem:[#allocation12_spill] sm:$0xff] %v11787_v8 }
 0xcef   : > { %4919 = vst [vmem:[#allocation1] ss:$9 sm:$0xff] %v11581_v35 }
 0xcf0   : > { %4921 = vst [vmem:[#allocation1 + $0x1] ss:$9 sm:$0xff] %v11531_v9  ;;  %4811 = vrot.lane.b32.xlu0 %v4810_v54, %s13676_s23 }
 0xcf1   : > { %4923 = vst [vmem:[#allocation1 + $0x2] ss:$9 sm:$0xff] %v11610_v4 }
 0xcf2   : > { %v11785_v27 = vpop.permute.xlu0 %4497 }
 0xcf4   : > { %v11789_v29 = vpop.permute.xlu1 %4505 }
 0xcf5   : > { %v11799_v54 = vpop.permute.xlu2 %4507 }
 0xcf8   : > { %v4924_v28 = vld [vmem:[#allocation1] sm:$0xff] }
 0xcf9   : > { %4953 = vst [vmem:[#allocation1 + $0x1] ss:$9 sm:$0xff] %v11547_v21  ;;  %4925 = vrot.lane.b32.xlu0 %v4924_v28, %s13676_s23 }
 0xcfa   : > { %4951 = vst [vmem:[#allocation1] ss:$9 sm:$0xff] %v11608_v3  ;;  %v11795_v9 = vpop.permute.xlu0 %4503 }
 0xcfb   : > { %4955 = vst [vmem:[#allocation1 + $0x2] ss:$9 sm:$0xff] %v11720_v41 }
 0xcfc   : > { %13720 = vst [vmem:[#allocation64_spill] sm:$0xff] %v11795_v9  ;;  %v11797_v4 = vpop.permute.xlu1 %4541 }
 0xcfd   : > { %13721 = vst [vmem:[#allocation67_spill] sm:$0xff] %v11797_v4  ;;  %v11810_v42 = vpop.permute.xlu2 %4555 }
 0xcfe   : > { %13724 = vst [vmem:[#allocation78_spill] sm:$0xff] %v11810_v42 }
 0xd02   : > { %v11801_v35 = vld [vmem:[#allocation1] sm:$0xff]  ;;  %v11806_v57 = vpop.permute.xlu0 %4545 }
 0xd03   : > { %4961 = vst [vmem:[#allocation1 + $0x2] ss:$9 sm:$0xff] %v11720_v41 }
 0xd04   : > { %4957 = vst [vmem:[#allocation1] ss:$9 sm:$0xff] %v11608_v3  ;;  %v11808_v47 = vpop.permute.xlu1 %4547 }
 0xd05   : > { %4959 = vst [vmem:[#allocation1 + $0x1] ss:$9 sm:$0xff] %v11547_v21  ;;  %v11820_v21 = vpop.permute.xlu2 %4465 }
 0xd06   : > { %13722 = vst [vmem:[#allocation77_spill] sm:$0xff] %v11806_v57 }
 0xd07   : > { %13723 = vst [vmem:[#allocation79_spill] sm:$0xff] %v11808_v47 }
 0xd08   : > { %13727 = vst [vmem:[#allocation76_spill] sm:$0xff] %v11820_v21 }
 0xd0a   : > { %v11814_v18 = vpop.permute.xlu0 %4551 }
 0xd0b   : > { %13725 = vst [vmem:[#allocation74_spill] sm:$0xff] %v11814_v18 }
 0xd0c   : > { %v4962_v28 = vld [vmem:[#allocation1] sm:$0xff]  ;;  %v11818_v41 = vpop.permute.xlu1 %4553 }
 0xd0d   : > { %4989 = vst [vmem:[#allocation1] ss:$9 sm:$0xff] %v11724_v25  ;;  %4963 = vrot.lane.b32.xlu2 %v4962_v28, %s13676_s23  ;;  %v11833_v28 = vpop.permute.xlu2 %4471 }
 0xd0e   : > { %4991 = vst [vmem:[#allocation1 + $0x1] ss:$9 sm:$0xff] %v11690_v26 }
 0xd0f   : > { %4993 = vst [vmem:[#allocation1 + $0x2] ss:$9 sm:$0xff] %v11764_v0 }
 0xd10   : > { %13726 = vst [vmem:[#allocation11_spill] sm:$0xff] %v11818_v41 }
 0xd11   : > { %13728 = vst [vmem:[#allocation82_spill] sm:$0xff] %v11833_v28 }
 0xd12   : > { %v4698_v3 = vpop.permute.xlu0 %4697 }
 0xd13   : > { %8642 = vmatpush.xpose.msk.msra.mxu3 %vm580_vm0, %v4698_v3 }
 0xd14   : > { %v4660_v46 = vpop.permute.xlu1 %4659 }
 0xd15   : > { %8640 = vmatpush.xpose.msk.msrb.mxu2 %vm580_vm0, %v4660_v46  ;;  %v11839_v46 = vpop.permute.xlu2 %4513 }
 0xd16   : > { %v11822_v58 = vld [vmem:[#allocation1] sm:$0xff]  ;;  %8643 = vmatmul.msk.f32.vlgmr.msra.gmra.mxu3 %vm580_vm0, %v11535_v40  ;;  %13729 = vst [vmem:[#allocation80_spill] sm:$0xff] %v11839_v46 }
 0xd17   : > { %4999 = vst [vmem:[#allocation1 + $0x2] ss:$9 sm:$0xff] %v11764_v0 }
 0xd18   : > { %4995 = vst [vmem:[#allocation1] ss:$9 sm:$0xff] %v11724_v25  ;;  %8641 = vmatmul.msk.f32.vlgmr.msrb.gmra.mxu2 %vm580_vm0, %v11491_v23 }
 0xd19   : > { %4997 = vst [vmem:[#allocation1 + $0x1] ss:$9 sm:$0xff] %v11690_v26 }
 0xd1a   : > { %v11848_v0 = vpop.permute.xlu0 %4461 }
 0xd1b   : > { %13730 = vst [vmem:[#allocation84_spill] sm:$0xff] %v11848_v0 }
 0xd1d   : > { %v11846_v23 = vpop.permute.xlu2 %4519 }
 0xd20   : > { %v5000_v45 = vld [vmem:[#allocation1] sm:$0xff] }
 0xd21   : > { %5027 = vst [vmem:[#allocation1] ss:$9 sm:$0xff] %v11739_v55  ;;  %5001 = vrot.lane.b32.xlu2 %v5000_v45, %s13676_s23 }
 0xd22   : > { %5029 = vst [vmem:[#allocation1 + $0x1] ss:$9 sm:$0xff] %v11710_v1 }
 0xd23   : > { %5031 = vst [vmem:[#allocation1 + $0x2] ss:$9 sm:$0xff] %v11773_v63 }
 0xd25   : > { %v11854_v45 = vpop.permute.xlu2 %4563 }
 0xd26   : > { %13731 = vst [vmem:[#allocation83_spill] sm:$0xff] %v11854_v45 }
 0xd2a   : > { %v11841_v3 = vld [vmem:[#allocation1] sm:$0xff] }
 0xd2b   : > { %5037 = vst [vmem:[#allocation1 + $0x2] ss:$9 sm:$0xff] %v11773_v63 }
 0xd2c   : > { %5033 = vst [vmem:[#allocation1] ss:$9 sm:$0xff] %v11739_v55 }
 0xd2d   : > { %5035 = vst [vmem:[#allocation1 + $0x1] ss:$9 sm:$0xff] %v11710_v1  ;;  %v11861_v1 = vpop.permute.xlu1 %4463  ;;  %v11863_v55 = vpop.permute.xlu2 %4569 }
 0xd2e   : > { %13732 = vst [vmem:[#allocation15_spill] sm:$0xff] %v11861_v1 }
 0xd2f   : > { %13733 = vst [vmem:[#allocation75_spill] sm:$0xff] %v11863_v55 }
 0xd34   : > { %v5038_v40 = vld [vmem:[#allocation1] sm:$0xff] }
 0xd35   : > { %5067 = vst [vmem:[#allocation1 + $0x1] ss:$9 sm:$0xff] %v11787_v8  ;;  %5039 = vrot.lane.b32.xlu0 %v5038_v40, %s13676_s23  ;;  %v11867_v40 = vpop.permute.xlu0 %4467 }
 0xd36   : > { %5065 = vst [vmem:[#allocation1] ss:$9 sm:$0xff] %v11756_v30 }
 0xd37   : > { %5069 = vst [vmem:[#allocation1 + $0x2] ss:$9 sm:$0xff] %v11848_v0 }
 0xd38   : > { %13734 = vst [vmem:[#allocation14_spill] sm:$0xff] %v11867_v40 }
 0xd3d   : > { %v11885_v7 = vpop.permute.xlu0 %4473 }
 0xd3e   : > { %v11856_v63 = vld [vmem:[#allocation1] sm:$0xff]  ;;  %13736 = vst [vmem:[#allocation17_spill] sm:$0xff] %v11885_v7 }
 0xd3f   : > { %5075 = vst [vmem:[#allocation1 + $0x2] ss:$9 sm:$0xff] %v11848_v0  ;;  %v11871_v0 = vpop.permute.xlu1 %4469 }
 0xd40   : > { %5071 = vst [vmem:[#allocation1] ss:$9 sm:$0xff] %v11756_v30  ;;  %v4774_v30 = vpop.permute.xlu2 %4773 }
 0xd41   : > { %5073 = vst [vmem:[#allocation1 + $0x1] ss:$9 sm:$0xff] %v11787_v8  ;;  %8646 = vmatpush.xpose.msk.msrb.mxu0 %vm580_vm0, %v4774_v30 }
 0xd42   : > { %13735 = vst [vmem:[#allocation13_spill] sm:$0xff] %v11871_v0 }
 0xd44   : > { %8647 = vmatmul.msk.f32.vlgmr.msrb.gmra.mxu0 %vm580_vm0, %v11616_v62 }
 0xd45   : > { %v11895_v62 = vpop.permute.xlu0 %4509 }
 0xd46   : > { %13738 = vst [vmem:[#allocation16_spill] sm:$0xff] %v11895_v62 }
 0xd48   : > { %v5076_v26 = vld [vmem:[#allocation1] sm:$0xff]  ;;  %v4888_v16 = vpop.permute.xlu2 %4887 }
 0xd49   : > { %5103 = vst [vmem:[#allocation1] ss:$9 sm:$0xff] %v11861_v1  ;;  %5077 = vrot.lane.b32.xlu1 %v5076_v26, %s13676_s23  ;;  %v11881_v26 = vpop.permute.xlu1 %4511 }
 0xd4a   : > { %5105 = vst [vmem:[#allocation1 + $0x1] ss:$9 sm:$0xff] %v11820_v21 }
 0xd4b   : > { %5107 = vst [vmem:[#allocation1 + $0x2] ss:$9 sm:$0xff] %v11867_v40 }
 0xd4d   : > { %v11905_v15 = vpop.permute.xlu0 %4515 }
 0xd4e   : > { %13740 = vst [vmem:[#allocation20_spill] sm:$0xff] %v11905_v15 }
 0xd51   : > { %v11889_v30 = vpop.permute.xlu1 %4517 }
 0xd52   : > { %v11873_v25 = vld [vmem:[#allocation1] sm:$0xff]  ;;  %13737 = vst [vmem:[#allocation18_spill] sm:$0xff] %v11889_v30 }
 0xd53   : > { %5113 = vst [vmem:[#allocation1 + $0x2] ss:$9 sm:$0xff] %v11867_v40 }
 0xd54   : > { %5109 = vst [vmem:[#allocation1] ss:$9 sm:$0xff] %v11861_v1 }
 0xd55   : > { %5111 = vst [vmem:[#allocation1 + $0x1] ss:$9 sm:$0xff] %v11820_v21 }
 0xd59   : > { %v11898_v21 = vpop.permute.xlu1 %4561 }
 0xd5a   : > { %13739 = vst [vmem:[#allocation19_spill] sm:$0xff] %v11898_v21 }
 0xd5c   : > { %v5114_v8 = vld [vmem:[#allocation1] sm:$0xff] }
 0xd5d   : > { %5141 = vst [vmem:[#allocation1] ss:$9 sm:$0xff] %v11871_v0  ;;  %5115 = vrot.lane.b32.xlu0 %v5114_v8, %s13676_s23  ;;  %v11900_v8 = vpop.f32.mrf.mxu1 }
 0xd5e   : > { %5143 = vst [vmem:[#allocation1 + $0x1] ss:$9 sm:$0xff] %v11833_v28 }
 0xd5f   : > { %5145 = vst [vmem:[#allocation1 + $0x2] ss:$9 sm:$0xff] %v11885_v7 }
 0xd66   : > { %v11891_v40 = vld [vmem:[#allocation1] sm:$0xff] }
 0xd67   : > { %5147 = vst [vmem:[#allocation1] ss:$9 sm:$0xff] %v11871_v0  ;;  %v11910_v0 = vpop.f32.mrf.mxu3 }
 0xd68   : > { %5149 = vst [vmem:[#allocation1 + $0x1] ss:$9 sm:$0xff] %v11833_v28  ;;  %v5790_v28 = vsel %vm2044_vm2, %v11900_v8, -inf }
 0xd69   : > { %5151 = vst [vmem:[#allocation1 + $0x2] ss:$9 sm:$0xff] %v11885_v7  ;;  %5791 = vmax.xlane.f32.xlu2 %v5790_v28  ;;  %v4736_v7 = vpop.permute.xlu1 %4735  ;;  %v11922_v28 = vpop.permute.xlu0 %4521 }
 0xd6a   : > { %8644 = vmatpush.xpose.msk.msrb.mxu1 %vm580_vm0, %v4736_v7  ;;  %13741 = vst [vmem:[#allocation8_spill] sm:$0xff] %v11922_v28 }
 0xd6d   : > { %8645 = vmatmul.msk.f32.vlgmr.msrb.gmra.mxu1 %vm580_vm0, %v11566_v12 }
 0xd6e   : > { %8652 = vmatpush.xpose.msk.msra.mxu1 %vm580_vm0, %v4888_v16 }
 0xd70   : > { %v5152_v1 = vld [vmem:[#allocation1] sm:$0xff] }
 0xd71   : > { %5179 = vst [vmem:[#allocation1] ss:$9 sm:$0xff] %v11560_v22  ;;  %5153 = vrot.lane.b32.xlu0 %v5152_v1, %s13676_s23  ;;  %v5787_v1 = vsel %vm2044_vm2, %v11910_v0, -inf  ;;  %v11929_v7 = vpop.permute.xlu0 %4557  ;;  %v11932_v12 = vpop.permute.xlu1 %4567 }
 0xd72   : > { %5181 = vst [vmem:[#allocation1 + $0x1] ss:$9 sm:$0xff] %v11558_v43 }
 0xd73   : > { %5183 = vst [vmem:[#allocation1 + $0x2] ss:$9 sm:$0xff] %v11630_v34  ;;  %5788 = vmax.xlane.f32.xlu1 %v5787_v1 }
 0xd74   : > { %13742 = vst [vmem:[#allocation9_spill] sm:$0xff] %v11929_v7 }
 0xd75   : > { %8653 = vmatmul.msk.f32.vlgmr.msra.gmra.mxu1 %vm580_vm0, %v11741_v36  ;;  %13743 = vst [vmem:[#allocation10_spill] sm:$0xff] %v11932_v12 }
 0xd79   : > { %v4850_v36 = vpop.permute.xlu1 %4849 }
 0xd7a   : > { %v11918_v33 = vld [vmem:[#allocation1] sm:$0xff]  ;;  %8650 = vmatpush.xpose.msk.msrb.mxu3 %vm580_vm0, %v4850_v36 }
 0xd7b   : > { %5185 = vst [vmem:[#allocation1] ss:$9 sm:$0xff] %v11560_v22 }
 0xd7c   : > { %5187 = vst [vmem:[#allocation1 + $0x1] ss:$9 sm:$0xff] %v11558_v43  ;;  %v4964_v43 = vpop.permute.xlu2 %4963 }
 0xd7d   : > { %5189 = vst [vmem:[#allocation1 + $0x2] ss:$9 sm:$0xff] %v11630_v34  ;;  %v11938_v34 = vpop.permute.xlu0 %4559  ;;  %8651 = vmatmul.msk.f32.vlgmr.msrb.gmra.mxu3 %vm580_vm0, %v11705_v19 }
 0xd7e   : > { %13744 = vst [vmem:[#allocation85_spill] sm:$0xff] %v11938_v34 }
 0xd84   : > { %v5190_v16 = vld [vmem:[#allocation1] sm:$0xff] }
 0xd85   : > { %5217 = vst [vmem:[#allocation1] ss:$9 sm:$0xff] %v11624_v5  ;;  %v11945_v20 = vpop.permute.xlu0 %4565 }
 0xd86   : > { %5219 = vst [vmem:[#allocation1 + $0x1] ss:$9 sm:$0xff] %v11574_v61 }
 0xd87   : > { %5221 = vst [vmem:[#allocation1 + $0x2] ss:$9 sm:$0xff] %v11656_v53 }
 0xd88   : > { %13745 = vst [vmem:[#allocation86_spill] sm:$0xff] %v11945_v20 }
 0xd8c   : > { %5191 = vrot.lane.b32.xlu1 %v5190_v16, %s13676_s23  ;;  %v5002_v16 = vpop.permute.xlu2 %5001 }
 0xd8d   : > { %8658 = vmatpush.xpose.msk.msra.mxu3 %vm580_vm0, %v5002_v16  ;;  %v4812_v36 = vpop.permute.xlu0 %4811 }
 0xd8e   : > { %v11934_v1 = vld [vmem:[#allocation1] sm:$0xff]  ;;  %8648 = vmatpush.xpose.msk.msra.mxu2 %vm580_vm0, %v4812_v36 }
 0xd8f   : > { %5223 = vst [vmem:[#allocation1] ss:$9 sm:$0xff] %v11624_v5 }
 0xd90   : > { %5225 = vst [vmem:[#allocation1 + $0x1] ss:$9 sm:$0xff] %v11574_v61  ;;  %8659 = vmatmul.msk.f32.vlgmr.msra.gmra.mxu3 %vm580_vm0, %v11822_v58 }
 0xd91   : > { %5227 = vst [vmem:[#allocation1 + $0x2] ss:$9 sm:$0xff] %v11656_v53  ;;  %8649 = vmatmul.msk.f32.vlgmr.msra.gmra.mxu2 %vm580_vm0, %v11658_v10 }
 0xd92   : > { %8656 = vmatpush.xpose.msk.msrb.mxu2 %vm580_vm0, %v4964_v43 }
 0xd98   : > { %v5228_v22 = vld [vmem:[#allocation1] sm:$0xff] }
 0xd99   : > { %5259 = vst [vmem:[#allocation1 + $0x2] ss:$9 sm:$0xff] %v11735_v60  ;;  %5229 = vrot.lane.b32.xlu2 %v5228_v22, %s13676_s23  ;;  %v4926_v22 = vpop.permute.xlu0 %4925  ;;  %8657 = vmatmul.msk.f32.vlgmr.msrb.gmra.mxu2 %vm580_vm0, %v11801_v35  ;;  %v11992_v36 = vpop.f32.mrf.mxu3 }
 0xd9a   : > { %5255 = vst [vmem:[#allocation1] ss:$9 sm:$0xff] %v11650_v17  ;;  %8654 = vmatpush.xpose.msk.msra.mxu0 %vm580_vm0, %v4926_v22 }
 0xd9b   : > { %5257 = vst [vmem:[#allocation1 + $0x1] ss:$9 sm:$0xff] %v11590_v52  ;;  %v11996_v22 = vpop.f32.mrf.mxu2 }
 0xd9d   : > { %8655 = vmatmul.msk.f32.vlgmr.msra.gmra.mxu0 %vm580_vm0, %v11775_v13 }
 0xda2   : > { %v11955_v19 = vld [vmem:[#allocation1] sm:$0xff] }
 0xda3   : > { %5261 = vst [vmem:[#allocation1] ss:$9 sm:$0xff] %v11650_v17 }
 0xda4   : > { %5263 = vst [vmem:[#allocation1 + $0x1] ss:$9 sm:$0xff] %v11590_v52 }
 0xda5   : > { %5265 = vst [vmem:[#allocation1 + $0x2] ss:$9 sm:$0xff] %v11735_v60 }
 0xda7   : > { %v5040_v35 = vpop.permute.xlu0 %5039 }
 0xda8   : > { %8660 = vmatpush.xpose.msk.msrb.mxu1 %vm580_vm0, %v5040_v35 }
 0xdab   : > { %8661 = vmatmul.msk.f32.vlgmr.msrb.gmra.mxu1 %vm580_vm0, %v11841_v3  ;;  %v5796_v3 = vsel %vm2044_vm2, %v11992_v36, -inf }
 0xdac   : > { %v5266_v58 = vld [vmem:[#allocation1] sm:$0xff] }
 0xdad   : > { %5293 = vst [vmem:[#allocation1] ss:$9 sm:$0xff] %v11769_v6  ;;  %5267 = vrot.lane.b32.xlu1 %v5266_v58, %s13676_s23  ;;  %v5793_v58 = vsel %vm2044_vm2, %v11996_v22, -inf }
 0xdae   : > { %5295 = vst [vmem:[#allocation1 + $0x1] ss:$9 sm:$0xff] %v11727_v38  ;;  %5794 = vmax.xlane.f32.xlu0 %v5793_v58 }
 0xdaf   : > { %5297 = vst [vmem:[#allocation1 + $0x2] ss:$9 sm:$0xff] %v11785_v27 }
 0xdb6   : > { %v11972_v43 = vld [vmem:[#allocation1] sm:$0xff] }
 0xdb7   : > { %5299 = vst [vmem:[#allocation1] ss:$9 sm:$0xff] %v11769_v6 }
 0xdb8   : > { %5301 = vst [vmem:[#allocation1 + $0x1] ss:$9 sm:$0xff] %v11727_v38 }
 0xdb9   : > { %5303 = vst [vmem:[#allocation1 + $0x2] ss:$9 sm:$0xff] %v11785_v27 }
 0xdc0   : > { %v5304_v10 = vld [vmem:[#allocation1] sm:$0xff] }
 0xdc1   : > { %5331 = vst [vmem:[#allocation1] ss:$9 sm:$0xff] %v11780_v50  ;;  %5305 = vrot.lane.b32.xlu1 %v5304_v10, %s13676_s23  ;;  %v5078_v10 = vpop.permute.xlu1 %5077  ;;  %v12017_v58 = vpop.f32.mrf.mxu0 }
 0xdc2   : > { %5333 = vst [vmem:[#allocation1 + $0x1] ss:$9 sm:$0xff] %v11744_v56  ;;  %5797 = vmax.xlane.f32.xlu2 %v5796_v3  ;;  %8662 = vmatpush.xpose.msk.msrb.mxu0 %vm580_vm0, %v5078_v10  ;;  %v5802_v10 = vsel %vm2044_vm2, %v12017_v58, -inf }
 0xdc3   : > { %5335 = vst [vmem:[#allocation1 + $0x2] ss:$9 sm:$0xff] %v11795_v9 }
 0xdc5   : > { %8663 = vmatmul.msk.f32.vlgmr.msrb.gmra.mxu0 %vm580_vm0, %v11856_v63 }
 0xdca   : > { %v11984_v13 = vld [vmem:[#allocation1] sm:$0xff] }
 0xdcb   : > { %5337 = vst [vmem:[#allocation1] ss:$9 sm:$0xff] %v11780_v50 }
 0xdcc   : > { %5339 = vst [vmem:[#allocation1 + $0x1] ss:$9 sm:$0xff] %v11744_v56 }
 0xdcd   : > { %5341 = vst [vmem:[#allocation1 + $0x2] ss:$9 sm:$0xff] %v11795_v9 }
 0xdcf   : > { %v5116_v3 = vpop.permute.xlu0 %5115 }
 0xdd0   : > { %8664 = vmatpush.xpose.msk.msra.mxu2 %vm580_vm0, %v5116_v3 }
 0xdd3   : > { %8665 = vmatmul.msk.f32.vlgmr.msra.gmra.mxu2 %vm580_vm0, %v11873_v25 }
 0xdd4   : > { %v5342_v16 = vld [vmem:[#allocation1] sm:$0xff] }
 0xdd5   : > { %5369 = vst [vmem:[#allocation1] ss:$9 sm:$0xff] %v11789_v29 }
 0xdd6   : > { %5371 = vst [vmem:[#allocation1 + $0x1] ss:$9 sm:$0xff] %v11799_v54 }
 0xdd7   : > { %5373 = vst [vmem:[#allocation1 + $0x2] ss:$9 sm:$0xff] %v11895_v62 }
 0xddc   : > { %v12024_v3 = vpop.xlane.xlu2 %5791 }
 0xdde   : > { %v12001_v35 = vld [vmem:[#allocation1] sm:$0xff] }
 0xddf   : > { %5379 = vst [vmem:[#allocation1 + $0x2] ss:$9 sm:$0xff] %v11895_v62 }
 0xde0   : > { %5375 = vst [vmem:[#allocation1] ss:$9 sm:$0xff] %v11789_v29 }
 0xde1   : > { %5377 = vst [vmem:[#allocation1 + $0x1] ss:$9 sm:$0xff] %v11799_v54 }
 0xde3   : > { %v5154_v62 = vpop.permute.xlu0 %5153 }
 0xde4   : > { %8666 = vmatpush.xpose.msk.msrb.mxu3 %vm580_vm0, %v5154_v62 }
 0xde6   : > { %v5789_v62 = vpop.xlane.xlu1 %5788 }
 0xde7   : > { %8667 = vmatmul.msk.f32.vlgmr.msrb.gmra.mxu3 %vm580_vm0, %v11891_v40 }
 0xde8   : > { %v5380_v9 = vld [vmem:[#allocation1] sm:$0xff] }
 0xde9   : > { %5407 = vst [vmem:[#allocation1] ss:$9 sm:$0xff] %v11881_v26  ;;  %5381 = vrot.lane.b32.xlu0 %v5380_v9, %s13676_s23 }
 0xdea   : > { %5409 = vst [vmem:[#allocation1 + $0x1] ss:$9 sm:$0xff] %v11839_v46 }
 0xdeb   : > { %5411 = vst [vmem:[#allocation1 + $0x2] ss:$9 sm:$0xff] %v11905_v15  ;;  %5803 = vmax.xlane.f32.xlu1 %v5802_v10 }
 0xdf2   : > { %v12015_v63 = vld [vmem:[#allocation1] sm:$0xff] }
 0xdf3   : > { %5417 = vst [vmem:[#allocation1 + $0x2] ss:$9 sm:$0xff] %v11905_v15  ;;  %v5230_v9 = vpop.permute.xlu2 %5229  ;;  %v12032_v15 = vpop.f32.mrf.mxu1 }
 0xdf4   : > { %5413 = vst [vmem:[#allocation1] ss:$9 sm:$0xff] %v11881_v26  ;;  %8670 = vmatpush.xpose.msk.msra.mxu0 %vm580_vm0, %v5230_v9  ;;  %v5799_v10 = vsel %vm2044_vm2, %v12032_v15, -inf }
 0xdf5   : > { %5415 = vst [vmem:[#allocation1 + $0x1] ss:$9 sm:$0xff] %v11839_v46  ;;  %5800 = vmax.xlane.f32.xlu2 %v5799_v10 }
 0xdf7   : > { %8671 = vmatmul.msk.f32.vlgmr.msra.gmra.mxu0 %vm580_vm0, %v11934_v1 }
 0xdfc   : > { %v5418_v25 = vld [vmem:[#allocation1] sm:$0xff] }
 0xdfd   : > { %5445 = vst [vmem:[#allocation1] ss:$9 sm:$0xff] %v11889_v30 }
 0xdfe   : > { %5447 = vst [vmem:[#allocation1 + $0x1] ss:$9 sm:$0xff] %v11846_v23  ;;  %v5192_v1 = vpop.permute.xlu1 %5191 }
 0xdff   : > { %5449 = vst [vmem:[#allocation1 + $0x2] ss:$9 sm:$0xff] %v11922_v28  ;;  %8668 = vmatpush.xpose.msk.msra.mxu1 %vm580_vm0, %v5192_v1 }
 0xe00   : > { %v12047_v9 = vpop.f32.mrf.mxu3 }
 0xe02   : > { %8669 = vmatmul.msk.f32.vlgmr.msra.gmra.mxu1 %vm580_vm0, %v11918_v33 }
 0xe06   : > { %v12037_v46 = vld [vmem:[#allocation1] sm:$0xff] }
 0xe07   : > { %5451 = vst [vmem:[#allocation1] ss:$9 sm:$0xff] %v11889_v30  ;;  %v5808_v30 = vsel %vm2044_vm2, %v12047_v9, -inf }
 0xe08   : > { %5453 = vst [vmem:[#allocation1 + $0x1] ss:$9 sm:$0xff] %v11846_v23  ;;  %5809 = vmax.xlane.f32.xlu1 %v5808_v30 }
 0xe09   : > { %5455 = vst [vmem:[#allocation1 + $0x2] ss:$9 sm:$0xff] %v11922_v28 }
 0xe0d   : > { %5343 = vrot.lane.b32.xlu2 %v5342_v16, %s13676_s23 }
 0xe10   : > { %v5456_v40 = vld [vmem:[#allocation1] sm:$0xff] }
 0xe11   : > { %5483 = vst [vmem:[#allocation1] ss:$9 sm:$0xff] %v11576_v37 }
 0xe12   : > { %5485 = vst [vmem:[#allocation1 + $0x1] ss:$9 sm:$0xff] %v11606_v39 }
 0xe13   : > { %5487 = vst [vmem:[#allocation1 + $0x2] ss:$9 sm:$0xff] %v11683_v59 }
 0xe14   : > { %v12066_v30 = vpop.f32.mrf.mxu2 }
 0xe15   : > { %5419 = vrot.lane.b32.xlu2 %v5418_v25, %s13676_s23  ;;  %v5805_v16 = vsel %vm2044_vm2, %v12066_v30, -inf }
 0xe16   : > { %5806 = vmax.xlane.f32.xlu0 %v5805_v16 }
 0xe1a   : > { %v12049_v10 = vld [vmem:[#allocation1] sm:$0xff]  ;;  %v12071_v33 = vpop.f32.mrf.mxu0 }
 0xe1b   : > { %5489 = vst [vmem:[#allocation1] ss:$9 sm:$0xff] %v11576_v37  ;;  %v5814_v25 = vsel %vm2044_vm2, %v12071_v33, -inf }
 0xe1c   : > { %5491 = vst [vmem:[#allocation1 + $0x1] ss:$9 sm:$0xff] %v11606_v39 }
 0xe1d   : > { %5493 = vst [vmem:[#allocation1 + $0x2] ss:$9 sm:$0xff] %v11683_v59 }
 0xe1e   : > { %5815 = vmax.xlane.f32.xlu0 %v5814_v25 }
 0xe1f   : > { %v5268_v1 = vpop.permute.xlu1 %5267 }
 0xe20   : > { %8672 = vmatpush.xpose.msk.msrb.mxu2 %vm580_vm0, %v5268_v1 }
 0xe21   : > { %5457 = vrot.lane.b32.xlu1 %v5456_v40, %s13676_s23 }
 0xe23   : > { %8673 = vmatmul.msk.f32.vlgmr.msrb.gmra.mxu2 %vm580_vm0, %v11955_v19  ;;  %v5883_v19 = vsub.f32 %v11910_v0, %v5789_v62 }
 0xe24   : > { %v12060_v28 = vld [vmem:[#allocation1] sm:$0xff] }
 0xe25   : > { %5521 = vst [vmem:[#allocation1] ss:$9 sm:$0xff] %v11667_v24 }
 0xe26   : > { %5523 = vst [vmem:[#allocation1 + $0x1] ss:$9 sm:$0xff] %v11622_v44 }
 0xe27   : > { %5525 = vst [vmem:[#allocation1 + $0x2] ss:$9 sm:$0xff] %v11700_v2 }
 0xe2e   : > { %v12073_v59 = vld [vmem:[#allocation1] sm:$0xff] }
 0xe2f   : > { %5527 = vst [vmem:[#allocation1] ss:$9 sm:$0xff] %v11667_v24 }
 0xe30   : > { %5529 = vst [vmem:[#allocation1 + $0x1] ss:$9 sm:$0xff] %v11622_v44  ;;  %v5915_v44 = vmul.f32 1.442695, %v5883_v19  ;;  %v12112_v19 = vpop.f32.mrf.mxu1 }
 0xe31   : > { %5531 = vst [vmem:[#allocation1 + $0x2] ss:$9 sm:$0xff] %v11700_v2 }
 0xe32   : > { %9015 = vpow2.f32 %v5915_v44  ;;  %v5884_v44 = vsub.f32 %v11900_v8, %v12024_v3 }
 0xe33   : > { %v5306_v1 = vpop.permute.xlu1 %5305 }
 0xe34   : > { %8674 = vmatpush.xpose.msk.msra.mxu3 %vm580_vm0, %v5306_v1  ;;  %v5917_v25 = vmul.f32 1.442695, %v5884_v44  ;;  %v5795_v1 = vpop.xlane.xlu0 %5794 }
 0xe36   : > { %9017 = vpow2.f32 %v5917_v25 }
 0xe37   : > { %8675 = vmatmul.msk.f32.vlgmr.msra.gmra.mxu3 %vm580_vm0, %v11972_v43 }
 0xe38   : > { %v5532_v16 = vld [vmem:[#allocation1] sm:$0xff]  ;;  %v12096_v40 = vpop.eup %9015 }
 0xe39   : > { %5563 = vst [vmem:[#allocation1 + $0x2] ss:$9 sm:$0xff] %v11752_v31  ;;  %5533 = vrot.lane.b32.xlu0 %v5532_v16, %s13676_s23  ;;  %v5979_v43 = vsel %vm2044_vm2, %v12096_v40, 0.0  ;;  %v5798_v16 = vpop.xlane.xlu2 %5797 }
 0xe3a   : > { %5559 = vst [vmem:[#allocation1] ss:$9 sm:$0xff] %v11687_v51 }
 0xe3b   : > { %5561 = vst [vmem:[#allocation1 + $0x1] ss:$9 sm:$0xff] %v11648_v49 }
 0xe3e   : > { %5980 = vadd.xlane.f32.xlu2 %v5979_v43  ;;  %v5886_v43 = vsub.f32 %v11992_v36, %v5798_v16  ;;  %v5885_v36 = vsub.f32 %v11996_v22, %v5795_v1 }
 0xe40   : > { %v5921_v3 = vmul.f32 1.442695, %v5886_v43  ;;  %v5919_v44 = vmul.f32 1.442695, %v5885_v36 }
 0xe42   : > { %v12090_v2 = vld [vmem:[#allocation1] sm:$0xff]  ;;  %9019 = vpow2.f32 %v5921_v3 }
 0xe43   : > { %5565 = vst [vmem:[#allocation1] ss:$9 sm:$0xff] %v11687_v51  ;;  %9021 = vpow2.f32 %v5919_v44 }
 0xe44   : > { %5567 = vst [vmem:[#allocation1 + $0x1] ss:$9 sm:$0xff] %v11648_v49 }
 0xe45   : > { %5569 = vst [vmem:[#allocation1 + $0x2] ss:$9 sm:$0xff] %v11752_v31  ;;  %v5811_v31 = vsel %vm2044_vm2, %v12112_v19, -inf }
 0xe4b   : > { %5812 = vmax.xlane.f32.xlu1 %v5811_v31 }
 0xe4c   : > { %v12098_v0 = vld [vmem:[#allocation1] sm:$0xff] }
 0xe4d   : > { %5597 = vst [vmem:[#allocation1] ss:$9 sm:$0xff] %v11797_v4 }
 0xe4e   : > { %5599 = vst [vmem:[#allocation1 + $0x1] ss:$9 sm:$0xff] %v11761_v11 }
 0xe4f   : > { %5601 = vst [vmem:[#allocation1 + $0x2] ss:$9 sm:$0xff] %v11806_v57 }
 0xe56   : > { %v12107_v62 = vld [vmem:[#allocation1] sm:$0xff]  ;;  %5495 = vrot.lane.b32.xlu2 %v12060_v28, %s13676_s23 }
 0xe57   : > { %5603 = vst [vmem:[#allocation1] ss:$9 sm:$0xff] %v11797_v4 }
 0xe58   : > { %5605 = vst [vmem:[#allocation1 + $0x1] ss:$9 sm:$0xff] %v11761_v11  ;;  %v12118_v11 = vpop.eup %9017 }
 0xe59   : > { %5607 = vst [vmem:[#allocation1 + $0x2] ss:$9 sm:$0xff] %v11806_v57  ;;  %v5982_v31 = vsel %vm2044_vm2, %v12118_v11, 0.0  ;;  %v12130_v25 = vpop.eup %9019 }
 0xe5a   : > { %5983 = vadd.xlane.f32.xlu1 %v5982_v31  ;;  %v5988_v22 = vsel %vm2044_vm2, %v12130_v25, 0.0 }
 0xe5b   : > { %v5382_v4 = vpop.permute.xlu0 %5381 }
 0xe5c   : > { %8678 = vmatpush.xpose.msk.msrb.mxu0 %vm580_vm0, %v5382_v4  ;;  %v12135_v4 = vpop.f32.mrf.mxu2 }
 0xe5d   : > { %v5817_v28 = vsel %vm2044_vm2, %v12135_v4, -inf }
 0xe5f   : > { %8679 = vmatmul.msk.f32.vlgmr.msrb.gmra.mxu0 %vm580_vm0, %v12001_v35  ;;  %v12143_v35 = vpop.eup %9021 }
 0xe60   : > { %v5608_v8 = vld [vmem:[#allocation1] sm:$0xff]  ;;  %v5985_v43 = vsel %vm2044_vm2, %v12143_v35, 0.0 }
 0xe61   : > { %5635 = vst [vmem:[#allocation1] ss:$9 sm:$0xff] %v11808_v47 }
 0xe62   : > { %5637 = vst [vmem:[#allocation1 + $0x1] ss:$9 sm:$0xff] %v11778_v48  ;;  %5989 = vadd.xlane.f32.xlu1 %v5988_v22 }
 0xe63   : > { %5639 = vst [vmem:[#allocation1 + $0x2] ss:$9 sm:$0xff] %v11814_v18  ;;  %5818 = vmax.xlane.f32.xlu0 %v5817_v28  ;;  %v12175_v28 = vpop.f32.mrf.mxu0 }
 0xe68   : > { %v5801_v3 = vpop.xlane.xlu2 %5800 }
 0xe6a   : > { %v12132_v16 = vld [vmem:[#allocation1] sm:$0xff] }
 0xe6b   : > { %5641 = vst [vmem:[#allocation1] ss:$9 sm:$0xff] %v11808_v47  ;;  %5986 = vadd.xlane.f32.xlu0 %v5985_v43  ;;  %v13788_v47 = vld [vmem:[#allocation59_spill] sm:$0xff] }
 0xe6c   : > { %5643 = vst [vmem:[#allocation1 + $0x1] ss:$9 sm:$0xff] %v11778_v48 }
 0xe6d   : > { %5645 = vst [vmem:[#allocation1 + $0x2] ss:$9 sm:$0xff] %v11814_v18 }
 0xe70   : > { %v5344_v31 = vpop.permute.xlu2 %5343 }
 0xe71   : > { %8676 = vmatpush.xpose.msk.msrb.mxu1 %vm580_vm0, %v5344_v31  ;;  %v12183_v31 = vpop.f32.mrf.mxu3 }
 0xe74   : > { %v5646_v1 = vld [vmem:[#allocation1] sm:$0xff]  ;;  %8677 = vmatmul.msk.f32.vlgmr.msrb.gmra.mxu1 %vm580_vm0, %v11984_v13 }
 0xe75   : > { %5673 = vst [vmem:[#allocation1] ss:$9 sm:$0xff] %v11818_v41  ;;  %5647 = vrot.lane.b32.xlu2 %v5646_v1, %s13676_s23 }
 0xe76   : > { %5675 = vst [vmem:[#allocation1 + $0x1] ss:$9 sm:$0xff] %v11810_v42 }
 0xe77   : > { %5677 = vst [vmem:[#allocation1 + $0x2] ss:$9 sm:$0xff] %v11929_v7 }
 0xe78   : > { %v5420_v44 = vpop.permute.xlu2 %5419 }
 0xe79   : > { %8680 = vmatpush.xpose.msk.msra.mxu2 %vm580_vm0, %v5420_v44  ;;  %v12185_v44 = vpop.f32.mrf.mxu2 }
 0xe7b   : > { %5609 = vrot.lane.b32.xlu1 %v5608_v8, %s13676_s23  ;;  %v5804_v8 = vpop.xlane.xlu1 %5803 }
 0xe7c   : > { %8681 = vmatmul.msk.f32.vlgmr.msra.gmra.mxu2 %vm580_vm0, %v12015_v63  ;;  %v5887_v63 = vsub.f32 %v12032_v15, %v5801_v3 }
 0xe7e   : > { %v12151_v36 = vld [vmem:[#allocation1] sm:$0xff] }
 0xe7f   : > { %5683 = vst [vmem:[#allocation1 + $0x2] ss:$9 sm:$0xff] %v11929_v7  ;;  %5571 = vrot.lane.b32.xlu0 %v12098_v0, %s13676_s23  ;;  %v5826_v0 = vsel %vm2044_vm2, %v12175_v28, -inf  ;;  %v5829_v7 = vsel %vm2044_vm2, %v12185_v44, -inf }
 0xe80   : > { %5679 = vst [vmem:[#allocation1] ss:$9 sm:$0xff] %v11818_v41 }
 0xe81   : > { %5681 = vst [vmem:[#allocation1 + $0x1] ss:$9 sm:$0xff] %v11810_v42 }
 0xe83   : > { %v5810_v43 = vpop.xlane.xlu1 %5809 }
 0xe88   : > { %v12160_v22 = vld [vmem:[#allocation1] sm:$0xff] }
 0xe89   : > { %5711 = vst [vmem:[#allocation1] ss:$9 sm:$0xff] %v11938_v34 }
 0xe8a   : > { %5713 = vst [vmem:[#allocation1 + $0x1] ss:$9 sm:$0xff] %v11898_v21 }
 0xe8b   : > { %5715 = vst [vmem:[#allocation1 + $0x2] ss:$9 sm:$0xff] %v11854_v45 }
 0xe92   : > { %v12170_v13 = vld [vmem:[#allocation1] sm:$0xff] }
 0xe93   : > { %5717 = vst [vmem:[#allocation1] ss:$9 sm:$0xff] %v11938_v34  ;;  %v12188_v34 = vpop.xlane.xlu0 %5806 }
 0xe94   : > { %5719 = vst [vmem:[#allocation1 + $0x1] ss:$9 sm:$0xff] %v11898_v21  ;;  %v5890_v21 = vsub.f32 %v12047_v9, %v5810_v43  ;;  %v12198_v9 = vpop.f32.mrf.mxu3  ;;  %v5889_v41 = vsub.f32 %v12066_v30, %v12188_v34  ;;  %v13766_v34 = vld [vmem:[#allocation42_spill] sm:$0xff]  ;;  %v12289_v30 = vpop.f32.mrf.mxu0 }
 0xe95   : > { %5721 = vst [vmem:[#allocation1 + $0x2] ss:$9 sm:$0xff] %v11854_v45  ;;  %v5923_v45 = vmul.f32 1.442695, %v5887_v63 }
 0xe96   : > { %v5929_v15 = vmul.f32 1.442695, %v5890_v21  ;;  %v5927_v48 = vmul.f32 1.442695, %v5889_v41 }
 0xe97   : > { %9023 = vpow2.f32 %v5923_v45  ;;  %v5832_v45 = vsel %vm2044_vm2, %v12198_v9, -inf }
 0xe98   : > { %9025 = vpow2.f32 %v5929_v15  ;;  %v5820_v15 = vsel %vm2044_vm2, %v12183_v31, -inf }
 0xe9b   : > { %v12206_v3 = vpop.xlane.xlu0 %5815 }
 0xe9c   : > { %v5722_v1 = vld [vmem:[#allocation1] sm:$0xff] }
 0xe9d   : > { %5749 = vst [vmem:[#allocation1] ss:$9 sm:$0xff] %v11945_v20 }
 0xe9e   : > { %5827 = vmax.xlane.f32.xlu2 %v5826_v0  ;;  %5751 = vst [vmem:[#allocation1 + $0x1] ss:$9 sm:$0xff] %v11932_v12  ;;  %v5458_v0 = vpop.permute.xlu1 %5457 }
 0xe9f   : > { %5753 = vst [vmem:[#allocation1 + $0x2] ss:$9 sm:$0xff] %v11863_v55  ;;  %8682 = vmatpush.xpose.msk.msrb.mxu3 %vm580_vm0, %v5458_v0  ;;  %v13746_v0 = vld [vmem:[#allocation29_spill] sm:$0xff] }
 0xea0   : > { %13767 = vst [vmem:[#allocation29_spill] sm:$0xff] %v12289_v30 }
 0xea2   : > { %8683 = vmatmul.msk.f32.vlgmr.msrb.gmra.mxu3 %vm580_vm0, %v12037_v46  ;;  %v5888_v46 = vsub.f32 %v12017_v58, %v5804_v8  ;;  %v13748_v8 = vld [vmem:[#allocation30_spill] sm:$0xff] }
 0xea6   : > { %5830 = vmax.xlane.f32.xlu2 %v5829_v7  ;;  %v12192_v42 = vld [vmem:[#allocation1] sm:$0xff]  ;;  %v12202_v7 = vpop.eup %9023 }
 0xea7   : > { %5755 = vst [vmem:[#allocation1] ss:$9 sm:$0xff] %v11945_v20  ;;  %v5991_v21 = vsel %vm2044_vm2, %v12202_v7, 0.0  ;;  %v12211_v63 = vpop.eup %9025 }
 0xea8   : > { %5757 = vst [vmem:[#allocation1 + $0x1] ss:$9 sm:$0xff] %v11932_v12  ;;  %5992 = vadd.xlane.f32.xlu1 %v5991_v21 }
 0xea9   : > { %5759 = vst [vmem:[#allocation1 + $0x2] ss:$9 sm:$0xff] %v11863_v55  ;;  %5821 = vmax.xlane.f32.xlu0 %v5820_v15  ;;  %v5925_v55 = vmul.f32 1.442695, %v5888_v46 }
 0xeab   : > { %v5534_v21 = vpop.permute.xlu0 %5533  ;;  %9027 = vpow2.f32 %v5925_v55 }
 0xeac   : > { %8686 = vmatpush.xpose.msk.msra.mxu0 %vm580_vm0, %v5534_v21  ;;  %v13751_v21 = vld [vmem:[#allocation36_spill] sm:$0xff] }
 0xeae   : > { %5833 = vmax.xlane.f32.xlu2 %v5832_v45  ;;  %v6000_v45 = vsel %vm2044_vm2, %v12211_v63, 0.0 }
 0xeaf   : > { %8687 = vmatmul.msk.f32.vlgmr.msra.gmra.mxu0 %vm580_vm0, %v12073_v59  ;;  %v13750_v59 = vld [vmem:[#allocation39_spill] sm:$0xff] }
 0xeb0   : > { %v5760_v43 = vld [vmem:[#allocation1] sm:$0xff] }
 0xeb1   : > { %6555 = vst [vmem:[#allocation1] ss:$9 sm:$0xff] %v11386_v14  ;;  %v12221_v14 = vpop.f32.mrf.mxu1  ;;  %v12230_v46 = vpop.eup %9027 }
 0xeb2   : > { %6557 = vst [vmem:[#allocation1 + $0x1] ss:$9 sm:$0xff] %v11389_v32  ;;  %v13747_v32 = vld [vmem:[#allocation31_spill] sm:$0xff]  ;;  %v5823_v58 = vsel %vm2044_vm2, %v12221_v14, -inf  ;;  %v12232_v15 = vpop.xlane.xlu2 %5980  ;;  %v5994_v55 = vsel %vm2044_vm2, %v12230_v46, 0.0 }
 0xeb3   : > { %6559 = vst [vmem:[#allocation1 + $0x2] ss:$9 sm:$0xff] %v13746_v0  ;;  %5824 = vmax.xlane.f32.xlu0 %v5823_v58  ;;  %v13749_v0 = vld [vmem:[#allocation38_spill] sm:$0xff]  ;;  %v6086_v57 = vand.u32 2147483648, %v12232_v15  ;;  %vm6080_vm7 = vweird.f32 %v12232_v15 }
 0xeb6   : > { %6001 = vadd.xlane.f32.xlu2 %v6000_v45 }
 0xeba   : > { %v6560_v12 = vld [vmem:[#allocation1] sm:$0xff] }
 0xebb   : > { %6588 = vst [vmem:[#allocation1] ss:$9 sm:$0xff] %v13747_v32  ;;  %5995 = vadd.xlane.f32.xlu0 %v5994_v55  ;;  %v13752_v32 = vld [vmem:[#allocation27_spill] sm:$0xff]  ;;  %v13754_v55 = vld [vmem:[#allocation28_spill] sm:$0xff] }
 0xebc   : > { %6590 = vst [vmem:[#allocation1 + $0x1] ss:$9 sm:$0xff] %v13748_v8  ;;  %v5496_v8 = vpop.permute.xlu2 %5495 }
 0xebd   : > { %6592 = vst [vmem:[#allocation1 + $0x2] ss:$9 sm:$0xff] %v13749_v0  ;;  %8684 = vmatpush.xpose.msk.msra.mxu1 %vm580_vm0, %v5496_v8  ;;  %v13753_v0 = vld [vmem:[#allocation37_spill] sm:$0xff] }
 0xebe   : > { %v5813_v8 = vpop.xlane.xlu1 %5812 }
 0xec0   : > { %8685 = vmatmul.msk.f32.vlgmr.msra.gmra.mxu1 %vm580_vm0, %v12049_v10  ;;  %v13757_v10 = vld [vmem:[#allocation33_spill] sm:$0xff] }
 0xec1   : > { %5723 = vrot.lane.b32.xlu1 %v5722_v1, %s13676_s23 }
 0xec4   : > { %v12236_v45 = vld [vmem:[#allocation1] sm:$0xff] }
 0xec5   : > { %6621 = vst [vmem:[#allocation1] ss:$9 sm:$0xff] %v13750_v59 }
 0xec6   : > { %6623 = vst [vmem:[#allocation1 + $0x1] ss:$9 sm:$0xff] %v13751_v21  ;;  %v13755_v21 = vld [vmem:[#allocation35_spill] sm:$0xff] }
 0xec7   : > { %6625 = vst [vmem:[#allocation1 + $0x2] ss:$9 sm:$0xff] %v13752_v32  ;;  %v13759_v32 = vld [vmem:[#allocation48_spill] sm:$0xff] }
 0xec9   : > { %6561 = vrot.lane.b32.xlu1 %v6560_v12, %s13756_s28  ;;  %v13760_v12 = vld [vmem:[#allocation26_spill] sm:$0xff] }
 0xece   : > { %5761 = vrot.lane.b32.xlu2 %v5760_v43, %s13676_s23  ;;  %v12246_v58 = vld [vmem:[#allocation1] sm:$0xff] }
 0xecf   : > { %6654 = vst [vmem:[#allocation1] ss:$9 sm:$0xff] %v13753_v0  ;;  %v5648_v59 = vpop.permute.xlu2 %5647  ;;  %5685 = vrot.lane.b32.xlu0 %v12160_v22, %s13676_s23  ;;  %v13758_v43 = vld [vmem:[#allocation25_spill] sm:$0xff]  ;;  %v5891_v22 = vsub.f32 %v12112_v19, %v5813_v8 }
 0xed0   : > { %6656 = vst [vmem:[#allocation1 + $0x1] ss:$9 sm:$0xff] %v13754_v55  ;;  %8692 = vmatpush.xpose.msk.msrb.mxu1 %vm580_vm0, %v5648_v59  ;;  %v13761_v55 = vld [vmem:[#allocation54_spill] sm:$0xff] }
 0xed1   : > { %6658 = vst [vmem:[#allocation1 + $0x2] ss:$9 sm:$0xff] %v13755_v21  ;;  %v13762_v59 = vld [vmem:[#allocation66_spill] sm:$0xff] }
 0xed3   : > { %8693 = vmatmul.msk.f32.vlgmr.msrb.gmra.mxu1 %vm580_vm0, %v12132_v16  ;;  %v12267_v16 = vpop.xlane.xlu1 %5983 }
 0xed4   : > { %vm6095_vm13 = vweird.f32 %v12267_v16 }
 0xed6   : > { %v5819_v21 = vpop.xlane.xlu0 %5818 }
 0xed7   : > { %v5893_v19 = vsub.f32 %v12135_v4, %v5819_v21  ;;  %v5838_v21 = vsel %vm2044_vm2, %v12289_v30, -inf }
 0xed8   : > { %v12255_v1 = vld [vmem:[#allocation1] sm:$0xff] }
 0xed9   : > { %6687 = vst [vmem:[#allocation1] ss:$9 sm:$0xff] %v13757_v10  ;;  %v13763_v10 = vld [vmem:[#allocation72_spill] sm:$0xff]  ;;  %v5935_v41 = vmul.f32 1.442695, %v5893_v19 }
 0xeda   : > { %6689 = vst [vmem:[#allocation1 + $0x1] ss:$9 sm:$0xff] %v13758_v43  ;;  %v13764_v43 = vld [vmem:[#allocation71_spill] sm:$0xff] }
 0xedb   : > { %6691 = vst [vmem:[#allocation1 + $0x2] ss:$9 sm:$0xff] %v13759_v32  ;;  %v13765_v32 = vld [vmem:[#allocation40_spill] sm:$0xff]  ;;  %v12275_v18 = vpop.xlane.xlu1 %5989 }
 0xede   : > { %v12282_v8 = vpop.xlane.xlu0 %5986 }
 0xee2   : > { %v12262_v0 = vld [vmem:[#allocation1] sm:$0xff] }
 0xee3   : > { %6720 = vst [vmem:[#allocation1] ss:$9 sm:$0xff] %v13760_v12  ;;  %v5931_v12 = vmul.f32 1.442695, %v5891_v22  ;;  %v13769_v22 = vld [vmem:[#allocation34_spill] sm:$0xff] }
 0xee4   : > { %6722 = vst [vmem:[#allocation1 + $0x1] ss:$9 sm:$0xff] %v13761_v55  ;;  %v5892_v55 = vsub.f32 %v12071_v33, %v12206_v3  ;;  %v13768_v33 = vld [vmem:[#allocation43_spill] sm:$0xff] }
 0xee5   : > { %6724 = vst [vmem:[#allocation1 + $0x2] ss:$9 sm:$0xff] %v13762_v59  ;;  %v12279_v59 = vpop.f32.mrf.mxu1  ;;  %9029 = vpow2.f32 %v5931_v12 }
 0xee6   : > { %9031 = vpow2.f32 %v5927_v48 }
 0xeeb   : > { %v12294_v4 = vpop.eup %9029 }
 0xeec   : > { %v6725_v20 = vld [vmem:[#allocation1] sm:$0xff]  ;;  %13770 = vst [vmem:[#allocation31_spill] sm:$0xff] %v12294_v4  ;;  %v6003_v48 = vsel %vm2044_vm2, %v12294_v4, 0.0 }
 0xeed   : > { %6753 = vst [vmem:[#allocation1] ss:$9 sm:$0xff] %v13763_v10  ;;  %v5933_v10 = vmul.f32 1.442695, %v5892_v55  ;;  %v5610_v3 = vpop.permute.xlu1 %5609  ;;  %v12303_v55 = vpop.eup %9031 }
 0xeee   : > { %6755 = vst [vmem:[#allocation1 + $0x1] ss:$9 sm:$0xff] %v13764_v43  ;;  %v5835_v43 = vsel %vm2044_vm2, %v12279_v59, -inf  ;;  %8690 = vmatpush.xpose.msk.msra.mxu3 %vm580_vm0, %v5610_v3  ;;  %v13775_v3 = vld [vmem:[#allocation65_spill] sm:$0xff] }
 0xeef   : > { %6757 = vst [vmem:[#allocation1 + $0x2] ss:$9 sm:$0xff] %v13765_v32  ;;  %9033 = vpow2.f32 %v5933_v10 }
 0xef0   : > { %9035 = vpow2.f32 %v5935_v41 }
 0xef1   : > { %v5572_v12 = vpop.permute.xlu0 %5571  ;;  %8691 = vmatmul.msk.f32.vlgmr.msra.gmra.mxu3 %vm580_vm0, %v12107_v62  ;;  %v13773_v62 = vld [vmem:[#allocation53_spill] sm:$0xff]  ;;  %9037 = vrcp.f32 %v12232_v15 }
 0xef2   : > { %8688 = vmatpush.xpose.msk.msrb.mxu2 %vm580_vm0, %v5572_v12  ;;  %v13777_v12 = vld [vmem:[#allocation45_spill] sm:$0xff] }
 0xef3   : > { %5839 = vmax.xlane.f32.xlu1 %v5838_v21  ;;  %v13776_v21 = vld [vmem:[#allocation52_spill] sm:$0xff] }
 0xef5   : > { %v12305_v19 = vpop.eup %9033  ;;  %8689 = vmatmul.msk.f32.vlgmr.msrb.gmra.mxu2 %vm580_vm0, %v12090_v2 }
 0xef6   : > { %v12286_v32 = vld [vmem:[#allocation1] sm:$0xff]  ;;  %13771 = vst [vmem:[#allocation30_spill] sm:$0xff] %v12305_v19  ;;  %v6006_v41 = vsel %vm2044_vm2, %v12305_v19, 0.0 }
 0xef7   : > { %5836 = vmax.xlane.f32.xlu2 %v5835_v43  ;;  %6786 = vst [vmem:[#allocation1] ss:$9 sm:$0xff] %v13766_v34  ;;  %v13772_v43 = vld [vmem:[#allocation41_spill] sm:$0xff]  ;;  %v5997_v34 = vsel %vm2044_vm2, %v12303_v55, 0.0 }
 0xef8   : > { %6788 = vst [vmem:[#allocation1 + $0x1] ss:$9 sm:$0xff] %v13768_v33  ;;  %v12313_v33 = vpop.eup %9035 }
 0xef9   : > { %6790 = vst [vmem:[#allocation1 + $0x2] ss:$9 sm:$0xff] %v13769_v22  ;;  %5998 = vadd.xlane.f32.xlu0 %v5997_v34  ;;  %v6009_v22 = vsel %vm2044_vm2, %v12313_v33, 0.0 }
 0xefa   : > { %13774 = vst [vmem:[#allocation38_spill] sm:$0xff] %v12313_v33 }
 0xefb   : > { %6007 = vadd.xlane.f32.xlu1 %v6006_v41  ;;  %v13781_v41 = vld [vmem:[#allocation57_spill] sm:$0xff] }
 0xeff   : > { %6004 = vadd.xlane.f32.xlu2 %v6003_v48  ;;  %v13778_v48 = vld [vmem:[#allocation69_spill] sm:$0xff] }
 0xf00   : > { %v6791_v10 = vld [vmem:[#allocation1] sm:$0xff] }
 0xf01   : > { %6819 = vst [vmem:[#allocation1] ss:$9 sm:$0xff] %v13772_v43 }
 0xf02   : > { %6821 = vst [vmem:[#allocation1 + $0x1] ss:$9 sm:$0xff] %v13773_v62  ;;  %v13779_v62 = vld [vmem:[#allocation70_spill] sm:$0xff] }
 0xf03   : > { %6823 = vst [vmem:[#allocation1 + $0x2] ss:$9 sm:$0xff] %v13775_v3  ;;  %v13780_v3 = vld [vmem:[#allocation50_spill] sm:$0xff] }
 0xf07   : > { %6010 = vadd.xlane.f32.xlu2 %v6009_v22 }
 0xf0a   : > { %v12320_v2 = vld [vmem:[#allocation1] sm:$0xff] }
 0xf0b   : > { %6852 = vst [vmem:[#allocation1] ss:$9 sm:$0xff] %v13776_v21 }
 0xf0c   : > { %6854 = vst [vmem:[#allocation1 + $0x1] ss:$9 sm:$0xff] %v13777_v12  ;;  %v13782_v12 = vld [vmem:[#allocation56_spill] sm:$0xff] }
 0xf0d   : > { %6856 = vst [vmem:[#allocation1 + $0x2] ss:$9 sm:$0xff] %v13778_v48  ;;  %6594 = vrot.lane.b32.xlu0 %v12236_v45, %s13756_s28  ;;  %v13783_v48 = vld [vmem:[#allocation44_spill] sm:$0xff]  ;;  %v13784_v45 = vld [vmem:[#allocation62_spill] sm:$0xff] }
 0xf11   : > { %v12325_v43 = vpop.xlane.xlu2 %5827 }
 0xf14   : > { %v12327_v34 = vld [vmem:[#allocation1] sm:$0xff]  ;;  %6693 = vrot.lane.b32.xlu1 %v12262_v0, %s13756_s28 }
 0xf15   : > { %6885 = vst [vmem:[#allocation1] ss:$9 sm:$0xff] %v13779_v62  ;;  %6627 = vrot.lane.b32.xlu0 %v12246_v58, %s13756_s28  ;;  %v13786_v58 = vld [vmem:[#allocation81_spill] sm:$0xff] }
 0xf16   : > { %6887 = vst [vmem:[#allocation1 + $0x1] ss:$9 sm:$0xff] %v13780_v3 }
 0xf17   : > { %6889 = vst [vmem:[#allocation1 + $0x2] ss:$9 sm:$0xff] %v13781_v41  ;;  %v13785_v41 = vld [vmem:[#allocation55_spill] sm:$0xff] }
 0xf19   : > { %v12334_v22 = vpop.xlane.xlu2 %5830 }
 0xf1d   : > { %6660 = vrot.lane.b32.xlu0 %v12255_v1, %s13756_s28 }
 0xf1e   : > { %v12338_v21 = vld [vmem:[#allocation1] sm:$0xff] }
 0xf1f   : > { %6726 = vrot.lane.b32.xlu2 %v6725_v20, %s13756_s28  ;;  %6918 = vst [vmem:[#allocation1] ss:$9 sm:$0xff] %v13782_v12  ;;  %v5822_v20 = vpop.xlane.xlu0 %5821  ;;  %v9038_v12 = vpop.eup %9037 }
 0xf20   : > { %6920 = vst [vmem:[#allocation1 + $0x1] ss:$9 sm:$0xff] %v13783_v48  ;;  %v13787_v48 = vld [vmem:[#allocation61_spill] sm:$0xff]  ;;  %v6076_v30 = vmul.f32 %v9038_v12, %v12232_v15  ;;  %vm6081_vm6 = vweird.f32 %v9038_v12 }
 0xf21   : > { %v12345_v62 = vpop.xlane.xlu2 %5833  ;;  %6922 = vst [vmem:[#allocation1 + $0x2] ss:$9 sm:$0xff] %v13784_v45  ;;  %vm6082_vm8 = vmor %vm6080_vm7, %vm6081_vm6 }
 0xf22   : > { %v6077_v4 = vsub.f32 1.0, %v6076_v30 }
 0xf24   : > { %v6078_v19 = vmul.f32 %v9038_v12, %v6077_v4  ;;  %v13792_v4 = vld [vmem:[#allocation76_spill] sm:$0xff] }
 0xf25   : > { %6759 = vrot.lane.b32.xlu0 %v12286_v32, %s13756_s28 }
 0xf26   : > { %v6079_v30 = vadd.f32 %v9038_v12, %v6078_v19  ;;  %v6087_v19 = vor.u32 1.1754944e-38, %v6086_v57 }
 0xf27   : > { %v5825_v33 = vpop.xlane.xlu0 %5824 }
 0xf28   : > { %v12351_v0 = vld [vmem:[#allocation1] sm:$0xff]  ;;  %v5895_v32 = vsub.f32 %v12221_v14, %v5825_v33  ;;  %v6083_v14 = vsel %vm6082_vm8, %v9038_v12, %v6079_v30  ;;  %v12384_v33 = vpop.f32.mrf.mxu2  ;;  %v5894_v30 = vsub.f32 %v12183_v31, %v5822_v20  ;;  %v12403_v20 = vpop.f32.mrf.mxu3 }
 0xf29   : > { %v12353_v3 = vpop.xlane.xlu2 %6001  ;;  %6951 = vst [vmem:[#allocation1] ss:$9 sm:$0xff] %v13785_v41  ;;  %v12365_v41 = vpop.xlane.xlu1 %5992  ;;  %v5841_v57 = vsel %vm2044_vm2, %v12384_v33, -inf  ;;  %v13796_v31 = vld [vmem:[#allocation17_spill] sm:$0xff] }
 0xf2a   : > { %6953 = vst [vmem:[#allocation1 + $0x1] ss:$9 sm:$0xff] %v13786_v58  ;;  %v13789_v58 = vld [vmem:[#allocation12_spill] sm:$0xff]  ;;  %vm6140_vm8 = vweird.f32 %v12365_v41 }
 0xf2b   : > { %6955 = vst [vmem:[#allocation1 + $0x2] ss:$9 sm:$0xff] %v13787_v48  ;;  %v13790_v48 = vld [vmem:[#allocation84_spill] sm:$0xff] }
 0xf2c   : > { %13797 = vst [vmem:[#allocation39_spill] sm:$0xff] %v12403_v20 }
 0xf2d   : > { %6792 = vrot.lane.b32.xlu0 %v6791_v10, %s13756_s28  ;;  %v13793_v10 = vld [vmem:[#allocation14_spill] sm:$0xff] }
 0xf31   : > { %v5762_v45 = vpop.permute.xlu2 %5761 }
 0xf32   : > { %8698 = vmatpush.xpose.msk.msrb.mxu3 %vm580_vm0, %v5762_v45  ;;  %v12362_v1 = vld [vmem:[#allocation1] sm:$0xff]  ;;  %v5939_v45 = vmul.f32 1.442695, %v5895_v32 }
 0xf33   : > { %6984 = vst [vmem:[#allocation1] ss:$9 sm:$0xff] %v13788_v47  ;;  %v6084_v47 = vand.u32 2147483647, %v12232_v15 }
 0xf34   : > { %6986 = vst [vmem:[#allocation1 + $0x1] ss:$9 sm:$0xff] %v13789_v58  ;;  %v5724_v58 = vpop.permute.xlu1 %5723  ;;  %9039 = vpow2.f32 %v5939_v45 }
 0xf35   : > { %8699 = vmatmul.msk.f32.vlgmr.msrb.gmra.mxu3 %vm580_vm0, %v12192_v42  ;;  %6988 = vst [vmem:[#allocation1 + $0x2] ss:$9 sm:$0xff] %v13790_v48  ;;  %8696 = vmatpush.xpose.msk.msra.mxu2 %vm580_vm0, %v5724_v58  ;;  %v13791_v42 = vld [vmem:[#allocation15_spill] sm:$0xff]  ;;  %vm6085_vm9 = vcmp.eq.f32.partialorder %v6084_v47, 8.507059e+37  ;;  %v12386_v48 = vpop.xlane.xlu0 %5995  ;;  %v13794_v47 = vld [vmem:[#allocation13_spill] sm:$0xff] }
 0xf36   : > { %v6088_v15 = vsel %vm6085_vm9, %v6087_v19, %v6083_v14 }
 0xf37   : > { %v6089_v58 = vmul.f32 %v12096_v40, %v6088_v15  ;;  %v13795_v40 = vld [vmem:[#allocation82_spill] sm:$0xff]  ;;  %v13799_v15 = vld [vmem:[#allocation49_spill] sm:$0xff] }
 0xf38   : > { %8697 = vmatmul.msk.f32.vlgmr.msra.gmra.mxu2 %vm580_vm0, %v12170_v13 }
 0xf3a   : > { %v12388_v32 = vpop.eup %9039 }
 0xf3b   : > { %v6015_v45 = vsel %vm2044_vm2, %v12388_v32, 0.0 }
 0xf3c   : > { %v12376_v49 = vld [vmem:[#allocation1] sm:$0xff]  ;;  %v6562_v12 = vpop.permute.xlu1 %6561 }
 0xf3d   : > { %7017 = vst [vmem:[#allocation1] ss:$9 sm:$0xff] %v13791_v42  ;;  %8700 = vmatpush.msk.msra.mxu1 %vm2825_vm10, %v6562_v12  ;;  %v5937_v42 = vmul.f32 1.442695, %v5894_v30  ;;  %v13800_v12 = vld [vmem:[#allocation73_spill] sm:$0xff] }
 0xf3e   : > { %7019 = vst [vmem:[#allocation1 + $0x1] ss:$9 sm:$0xff] %v13792_v4  ;;  %8701 = vmatmul.msk.f32.vlgmr.msra.gmra.mxu1 %vm2821_vm11, %v6089_v58  ;;  %5842 = vmax.xlane.f32.xlu1 %v5841_v57  ;;  %v5844_v4 = vsel %vm2044_vm2, %v12403_v20, -inf  ;;  %v5896_v57 = vsub.f32 %v12175_v28, %v12325_v43 }
 0xf3f   : > { %7021 = vst [vmem:[#allocation1 + $0x2] ss:$9 sm:$0xff] %v13793_v10  ;;  %9041 = vpow2.f32 %v5937_v42  ;;  %v13798_v10 = vld [vmem:[#allocation51_spill] sm:$0xff] }
 0xf41   : > { %v5686_v14 = vpop.permute.xlu0 %5685 }
 0xf42   : > { %8694 = vmatpush.xpose.msk.msrb.mxu0 %vm580_vm0, %v5686_v14 }
 0xf45   : > { %8695 = vmatmul.msk.f32.vlgmr.msrb.gmra.mxu0 %vm580_vm0, %v12151_v36  ;;  %v12414_v58 = vpop.eup %9041  ;;  %v12423_v36 = vpop.f32.mrf.mxu1 }
 0xf46   : > { %v12396_v13 = vld [vmem:[#allocation1] sm:$0xff]  ;;  %5845 = vmax.xlane.f32.xlu1 %v5844_v4  ;;  %v6012_v30 = vsel %vm2044_vm2, %v12414_v58, 0.0  ;;  %13801 = vst [vmem:[#allocation36_spill] sm:$0xff] %v12423_v36  ;;  %v5847_v42 = vsel %vm2044_vm2, %v12423_v36, -inf }
 0xf47   : > { %7050 = vst [vmem:[#allocation1] ss:$9 sm:$0xff] %v13794_v47  ;;  %v5941_v47 = vmul.f32 1.442695, %v5896_v57  ;;  %v13802_v57 = vld [vmem:[#allocation64_spill] sm:$0xff] }
 0xf48   : > { %6016 = vadd.xlane.f32.xlu2 %v6015_v45  ;;  %7052 = vst [vmem:[#allocation1 + $0x1] ss:$9 sm:$0xff] %v13795_v40  ;;  %v12427_v40 = vpop.f32.mrf.mxu0 }
 0xf49   : > { %7054 = vst [vmem:[#allocation1 + $0x2] ss:$9 sm:$0xff] %v13796_v31  ;;  %9043 = vpow2.f32 %v5941_v47  ;;  %v5850_v28 = vsel %vm2044_vm2, %v12427_v40, -inf }
 0xf4a   : > { %9045 = vrcp.f32 %v12267_v16 }
 0xf4b   : > { %9047 = vrcp.f32 %v12365_v41 }
 0xf4c   : > { %9049 = vrcp.f32 %v12282_v8 }
 0xf4d   : > { %9051 = vrcp.f32 %v12386_v48 }
 0xf4e   : > { %6013 = vadd.xlane.f32.xlu1 %v6012_v30  ;;  %9053 = vrcp.f32 %v12275_v18 }
 0xf50   : > { %v12410_v19 = vld [vmem:[#allocation1] sm:$0xff] }
 0xf51   : > { %7083 = vst [vmem:[#allocation1] ss:$9 sm:$0xff] %v13798_v10 }
 0xf52   : > { %7085 = vst [vmem:[#allocation1 + $0x1] ss:$9 sm:$0xff] %v13799_v15 }
 0xf53   : > { %7087 = vst [vmem:[#allocation1 + $0x2] ss:$9 sm:$0xff] %v13800_v12 }
 0xf56   : > { %5848 = vmax.xlane.f32.xlu1 %v5847_v42 }
 0xf57   : > { %5851 = vmax.xlane.f32.xlu0 %v5850_v28 }
 0xf5a   : > { %v12421_v45 = vld [vmem:[#allocation1] sm:$0xff] }
 0xf5b   : > { %7116 = vst [vmem:[#allocation1] ss:$9 sm:$0xff] %v11624_v5  ;;  %v12438_v5 = vpop.eup %9043 }
 0xf5c   : > { %7118 = vst [vmem:[#allocation1 + $0x1] ss:$9 sm:$0xff] %v11574_v61  ;;  %v6018_v61 = vsel %vm2044_vm2, %v12438_v5, 0.0 }
 0xf5d   : > { %7120 = vst [vmem:[#allocation1 + $0x2] ss:$9 sm:$0xff] %v11656_v53  ;;  %v12448_v53 = vpop.f32.mrf.mxu2 }
 0xf5f   : > { %6019 = vadd.xlane.f32.xlu0 %v6018_v61 }
 0xf60   : > { %6858 = vrot.lane.b32.xlu2 %v12327_v34, %s13756_s28 }
 0xf64   : > { %v12436_v43 = vld [vmem:[#allocation1] sm:$0xff] }
 0xf65   : > { %7149 = vst [vmem:[#allocation1] ss:$9 sm:$0xff] %v11650_v17  ;;  %v9046_v17 = vpop.eup %9045 }
 0xf66   : > { %7151 = vst [vmem:[#allocation1 + $0x1] ss:$9 sm:$0xff] %v11590_v52  ;;  %v5853_v52 = vsel %vm2044_vm2, %v12448_v53, -inf  ;;  %v12491_v42 = vpop.xlane.xlu1 %5839  ;;  %vm6096_vm12 = vweird.f32 %v9046_v17 }
 0xf67   : > { %7153 = vst [vmem:[#allocation1 + $0x2] ss:$9 sm:$0xff] %v11735_v60  ;;  %5854 = vmax.xlane.f32.xlu0 %v5853_v52  ;;  %v6091_v60 = vmul.f32 %v9046_v17, %v12267_v16  ;;  %vm6097_vm14 = vmor %vm6095_vm13, %vm6096_vm12  ;;  %vm6110_vm12 = vweird.f32 %v12282_v8 }
 0xf68   : > { %6891 = vrot.lane.b32.xlu2 %v12338_v21, %s13756_s28  ;;  %v12467_v21 = vpop.eup %9047 }
 0xf69   : > { %v6092_v14 = vsub.f32 1.0, %v6091_v60  ;;  %v6136_v15 = vmul.f32 %v12467_v21, %v12365_v41  ;;  %vm6141_vm6 = vweird.f32 %v12467_v21 }
 0xf6a   : > { %v12450_v34 = vpop.xlane.xlu2 %5836  ;;  %vm12535_vm13 = vmor %vm6140_vm8, %vm6141_vm6 }
 0xf6b   : > { %v6093_v12 = vmul.f32 %v9046_v17, %v6092_v14  ;;  %v6137_v47 = vsub.f32 1.0, %v6136_v15 }
 0xf6c   : > { %v12496_v14 = vpop.xlane.xlu0 %5998 }
 0xf6d   : > { %v6094_v61 = vadd.f32 %v9046_v17, %v6093_v12  ;;  %v6138_v15 = vmul.f32 %v12467_v21, %v6137_v47  ;;  %9055 = vrcp.f32 %v12496_v14 }
 0xf6e   : > { %v12452_v31 = vld [vmem:[#allocation1] sm:$0xff]  ;;  %9057 = vrcp.f32 %v12353_v3 }
 0xf6f   : > { %7182 = vst [vmem:[#allocation1] ss:$9 sm:$0xff] %v11769_v6  ;;  %v12465_v6 = vpop.f32.mrf.mxu3  ;;  %6825 = vrot.lane.b32.xlu1 %v12320_v2, %s13756_s28  ;;  %v6139_v47 = vadd.f32 %v12467_v21, %v6138_v15  ;;  %v6114_v15 = vand.u32 2147483647, %v12282_v8 }
 0xf70   : > { %6924 = vrot.lane.b32.xlu2 %v12351_v0, %s13756_s28  ;;  %7184 = vst [vmem:[#allocation1 + $0x1] ss:$9 sm:$0xff] %v11727_v38  ;;  %v12469_v0 = vpop.eup %9049  ;;  %v5856_v38 = vsel %vm2044_vm2, %v12465_v6, -inf }
 0xf71   : > { %7186 = vst [vmem:[#allocation1 + $0x2] ss:$9 sm:$0xff] %v11785_v27  ;;  %v12473_v10 = vpop.eup %9051  ;;  %5857 = vmax.xlane.f32.xlu0 %v5856_v38  ;;  %v6106_v30 = vmul.f32 %v12469_v0, %v12282_v8  ;;  %vm6111_vm7 = vweird.f32 %v12469_v0  ;;  %vm6115_vm8 = vcmp.eq.f32.partialorder %v6114_v15, 8.507059e+37 }
 0xf72   : > { %v12471_v4 = vpop.xlane.xlu2 %6004  ;;  %v6151_v2 = vmul.f32 %v12473_v10, %v12386_v48  ;;  %v12493_v28 = vpop.eup %9053  ;;  %vm6156_vm9 = vweird.f32 %v12473_v10 }
 0xf73   : > { %v6107_v52 = vsub.f32 1.0, %v6106_v30  ;;  %v6121_v38 = vmul.f32 %v12493_v28, %v12275_v18  ;;  %v6098_v30 = vsel %vm6097_vm14, %v9046_v17, %v6094_v61  ;;  %v13803_v17 = vld [vmem:[#allocation16_spill] sm:$0xff]  ;;  %vm12540_vm14 = vmor %vm6110_vm12, %vm6111_vm7  ;;  %vm6126_vm12 = vweird.f32 %v12493_v28 }
 0xf74   : > { %v6152_v60 = vsub.f32 1.0, %v6151_v2 }
 0xf75   : > { %v6108_v2 = vmul.f32 %v12469_v0, %v6107_v52  ;;  %v6122_v36 = vsub.f32 1.0, %v6121_v38  ;;  %v5897_v52 = vsub.f32 %v12185_v44, %v12334_v22  ;;  %v6116_v44 = vand.u32 2147483648, %v12282_v8  ;;  %v13811_v38 = vld [vmem:[#allocation20_spill] sm:$0xff] }
 0xf77   : > { %6957 = vrot.lane.b32.xlu1 %v12362_v1, %s13756_s28  ;;  %v6109_v61 = vadd.f32 %v12469_v0, %v6108_v2 }
 0xf78   : > { %v12480_v27 = vld [vmem:[#allocation1] sm:$0xff] }
 0xf79   : > { %7215 = vst [vmem:[#allocation1] ss:$9 sm:$0xff] %v11780_v50  ;;  %v6101_v50 = vand.u32 2147483648, %v12267_v16 }
 0xf7a   : > { %7217 = vst [vmem:[#allocation1 + $0x1] ss:$9 sm:$0xff] %v11744_v56  ;;  %v6099_v56 = vand.u32 2147483647, %v12267_v16  ;;  %v12505_v12 = vpop.xlane.xlu2 %6010  ;;  %v6153_v16 = vmul.f32 %v12473_v10, %v6152_v60  ;;  %v12528_v60 = vpop.eup %9055 }
 0xf7b   : > { %7219 = vst [vmem:[#allocation1 + $0x2] ss:$9 sm:$0xff] %v13802_v57  ;;  %v6102_v20 = vor.u32 1.1754944e-38, %v6101_v50  ;;  %v12526_v50 = vpop.xlane.xlu1 %6007  ;;  %v12579_v15 = vpop.eup %9057 }
 0xf7c   : > { %vm6100_vm4 = vcmp.eq.f32.partialorder %v6099_v56, 8.507059e+37 }
 0xf7d   : > { %v6103_v1 = vsel %vm6100_vm4, %v6102_v20, %v6098_v30  ;;  %v6154_v20 = vadd.f32 %v12473_v10, %v6153_v16  ;;  %vm6155_vm4 = vweird.f32 %v12386_v48  ;;  %v6159_v30 = vand.u32 2147483647, %v12386_v48 }
 0xf7e   : > { %v6104_v56 = vmul.f32 %v12118_v11, %v6103_v1  ;;  %v6143_v11 = vsel %vm12535_vm13, %v12467_v21, %v6139_v47  ;;  %v6123_v16 = vmul.f32 %v12493_v28, %v6122_v36  ;;  %v6113_v1 = vsel %vm12540_vm14, %v12469_v0, %v6109_v61  ;;  %vm12557_vm6 = vmor %vm6155_vm4, %vm6156_vm9 }
 0xf7f   : > { %v6595_v2 = vpop.permute.xlu0 %6594  ;;  %v5943_v21 = vmul.f32 1.442695, %v5897_v52  ;;  %v6166_v36 = vmul.f32 %v12528_v60, %v12496_v14  ;;  %v6117_v47 = vor.u32 1.1754944e-38, %v6116_v44  ;;  %vm6160_vm9 = vcmp.eq.f32.partialorder %v6159_v30, 8.507059e+37 }
 0xf80   : > { %8702 = vmatpush.msk.msra.mxu0 %vm2825_vm10, %v6595_v2  ;;  %vm6125_vm13 = vweird.f32 %v12275_v18 }
 0xf81   : > { %8703 = vmatmul.msk.f32.vlgmr.msra.gmra.mxu0 %vm2821_vm11, %v6104_v56  ;;  %9059 = vpow2.f32 %v5943_v21  ;;  %v6167_v44 = vsub.f32 1.0, %v6166_v36  ;;  %vm6127_vm14 = vmor %vm6125_vm13, %vm6126_vm12  ;;  %v13812_v21 = vld [vmem:[#allocation18_spill] sm:$0xff]  ;;  %v6176_v36 = vand.u32 2147483648, %v12496_v14  ;;  %vm6186_vm12 = vweird.f32 %v12579_v15 }
 0xf82   : > { %v12509_v57 = vld [vmem:[#allocation1] sm:$0xff]  ;;  %v6727_v0 = vpop.permute.xlu2 %6726  ;;  %vm6185_vm13 = vweird.f32 %v12353_v3 }
 0xf83   : > { %7248 = vst [vmem:[#allocation1] ss:$9 sm:$0xff] %v11789_v29  ;;  %v6146_v29 = vand.u32 2147483648, %v12365_v41  ;;  %8710 = vmatpush.msk.msrb.mxu0 %vm2825_vm10, %v6727_v0 }
 0xf84   : > { %7250 = vst [vmem:[#allocation1 + $0x1] ss:$9 sm:$0xff] %v11799_v54  ;;  %v6144_v54 = vand.u32 2147483647, %v12365_v41  ;;  %v6161_v41 = vand.u32 2147483648, %v12386_v48  ;;  %v6158_v48 = vsel %vm12557_vm6, %v12473_v10, %v6154_v20  ;;  %v6118_v10 = vsel %vm6115_vm8, %v6117_v47, %v6113_v1 }
 0xf85   : > { %7252 = vst [vmem:[#allocation1 + $0x2] ss:$9 sm:$0xff] %v13803_v17  ;;  %v6147_v17 = vor.u32 1.1754944e-38, %v6146_v29  ;;  %7056 = vrot.lane.b32.xlu0 %v12410_v19, %s13756_s28  ;;  %v6124_v20 = vadd.f32 %v12493_v28, %v6123_v16  ;;  %v6131_v19 = vand.u32 2147483648, %v12275_v18  ;;  %v6181_v16 = vmul.f32 %v12579_v15, %v12353_v3 }
 0xf86   : > { %vm6145_vm7 = vcmp.eq.f32.partialorder %v6144_v54, 8.507059e+37  ;;  %v6162_v29 = vor.u32 1.1754944e-38, %v6161_v41  ;;  %v13810_v54 = vld [vmem:[#allocation80_spill] sm:$0xff]  ;;  %v6694_v41 = vpop.permute.xlu1 %6693  ;;  %v6168_v1 = vmul.f32 %v12528_v60, %v6167_v44  ;;  %vm6171_vm6 = vweird.f32 %v12528_v60 }
 0xf87   : > { %v6148_v61 = vsel %vm6145_vm7, %v6147_v17, %v6143_v11  ;;  %8708 = vmatpush.msk.msrb.mxu1 %vm2825_vm10, %v6694_v41  ;;  %v6119_v11 = vmul.f32 %v12143_v35, %v6118_v10  ;;  %v6628_v2 = vpop.permute.xlu0 %6627  ;;  %v12597_v35 = vpop.eup %9059  ;;  %vm6170_vm7 = vweird.f32 %v12496_v14  ;;  %v6174_v47 = vand.u32 2147483647, %v12496_v14 }
 0xf88   : > { %v6163_v52 = vsel %vm6160_vm9, %v6162_v29, %v6158_v48  ;;  %v6149_v56 = vmul.f32 %v12202_v7, %v6148_v61  ;;  %8704 = vmatpush.msk.msrb.mxu2 %vm2825_vm10, %v6628_v2  ;;  %v6128_v7 = vsel %vm6127_vm14, %v12493_v28, %v6124_v20  ;;  %v6182_v28 = vsub.f32 1.0, %v6181_v16  ;;  %v13813_v29 = vld [vmem:[#allocation8_spill] sm:$0xff]  ;;  %vm6172_vm8 = vmor %vm6170_vm7, %vm6171_vm6 }
 0xf89   : > { %v6164_v30 = vmul.f32 %v12230_v46, %v6163_v52  ;;  %8705 = vmatmul.msk.f32.vlgmr.msrb.gmra.mxu2 %vm2821_vm11, %v6119_v11  ;;  %v6169_v8 = vadd.f32 %v12528_v60, %v6168_v1  ;;  %v5898_v48 = vsub.f32 %v12198_v9, %v12345_v62  ;;  %v6021_v0 = vsel %vm2044_vm2, %v12597_v35, 0.0  ;;  %vm6187_vm14 = vmor %vm6185_vm13, %vm6186_vm12  ;;  %v13815_v11 = vld [vmem:[#allocation68_spill] sm:$0xff] }
 0xf8a   : > { %8709 = vmatmul.msk.f32.vlgmr.msrb.gmra.mxu1 %vm2821_vm11, %v6149_v56  ;;  %v6183_v9 = vmul.f32 %v12579_v15, %v6182_v28  ;;  %v6177_v10 = vor.u32 1.1754944e-38, %v6176_v36  ;;  %vm6175_vm9 = vcmp.eq.f32.partialorder %v6174_v47, 8.507059e+37  ;;  %v6191_v14 = vand.u32 2147483648, %v12353_v3  ;;  %v13817_v28 = vld [vmem:[#allocation32_spill] sm:$0xff] }
 0xf8b   : > { %8711 = vmatmul.msk.f32.vlgmr.msrb.gmra.mxu0 %vm2821_vm11, %v6164_v30  ;;  %v6173_v62 = vsel %vm6172_vm8, %v12528_v60, %v6169_v8  ;;  %v6189_v60 = vand.u32 2147483647, %v12353_v3  ;;  %v13816_v30 = vld [vmem:[#allocation47_spill] sm:$0xff]  ;;  %v13818_v8 = vld [vmem:[#allocation60_spill] sm:$0xff]  ;;  %vm6215_vm7 = vweird.f32 %v12526_v50  ;;  %vm6230_vm13 = vweird.f32 %v12505_v12 }
 0xf8c   : > { %v12569_v22 = vld [vmem:[#allocation1] sm:$0xff]  ;;  %v6184_v52 = vadd.f32 %v12579_v15, %v6183_v9  ;;  %v13819_v9 = vld [vmem:[#allocation67_spill] sm:$0xff] }
 0xf8d   : > { %7281 = vst [vmem:[#allocation1] ss:$9 sm:$0xff] %v11881_v26  ;;  %v6129_v26 = vand.u32 2147483647, %v12275_v18  ;;  %v6132_v18 = vor.u32 1.1754944e-38, %v6131_v19  ;;  %7155 = vrot.lane.b32.xlu0 %v12452_v31, %s13756_s28 }
 0xf8e   : > { %7283 = vst [vmem:[#allocation1 + $0x1] ss:$9 sm:$0xff] %v13810_v54  ;;  %v5899_v54 = vsub.f32 %v12279_v59, %v12450_v34  ;;  %v6188_v41 = vsel %vm6187_vm14, %v12579_v15, %v6184_v52  ;;  %v13814_v59 = vld [vmem:[#allocation46_spill] sm:$0xff]  ;;  %v6192_v34 = vor.u32 1.1754944e-38, %v6191_v14  ;;  %v6234_v52 = vand.u32 2147483647, %v12505_v12 }
 0xf8f   : > { %7285 = vst [vmem:[#allocation1 + $0x2] ss:$9 sm:$0xff] %v13811_v38  ;;  %vm6130_vm4 = vcmp.eq.f32.partialorder %v6129_v26, 8.507059e+37  ;;  %v6661_v61 = vpop.permute.xlu0 %6660  ;;  %v13822_v14 = vld [vmem:[#allocation30_spill] sm:$0xff] }
 0xf90   : > { %v6133_v46 = vsel %vm6130_vm4, %v6132_v18, %v6128_v7  ;;  %8706 = vmatpush.msk.msra.mxu3 %vm2825_vm10, %v6661_v61  ;;  %v5947_v38 = vmul.f32 1.442695, %v5899_v54  ;;  %vm6190_vm4 = vcmp.eq.f32.partialorder %v6189_v60, 8.507059e+37 }
 0xf91   : > { %v6134_v31 = vmul.f32 %v12130_v25, %v6133_v46  ;;  %v6178_v25 = vsel %vm6175_vm9, %v6177_v10, %v6173_v62  ;;  %v6193_v3 = vsel %vm6190_vm4, %v6192_v34, %v6188_v41  ;;  %v13820_v62 = vld [vmem:[#allocation58_spill] sm:$0xff]  ;;  %v13821_v10 = vld [vmem:[#allocation77_spill] sm:$0xff]  ;;  %vm6235_vm4 = vcmp.eq.f32.partialorder %v6234_v52, 8.507059e+37  ;;  %v13823_v34 = vld [vmem:[#allocation79_spill] sm:$0xff] }
 0xf92   : > { %v6179_v56 = vmul.f32 %v12303_v55, %v6178_v25  ;;  %v13830_v52 = vld [vmem:[#allocation85_spill] sm:$0xff] }
 0xf93   : > { %8707 = vmatmul.msk.f32.vlgmr.msra.gmra.mxu3 %vm2821_vm11, %v6134_v31 }
 0xf96   : > { %v12601_v17 = vld [vmem:[#allocation1] sm:$0xff] }
 0xf97   : > { %7314 = vst [vmem:[#allocation1] ss:$9 sm:$0xff] %v13812_v21  ;;  %v6760_v44 = vpop.permute.xlu0 %6759 }
 0xf98   : > { %7316 = vst [vmem:[#allocation1 + $0x1] ss:$9 sm:$0xff] %v11846_v23  ;;  %v5945_v23 = vmul.f32 1.442695, %v5898_v48  ;;  %8712 = vmatpush.msk.msra.mxu2 %vm2825_vm10, %v6760_v44 }
 0xf99   : > { %6022 = vadd.xlane.f32.xlu2 %v6021_v0  ;;  %7318 = vst [vmem:[#allocation1 + $0x2] ss:$9 sm:$0xff] %v13813_v29  ;;  %8713 = vmatmul.msk.f32.vlgmr.msra.gmra.mxu2 %vm2821_vm11, %v6179_v56  ;;  %v6219_v0 = vand.u32 2147483647, %v12526_v50 }
 0xf9a   : > { %9061 = vpow2.f32 %v5945_v23 }
 0xf9b   : > { %9063 = vrcp.f32 %v12526_v50  ;;  %vm6220_vm9 = vcmp.eq.f32.partialorder %v6219_v0, 8.507059e+37 }
 0xf9c   : > { %9065 = vpow2.f32 %v5947_v38 }
 0xf9d   : > { %9067 = vrcp.f32 %v12505_v12 }
 0xf9e   : > { %9069 = vrcp.f32 %v12471_v4 }
 0xf9f   : > { %v6793_v19 = vpop.permute.xlu0 %6792 }
 0xfa0   : > { %v12625_v20 = vld [vmem:[#allocation1] sm:$0xff]  ;;  %v12637_v55 = vpop.eup %9061  ;;  %8714 = vmatpush.msk.msrb.mxu3 %vm2825_vm10, %v6793_v19 }
 0xfa1   : > { %7347 = vst [vmem:[#allocation1] ss:$9 sm:$0xff] %v11576_v37  ;;  %v6194_v37 = vmul.f32 %v12211_v63, %v6193_v3  ;;  %v9064_v15 = vpop.eup %9063  ;;  %v13825_v3 = vld [vmem:[#allocation38_spill] sm:$0xff] }
 0xfa2   : > { %7349 = vst [vmem:[#allocation1 + $0x1] ss:$9 sm:$0xff] %v11606_v39  ;;  %v6024_v39 = vsel %vm2044_vm2, %v12637_v55, 0.0  ;;  %v6211_v63 = vmul.f32 %v9064_v15, %v12526_v50  ;;  %v12651_v2 = vpop.eup %9065  ;;  %vm6216_vm6 = vweird.f32 %v9064_v15 }
 0xfa3   : > { %7351 = vst [vmem:[#allocation1 + $0x2] ss:$9 sm:$0xff] %v13814_v59  ;;  %6025 = vadd.xlane.f32.xlu1 %v6024_v39  ;;  %8715 = vmatmul.msk.f32.vlgmr.msrb.gmra.mxu3 %vm2821_vm11, %v6194_v37  ;;  %v6027_v16 = vsel %vm2044_vm2, %v12651_v2, 0.0  ;;  %v9068_v1 = vpop.eup %9067  ;;  %vm6217_vm8 = vmor %vm6215_vm7, %vm6216_vm6  ;;  %v13826_v39 = vld [vmem:[#allocation74_spill] sm:$0xff] }
 0xfa4   : > { %v6212_v7 = vsub.f32 1.0, %v6211_v63  ;;  %v6226_v18 = vmul.f32 %v9068_v1, %v12505_v12  ;;  %vm6231_vm12 = vweird.f32 %v9068_v1 }
 0xfa5   : > { %vm6232_vm14 = vmor %vm6230_vm13, %vm6231_vm12  ;;  %vm6200_vm13 = vweird.f32 %v12471_v4 }
 0xfa6   : > { %v6213_v46 = vmul.f32 %v9064_v15, %v6212_v7  ;;  %v6227_v21 = vsub.f32 1.0, %v6226_v18 }
 0xfa8   : > { %v6214_v48 = vadd.f32 %v9064_v15, %v6213_v46  ;;  %v13828_v46 = vld [vmem:[#allocation78_spill] sm:$0xff] }
 0xfaa   : > { %v12643_v26 = vld [vmem:[#allocation1] sm:$0xff]  ;;  %v6218_v47 = vsel %vm6217_vm8, %v9064_v15, %v6214_v48  ;;  %v9070_v15 = vpop.eup %9069 }
 0xfab   : > { %7380 = vst [vmem:[#allocation1] ss:$9 sm:$0xff] %v11667_v24  ;;  %6028 = vadd.xlane.f32.xlu1 %v6027_v16  ;;  %v13827_v16 = vld [vmem:[#allocation11_spill] sm:$0xff]  ;;  %vm6201_vm12 = vweird.f32 %v9070_v15 }
 0xfac   : > { %7382 = vst [vmem:[#allocation1 + $0x1] ss:$9 sm:$0xff] %v13815_v11 }
 0xfad   : > { %7384 = vst [vmem:[#allocation1 + $0x2] ss:$9 sm:$0xff] %v13816_v30 }
 0xfb1   : > { %6990 = vrot.lane.b32.xlu2 %v12376_v49, %s13756_s28  ;;  %v6221_v49 = vand.u32 2147483648, %v12526_v50  ;;  %v12666_v36 = vpop.xlane.xlu1 %5842  ;;  %v6236_v50 = vand.u32 2147483648, %v12505_v12  ;;  %v13824_v12 = vld [vmem:[#allocation63_spill] sm:$0xff] }
 0xfb3   : > { %v6222_v61 = vor.u32 1.1754944e-38, %v6221_v49  ;;  %v6237_v44 = vor.u32 1.1754944e-38, %v6236_v50 }
 0xfb4   : > { %v12657_v24 = vld [vmem:[#allocation1] sm:$0xff] }
 0xfb5   : > { %7413 = vst [vmem:[#allocation1] ss:$9 sm:$0xff] %v11687_v51  ;;  %v6228_v51 = vmul.f32 %v9068_v1, %v6227_v21  ;;  %v13829_v21 = vld [vmem:[#allocation9_spill] sm:$0xff] }
 0xfb6   : > { %7415 = vst [vmem:[#allocation1 + $0x1] ss:$9 sm:$0xff] %v13817_v28 }
 0xfb7   : > { %7417 = vst [vmem:[#allocation1 + $0x2] ss:$9 sm:$0xff] %v13818_v8  ;;  %v6229_v23 = vadd.f32 %v9068_v1, %v6228_v51 }
 0xfb9   : > { %7023 = vrot.lane.b32.xlu2 %v12396_v13, %s13756_s28  ;;  %v6223_v13 = vsel %vm6220_vm9, %v6222_v61, %v6218_v47  ;;  %v12678_v25 = vpop.xlane.xlu1 %5845  ;;  %v6233_v56 = vsel %vm6232_vm14, %v9068_v1, %v6229_v23  ;;  %v6196_v1 = vmul.f32 %v9070_v15, %v12471_v4  ;;  %vm6202_vm14 = vmor %vm6200_vm13, %vm6201_vm12 }
 0xfba   : > { %v6224_v54 = vmul.f32 %v13822_v14, %v6223_v13  ;;  %v6238_v41 = vsel %vm6235_vm4, %v6237_v44, %v6233_v56  ;;  %v12710_v14 = vpop.f32.mrf.mxu1  ;;  %v13832_v56 = vld [vmem:[#allocation83_spill] sm:$0xff] }
 0xfbb   : > { %v12670_v31 = vpop.xlane.xlu2 %6016  ;;  %v6239_v37 = vmul.f32 %v13825_v3, %v6238_v41  ;;  %v6197_v51 = vsub.f32 1.0, %v6196_v1 }
 0xfbd   : > { %v6198_v23 = vmul.f32 %v9070_v15, %v6197_v51 }
 0xfbe   : > { %v12672_v29 = vld [vmem:[#allocation1] sm:$0xff] }
 0xfbf   : > { %7446 = vst [vmem:[#allocation1] ss:$9 sm:$0xff] %v13819_v9  ;;  %v6199_v44 = vadd.f32 %v9070_v15, %v6198_v23 }
 0xfc0   : > { %7448 = vst [vmem:[#allocation1 + $0x1] ss:$9 sm:$0xff] %v13820_v62 }
 0xfc1   : > { %7450 = vst [vmem:[#allocation1 + $0x2] ss:$9 sm:$0xff] %v13821_v10  ;;  %v6014_v38 = vpop.xlane.xlu1 %6013 }
 0xfc2   : > { %9071 = vrcp.f32 %v6014_v38  ;;  %v6251_v28 = vand.u32 2147483648, %v6014_v38  ;;  %v6249_v49 = vand.u32 2147483647, %v6014_v38  ;;  %vm6245_vm7 = vweird.f32 %v6014_v38 }
 0xfc3   : > { %v6859_v60 = vpop.permute.xlu2 %6858  ;;  %9073 = vrcp.f32 %v12670_v31 }
 0xfc4   : > { %8718 = vmatpush.msk.msra.mxu0 %vm2825_vm10, %v6859_v60  ;;  %7089 = vrot.lane.b32.xlu1 %v12421_v45, %s13756_s28  ;;  %v6252_v9 = vor.u32 1.1754944e-38, %v6251_v28  ;;  %vm6250_vm9 = vcmp.eq.f32.partialorder %v6249_v49, 8.507059e+37 }
 0xfc5   : > { %8719 = vmatmul.msk.f32.vlgmr.msra.gmra.mxu0 %vm2821_vm11, %v6224_v54  ;;  %v13831_v54 = vld [vmem:[#allocation19_spill] sm:$0xff] }
 0xfc8   : > { %v12685_v59 = vld [vmem:[#allocation1] sm:$0xff]  ;;  %v9072_v11 = vpop.eup %9071 }
 0xfc9   : > { %7479 = vst [vmem:[#allocation1] ss:$9 sm:$0xff] %v13823_v34  ;;  %v6241_v63 = vmul.f32 %v9072_v11, %v6014_v38  ;;  %vm6246_vm6 = vweird.f32 %v9072_v11  ;;  %v9074_v61 = vpop.eup %9073  ;;  %v6206_v34 = vand.u32 2147483648, %v12471_v4  ;;  %v5859_v38 = vsel %vm2044_vm2, %v12710_v14, -inf  ;;  %v12724_v3 = vpop.xlane.xlu1 %5848 }
 0xfca   : > { %7481 = vst [vmem:[#allocation1 + $0x1] ss:$9 sm:$0xff] %v13824_v12  ;;  %v5852_v45 = vpop.xlane.xlu0 %5851  ;;  %vm6247_vm8 = vmor %vm6245_vm7, %vm6246_vm6  ;;  %v6256_v10 = vmul.f32 %v9074_v61, %v12670_v31  ;;  %v6204_v12 = vand.u32 2147483647, %v12471_v4  ;;  %vm6261_vm6 = vweird.f32 %v9074_v61  ;;  %v6266_v4 = vand.u32 2147483648, %v12670_v31 }
 0xfcb   : > { %v6892_v19 = vpop.permute.xlu2 %6891  ;;  %7483 = vst [vmem:[#allocation1 + $0x2] ss:$9 sm:$0xff] %v13826_v39  ;;  %v6242_v18 = vsub.f32 1.0, %v6241_v63  ;;  %v5904_v8 = vsub.f32 %v12427_v40, %v5852_v45  ;;  %v13835_v45 = vld [vmem:[#allocation75_spill] sm:$0xff]  ;;  %vm6260_vm7 = vweird.f32 %v12670_v31 }
 0xfcc   : > { %8720 = vmatpush.msk.msrb.mxu2 %vm2825_vm10, %v6892_v19  ;;  %v6257_v41 = vsub.f32 1.0, %v6256_v10  ;;  %v6203_v19 = vsel %vm6202_vm14, %v9070_v15, %v6199_v44  ;;  %vm6205_vm4 = vcmp.eq.f32.partialorder %v6204_v12, 8.507059e+37  ;;  %v6264_v15 = vand.u32 2147483647, %v12670_v31 }
 0xfcd   : > { %8721 = vmatmul.msk.f32.vlgmr.msrb.gmra.mxu2 %vm2821_vm11, %v6239_v37  ;;  %v6243_v48 = vmul.f32 %v9072_v11, %v6242_v18  ;;  %v5957_v0 = vmul.f32 1.442695, %v5904_v8  ;;  %v13834_v18 = vld [vmem:[#allocation10_spill] sm:$0xff] }
 0xfce   : > { %v6258_v39 = vmul.f32 %v9074_v61, %v6257_v41 }
 0xfcf   : > { %v6244_v47 = vadd.f32 %v9072_v11, %v6243_v48  ;;  %9075 = vpow2.f32 %v5957_v0  ;;  %v6267_v0 = vor.u32 1.1754944e-38, %v6266_v4 }
 0xfd0   : > { %v6259_v1 = vadd.f32 %v9074_v61, %v6258_v39 }
 0xfd1   : > { %v6248_v13 = vsel %vm6247_vm8, %v9072_v11, %v6244_v47  ;;  %v6207_v11 = vor.u32 1.1754944e-38, %v6206_v34  ;;  %vm6262_vm8 = vmor %vm6260_vm7, %vm6261_vm6 }
 0xfd2   : > { %v12696_v30 = vld [vmem:[#allocation1] sm:$0xff]  ;;  %v6253_v62 = vsel %vm6250_vm9, %v6252_v9, %v6248_v13  ;;  %v6020_v37 = vpop.xlane.xlu0 %6019  ;;  %v6263_v49 = vsel %vm6262_vm8, %v9074_v61, %v6259_v1  ;;  %vm6265_vm9 = vcmp.eq.f32.partialorder %v6264_v15, 8.507059e+37  ;;  %v12739_v13 = vpop.f32.mrf.mxu0 }
 0xfd3   : > { %v6925_v7 = vpop.permute.xlu2 %6924  ;;  %7512 = vst [vmem:[#allocation1] ss:$9 sm:$0xff] %v13827_v16  ;;  %v6254_v40 = vmul.f32 %v12414_v58, %v6253_v62  ;;  %v13833_v16 = vld [vmem:[#allocation86_spill] sm:$0xff]  ;;  %v6268_v9 = vsel %vm6265_vm9, %v6267_v0, %v6263_v49  ;;  %vm6275_vm13 = vweird.f32 %v6020_v37  ;;  %v6279_v41 = vand.u32 2147483647, %v6020_v37 }
 0xfd4   : > { %8722 = vmatpush.msk.msra.mxu3 %vm2825_vm10, %v6925_v7  ;;  %7514 = vst [vmem:[#allocation1 + $0x1] ss:$9 sm:$0xff] %v13828_v46  ;;  %v6208_v7 = vsel %vm6205_vm4, %v6207_v11, %v6203_v19  ;;  %v13836_v46 = vld [vmem:[#allocation31_spill] sm:$0xff]  ;;  %v6269_v62 = vmul.f32 %v12388_v32, %v6268_v9  ;;  %v12755_v19 = vpop.f32.mrf.mxu2 }
 0xfd5   : > { %7516 = vst [vmem:[#allocation1 + $0x2] ss:$9 sm:$0xff] %v13829_v21  ;;  %8723 = vmatmul.msk.f32.vlgmr.msra.gmra.mxu3 %vm2821_vm11, %v6254_v40  ;;  %v12714_v60 = vpop.eup %9075  ;;  %v6209_v28 = vmul.f32 %v13836_v46, %v6208_v7  ;;  %v13837_v21 = vld [vmem:[#allocation29_spill] sm:$0xff]  ;;  %vm6280_vm4 = vcmp.eq.f32.partialorder %v6279_v41, 8.507059e+37 }
 0xfd6   : > { %v6042_v58 = vsel %vm2044_vm2, %v12714_v60, 0.0  ;;  %v5900_v48 = vsub.f32 %v13837_v21, %v12491_v42  ;;  %v5862_v42 = vsel %vm2044_vm2, %v12739_v13, -inf }
 0xfd7   : > { %6043 = vadd.xlane.f32.xlu0 %v6042_v58 }
 0xfd8   : > { %v5949_v47 = vmul.f32 1.442695, %v5900_v48 }
 0xfda   : > { %v5855_v51 = vpop.xlane.xlu0 %5854  ;;  %9077 = vpow2.f32 %v5949_v47 }
 0xfdb   : > { %9079 = vrcp.f32 %v6020_v37 }
 0xfdc   : > { %v12707_v50 = vld [vmem:[#allocation1] sm:$0xff] }
 0xfdd   : > { %7545 = vst [vmem:[#allocation1] ss:$9 sm:$0xff] %v13830_v52 }
 0xfde   : > { %7547 = vst [vmem:[#allocation1 + $0x1] ss:$9 sm:$0xff] %v13831_v54 }
 0xfdf   : > { %7549 = vst [vmem:[#allocation1 + $0x2] ss:$9 sm:$0xff] %v13832_v56 }
 0xfe0   : > { %v12748_v23 = vpop.eup %9077 }
 0xfe1   : > { %v6826_v8 = vpop.permute.xlu1 %6825  ;;  %v9080_v32 = vpop.eup %9079  ;;  %v6030_v10 = vsel %vm2044_vm2, %v12748_v23, 0.0 }
 0xfe2   : > { %5860 = vmax.xlane.f32.xlu2 %v5859_v38  ;;  %8716 = vmatpush.msk.msra.mxu1 %vm2825_vm10, %v6826_v8  ;;  %v6271_v40 = vmul.f32 %v9080_v32, %v6020_v37  ;;  %vm6276_vm12 = vweird.f32 %v9080_v32 }
 0xfe3   : > { %8717 = vmatmul.msk.f32.vlgmr.msra.gmra.mxu1 %vm2821_vm11, %v6209_v28  ;;  %vm6277_vm14 = vmor %vm6275_vm13, %vm6276_vm12  ;;  %v12765_v28 = vpop.f32.mrf.mxu2 }
 0xfe4   : > { %v5858_v61 = vpop.xlane.xlu0 %5857  ;;  %v6272_v54 = vsub.f32 1.0, %v6271_v40 }
 0xfe6   : > { %v12726_v63 = vld [vmem:[#allocation1] sm:$0xff]  ;;  %v6273_v56 = vmul.f32 %v9080_v32, %v6272_v54 }
 0xfe7   : > { %7578 = vst [vmem:[#allocation1] ss:$9 sm:$0xff] %v13833_v16  ;;  %v5905_v16 = vsub.f32 %v12448_v53, %v5855_v51  ;;  %v5865_v51 = vsel %vm2044_vm2, %v12755_v19, -inf }
 0xfe8   : > { %7580 = vst [vmem:[#allocation1 + $0x1] ss:$9 sm:$0xff] %v13834_v18  ;;  %v6274_v44 = vadd.f32 %v9080_v32, %v6273_v56 }
 0xfe9   : > { %7582 = vst [vmem:[#allocation1 + $0x2] ss:$9 sm:$0xff] %v13835_v45  ;;  %v6958_v31 = vpop.permute.xlu1 %6957  ;;  %v5901_v45 = vsub.f32 %v12384_v33, %v12666_v36  ;;  %v5877_v36 = vsel %vm2044_vm2, %v12765_v28, -inf }
 0xfea   : > { %8724 = vmatpush.msk.msrb.mxu1 %vm2825_vm10, %v6958_v31 }
 0xfeb   : > { %8725 = vmatmul.msk.f32.vlgmr.msrb.gmra.mxu1 %vm2821_vm11, %v6269_v62  ;;  %7419 = vrot.lane.b32.xlu0 %v12672_v29, %s13756_s28  ;;  %v6281_v29 = vand.u32 2147483648, %v6020_v37  ;;  %v5951_v21 = vmul.f32 1.442695, %v5901_v45 }
 0xfed   : > { %v6282_v34 = vor.u32 1.1754944e-38, %v6281_v29 }
 0xfee   : > { %5863 = vmax.xlane.f32.xlu1 %v5862_v42 }
 0xff6   : > { %6031 = vadd.xlane.f32.xlu1 %v6030_v10 }
 0xff7   : > { %v7057_v52 = vpop.permute.xlu0 %7056 }
 0xff8   : > { %8730 = vmatpush.msk.msrb.mxu3 %vm2825_vm10, %v7057_v52 }
 0xffa   : > { %7122 = vrot.lane.b32.xlu2 %v12436_v43, %s13756_s28  ;;  %v6278_v43 = vsel %vm6277_vm14, %v9080_v32, %v6274_v44 }
 0xffb   : > { %v6283_v38 = vsel %vm6280_vm4, %v6282_v34, %v6278_v43  ;;  %v12794_v43 = vpop.f32.mrf.mxu3 }
 0xffc   : > { %v6284_v39 = vmul.f32 %v12438_v5, %v6283_v38  ;;  %v5959_v5 = vmul.f32 1.442695, %v5905_v16 }
 0xfff   : > { %v7156_v49 = vpop.permute.xlu0 %7155 }
0x100c   : > { %v6023_v58 = vpop.xlane.xlu2 %6022 }
0x100d   : > { %9081 = vrcp.f32 %v6023_v58  ;;  %v6296_v37 = vand.u32 2147483648, %v6023_v58  ;;  %v6294_v4 = vand.u32 2147483647, %v6023_v58  ;;  %vm6290_vm7 = vweird.f32 %v6023_v58 }
0x100e   : > { %9083 = vpow2.f32 %v5959_v5 }
0x100f   : > { %7188 = vrot.lane.b32.xlu1 %v12480_v27, %s13756_s28  ;;  %v6297_v53 = vor.u32 1.1754944e-38, %v6296_v37  ;;  %vm6295_vm9 = vcmp.eq.f32.partialorder %v6294_v4, 8.507059e+37  ;;  %v5906_v27 = vsub.f32 %v12465_v6, %v5858_v61 }
0x1011   : > { %v5961_v6 = vmul.f32 1.442695, %v5906_v27  ;;  %v12815_v27 = vpop.f32.mrf.mxu3 }
0x1013   : > { %v9082_v12 = vpop.eup %9081 }
0x1014   : > { %v6286_v11 = vmul.f32 %v9082_v12, %v6023_v58  ;;  %v6991_v7 = vpop.permute.xlu2 %6990  ;;  %vm6291_vm6 = vweird.f32 %v9082_v12  ;;  %v12778_v47 = vpop.eup %9083 }
0x1015   : > { %8726 = vmatpush.msk.msrb.mxu0 %vm2825_vm10, %v6991_v7  ;;  %vm6292_vm8 = vmor %vm6290_vm7, %vm6291_vm6  ;;  %5878 = vmax.xlane.f32.xlu0 %v5877_v36  ;;  %v5868_v7 = vsel %vm2044_vm2, %v12794_v43, -inf }
0x1016   : > { %v6287_v1 = vsub.f32 1.0, %v6286_v11  ;;  %8727 = vmatmul.msk.f32.vlgmr.msrb.gmra.mxu0 %vm2821_vm11, %v6284_v39  ;;  %v6026_v0 = vpop.xlane.xlu1 %6025 }
0x1017   : > { %9085 = vrcp.f32 %v6026_v0  ;;  %7221 = vrot.lane.b32.xlu1 %v12509_v57, %s13756_s28  ;;  %v6045_v57 = vsel %vm2044_vm2, %v12778_v47, 0.0  ;;  %v6311_v61 = vand.u32 2147483648, %v6026_v0  ;;  %v6309_v10 = vand.u32 2147483647, %v6026_v0 }
0x1018   : > { %v6288_v18 = vmul.f32 %v9082_v12, %v6287_v1  ;;  %9087 = vpow2.f32 %v5951_v21  ;;  %vm6305_vm13 = vweird.f32 %v6026_v0 }
0x1019   : > { %9089 = vpow2.f32 %v5961_v6  ;;  %v6312_v56 = vor.u32 1.1754944e-38, %v6311_v61  ;;  %vm6310_vm4 = vcmp.eq.f32.partialorder %v6309_v10, 8.507059e+37 }
0x101a   : > { %v6289_v46 = vadd.f32 %v9082_v12, %v6288_v18 }
0x101c   : > { %v6293_v15 = vsel %vm6292_vm8, %v9082_v12, %v6289_v46  ;;  %v7024_v8 = vpop.permute.xlu2 %7023  ;;  %v13838_v12 = vld [vmem:[#allocation36_spill] sm:$0xff] }
0x101d   : > { %v6298_v48 = vsel %vm6295_vm9, %v6297_v53, %v6293_v15  ;;  %8728 = vmatpush.msk.msra.mxu2 %vm2825_vm10, %v7024_v8  ;;  %6046 = vadd.xlane.f32.xlu0 %v6045_v57  ;;  %v5903_v39 = vsub.f32 %v13838_v12, %v12724_v3  ;;  %v13839_v8 = vld [vmem:[#allocation39_spill] sm:$0xff] }
0x101e   : > { %v6299_v33 = vmul.f32 %v12597_v35, %v6298_v48  ;;  %v9086_v35 = vpop.eup %9085  ;;  %v6029_v62 = vpop.xlane.xlu1 %6028  ;;  %v5902_v21 = vsub.f32 %v13839_v8, %v12678_v25 }
0x101f   : > { %8736 = vmatpush.msk.msrb.mxu2 %vm2825_vm10, %v7156_v49  ;;  %v6301_v9 = vmul.f32 %v9086_v35, %v6026_v0  ;;  %9091 = vrcp.f32 %v6029_v62  ;;  %7254 = vrot.lane.b32.xlu1 %v12569_v22, %s13756_s28  ;;  %v12784_v31 = vpop.eup %9087  ;;  %vm6306_vm12 = vweird.f32 %v9086_v35  ;;  %v5955_v1 = vmul.f32 1.442695, %v5903_v39 }
0x1020   : > { %8729 = vmatmul.msk.f32.vlgmr.msra.gmra.mxu2 %vm2821_vm11, %v6299_v33  ;;  %v6033_v40 = vsel %vm2044_vm2, %v12784_v31, 0.0  ;;  %v12788_v52 = vpop.eup %9089  ;;  %vm6307_vm14 = vmor %vm6305_vm13, %vm6306_vm12  ;;  %vm6320_vm7 = vweird.f32 %v6029_v62  ;;  %v6324_v37 = vand.u32 2147483647, %v6029_v62  ;;  %v5953_v48 = vmul.f32 1.442695, %v5902_v21 }
0x1021   : > { %v6302_v42 = vsub.f32 1.0, %v6301_v9  ;;  %v6048_v58 = vsel %vm2044_vm2, %v12788_v52, 0.0  ;;  %9093 = vpow2.f32 %v5955_v1 }
0x1022   : > { %vm6325_vm9 = vcmp.eq.f32.partialorder %v6324_v37, 8.507059e+37  ;;  %9095 = vpow2.f32 %v5953_v48 }
0x1023   : > { %5866 = vmax.xlane.f32.xlu2 %v5865_v51  ;;  %v6303_v32 = vmul.f32 %v9086_v35, %v6302_v42 }
0x1025   : > { %v6304_v54 = vadd.f32 %v9086_v35, %v6303_v32  ;;  %v9092_v22 = vpop.eup %9091  ;;  %6049 = vadd.xlane.f32.xlu0 %v6048_v58 }
0x1026   : > { %v6316_v29 = vmul.f32 %v9092_v22, %v6029_v62  ;;  %vm6321_vm6 = vweird.f32 %v9092_v22 }
0x1027   : > { %v6308_v44 = vsel %vm6307_vm14, %v9086_v35, %v6304_v54  ;;  %7287 = vrot.lane.b32.xlu1 %v12601_v17, %s13756_s28  ;;  %v6326_v17 = vand.u32 2147483648, %v6029_v62  ;;  %vm6322_vm8 = vmor %vm6320_vm7, %vm6321_vm6  ;;  %v12808_v53 = vpop.eup %9093 }
0x1028   : > { %v6313_v41 = vsel %vm6310_vm4, %v6312_v56, %v6308_v44  ;;  %v6317_v38 = vsub.f32 1.0, %v6316_v29  ;;  %v6039_v15 = vsel %vm2044_vm2, %v12808_v53, 0.0  ;;  %v12819_v49 = vpop.eup %9095 }
0x1029   : > { %v6314_v34 = vmul.f32 %v12637_v55, %v6313_v41  ;;  %v12802_v55 = vpop.f32.mrf.mxu1  ;;  %v6327_v4 = vor.u32 1.1754944e-38, %v6326_v17  ;;  %v6036_v36 = vsel %vm2044_vm2, %v12819_v49, 0.0 }
0x102a   : > { %v6318_v11 = vmul.f32 %v9092_v22, %v6317_v38  ;;  %v5871_v45 = vsel %vm2044_vm2, %v12802_v55, -inf }
0x102b   : > { %6034 = vadd.xlane.f32.xlu2 %v6033_v40  ;;  %8731 = vmatmul.msk.f32.vlgmr.msrb.gmra.mxu3 %vm2821_vm11, %v6314_v34 }
0x102c   : > { %v6319_v16 = vadd.f32 %v9092_v22, %v6318_v11 }
0x102e   : > { %v6323_v18 = vsel %vm6322_vm8, %v9092_v22, %v6319_v16 }
0x102f   : > { %v6328_v3 = vsel %vm6325_vm9, %v6327_v4, %v6323_v18 }
0x1030   : > { %v6329_v5 = vmul.f32 %v12651_v2, %v6328_v3  ;;  %v5880_v2 = vsel %vm2044_vm2, %v12815_v27, -inf }
0x1033   : > { %5869 = vmax.xlane.f32.xlu2 %v5868_v7 }
0x1036   : > { %v7090_v46 = vpop.permute.xlu1 %7089 }
0x1037   : > { %8732 = vmatpush.msk.msra.mxu1 %vm2825_vm10, %v7090_v46 }
0x1038   : > { %8733 = vmatmul.msk.f32.vlgmr.msra.gmra.mxu1 %vm2821_vm11, %v6329_v5 }
0x103b   : > { %5872 = vmax.xlane.f32.xlu2 %v5871_v45  ;;  %v12848_v45 = vpop.f32.mrf.mxu0 }
0x103c   : > { %v5874_v8 = vsel %vm2044_vm2, %v12848_v45, -inf }
0x1043   : > { %6040 = vadd.xlane.f32.xlu2 %v6039_v15 }
0x104a   : > { %v6044_v32 = vpop.xlane.xlu0 %6043 }
0x104b   : > { %5881 = vmax.xlane.f32.xlu2 %v5880_v2  ;;  %v6401_v17 = vand.u32 2147483648, %v6044_v32  ;;  %vm6395_vm7 = vweird.f32 %v6044_v32  ;;  %v6399_v1 = vand.u32 2147483647, %v6044_v32 }
0x104d   : > { %v6402_v4 = vor.u32 1.1754944e-38, %v6401_v17  ;;  %vm6400_vm9 = vcmp.eq.f32.partialorder %v6399_v1, 8.507059e+37 }
0x1051   : > { %6037 = vadd.xlane.f32.xlu1 %v6036_v36 }
0x1055   : > { %v5861_v0 = vpop.xlane.xlu2 %5860 }
0x1056   : > { %v5907_v33 = vsub.f32 %v12710_v14, %v5861_v0 }
0x1058   : > { %v5963_v6 = vmul.f32 1.442695, %v5907_v33 }
0x105a   : > { %9097 = vpow2.f32 %v5963_v6 }
0x105d   : > { %v7123_v25 = vpop.permute.xlu2 %7122  ;;  %v12841_v7 = vpop.permute.xlu0 %7419 }
0x105e   : > { %8734 = vmatpush.msk.msra.mxu0 %vm2825_vm10, %v7123_v25 }
0x1060   : > { %v12825_v51 = vpop.eup %9097 }
0x1061   : > { %v6051_v35 = vsel %vm2044_vm2, %v12825_v51, 0.0  ;;  %v5864_v9 = vpop.xlane.xlu1 %5863 }
0x1062   : > { %6052 = vadd.xlane.f32.xlu2 %v6051_v35  ;;  %v5908_v62 = vsub.f32 %v12739_v13, %v5864_v9 }
0x1064   : > { %v5965_v57 = vmul.f32 1.442695, %v5908_v62 }
0x1066   : > { %9099 = vpow2.f32 %v5965_v57 }
0x1069   : > { %v6032_v14 = vpop.xlane.xlu1 %6031 }
0x106a   : > { %9101 = vrcp.f32 %v6032_v14  ;;  %7353 = vrot.lane.b32.xlu1 %v12643_v26, %s13756_s28  ;;  %v6341_v22 = vand.u32 2147483648, %v6032_v14  ;;  %v6339_v56 = vand.u32 2147483647, %v6032_v14  ;;  %vm6335_vm13 = vweird.f32 %v6032_v14 }
0x106b   : > { %9103 = vrcp.f32 %v6044_v32 }
0x106c   : > { %v12832_v42 = vpop.eup %9099  ;;  %v6342_v26 = vor.u32 1.1754944e-38, %v6341_v22  ;;  %vm6340_vm4 = vcmp.eq.f32.partialorder %v6339_v56, 8.507059e+37 }
0x106d   : > { %v6054_v61 = vsel %vm2044_vm2, %v12832_v42, 0.0 }
0x106e   : > { %6055 = vadd.xlane.f32.xlu0 %v6054_v61 }
0x1070   : > { %v9102_v10 = vpop.eup %9101 }
0x1071   : > { %v6331_v40 = vmul.f32 %v9102_v10, %v6032_v14  ;;  %vm6336_vm12 = vweird.f32 %v9102_v10  ;;  %v9104_v29 = vpop.eup %9103 }
0x1072   : > { %vm6337_vm14 = vmor %vm6335_vm13, %vm6336_vm12  ;;  %v6391_v34 = vmul.f32 %v9104_v29, %v6044_v32  ;;  %vm6396_vm6 = vweird.f32 %v9104_v29 }
0x1073   : > { %v6332_v54 = vsub.f32 1.0, %v6331_v40  ;;  %vm6397_vm8 = vmor %vm6395_vm7, %vm6396_vm6 }
0x1074   : > { %v6392_v12 = vsub.f32 1.0, %v6391_v34 }
0x1075   : > { %v6333_v13 = vmul.f32 %v9102_v10, %v6332_v54 }
0x1076   : > { %v6393_v11 = vmul.f32 %v9104_v29, %v6392_v12 }
0x1077   : > { %v6334_v44 = vadd.f32 %v9102_v10, %v6333_v13 }
0x1078   : > { %v6394_v16 = vadd.f32 %v9104_v29, %v6393_v11 }
0x1079   : > { %v6338_v41 = vsel %vm6337_vm14, %v9102_v10, %v6334_v44 }
0x107a   : > { %v6343_v58 = vsel %vm6340_vm4, %v6342_v26, %v6338_v41 }
0x107b   : > { %v6344_v38 = vmul.f32 %v12748_v23, %v6343_v58  ;;  %v6398_v23 = vsel %vm6397_vm8, %v9104_v29, %v6394_v16 }
0x107d   : > { %8735 = vmatmul.msk.f32.vlgmr.msra.gmra.mxu0 %vm2821_vm11, %v6344_v38 }
0x1081   : > { %v7189_v39 = vpop.permute.xlu1 %7188 }
0x1082   : > { %7452 = vrot.lane.b32.xlu0 %v12685_v59, %s13756_s28  ;;  %8738 = vmatpush.msk.msra.mxu3 %vm2825_vm10, %v7189_v39  ;;  %v6403_v59 = vsel %vm6400_vm9, %v6402_v4, %v6398_v23 }
0x1083   : > { %v6404_v5 = vmul.f32 %v12714_v60, %v6403_v59 }
0x1088   : > { %v12844_v18 = vpop.xlane.xlu0 %5878 }
0x1089   : > { %v7222_v37 = vpop.permute.xlu1 %7221 }
0x108a   : > { %8740 = vmatpush.msk.msrb.mxu1 %vm2825_vm10, %v7222_v37 }
0x1090   : > { %v6047_v15 = vpop.xlane.xlu0 %6046 }
0x1091   : > { %v7255_v46 = vpop.permute.xlu1 %7254  ;;  %9105 = vrcp.f32 %v6047_v15  ;;  %v6416_v56 = vand.u32 2147483648, %v6047_v15  ;;  %vm6410_vm7 = vweird.f32 %v6047_v15  ;;  %v6414_v29 = vand.u32 2147483647, %v6047_v15 }
0x1092   : > { %8742 = vmatpush.msk.msrb.mxu0 %vm2825_vm10, %v7255_v46 }
0x1093   : > { %8743 = vmatmul.msk.f32.vlgmr.msrb.gmra.mxu0 %vm2821_vm11, %v6404_v5  ;;  %v6417_v38 = vor.u32 1.1754944e-38, %v6416_v56  ;;  %vm6415_vm9 = vcmp.eq.f32.partialorder %v6414_v29, 8.507059e+37 }
0x1094   : > { %5875 = vmax.xlane.f32.xlu1 %v5874_v8 }
0x1096   : > { %v12846_v3 = vpop.xlane.xlu2 %5866 }
0x1097   : > { %v9106_v2 = vpop.eup %9105  ;;  %v5909_v8 = vsub.f32 %v12755_v19, %v12846_v3 }
0x1098   : > { %v6406_v0 = vmul.f32 %v9106_v2, %v6047_v15  ;;  %vm6411_vm6 = vweird.f32 %v9106_v2  ;;  %v12878_v15 = vpop.f32.mrf.mxu1 }
0x1099   : > { %v7288_v48 = vpop.permute.xlu1 %7287  ;;  %vm6412_vm8 = vmor %vm6410_vm7, %vm6411_vm6 }
0x109a   : > { %8744 = vmatpush.msk.msra.mxu2 %vm2825_vm10, %v7288_v48  ;;  %v6407_v36 = vsub.f32 1.0, %v6406_v0  ;;  %v5967_v48 = vmul.f32 1.442695, %v5909_v8 }
0x109c   : > { %v6408_v61 = vmul.f32 %v9106_v2, %v6407_v36 }
0x109e   : > { %v6035_v21 = vpop.xlane.xlu2 %6034  ;;  %v6409_v54 = vadd.f32 %v9106_v2, %v6408_v61 }
0x109f   : > { %9107 = vrcp.f32 %v6035_v21  ;;  %v6356_v9 = vand.u32 2147483648, %v6035_v21  ;;  %v6354_v14 = vand.u32 2147483647, %v6035_v21  ;;  %vm6350_vm13 = vweird.f32 %v6035_v21 }
0x10a0   : > { %v6413_v58 = vsel %vm6412_vm8, %v9106_v2, %v6409_v54  ;;  %v12886_v0 = vpop.f32.mrf.mxu1 }
0x10a1   : > { %v6357_v10 = vor.u32 1.1754944e-38, %v6356_v9  ;;  %vm6355_vm4 = vcmp.eq.f32.partialorder %v6354_v14, 8.507059e+37 }
0x10a5   : > { %v9108_v33 = vpop.eup %9107 }
0x10a6   : > { %v6346_v60 = vmul.f32 %v9108_v33, %v6035_v21  ;;  %v5870_v6 = vpop.xlane.xlu2 %5869  ;;  %vm6351_vm12 = vweird.f32 %v9108_v33 }
0x10a7   : > { %v5910_v25 = vsub.f32 %v12794_v43, %v5870_v6  ;;  %vm6352_vm14 = vmor %vm6350_vm13, %vm6351_vm12 }
0x10a8   : > { %v6347_v35 = vsub.f32 1.0, %v6346_v60  ;;  %v6849_v9 = vpop.f32.mrf.mxu1 }
0x10a9   : > { %v5969_v62 = vmul.f32 1.442695, %v5910_v25 }
0x10aa   : > { %v6348_v57 = vmul.f32 %v9108_v33, %v6347_v35 }
0x10ab   : > { %9109 = vpow2.f32 %v5969_v62 }
0x10ac   : > { %v6349_v32 = vadd.f32 %v9108_v33, %v6348_v57 }
0x10ad   : > { %7386 = vrot.lane.b32.xlu1 %v12657_v24, %s13756_s28 }
0x10ae   : > { %v6353_v40 = vsel %vm6352_vm14, %v9108_v33, %v6349_v32  ;;  %v5873_v22 = vpop.xlane.xlu2 %5872  ;;  %v7583_v32 = vld [vmem:[#allocation1] sm:$0xff] }
0x10af   : > { %v6358_v13 = vsel %vm6355_vm4, %v6357_v10, %v6353_v40  ;;  %v5911_v43 = vsub.f32 %v12802_v55, %v5873_v22  ;;  %v5913_v22 = vsub.f32 %v12765_v28, %v12844_v18 }
0x10b0   : > { %v6359_v44 = vmul.f32 %v12784_v31, %v6358_v13  ;;  %v6418_v31 = vsel %vm6415_vm9, %v6417_v38, %v6413_v58  ;;  %v12910_v38 = vpop.f32.mrf.mxu0 }
0x10b1   : > { %v12859_v26 = vpop.eup %9109  ;;  %v5971_v41 = vmul.f32 1.442695, %v5911_v43  ;;  %v6419_v12 = vmul.f32 %v12778_v47, %v6418_v31  ;;  %v5975_v29 = vmul.f32 1.442695, %v5913_v22  ;;  %v6050_v31 = vpop.xlane.xlu0 %6049 }
0x10b2   : > { %8737 = vmatmul.msk.f32.vlgmr.msrb.gmra.mxu2 %vm2821_vm11, %v6359_v44  ;;  %v6060_v34 = vsel %vm2044_vm2, %v12859_v26, 0.0  ;;  %v12900_v44 = vpop.f32.mrf.mxu1 }
0x10b3   : > { %9111 = vpow2.f32 %v5971_v41  ;;  %8752 = vmatpush.msk.msrb.mxu2 %vm2825_vm10, %v12841_v7  ;;  %6061 = vadd.xlane.f32.xlu2 %v6060_v34 }
0x10b6   : > { %v6041_v55 = vpop.xlane.xlu2 %6040 }
0x10b7   : > { %9113 = vrcp.f32 %v6041_v55  ;;  %v6386_v1 = vand.u32 2147483648, %v6041_v55  ;;  %v6384_v24 = vand.u32 2147483647, %v6041_v55  ;;  %vm6380_vm13 = vweird.f32 %v6041_v55 }
0x10b9   : > { %v12869_v39 = vpop.eup %9111  ;;  %v6387_v4 = vor.u32 1.1754944e-38, %v6386_v1  ;;  %vm6385_vm4 = vcmp.eq.f32.partialorder %v6384_v24, 8.507059e+37 }
0x10ba   : > { %8745 = vmatmul.msk.f32.vlgmr.msra.gmra.mxu2 %vm2821_vm11, %v6419_v12  ;;  %v6063_v11 = vsel %vm2044_vm2, %v12869_v39, 0.0  ;;  %v7113_v28 = vpop.f32.mrf.mxu1 }
0x10bb   : > { %6064 = vadd.xlane.f32.xlu0 %v6063_v11 }
0x10bd   : > { %v9114_v16 = vpop.eup %9113 }
0x10be   : > { %v6376_v7 = vmul.f32 %v9114_v16, %v6041_v55  ;;  %vm6381_vm12 = vweird.f32 %v9114_v16  ;;  %v12882_v21 = vpop.xlane.xlu2 %5881  ;;  %v12912_v55 = vpop.f32.mrf.mxu0 }
0x10bf   : > { %vm6382_vm14 = vmor %vm6380_vm13, %vm6381_vm12  ;;  %v5914_v1 = vsub.f32 %v12815_v27, %v12882_v21 }
0x10c0   : > { %v6377_v17 = vsub.f32 1.0, %v6376_v7 }
0x10c2   : > { %v6378_v37 = vmul.f32 %v9114_v16, %v6377_v17 }
0x10c4   : > { %v6379_v23 = vadd.f32 %v9114_v16, %v6378_v37  ;;  %v6038_v46 = vpop.xlane.xlu1 %6037 }
0x10c5   : > { %9115 = vrcp.f32 %v6038_v46  ;;  %v6371_v60 = vand.u32 2147483648, %v6038_v46  ;;  %v6369_v6 = vand.u32 2147483647, %v6038_v46  ;;  %vm6365_vm7 = vweird.f32 %v6038_v46 }
0x10c6   : > { %v6383_v47 = vsel %vm6382_vm14, %v9114_v16, %v6379_v23  ;;  %9117 = vpow2.f32 %v5967_v48  ;;  %v6882_v12 = vpop.f32.mrf.mxu0 }
0x10c7   : > { %v6388_v59 = vsel %vm6385_vm4, %v6387_v4, %v6383_v47  ;;  %vm6370_vm9 = vcmp.eq.f32.partialorder %v6369_v6, 8.507059e+37  ;;  %v12918_v4 = vpop.f32.mrf.mxu2  ;;  %v5977_v47 = vmul.f32 1.442695, %v5914_v1 }
0x10c8   : > { %v6389_v5 = vmul.f32 %v12808_v53, %v6388_v59 }
0x10ca   : > { %8741 = vmatmul.msk.f32.vlgmr.msrb.gmra.mxu1 %vm2821_vm11, %v6389_v5 }
0x10cb   : > { %7320 = vrot.lane.b32.xlu2 %v12625_v20, %s13756_s28  ;;  %v9116_v2 = vpop.eup %9115 }
0x10cc   : > { %v6361_v53 = vmul.f32 %v9116_v2, %v6038_v46  ;;  %vm6366_vm6 = vweird.f32 %v9116_v2  ;;  %v12890_v3 = vpop.eup %9117 }
0x10cd   : > { %vm6367_vm8 = vmor %vm6365_vm7, %vm6366_vm6  ;;  %v6057_v61 = vsel %vm2044_vm2, %v12890_v3, 0.0 }
0x10ce   : > { %v6362_v33 = vsub.f32 1.0, %v6361_v53 }
0x10cf   : > { %7485 = vrot.lane.b32.xlu0 %v12696_v30, %s13756_s28  ;;  %v6372_v30 = vor.u32 1.1754944e-38, %v6371_v60  ;;  %v12924_v27 = vpop.f32.mrf.mxu2 }
0x10d0   : > { %v6363_v36 = vmul.f32 %v9116_v2, %v6362_v33 }
0x10d2   : > { %v6364_v19 = vadd.f32 %v9116_v2, %v6363_v36 }
0x10d4   : > { %v6368_v25 = vsel %vm6367_vm8, %v9116_v2, %v6364_v19 }
0x10d5   : > { %v6053_v20 = vpop.xlane.xlu2 %6052  ;;  %v6373_v62 = vsel %vm6370_vm9, %v6372_v30, %v6368_v25  ;;  %v6431_v25 = vand.u32 2147483648, %v6050_v31 }
0x10d6   : > { %9119 = vrcp.f32 %v6053_v20  ;;  %v6374_v57 = vmul.f32 %v12819_v49, %v6373_v62  ;;  %v6446_v10 = vand.u32 2147483648, %v6053_v20  ;;  %v6444_v54 = vand.u32 2147483647, %v6053_v20 }
0x10d7   : > { %7551 = vrot.lane.b32.xlu0 %v12726_v63, %s13756_s28  ;;  %6058 = vadd.xlane.f32.xlu1 %v6057_v61  ;;  %vm6440_vm13 = vweird.f32 %v6053_v20  ;;  %9121 = vpow2.f32 %v5975_v29  ;;  %v6915_v30 = vpop.f32.mrf.mxu2 }
0x10d8   : > { %8739 = vmatmul.msk.f32.vlgmr.msra.gmra.mxu3 %vm2821_vm11, %v6374_v57  ;;  %v6447_v56 = vor.u32 1.1754944e-38, %v6446_v10  ;;  %vm6445_vm4 = vcmp.eq.f32.partialorder %v6444_v54, 8.507059e+37 }
0x10dc   : > { %v9120_v35 = vpop.eup %9119  ;;  %v7354_v49 = vpop.permute.xlu1 %7353 }
0x10dd   : > { %v6436_v14 = vmul.f32 %v9120_v35, %v6053_v20  ;;  %vm6441_vm12 = vweird.f32 %v9120_v35  ;;  %8748 = vmatpush.msk.msra.mxu1 %vm2825_vm10, %v7354_v49  ;;  %v12906_v18 = vpop.eup %9121 }
0x10de   : > { %vm6442_vm14 = vmor %vm6440_vm13, %vm6441_vm12  ;;  %v6069_v34 = vsel %vm2044_vm2, %v12906_v18, 0.0  ;;  %vm6425_vm13 = vweird.f32 %v6050_v31 }
0x10df   : > { %v6437_v63 = vsub.f32 1.0, %v6436_v14  ;;  %7584 = vrot.lane.b32.xlu0 %v7583_v32, %s13756_s28  ;;  %v6432_v32 = vor.u32 1.1754944e-38, %v6431_v25 }
0x10e1   : > { %v6438_v40 = vmul.f32 %v9120_v35, %v6437_v63 }
0x10e3   : > { %v6439_v13 = vadd.f32 %v9120_v35, %v6438_v40  ;;  %v12933_v40 = vpop.f32.mrf.mxu2 }
0x10e5   : > { %v6443_v43 = vsel %vm6442_vm14, %v9120_v35, %v6439_v13 }
0x10e6   : > { %v6448_v41 = vsel %vm6445_vm4, %v6447_v56, %v6443_v43 }
0x10e7   : > { %v6449_v58 = vmul.f32 %v12825_v51, %v6448_v41  ;;  %7619 = vrot.lane.b32.xlu0 %v6849_v9, %s13840_s19  ;;  %v6056_v51 = vpop.xlane.xlu0 %6055  ;;  %v6429_v9 = vand.u32 2147483647, %v6050_v31 }
0x10e8   : > { %9123 = vrcp.f32 %v6056_v51  ;;  %v6461_v21 = vand.u32 2147483648, %v6056_v51  ;;  %vm6455_vm7 = vweird.f32 %v6056_v51  ;;  %v6459_v2 = vand.u32 2147483647, %v6056_v51 }
0x10e9   : > { %8749 = vmatmul.msk.f32.vlgmr.msra.gmra.mxu1 %vm2821_vm11, %v6449_v58  ;;  %9125 = vrcp.f32 %v6050_v31 }
0x10ea   : > { %v6462_v60 = vor.u32 1.1754944e-38, %v6461_v21  ;;  %vm6460_vm9 = vcmp.eq.f32.partialorder %v6459_v2, 8.507059e+37 }
0x10ee   : > { %v9124_v11 = vpop.eup %9123 }
0x10ef   : > { %7651 = vrot.lane.b32.xlu0 %v7113_v28, %s13841_s2  ;;  %v6451_v17 = vmul.f32 %v9124_v11, %v6056_v51  ;;  %v9126_v23 = vpop.eup %9125  ;;  %vm6456_vm6 = vweird.f32 %v9124_v11 }
0x10f0   : > { %v6421_v59 = vmul.f32 %v9126_v23, %v6050_v31  ;;  %vm6457_vm8 = vmor %vm6455_vm7, %vm6456_vm6  ;;  %vm6426_vm12 = vweird.f32 %v9126_v23 }
0x10f1   : > { %v6452_v24 = vsub.f32 1.0, %v6451_v17  ;;  %vm6427_vm14 = vmor %vm6425_vm13, %vm6426_vm12 }
0x10f3   : > { %v6453_v5 = vmul.f32 %v9124_v11, %v6452_v24 }
0x10f4   : > { %6070 = vadd.xlane.f32.xlu2 %v6069_v34  ;;  %v7453_v35 = vpop.permute.xlu0 %7452 }
0x10f5   : > { %v6454_v48 = vadd.f32 %v9124_v11, %v6453_v5 }
0x10f7   : > { %v6458_v20 = vsel %vm6457_vm8, %v9124_v11, %v6454_v48 }
0x10f8   : > { %v6463_v6 = vsel %vm6460_vm9, %v6462_v60, %v6458_v20  ;;  %v12953_v60 = vpop.f32.mrf.mxu3 }
0x10f9   : > { %v6464_v62 = vmul.f32 %v12832_v42, %v6463_v6 }
0x1107   : > { %v5876_v16 = vpop.xlane.xlu1 %5875 }
0x1108   : > { %v5912_v7 = vsub.f32 %v12848_v45, %v5876_v16  ;;  %v6422_v45 = vsub.f32 1.0, %v6421_v59  ;;  %v12946_v59 = vpop.f32.mrf.mxu0 }
0x110a   : > { %v5973_v37 = vmul.f32 1.442695, %v5912_v7  ;;  %v6423_v33 = vmul.f32 %v9126_v23, %v6422_v45 }
0x110c   : > { %7621 = vrot.lane.b32.xlu2 %v6882_v12, %s13840_s19  ;;  %9127 = vpow2.f32 %v5973_v37  ;;  %v6424_v19 = vadd.f32 %v9126_v23, %v6423_v33 }
0x110d   : > { %9129 = vpow2.f32 %v5977_v47 }
0x110e   : > { %v6428_v61 = vsel %vm6427_vm14, %v9126_v23, %v6424_v19 }
0x1112   : > { %v12920_v46 = vpop.eup %9127 }
0x1113   : > { %v6066_v8 = vsel %vm2044_vm2, %v12920_v46, 0.0  ;;  %v12926_v53 = vpop.eup %9129 }
0x1114   : > { %6067 = vadd.xlane.f32.xlu1 %v6066_v8  ;;  %v6072_v36 = vsel %vm2044_vm2, %v12926_v53, 0.0  ;;  %vm6430_vm2 = vcmp.eq.f32.partialorder %v6429_v9, 8.507059e+37  ;;  %v12957_v9 = vpop.f32.mrf.mxu3 }
0x1115   : > { %v6433_v63 = vsel %vm6430_vm2, %v6432_v32, %v6428_v61 }
0x1116   : > { %v6434_v54 = vmul.f32 %v12788_v52, %v6433_v63 }
0x111c   : > { %6073 = vadd.xlane.f32.xlu1 %v6072_v36  ;;  %v6948_v61 = vpop.f32.mrf.mxu3 }
0x111f   : > { %v7387_v14 = vpop.permute.xlu1 %7386 }
0x1120   : > { %8750 = vmatpush.msk.msra.mxu0 %vm2825_vm10, %v7387_v14 }
0x1121   : > { %8751 = vmatmul.msk.f32.vlgmr.msra.gmra.mxu0 %vm2821_vm11, %v6464_v62 }
0x1126   : > { %v6062_v57 = vpop.xlane.xlu2 %6061 }
0x1127   : > { %9131 = vrcp.f32 %v6062_v57  ;;  %v6491_v56 = vand.u32 2147483648, %v6062_v57  ;;  %v6489_v29 = vand.u32 2147483647, %v6062_v57  ;;  %vm6485_vm6 = vweird.f32 %v6062_v57 }
0x1129   : > { %v6492_v52 = vor.u32 1.1754944e-38, %v6491_v56  ;;  %vm6490_vm8 = vcmp.eq.f32.partialorder %v6489_v29, 8.507059e+37 }
0x112d   : > { %v9132_v10 = vpop.eup %9131 }
0x112e   : > { %v6481_v22 = vmul.f32 %v9132_v10, %v6062_v57  ;;  %v7321_v13 = vpop.permute.xlu2 %7320  ;;  %v6065_v42 = vpop.xlane.xlu0 %6064  ;;  %vm6486_vm4 = vweird.f32 %v9132_v10 }
0x112f   : > { %9133 = vrcp.f32 %v6065_v42  ;;  %8746 = vmatpush.msk.msrb.mxu3 %vm2825_vm10, %v7321_v13  ;;  %vm6487_vm7 = vmor %vm6485_vm6, %vm6486_vm4  ;;  %v6506_v16 = vand.u32 2147483648, %v6065_v42  ;;  %v6504_v17 = vand.u32 2147483647, %v6065_v42  ;;  %vm6500_vm12 = vweird.f32 %v6065_v42 }
0x1130   : > { %v6482_v49 = vsub.f32 1.0, %v6481_v22  ;;  %8747 = vmatmul.msk.f32.vlgmr.msrb.gmra.mxu3 %vm2821_vm11, %v6434_v54 }
0x1131   : > { %8754 = vmatpush.msk.msra.mxu3 %vm2825_vm10, %v7453_v35  ;;  %v6507_v37 = vor.u32 1.1754944e-38, %v6506_v16  ;;  %vm6505_vm14 = vcmp.eq.f32.partialorder %v6504_v17, 8.507059e+37 }
0x1132   : > { %v6483_v43 = vmul.f32 %v9132_v10, %v6482_v49 }
0x1134   : > { %v6484_v41 = vadd.f32 %v9132_v10, %v6483_v43 }
0x1135   : > { %v9134_v58 = vpop.eup %9133  ;;  %v7179_v28 = vpop.f32.mrf.mxu2  ;;  %7518 = vrot.lane.b32.xlu1 %v12707_v50, %s13756_s28 }
0x1136   : > { %v6488_v34 = vsel %vm6487_vm7, %v9132_v10, %v6484_v41  ;;  %v6496_v31 = vmul.f32 %v9134_v58, %v6065_v42  ;;  %7655 = vrot.lane.b32.xlu0 %v7179_v28, %s13841_s2  ;;  %vm6501_vm9 = vweird.f32 %v9134_v58  ;;  %v7146_v50 = vpop.f32.mrf.mxu0 }
0x1137   : > { %v6493_v51 = vsel %vm6490_vm8, %v6492_v52, %v6488_v34  ;;  %vm6502_vm13 = vmor %vm6500_vm12, %vm6501_vm9 }
0x1138   : > { %v6494_v12 = vmul.f32 %v12859_v26, %v6493_v51  ;;  %v6497_v11 = vsub.f32 1.0, %v6496_v31 }
0x113a   : > { %v6498_v7 = vmul.f32 %v9134_v58, %v6497_v11  ;;  %8755 = vmatmul.msk.f32.vlgmr.msra.gmra.mxu3 %vm2821_vm11, %v6494_v12 }
0x113c   : > { %v6499_v1 = vadd.f32 %v9134_v58, %v6498_v7 }
0x113d   : > { %7623 = vrot.lane.b32.xlu1 %v6915_v30, %s13840_s19 }
0x113e   : > { %v6503_v24 = vsel %vm6502_vm13, %v9134_v58, %v6499_v1  ;;  %v7278_v34 = vpop.f32.mrf.mxu0 }
0x113f   : > { %v6508_v23 = vsel %vm6505_vm14, %v6507_v37, %v6503_v24 }
0x1140   : > { %v6509_v47 = vmul.f32 %v12869_v39, %v6508_v23 }
0x1141   : > { %v7486_v26 = vpop.permute.xlu0 %7485 }
0x1142   : > { %8756 = vmatpush.msk.msrb.mxu1 %vm2825_vm10, %v7486_v26 }
0x1143   : > { %8757 = vmatmul.msk.f32.vlgmr.msrb.gmra.mxu1 %vm2821_vm11, %v6509_v47 }
0x1145   : > { %7653 = vrot.lane.b32.xlu1 %v7146_v50, %s13841_s2 }
0x1147   : > { %v7245_v36 = vpop.f32.mrf.mxu1 }
0x1149   : > { %v7552_v5 = vpop.permute.xlu0 %7551 }
0x114a   : > { %8760 = vmatpush.msk.msra.mxu2 %vm2825_vm10, %v7552_v5  ;;  %v6059_v45 = vpop.xlane.xlu1 %6058 }
0x114b   : > { %9135 = vrcp.f32 %v6059_v45  ;;  %v6476_v2 = vand.u32 2147483648, %v6059_v45  ;;  %v6474_v20 = vand.u32 2147483647, %v6059_v45  ;;  %vm6470_vm4 = vweird.f32 %v6059_v45 }
0x114d   : > { %v6477_v19 = vor.u32 1.1754944e-38, %v6476_v2  ;;  %vm6475_vm7 = vcmp.eq.f32.partialorder %v6474_v20, 8.507059e+37 }
0x1151   : > { %v7585_v8 = vpop.permute.xlu0 %7584  ;;  %v9136_v39 = vpop.eup %9135 }
0x1152   : > { %8762 = vmatpush.msk.msrb.mxu3 %vm2825_vm10, %v7585_v8  ;;  %v6466_v48 = vmul.f32 %v9136_v39, %v6059_v45  ;;  %vm6471_vm2 = vweird.f32 %v9136_v39 }
0x1153   : > { %vm6472_vm6 = vmor %vm6470_vm4, %vm6471_vm2 }
0x1154   : > { %v6467_v21 = vsub.f32 1.0, %v6466_v48 }
0x1156   : > { %v6468_v33 = vmul.f32 %v9136_v39, %v6467_v21 }
0x1158   : > { %v6469_v6 = vadd.f32 %v9136_v39, %v6468_v33 }
0x115a   : > { %v6473_v30 = vsel %vm6472_vm6, %v9136_v39, %v6469_v6 }
0x115b   : > { %v6478_v25 = vsel %vm6475_vm7, %v6477_v19, %v6473_v30 }
0x115c   : > { %v6479_v35 = vmul.f32 %v12890_v3, %v6478_v25 }
0x115e   : > { %8753 = vmatmul.msk.f32.vlgmr.msrb.gmra.mxu2 %vm2821_vm11, %v6479_v35 }
0x1166   : > { %v7377_v62 = vpop.f32.mrf.mxu1 }
0x1167   : > { %v6071_v57 = vpop.xlane.xlu2 %6070  ;;  %7683 = vrot.lane.b32.xlu1 %v7377_v62, %s13842_s1 }
0x1168   : > { %9137 = vrcp.f32 %v6071_v57  ;;  %v6536_v10 = vand.u32 2147483648, %v6071_v57  ;;  %v6534_v22 = vand.u32 2147483647, %v6071_v57  ;;  %vm6530_vm9 = vweird.f32 %v6071_v57 }
0x116a   : > { %v6537_v13 = vor.u32 1.1754944e-38, %v6536_v10  ;;  %vm6535_vm13 = vcmp.eq.f32.partialorder %v6534_v22, 8.507059e+37 }
0x116e   : > { %v9138_v14 = vpop.eup %9137 }
0x116f   : > { %v6526_v32 = vmul.f32 %v9138_v14, %v6071_v57  ;;  %7625 = vrot.lane.b32.xlu1 %v6948_v61, %s13840_s19  ;;  %vm6531_vm8 = vweird.f32 %v9138_v14  ;;  %v7622_v61 = vpop.permute.xlu2 %7621 }
0x1170   : > { %vm6532_vm12 = vmor %vm6530_vm9, %vm6531_vm8 }
0x1171   : > { %v6527_v63 = vsub.f32 1.0, %v6526_v32  ;;  %v7708_v32 = vsel %vm580_vm0, %v12910_v38, %v7622_v61  ;;  %v8765_v38 = vld [vmem:[%s13260_s5 + $0x28] sm:$0xff] }
0x1173   : > { %v6528_v54 = vmul.f32 %v9138_v14, %v6527_v63 }
0x1175   : > { %v6529_v3 = vadd.f32 %v9138_v14, %v6528_v54 }
0x1177   : > { %v6533_v42 = vsel %vm6532_vm12, %v9138_v14, %v6529_v3  ;;  %7659 = vrot.lane.b32.xlu1 %v7245_v36, %s13841_s2 }
0x1178   : > { %v6538_v49 = vsel %vm6535_vm13, %v6537_v13, %v6533_v42  ;;  %v8767_v13 = vld [vmem:[%s13260_s5 + $0x38] sm:$0xff]  ;;  %v8766_v42 = vld [vmem:[%s13260_s5 + $0x30] sm:$0xff] }
0x1179   : > { %v6539_v56 = vmul.f32 %v12906_v18, %v6538_v49  ;;  %7817 = vmatpush.msra.mxu1 %v8767_v13  ;;  %v8764_v49 = vld [vmem:[%s13260_s5 + $0x20] sm:$0xff] }
0x117b   : > { %8761 = vmatmul.msk.f32.vlgmr.msra.gmra.mxu2 %vm2821_vm11, %v6539_v56  ;;  %7818 = vmatpush.msra.mxu1 %v8766_v42 }
0x117d   : > { %7819 = vmatpush.msra.mxu1 %v8765_v38 }
0x117f   : > { %7820 = vmatpush.msra.mxu1 %v8764_v49 }
0x1187   : > { %v6068_v43 = vpop.xlane.xlu1 %6067 }
0x1188   : > { %9139 = vrcp.f32 %v6068_v43  ;;  %v6521_v1 = vand.u32 2147483648, %v6068_v43  ;;  %vm6515_vm7 = vweird.f32 %v6068_v43  ;;  %v6519_v23 = vand.u32 2147483647, %v6068_v43 }
0x118a   : > { %v6522_v8 = vor.u32 1.1754944e-38, %v6521_v1  ;;  %vm6520_vm12 = vcmp.eq.f32.partialorder %v6519_v23, 8.507059e+37 }
0x118e   : > { %v9140_v29 = vpop.eup %9139 }
0x118f   : > { %v6074_v41 = vpop.xlane.xlu1 %6073  ;;  %v6511_v58 = vmul.f32 %v9140_v29, %v6068_v43  ;;  %vm6516_vm2 = vweird.f32 %v9140_v29 }
0x1190   : > { %9141 = vrcp.f32 %v6074_v41  ;;  %v6551_v11 = vand.u32 2147483648, %v6074_v41  ;;  %v6549_v7 = vand.u32 2147483647, %v6074_v41  ;;  %vm6545_vm4 = vweird.f32 %v6074_v41  ;;  %vm6517_vm9 = vmor %vm6515_vm7, %vm6516_vm2 }
0x1191   : > { %v6512_v52 = vsub.f32 1.0, %v6511_v58 }
0x1192   : > { %v6552_v37 = vor.u32 1.1754944e-38, %v6551_v11  ;;  %vm6550_vm8 = vcmp.eq.f32.partialorder %v6549_v7, 8.507059e+37 }
0x1193   : > { %v6513_v51 = vmul.f32 %v9140_v29, %v6512_v52 }
0x1195   : > { %v6514_v17 = vadd.f32 %v9140_v29, %v6513_v51 }
0x1196   : > { %v9142_v28 = vpop.eup %9141 }
0x1197   : > { %v6541_v31 = vmul.f32 %v9142_v28, %v6074_v41  ;;  %vm6546_vm14 = vweird.f32 %v9142_v28  ;;  %v6518_v5 = vsel %vm6517_vm9, %v9140_v29, %v6514_v17 }
0x1198   : > { %vm6547_vm6 = vmor %vm6545_vm4, %vm6546_vm14  ;;  %v6523_v45 = vsel %vm6520_vm12, %v6522_v8, %v6518_v5 }
0x1199   : > { %v6542_v12 = vsub.f32 1.0, %v6541_v31  ;;  %v6524_v39 = vmul.f32 %v12920_v46, %v6523_v45 }
0x119b   : > { %v6543_v16 = vmul.f32 %v9142_v28, %v6542_v12 }
0x119d   : > { %v6544_v18 = vadd.f32 %v9142_v28, %v6543_v16 }
0x119e   : > { %v7410_v24 = vpop.f32.mrf.mxu0 }
0x119f   : > { %v6548_v47 = vsel %vm6547_vm6, %v9142_v28, %v6544_v18  ;;  %7685 = vrot.lane.b32.xlu0 %v7410_v24, %s13842_s1 }
0x11a0   : > { %v6553_v26 = vsel %vm6550_vm8, %v6552_v37, %v6548_v47  ;;  %vm8239_vm8 = vcmask 256000  }
0x11a1   : > { %v6554_v50 = vmul.f32 %v12926_v53, %v6553_v26  ;;  %v7080_v53 = vpop.f32.mrf.mxu3 }
0x11a3   : > { %8763 = vmatmul.msk.f32.vlgmr.msrb.gmra.mxu3 %vm2821_vm11, %v6554_v50 }
0x11a7   : > { %7627 = vrot.lane.b32.xlu0 %v12900_v44, %s13840_s19  ;;  %v7519_v48 = vpop.permute.xlu1 %7518  ;;  %v7620_v44 = vpop.permute.xlu0 %7619 }
0x11a8   : > { %8758 = vmatpush.msk.msrb.mxu0 %vm2825_vm10, %v7519_v48 }
0x11a9   : > { %8759 = vmatmul.msk.f32.vlgmr.msrb.gmra.mxu0 %vm2821_vm11, %v6524_v39  ;;  %v7212_v2 = vpop.f32.mrf.mxu3 }
0x11af   : > { %7629 = vrot.lane.b32.xlu0 %v12946_v59, %s13840_s19  ;;  %v7624_v46 = vpop.permute.xlu1 %7623  ;;  %v7652_v36 = vpop.permute.xlu0 %7651  ;;  %v7707_v59 = vsel %vm580_vm0, %v12878_v15, %v7620_v44 }
0x11b0   : > { %v7715_v6 = vsel %vm3975_vm3, %v7707_v59, %v7652_v36  ;;  %v7709_v41 = vsel %vm580_vm0, %v12918_v4, %v7624_v46 }
0x11b3   : > { %v7344_v33 = vpop.f32.mrf.mxu3 }
0x11b7   : > { %7661 = vrot.lane.b32.xlu0 %v7278_v34, %s13841_s2  ;;  %v7654_v20 = vpop.permute.xlu1 %7653  ;;  %v7656_v14 = vpop.permute.xlu0 %7655 }
0x11b8   : > { %v7716_v63 = vsel %vm3975_vm3, %v7708_v32, %v7654_v20  ;;  %v7717_v28 = vsel %vm3975_vm3, %v7709_v41, %v7656_v14  ;;  %v8865_v14 = vld [vmem:[%s13261_s6 + $0x1] ss:$0 sm:$0xff] }
0x11bd   : > { %v7476_v57 = vpop.f32.mrf.mxu3 }
0x11bf   : > { %7633 = vrot.lane.b32.xlu0 %v7080_v53, %s13840_s19 }
0x11c0   : > { %v7509_v21 = vpop.f32.mrf.mxu1 }
0x11c1   : > { %7691 = vrot.lane.b32.xlu1 %v7509_v21, %s13842_s1 }
0x11c9   : > { %7631 = vrot.lane.b32.xlu1 %v12933_v40, %s13840_s19  ;;  %v7311_v40 = vpop.f32.mrf.mxu2  ;;  %s9169_s19 = sshra.s32 %s8407_s16, 4  ;;  %s9170_s19 = int_to_ptr.hbm [resolvable:$true] %s9169_s19 }
0x11ca   : > { %s9171_s25 = scalar_lea.hbm %s9170_s19, 8  ;;  %p9176_p0 = scmp.lt.s32.totalorder %s9170_s19, %s13272_s17 }
0x11cb   : > { %p9172_p11 = scmp.ne.s32.totalorder %s9170_s19, %s9171_s25  ;;  %p9177_p1 = scmp.lt.s32.totalorder %s9175_s24, %s9171_s25 }
0x11cd   : > { %p9173_p12 = pnand %p9172_p11, %p9360_p5  ;;  %p9178_p2 = por %p9177_p1, %p9176_p0 }
0x11cf   : > { %p9174_p13 = pneg %p9173_p12 }
0x11d1   : > { %7665 = vrot.lane.b32.xlu1 %v7344_v33, %s13841_s2  ;;  %p9179_p3 = pnand %p9178_p2, %p9174_p13 }
0x11d9   : > { %v7684_v19 = vpop.permute.xlu1 %7683 }
0x11da   : > { %v7723_v30 = vsel %vm3984_vm5, %v7715_v6, %v7684_v19 }
0x11db   : > { %v7739_v25 = vrot.slane %v7723_v30, 1  ;;  %v7740_v35 = vrot.slane %v7723_v30, 2  ;;  %7765 = vst [vmem:[#allocation1] ss:$9 sm:$0xff] %v7723_v30 }
0x11dd   : > { %7767 = vst [vmem:[#allocation1 + $0x1] ss:$9 sm:$0xff] %v7739_v25 }
0x11de   : > { %7769 = vst [vmem:[#allocation1 + $0x2] ss:$9 sm:$0xff] %v7740_v35 }
0x11e1   : > { %v7443_v62 = vpop.f32.mrf.mxu2  ;;  %v7626_v43 = vpop.permute.xlu1 %7625 }
0x11e2   : > { %7687 = vrot.lane.b32.xlu2 %v7443_v62, %s13842_s1  ;;  %v7710_v24 = vsel %vm580_vm0, %v12953_v60, %v7626_v43 }
0x11e9   : > { %v7660_v58 = vpop.permute.xlu1 %7659 }
0x11ea   : > { %7657 = vrot.lane.b32.xlu2 %v7212_v2, %s13841_s2 }
0x11f2   : > { %7689 = vrot.lane.b32.xlu2 %v7476_v57, %s13842_s1 }
0x11fe   : > { %v7575_v15 = vpop.f32.mrf.mxu2 }
0x11ff   : > { %7695 = vrot.lane.b32.xlu0 %v7575_v15, %s13842_s1 }
0x1211   : > { %v7686_v10 = vpop.permute.xlu0 %7685 }
0x1212   : > { %v7724_v54 = vsel %vm3984_vm5, %v7716_v63, %v7686_v10 }
0x1213   : > { %v7741_v22 = vrot.slane %v7724_v54, 1  ;;  %v7742_v3 = vrot.slane %v7724_v54, 2  ;;  %7771 = vst [vmem:[#allocation1 + $0x3] ss:$9 sm:$0xff] %v7724_v54 }
0x1215   : > { %7773 = vst [vmem:[#allocation1 + $0x4] ss:$9 sm:$0xff] %v7741_v22 }
0x1216   : > { %7775 = vst [vmem:[#allocation1 + $0x5] ss:$9 sm:$0xff] %v7742_v3  ;;  %v13844_v3 = vld [vmem:[#allocation23_spill] sm:$0xff] }
0x1219   : > { %v7628_v31 = vpop.permute.xlu0 %7627 }
0x121a   : > { %v7711_v12 = vsel %vm580_vm0, %v12886_v0, %v7628_v31 }
0x121b   : > { %v7719_v16 = vsel %vm3975_vm3, %v7711_v12, %v7660_v58  ;;  %v13846_v58 = vld [vmem:[#allocation21_spill] sm:$0xff] }
0x1221   : > { %v7630_v50 = vpop.permute.xlu0 %7629 }
0x1222   : > { %v7712_v45 = vsel %vm580_vm0, %v12912_v55, %v7630_v50 }
0x1226   : > { %v7542_v56 = vpop.f32.mrf.mxu0  ;;  %v7608_v29 = vpop.f32.mrf.mxu3 }
0x1227   : > { %7693 = vrot.lane.b32.xlu2 %v7542_v56, %s13842_s1  ;;  %v13845_v56 = vld [vmem:[#allocation24_spill] sm:$0xff] }
0x1229   : > { %v7662_v8 = vpop.permute.xlu0 %7661 }
0x122a   : > { %v7720_v39 = vsel %vm3975_vm3, %v7712_v45, %v7662_v8 }
0x122f   : > { %7663 = vrot.lane.b32.xlu2 %v7311_v40, %s13841_s2  ;;  %s558_s2 = sand.u32 1, %s9209_s27  }
0x1230   : > { %s8392_s28 = scalar_lea.sflag [#allocation4], %s558_s2 }
0x1231   : > { %v7634_v60 = vpop.permute.xlu0 %7633 }
0x1233   : > { %v7692_v11 = vpop.permute.xlu1 %7691 }
0x1234   : > { %v7727_v17 = vsel %vm3984_vm5, %v7719_v16, %v7692_v11 }
0x1235   : > { %v7747_v1 = vrot.slane %v7727_v17, 1  ;;  %v7748_v37 = vrot.slane %v7727_v17, 2 }
0x1237   : > { %7697 = vrot.lane.b32.xlu2 %v7608_v29, %s13842_s1  ;;  %s8482_s1 = sshll.u32 %s558_s2, 3 }
0x1238   : > { %s560_s22 = scalar_lea.vmem [#allocation3], %s8482_s1 }
0x1239   : > { %s8404_s23 = sshll.u32 %s560_s22, 4  ;;  %s8405_s23 = int_to_ptr.vmem [resolvable:$true] %s8404_s23 }
0x123b   : > { %v7632_v21 = vpop.permute.xlu1 %7631 }
0x123c   : > { %v7688_v52 = vpop.permute.xlu2 %7687  ;;  %v7713_v46 = vsel %vm580_vm0, %v12924_v27, %v7632_v21  ;;  %v7714_v27 = vsel %vm580_vm0, %v12957_v9, %v7634_v60  ;;  %v13843_v9 = vld [vmem:[#allocation22_spill] sm:$0xff]  ;;  %v8866_v21 = vld [vmem:[%s13262_s7 + $0x1] ss:$0 sm:$0xff] }
0x123d   : > { %v7725_v34 = vsel %vm3984_vm5, %v7717_v28, %v7688_v52 }
0x123e   : > { %v7743_v51 = vrot.slane %v7725_v34, 1  ;;  %7777 = vst [vmem:[#allocation1 + $0x6] ss:$9 sm:$0xff] %v7725_v34  ;;  %v7744_v4 = vrot.slane %v7725_v34, 2 }
0x1240   : > { %7779 = vst [vmem:[#allocation1 + $0x7] ss:$9 sm:$0xff] %v7743_v51 }
0x1243   : > { %v7666_v30 = vpop.permute.xlu1 %7665 }
0x1244   : > { %v7658_v7 = vpop.permute.xlu2 %7657  ;;  %v7722_v25 = vsel %vm3975_vm3, %v7714_v27, %v7666_v30 }
0x1245   : > { %v7718_v0 = vsel %vm3975_vm3, %v7710_v24, %v7658_v7  ;;  %v8777_v24 = vld [vmem:[%s13264_s9 + $0x38] sm:$0xff] }
0x1246   : > { %7947 = vmatpush.msra.mxu0 %v8777_v24  ;;  %v8869_v24 = vld [vmem:[%s13267_s12 + $0x1] ss:$0 sm:$0xff] }
0x1247   : > { %v7780_v18 = vld [vmem:[#allocation1] sm:$0xff] }
0x1248   : > { %8769 = vmatmul.msk.f32.vlgmr.msra.gmra.mxu1 %vm624_vm1, %v7780_v18  ;;  %7781 = vst [vmem:[#allocation1] ss:$9 sm:$0xff] %v7744_v4 }
0x1249   : > { %7785 = vst [vmem:[#allocation1 + $0x4] ss:$9 sm:$0xff] %v7727_v17 }
0x124a   : > { %7786 = vst [vmem:[#allocation1 + $0x5] ss:$9 sm:$0xff] %v7747_v1 }
0x124b   : > { %7787 = vst [vmem:[#allocation1 + $0x6] ss:$9 sm:$0xff] %v7748_v37 }
0x124c   : > { %v7690_v23 = vpop.permute.xlu2 %7689 }
0x124d   : > { %v7726_v47 = vsel %vm3984_vm5, %v7718_v0, %v7690_v23  ;;  %v8776_v0 = vld [vmem:[%s13264_s9 + $0x30] sm:$0xff]  ;;  %v8775_v23 = vld [vmem:[%s13264_s9 + $0x28] sm:$0xff] }
0x124e   : > { %v7745_v26 = vrot.slane %v7726_v47, 1  ;;  %v7746_v5 = vrot.slane %v7726_v47, 2  ;;  %7782 = vst [vmem:[#allocation1 + $0x1] ss:$9 sm:$0xff] %v7726_v47  ;;  %7948 = vmatpush.msra.mxu0 %v8776_v0  ;;  %v8774_v47 = vld [vmem:[%s13264_s9 + $0x20] sm:$0xff] }
0x1250   : > { %7783 = vst [vmem:[#allocation1 + $0x2] ss:$9 sm:$0xff] %v7745_v26  ;;  %7949 = vmatpush.msra.mxu0 %v8775_v23 }
0x1251   : > { %7784 = vst [vmem:[#allocation1 + $0x3] ss:$9 sm:$0xff] %v7746_v5 }
0x1252   : > { %7950 = vmatpush.msra.mxu0 %v8774_v47 }
0x1271   : > { %v7696_v33 = vpop.permute.xlu0 %7695 }
0x1281   : > { %v7694_v48 = vpop.permute.xlu2 %7693 }
0x1282   : > { %v7728_v53 = vsel %vm3984_vm5, %v7720_v39, %v7694_v48 }
0x1283   : > { %7788 = vst [vmem:[#allocation1 + $0x7] ss:$9 sm:$0xff] %v7728_v53  ;;  %v7749_v2 = vrot.slane %v7728_v53, 1  ;;  %v7750_v20 = vrot.slane %v7728_v53, 2 }
0x1289   : > { %v7664_v44 = vpop.permute.xlu2 %7663 }
0x128a   : > { %v7721_v36 = vsel %vm3975_vm3, %v7713_v46, %v7664_v44  ;;  %v7789_v59 = vld [vmem:[#allocation1] sm:$0xff] }
0x128b   : > { %v7729_v55 = vsel %vm3984_vm5, %v7721_v36, %v7696_v33  ;;  %8770 = vmatmul.msk.f32.gmra.mxu1 %vm624_vm1, %v7789_v59  ;;  %7790 = vst [vmem:[#allocation1] ss:$9 sm:$0xff] %v7749_v2  ;;  %v8867_v2 = vld [vmem:[%s13263_s8 + $0x1] ss:$0 sm:$0xff] }
0x128c   : > { %v7751_v6 = vrot.slane %v7729_v55, 1  ;;  %v7752_v19 = vrot.slane %v7729_v55, 2  ;;  %7791 = vst [vmem:[#allocation1 + $0x1] ss:$9 sm:$0xff] %v7750_v20 }
0x128d   : > { %7792 = vst [vmem:[#allocation1 + $0x2] ss:$9 sm:$0xff] %v7729_v55 }
0x128e   : > { %7793 = vst [vmem:[#allocation1 + $0x3] ss:$9 sm:$0xff] %v7751_v6 }
0x128f   : > { %7794 = vst [vmem:[#allocation1 + $0x4] ss:$9 sm:$0xff] %v7752_v19 }
0x1291   : > { %v7698_v35 = vpop.permute.xlu2 %7697 }
0x1292   : > { %v7730_v40 = vsel %vm3984_vm5, %v7722_v25, %v7698_v35  ;;  %v8789_v25 = vld [vmem:[%s13266_s11 + $0x78] sm:$0xff]  ;;  %v8788_v35 = vld [vmem:[%s13266_s11 + $0x70] sm:$0xff] }
0x1293   : > { %v7753_v62 = vrot.slane %v7730_v40, 1  ;;  %v7754_v57 = vrot.slane %v7730_v40, 2  ;;  %7795 = vst [vmem:[#allocation1 + $0x5] ss:$9 sm:$0xff] %v7730_v40  ;;  %7995 = vmatpush.msrb.mxu2 %v8789_v25 }
0x1295   : > { %7796 = vst [vmem:[#allocation1 + $0x6] ss:$9 sm:$0xff] %v7753_v62  ;;  %v8787_v62 = vld [vmem:[%s13266_s11 + $0x68] sm:$0xff]  ;;  %7996 = vmatpush.msrb.mxu2 %v8788_v35 }
0x1296   : > { %7797 = vst [vmem:[#allocation1 + $0x7] ss:$9 sm:$0xff] %v7754_v57 }
0x1297   : > { %7997 = vmatpush.msrb.mxu2 %v8787_v62 }
0x129d   : > { %v7798_v15 = vld [vmem:[#allocation1] sm:$0xff] }
0x129e   : > { %8771 = vmatmul.msk.f32.gmra.mxu1 %vm624_vm1, %v7798_v15 }
0x12c5   : > { %v7822_v61 = vpop.f32.mrf.mxu1 }
0x12c6   : > { %v7823_v32 = vadd.f32 %v8865_v14, %v7822_v61  ;;  %v8786_v61 = vld [vmem:[%s13266_s11 + $0x60] sm:$0xff] }
0x12c7   : > { %7998 = vmatpush.msrb.mxu2 %v8786_v61 }
0x12c8   : > { %v7831_v63 = vadd.f32 %v7823_v32, %v13843_v9 }
0x12ca   : > { %v7838_v10 = vsel %vm624_vm1, %v7831_v63, 0.0 }
0x12cb   : > { %7839 = vadd.xlane.f32.xlu1 %v7838_v10 }
0x1308   : > { %v7825_v54 = vpop.f32.mrf.mxu1 }
0x1309   : > { %v7826_v22 = vadd.f32 %v8865_v14, %v7825_v54 }
0x130b   : > { %v7832_v13 = vadd.f32 %v7826_v22, %v13844_v3 }
0x130d   : > { %v7841_v42 = vsel %vm624_vm1, %v7832_v13, 0.0 }
0x130e   : > { %7842 = vadd.xlane.f32.xlu0 %v7841_v42 }
0x131b   : > { %v7828_v38 = vpop.f32.mrf.mxu1 }
0x131c   : > { %v7829_v49 = vadd.f32 %v8865_v14, %v7828_v38 }
0x131e   : > { %v7833_v43 = vadd.f32 %v7829_v49, %v13845_v56 }
0x1320   : > { %v7844_v29 = vsel %vm624_vm1, %v7833_v43, 0.0 }
0x1321   : > { %7845 = vadd.xlane.f32.xlu2 %v7844_v29 }
0x133e   : > { %v7840_v41 = vpop.xlane.xlu1 %7839 }
0x133f   : > { %v7847_v52 = vmul.f32 %v7840_v41, %v13846_v58 }
0x1341   : > { %v7850_v28 = vsub.f32 %v7831_v63, %v7847_v52  ;;  %v8785_v63 = vld [vmem:[%s13266_s11 + $0x58] sm:$0xff] }
0x1342   : > { %7999 = vmatpush.msrb.mxu2 %v8785_v63 }
0x1343   : > { %v7853_v34 = vmul.f32 %v7850_v28, %v7850_v28 }
0x1345   : > { %v7856_v31 = vsel %vm624_vm1, %v7853_v34, 0.0  ;;  %v8783_v34 = vld [vmem:[%s13266_s11 + $0x48] sm:$0xff] }
0x1346   : > { %7857 = vadd.xlane.f32.xlu1 %v7856_v31  ;;  %v8782_v31 = vld [vmem:[%s13266_s11 + $0x40] sm:$0xff] }
0x1381   : > { %v7843_v51 = vpop.xlane.xlu0 %7842 }
0x1382   : > { %v7848_v12 = vmul.f32 %v7843_v51, %v13846_v58  ;;  %v8868_v51 = vld [vmem:[%s13265_s10 + $0x1] ss:$0 sm:$0xff] }
0x1384   : > { %v13046_v11 = vsub.f32 %v7832_v13, %v7848_v12 }
0x1386   : > { %v7854_v16 = vmul.f32 %v13046_v11, %v13046_v11 }
0x1388   : > { %v7859_v7 = vsel %vm624_vm1, %v7854_v16, 0.0 }
0x1389   : > { %7860 = vadd.xlane.f32.xlu0 %v7859_v7 }
0x1394   : > { %v7846_v17 = vpop.xlane.xlu2 %7845 }
0x1395   : > { %v7849_v4 = vmul.f32 %v7846_v17, %v13846_v58 }
0x1397   : > { %v13052_v18 = vsub.f32 %v7833_v43, %v7849_v4 }
0x1399   : > { %v7855_v1 = vmul.f32 %v13052_v18, %v13052_v18 }
0x139b   : > { %v7862_v37 = vsel %vm624_vm1, %v7855_v1, 0.0 }
0x139c   : > { %7863 = vadd.xlane.f32.xlu2 %v7862_v37 }
0x13b9   : > { %v7858_v26 = vpop.xlane.xlu1 %7857 }
0x13ba   : > { %v7865_v5 = vmul.f32 %v7858_v26, %v13846_v58 }
0x13bc   : > { %v7868_v50 = vadd.f32 1e-05, %v7865_v5 }
0x13be   : > { %9143 = vrsqrt.f32 %v7868_v50  ;;  %vm7877_vm11 = vweird.f32 %v7868_v50 }
0x13c4   : > { %v9144_v8 = vpop.eup %9143 }
0x13c5   : > { %v7872_v45 = vmul.f32 %v9144_v8, %v7868_v50  ;;  %vm7878_vm0 = vweird.f32 %v9144_v8 }
0x13c6   : > { %vm7879_vm3 = vmor %vm7877_vm11, %vm7878_vm0 }
0x13c7   : > { %v7873_v39 = vmul.f32 %v9144_v8, %v7872_v45 }
0x13c9   : > { %v7874_v48 = vmul.f32 0.5, %v7873_v39 }
0x13cb   : > { %v7875_v60 = vsub.f32 1.5, %v7874_v48 }
0x13cd   : > { %v7876_v53 = vmul.f32 %v9144_v8, %v7875_v60 }
0x13cf   : > { %v7880_v46 = vsel %vm7879_vm3, %v9144_v8, %v7876_v53 }
0x13d0   : > { %v7901_v44 = vmul.f32 %v7880_v46, %v7850_v28  ;;  %v8784_v28 = vld [vmem:[%s13266_s11 + $0x50] sm:$0xff] }
0x13d1   : > { %8000 = vmatpush.msrb.mxu2 %v8784_v28 }
0x13d2   : > { %v7907_v33 = vmul.f32 %v8866_v21, %v7901_v44 }
0x13d3   : > { %8001 = vmatpush.msrb.mxu2 %v8783_v34 }
0x13d4   : > { %v13076_v20 = vadd.f32 %v8867_v2, %v7907_v33 }
0x13d5   : > { %8002 = vmatpush.msrb.mxu2 %v8782_v31 }
0x13d6   : > { %8779 = vmatmul.msk.f32.vlgmr.msra.gmra.mxu0 %vm624_vm1, %v13076_v20 }
0x13fc   : > { %v7861_v36 = vpop.xlane.xlu0 %7860 }
0x13fd   : > { %v7866_v59 = vmul.f32 %v7861_v36, %v13846_v58 }
0x13ff   : > { %v7869_v55 = vadd.f32 1e-05, %v7866_v59 }
0x1401   : > { %9145 = vrsqrt.f32 %v7869_v55  ;;  %vm7887_vm13 = vweird.f32 %v7869_v55 }
0x1407   : > { %v9146_v6 = vpop.eup %9145 }
0x1408   : > { %v7882_v19 = vmul.f32 %v9146_v6, %v7869_v55  ;;  %vm7888_vm5 = vweird.f32 %v9146_v6 }
0x1409   : > { %vm7889_vm14 = vmor %vm7887_vm13, %vm7888_vm5  ;;  %vm8371_vm13 = vcmask 1042434  }
0x140a   : > { %v7883_v30 = vmul.f32 %v9146_v6, %v7882_v19 }
0x140c   : > { %v7884_v27 = vmul.f32 0.5, %v7883_v30 }
0x140e   : > { %v7885_v40 = vsub.f32 1.5, %v7884_v27 }
0x140f   : > { %v7864_v57 = vpop.xlane.xlu2 %7863 }
0x1410   : > { %v7886_v15 = vmul.f32 %v9146_v6, %v7885_v40  ;;  %v7867_v14 = vmul.f32 %v7864_v57, %v13846_v58 }
0x1412   : > { %v7890_v32 = vsel %vm7889_vm14, %v9146_v6, %v7886_v15  ;;  %v7870_v9 = vadd.f32 1e-05, %v7867_v14  ;;  %vm8374_vm14 = vcmask 1043459  }
0x1413   : > { %v7902_v10 = vmul.f32 %v7890_v32, %v13046_v11 }
0x1414   : > { %9147 = vrsqrt.f32 %v7870_v9  ;;  %vm7897_vm4 = vweird.f32 %v7870_v9 }
0x1415   : > { %v7908_v54 = vmul.f32 %v8866_v21, %v7902_v10  ;;  %v13141_v10 = vld [vmem:[%s13268_s13 + $0x1] ss:$0 sm:$0xff] }
0x1417   : > { %v7914_v22 = vadd.f32 %v8867_v2, %v7908_v54 }
0x1419   : > { %8780 = vmatmul.msk.f32.gmra.mxu0 %vm624_vm1, %v7914_v22 }
0x141a   : > { %v9148_v3 = vpop.eup %9147 }
0x141b   : > { %v7892_v13 = vmul.f32 %v9148_v3, %v7870_v9  ;;  %vm7898_vm2 = vweird.f32 %v9148_v3 }
0x141c   : > { %vm7899_vm6 = vmor %vm7897_vm4, %vm7898_vm2  ;;  %vm8377_vm2 = vcmask 1044484   ;;  %vm8380_vm4 = vcmask 1045509  }
0x141d   : > { %v7893_v42 = vmul.f32 %v9148_v3, %v7892_v13  ;;  %v13151_v13 = vld [vmem:[%s13270_s15] sm:$0x7] }
0x141f   : > { %v7894_v38 = vmul.f32 0.5, %v7893_v42 }
0x1421   : > { %v7895_v49 = vsub.f32 1.5, %v7894_v38  ;;  %v13155_v38 = vrot.slane %v13151_v13, 1 }
0x1423   : > { %v7896_v56 = vmul.f32 %v9148_v3, %v7895_v49  ;;  %v13158_v49 = vrot.slane %v13151_v13, 2 }
0x1425   : > { %v7900_v43 = vsel %vm7899_vm6, %v9148_v3, %v7896_v56  ;;  %vm8383_vm6 = vcmask 1046534  }
0x1426   : > { %v7903_v29 = vmul.f32 %v7900_v43, %v13052_v18 }
0x1428   : > { %v7909_v41 = vmul.f32 %v8866_v21, %v7903_v29 }
0x142a   : > { %v7915_v52 = vadd.f32 %v8867_v2, %v7909_v41 }
0x142c   : > { %8781 = vmatmul.msk.f32.gmra.mxu0 %vm624_vm1, %v7915_v52 }
0x1453   : > { %v7952_v12 = vpop.f32.mrf.mxu0 }
0x1454   : > { %v7953_v11 = vadd.f32 %v8868_v51, %v7952_v12 }
0x1456   : > { %v7961_v16 = vmax.f32 %v7953_v11, 0.0 }
0x1458   : > { %8791 = vmatmul.msk.f32.vlgmr.msrb.gmra.mxu2 %vm4239_vm15, %v7961_v16 }
0x1496   : > { %v7955_v7 = vpop.f32.mrf.mxu0 }
0x1497   : > { %v7956_v17 = vadd.f32 %v8868_v51, %v7955_v7 }
0x1499   : > { %v7962_v4 = vmax.f32 %v7956_v17, 0.0 }
0x149b   : > { %8792 = vmatmul.msk.f32.gmra.mxu2 %vm4239_vm15, %v7962_v4 }
0x14a9   : > { %v7958_v18 = vpop.f32.mrf.mxu0 }
0x14aa   : > { %v7959_v1 = vadd.f32 %v8868_v51, %v7958_v18 }
0x14ac   : > { %v7963_v37 = vmax.f32 %v7959_v1, 0.0 }
0x14ae   : > { %8793 = vmatmul.msk.f32.gmra.mxu2 %vm4239_vm15, %v7963_v37 }
0x14db   : > { %v8004_v0 = vpop.f32.mrf.mxu2 }
0x14dc   : > { %v8005_v23 = vadd.f32 %v8869_v24, %v8004_v0 }
0x14de   : > { %v8013_v47 = vadd.f32 %v8005_v23, %v13076_v20 }
0x14e0   : > { %v8020_v26 = vsel %vm624_vm1, %v8013_v47, 0.0 }
0x14e1   : > { %8021 = vadd.xlane.f32.xlu1 %v8020_v26 }
0x151e   : > { %v8007_v5 = vpop.f32.mrf.mxu2 }
0x151f   : > { %v8008_v50 = vadd.f32 %v8869_v24, %v8007_v5 }
0x1521   : > { %v8014_v8 = vadd.f32 %v8008_v50, %v7914_v22  ;;  %v13146_v22 = vld [vmem:[%s13269_s14 + $0x1] ss:$0 sm:$0xff] }
0x1523   : > { %v8023_v45 = vsel %vm624_vm1, %v8014_v8, 0.0 }
0x1524   : > { %8024 = vadd.xlane.f32.xlu0 %v8023_v45 }
0x1531   : > { %v8010_v39 = vpop.f32.mrf.mxu2 }
0x1532   : > { %v8011_v48 = vadd.f32 %v8869_v24, %v8010_v39 }
0x1534   : > { %v8015_v60 = vadd.f32 %v8011_v48, %v7915_v52 }
0x1536   : > { %v8026_v53 = vsel %vm624_vm1, %v8015_v60, 0.0 }
0x1537   : > { %8027 = vadd.xlane.f32.xlu2 %v8026_v53 }
0x1554   : > { %v8022_v21 = vpop.xlane.xlu1 %8021 }
0x1555   : > { %v8029_v46 = vmul.f32 %v8022_v21, %v13846_v58 }
0x1557   : > { %v8032_v2 = vsub.f32 %v8013_v47, %v8029_v46 }
0x1559   : > { %v8035_v44 = vmul.f32 %v8032_v2, %v8032_v2 }
0x155b   : > { %v8038_v33 = vsel %vm624_vm1, %v8035_v44, 0.0 }
0x155c   : > { %8039 = vadd.xlane.f32.xlu1 %v8038_v33 }
0x1597   : > { %v8025_v20 = vpop.xlane.xlu0 %8024 }
0x1598   : > { %v8030_v36 = vmul.f32 %v8025_v20, %v13846_v58 }
0x159a   : > { %v13126_v59 = vsub.f32 %v8014_v8, %v8030_v36 }
0x159c   : > { %v8036_v55 = vmul.f32 %v13126_v59, %v13126_v59 }
0x159e   : > { %v8041_v6 = vsel %vm624_vm1, %v8036_v55, 0.0 }
0x159f   : > { %8042 = vadd.xlane.f32.xlu0 %v8041_v6 }
0x15aa   : > { %v8028_v19 = vpop.xlane.xlu2 %8027 }
0x15ab   : > { %v8031_v30 = vmul.f32 %v8028_v19, %v13846_v58 }
0x15ad   : > { %v13132_v27 = vsub.f32 %v8015_v60, %v8031_v30 }
0x15af   : > { %v8037_v25 = vmul.f32 %v13132_v27, %v13132_v27 }
0x15b1   : > { %v8044_v35 = vsel %vm624_vm1, %v8037_v25, 0.0 }
0x15b2   : > { %8045 = vadd.xlane.f32.xlu2 %v8044_v35 }
0x15cf   : > { %v8040_v40 = vpop.xlane.xlu1 %8039 }
0x15d0   : > { %v8047_v62 = vmul.f32 %v8040_v40, %v13846_v58 }
0x15d2   : > { %v8050_v57 = vadd.f32 1e-05, %v8047_v62 }
0x15d4   : > { %9149 = vrsqrt.f32 %v8050_v57  ;;  %vm8059_vm7 = vweird.f32 %v8050_v57 }
0x15da   : > { %v9150_v15 = vpop.eup %9149 }
0x15db   : > { %v8054_v14 = vmul.f32 %v9150_v15, %v8050_v57  ;;  %vm8060_vm15 = vweird.f32 %v9150_v15 }
0x15dc   : > { %vm8061_vm1 = vmor %vm8059_vm7, %vm8060_vm15  ;;  %vm8386_vm15 = vcmask 1047559  }
0x15dd   : > { %v8055_v61 = vmul.f32 %v9150_v15, %v8054_v14 }
0x15df   : > { %v8056_v32 = vmul.f32 0.5, %v8055_v61 }
0x15e1   : > { %v8057_v9 = vsub.f32 1.5, %v8056_v32 }
0x15e3   : > { %v8058_v63 = vmul.f32 %v9150_v15, %v8057_v9 }
0x15e5   : > { %v8062_v54 = vsel %vm8061_vm1, %v9150_v15, %v8058_v63 }
0x15e6   : > { %v8083_v3 = vmul.f32 %v8062_v54, %v8032_v2 }
0x15e8   : > { %v8089_v42 = vmul.f32 %v13141_v10, %v8083_v3 }
0x15ea   : > { %v8095_v56 = vadd.f32 %v13146_v22, %v8089_v42 }
0x15ec   : > { %v8101_v43 = vrot.slane %v8095_v56, 1  ;;  %v8102_v29 = vrot.slane %v8095_v56, 2  ;;  %v8149_v41 = vmul.f32 %v13151_v13, %v8095_v56  ;;  %v8103_v34 = vrot.slane %v8095_v56, 3 }
0x15ed   : > { %v8104_v31 = vrot.slane %v8095_v56, 4  ;;  %v8105_v51 = vrot.slane %v8095_v56, 5  ;;  %v8106_v4 = vrot.slane %v8095_v56, 6  ;;  %v8107_v18 = vrot.slane %v8095_v56, 7 }
0x15ee   : > { %v8150_v52 = vmul.f32 %v13155_v38, %v8101_v43  ;;  %v8151_v28 = vmul.f32 %v13158_v49, %v8102_v29  ;;  %8197 = vst [vmem:[#allocation1] ss:$9 sm:$0xff] %v8149_v41  ;;  %v8152_v12 = vmul.f32 %v13151_v13, %v8103_v34 }
0x15ef   : > { %v8153_v11 = vmul.f32 %v13155_v38, %v8104_v31  ;;  %v8154_v7 = vmul.f32 %v13158_v49, %v8105_v51  ;;  %v8155_v1 = vmul.f32 %v13151_v13, %v8106_v4  ;;  %v8156_v37 = vmul.f32 %v13155_v38, %v8107_v18 }
0x15f0   : > { %8199 = vst [vmem:[#allocation1 + $0x1] ss:$9 sm:$0xff] %v8150_v52 }
0x15f1   : > { %8201 = vst [vmem:[#allocation1 + $0x2] ss:$9 sm:$0xff] %v8151_v28 }
0x15f8   : > { %v8202_v16 = vld [vmem:[#allocation1] sm:$0xff] }
0x15f9   : > { %v8240_v17 = vsel %vm8239_vm8, %v8202_v16, 0.0  ;;  %8203 = vst [vmem:[#allocation1] ss:$9 sm:$0xff] %v8152_v12 }
0x15fa   : > { %8241 = vadd.xlane.f32.xlu2 %v8240_v17  ;;  %8204 = vst [vmem:[#allocation1 + $0x1] ss:$9 sm:$0xff] %v8153_v11 }
0x15fb   : > { %8205 = vst [vmem:[#allocation1 + $0x2] ss:$9 sm:$0xff] %v8154_v7 }
0x1602   : > { %v8206_v24 = vld [vmem:[#allocation1] sm:$0xff] }
0x1603   : > { %v8243_v0 = vsel %vm8239_vm8, %v8206_v24, 0.0  ;;  %8207 = vst [vmem:[#allocation1] ss:$9 sm:$0xff] %v8155_v1 }
0x1604   : > { %8244 = vadd.xlane.f32.xlu1 %v8243_v0  ;;  %8208 = vst [vmem:[#allocation1 + $0x1] ss:$9 sm:$0xff] %v8156_v37 }
0x1612   : > { %v8043_v23 = vpop.xlane.xlu0 %8042 }
0x1613   : > { %v8048_v47 = vmul.f32 %v8043_v23, %v13846_v58 }
0x1615   : > { %v8051_v26 = vadd.f32 1e-05, %v8048_v47 }
0x1617   : > { %9151 = vrsqrt.f32 %v8051_v26  ;;  %vm8069_vm12 = vweird.f32 %v8051_v26 }
0x161d   : > { %v9152_v5 = vpop.eup %9151 }
0x161e   : > { %v8064_v50 = vmul.f32 %v9152_v5, %v8051_v26  ;;  %vm8070_vm9 = vweird.f32 %v9152_v5 }
0x161f   : > { %vm8071_vm0 = vmor %vm8069_vm12, %vm8070_vm9 }
0x1620   : > { %v8065_v8 = vmul.f32 %v9152_v5, %v8064_v50 }
0x1622   : > { %v8066_v45 = vmul.f32 0.5, %v8065_v8  ;;  %v9228_v8 = vmov 0  }
0x1623   : > { %8855 = vset.pattern.permute.xlu0 %v9228_v8  ;;  %8853 = vset.pattern.permute.xlu2 %v9228_v8 }
0x1624   : > { %v8067_v39 = vsub.f32 1.5, %v8066_v45  ;;  %8854 = vset.pattern.permute.xlu1 %v9228_v8 }
0x1625   : > { %v8046_v48 = vpop.xlane.xlu2 %8045 }
0x1626   : > { %v8068_v60 = vmul.f32 %v9152_v5, %v8067_v39  ;;  %v8049_v53 = vmul.f32 %v8046_v48, %v13846_v58 }
0x1628   : > { %v8072_v21 = vsel %vm8071_vm0, %v9152_v5, %v8068_v60  ;;  %v8052_v46 = vadd.f32 1e-05, %v8049_v53 }
0x1629   : > { %v8084_v2 = vmul.f32 %v8072_v21, %v13126_v59 }
0x162a   : > { %9153 = vrsqrt.f32 %v8052_v46  ;;  %vm8079_vm3 = vweird.f32 %v8052_v46 }
0x162b   : > { %v8090_v44 = vmul.f32 %v13141_v10, %v8084_v2 }
0x162d   : > { %v8096_v33 = vadd.f32 %v13146_v22, %v8090_v44 }
0x162f   : > { %v8157_v36 = vmul.f32 %v13158_v49, %v8096_v33  ;;  %v8108_v6 = vrot.slane %v8096_v33, 1  ;;  %v8109_v30 = vrot.slane %v8096_v33, 2  ;;  %v8110_v25 = vrot.slane %v8096_v33, 3 }
0x1630   : > { %v9154_v20 = vpop.eup %9153  ;;  %v8111_v32 = vrot.slane %v8096_v33, 4  ;;  %v8112_v63 = vrot.slane %v8096_v33, 5  ;;  %v8113_v54 = vrot.slane %v8096_v33, 6 }
0x1631   : > { %8209 = vst [vmem:[#allocation1 + $0x2] ss:$9 sm:$0xff] %v8157_v36  ;;  %v8074_v55 = vmul.f32 %v9154_v20, %v8052_v46  ;;  %v8158_v35 = vmul.f32 %v13151_v13, %v8108_v6  ;;  %vm8080_vm11 = vweird.f32 %v9154_v20  ;;  %v8159_v59 = vmul.f32 %v13155_v38, %v8109_v30 }
0x1632   : > { %v8160_v57 = vmul.f32 %v13158_v49, %v8110_v25  ;;  %vm8081_vm5 = vmor %vm8079_vm3, %vm8080_vm11  ;;  %v8161_v3 = vmul.f32 %v13151_v13, %v8111_v32  ;;  %v8162_v56 = vmul.f32 %v13155_v38, %v8112_v63  ;;  %v8163_v29 = vmul.f32 %v13158_v49, %v8113_v54 }
0x1633   : > { %v8075_v19 = vmul.f32 %v9154_v20, %v8074_v55 }
0x1635   : > { %v8076_v58 = vmul.f32 0.5, %v8075_v19 }
0x1637   : > { %v8077_v40 = vsub.f32 1.5, %v8076_v58 }
0x1638   : > { %v8210_v62 = vld [vmem:[#allocation1] sm:$0xff] }
0x1639   : > { %v8078_v15 = vmul.f32 %v9154_v20, %v8077_v40  ;;  %v8246_v14 = vsel %vm8239_vm8, %v8210_v62, 0.0  ;;  %8211 = vst [vmem:[#allocation1] ss:$9 sm:$0xff] %v8158_v35 }
0x163a   : > { %8247 = vadd.xlane.f32.xlu0 %v8246_v14  ;;  %8212 = vst [vmem:[#allocation1 + $0x1] ss:$9 sm:$0xff] %v8159_v59 }
0x163b   : > { %v8082_v61 = vsel %vm8081_vm5, %v9154_v20, %v8078_v15  ;;  %8213 = vst [vmem:[#allocation1 + $0x2] ss:$9 sm:$0xff] %v8160_v57  ;;  %v13203_v20 = vld [vmem:[#allocation2] ss:$0 sm:$0xff] }
0x163c   : > { %v8085_v9 = vmul.f32 %v8082_v61, %v13132_v27  ;;  %v8114_v27 = vrot.slane %v8096_v33, 7 }
0x163e   : > { %v8091_v42 = vmul.f32 %v13141_v10, %v8085_v9  ;;  %v8164_v34 = vmul.f32 %v13151_v13, %v8114_v27 }
0x1640   : > { %v8097_v41 = vadd.f32 %v13146_v22, %v8091_v42 }
0x1642   : > { %v8214_v43 = vld [vmem:[#allocation1] sm:$0xff]  ;;  %v8115_v28 = vrot.slane %v8097_v41, 1  ;;  %v8165_v31 = vmul.f32 %v13155_v38, %v8097_v41  ;;  %v8116_v22 = vrot.slane %v8097_v41, 2  ;;  %v8117_v11 = vrot.slane %v8097_v41, 3 }
0x1643   : > { %8215 = vst [vmem:[#allocation1] ss:$9 sm:$0xff] %v8161_v3  ;;  %v8249_v52 = vsel %vm8239_vm8, %v8214_v43, 0.0  ;;  %v8118_v16 = vrot.slane %v8097_v41, 4  ;;  %v8119_v37 = vrot.slane %v8097_v41, 5  ;;  %v8120_v24 = vrot.slane %v8097_v41, 6 }
0x1644   : > { %8216 = vst [vmem:[#allocation1 + $0x1] ss:$9 sm:$0xff] %v8162_v56  ;;  %8250 = vadd.xlane.f32.xlu1 %v8249_v52  ;;  %v8166_v51 = vmul.f32 %v13158_v49, %v8115_v28  ;;  %v8167_v7 = vmul.f32 %v13151_v13, %v8116_v22  ;;  %v8168_v17 = vmul.f32 %v13155_v38, %v8117_v11  ;;  %v8121_v0 = vrot.slane %v8097_v41, 7 }
0x1645   : > { %8217 = vst [vmem:[#allocation1 + $0x2] ss:$9 sm:$0xff] %v8163_v29  ;;  %v8169_v18 = vmul.f32 %v13158_v49, %v8118_v16  ;;  %v8170_v23 = vmul.f32 %v13151_v13, %v8119_v37  ;;  %v8171_v47 = vmul.f32 %v13155_v38, %v8120_v24 }
0x1646   : > { %v8172_v5 = vmul.f32 %v13158_v49, %v8121_v0 }
0x164c   : > { %v8218_v10 = vld [vmem:[#allocation1] sm:$0xff] }
0x164d   : > { %v8252_v12 = vsel %vm8239_vm8, %v8218_v10, 0.0  ;;  %8219 = vst [vmem:[#allocation1] ss:$9 sm:$0xff] %v8164_v34 }
0x164e   : > { %8253 = vadd.xlane.f32.xlu0 %v8252_v12  ;;  %8220 = vst [vmem:[#allocation1 + $0x1] ss:$9 sm:$0xff] %v8165_v31 }
0x164f   : > { %8221 = vst [vmem:[#allocation1 + $0x2] ss:$9 sm:$0xff] %v8166_v51 }
0x1656   : > { %v8222_v4 = vld [vmem:[#allocation1] sm:$0xff] }
0x1657   : > { %v8255_v1 = vsel %vm8239_vm8, %v8222_v4, 0.0  ;;  %8223 = vst [vmem:[#allocation1] ss:$9 sm:$0xff] %v8167_v7 }
0x1658   : > { %8256 = vadd.xlane.f32.xlu2 %v8255_v1  ;;  %8224 = vst [vmem:[#allocation1 + $0x1] ss:$9 sm:$0xff] %v8168_v17 }
0x1659   : > { %8225 = vst [vmem:[#allocation1 + $0x2] ss:$9 sm:$0xff] %v8169_v18 }
0x1660   : > { %v8226_v26 = vld [vmem:[#allocation1] sm:$0xff] }
0x1661   : > { %v8258_v50 = vsel %vm8239_vm8, %v8226_v26, 0.0  ;;  %8227 = vst [vmem:[#allocation1] ss:$9 sm:$0xff] %v8170_v23 }
0x1662   : > { %8259 = vadd.xlane.f32.xlu1 %v8258_v50  ;;  %8228 = vst [vmem:[#allocation1 + $0x1] ss:$9 sm:$0xff] %v8171_v47 }
0x1663   : > { %8229 = vst [vmem:[#allocation1 + $0x2] ss:$9 sm:$0xff] %v8172_v5 }
0x166a   : > { %v8230_v45 = vld [vmem:[#allocation1] sm:$0xff] }
0x166b   : > { %v8261_v39 = vsel %vm8239_vm8, %v8230_v45, 0.0 }
0x166c   : > { %8262 = vadd.xlane.f32.xlu0 %v8261_v39 }
0x166d   : > { %v8242_v13 = vpop.xlane.xlu2 %8241 }
0x166e   : > { %v8264_v38 = vsel %vm2825_vm10, %v8242_v13, 0.0 }
0x166f   : > { %v8265_v48 = vrot.slane %v8264_v38, 4 }
0x1671   : > { %v8266_v60 = vadd.f32 %v8265_v48, %v8264_v38 }
0x1673   : > { %v8267_v49 = vrot.slane %v8266_v60, 2 }
0x1675   : > { %v8268_v53 = vadd.f32 %v8267_v49, %v8266_v60 }
0x1677   : > { %v8269_v21 = vrot.slane %v8268_v53, 1  ;;  %v8245_v46 = vpop.xlane.xlu1 %8244 }
0x1678   : > { %v8271_v2 = vsel %vm2825_vm10, %v8245_v46, 0.0 }
0x1679   : > { %v8270_v44 = vadd.f32 %v8269_v21, %v8268_v53  ;;  %v8272_v33 = vrot.slane %v8271_v2, 4 }
0x167b   : > { %v8273_v36 = vadd.f32 %v8272_v33, %v8271_v2  ;;  %v8324_v6 = vadd.f32 %v13203_v20, %v8270_v44 }
0x167d   : > { %v8274_v55 = vrot.slane %v8273_v36, 2 }
0x167f   : > { %v8275_v19 = vadd.f32 %v8274_v55, %v8273_v36 }
0x1680   : > { %8337 = vperm.xlu0 %8855, %v8324_v6  }
0x1681   : > { %v8276_v30 = vrot.slane %v8275_v19, 1 }
0x1683   : > { %v8277_v25 = vadd.f32 %v8276_v30, %v8275_v19 }
0x1685   : > { %v8325_v58 = vadd.f32 %v13203_v20, %v8277_v25 }
0x1687   : > { %8341 = vperm.xlu2 %8853, %v8325_v58  }
0x16ad   : > { %v8248_v35 = vpop.xlane.xlu0 %8247 }
0x16ae   : > { %v8278_v40 = vsel %vm2825_vm10, %v8248_v35, 0.0  ;;  %v8332_v35 = vlaneseq }
0x16af   : > { %v8279_v59 = vrot.slane %v8278_v40, 4 }
0x16b1   : > { %v8280_v62 = vadd.f32 %v8279_v59, %v8278_v40 }
0x16b3   : > { %v8281_v57 = vrot.slane %v8280_v62, 2 }
0x16b5   : > { %v8282_v15 = vadd.f32 %v8281_v57, %v8280_v62  ;;  %v8333_v57 = vand.u32 127, %v8332_v35 }
0x16b7   : > { %v8283_v14 = vrot.slane %v8282_v15, 1  ;;  %v8251_v32 = vpop.xlane.xlu1 %8250  ;;  %vm8334_vm7 = vcmp.eq.s32.totalorder %v8333_v57, 0 }
0x16b8   : > { %v8285_v9 = vsel %vm2825_vm10, %v8251_v32, 0.0 }
0x16b9   : > { %v8284_v61 = vadd.f32 %v8283_v14, %v8282_v15  ;;  %v8286_v63 = vrot.slane %v8285_v9, 4 }
0x16bb   : > { %v8326_v54 = vadd.f32 %v13203_v20, %v8284_v61  ;;  %v8287_v3 = vadd.f32 %v8286_v63, %v8285_v9 }
0x16bd   : > { %8345 = vperm.xlu1 %8854, %v8326_v54   ;;  %v8288_v42 = vrot.slane %v8287_v3, 2 }
0x16bf   : > { %v8289_v56 = vadd.f32 %v8288_v42, %v8287_v3 }
0x16c1   : > { %v8254_v43 = vpop.xlane.xlu0 %8253  ;;  %v8290_v41 = vrot.slane %v8289_v56, 1 }
0x16c2   : > { %v8292_v29 = vsel %vm2825_vm10, %v8254_v43, 0.0 }
0x16c3   : > { %v8293_v52 = vrot.slane %v8292_v29, 4  ;;  %v8291_v27 = vadd.f32 %v8290_v41, %v8289_v56 }
0x16c5   : > { %v8294_v28 = vadd.f32 %v8293_v52, %v8292_v29  ;;  %v8327_v31 = vadd.f32 %v13203_v20, %v8291_v27 }
0x16c7   : > { %v8295_v34 = vrot.slane %v8294_v28, 2  ;;  %8349 = vperm.xlu2 %8853, %v8327_v31  }
0x16c9   : > { %v8296_v10 = vadd.f32 %v8295_v34, %v8294_v28 }
0x16cb   : > { %v8297_v51 = vrot.slane %v8296_v10, 1  ;;  %v8257_v12 = vpop.xlane.xlu2 %8256 }
0x16cc   : > { %v8299_v22 = vsel %vm2825_vm10, %v8257_v12, 0.0 }
0x16cd   : > { %v8298_v11 = vadd.f32 %v8297_v51, %v8296_v10  ;;  %v8300_v16 = vrot.slane %v8299_v22, 4 }
0x16cf   : > { %v8301_v7 = vadd.f32 %v8300_v16, %v8299_v22  ;;  %v8328_v17 = vadd.f32 %v13203_v20, %v8298_v11 }
0x16d1   : > { %v8302_v4 = vrot.slane %v8301_v7, 2  ;;  %8353 = vperm.xlu1 %8854, %v8328_v17  }
0x16d3   : > { %v8303_v18 = vadd.f32 %v8302_v4, %v8301_v7 }
0x16d5   : > { %v8304_v1 = vrot.slane %v8303_v18, 1  ;;  %v8260_v37 = vpop.xlane.xlu1 %8259 }
0x16d6   : > { %v8306_v24 = vsel %vm2825_vm10, %v8260_v37, 0.0 }
0x16d7   : > { %v8305_v0 = vadd.f32 %v8304_v1, %v8303_v18  ;;  %v8307_v23 = vrot.slane %v8306_v24, 4 }
0x16d9   : > { %v8308_v47 = vadd.f32 %v8307_v23, %v8306_v24  ;;  %v8329_v26 = vadd.f32 %v13203_v20, %v8305_v0 }
0x16db   : > { %v8309_v5 = vrot.slane %v8308_v47, 2  ;;  %8357 = vperm.xlu2 %8853, %v8329_v26  }
0x16dd   : > { %v8310_v50 = vadd.f32 %v8309_v5, %v8308_v47 }
0x16df   : > { %v8311_v8 = vrot.slane %v8310_v50, 1  ;;  %v8263_v45 = vpop.xlane.xlu0 %8262 }
0x16e0   : > { %v8313_v39 = vsel %vm2825_vm10, %v8263_v45, 0.0  ;;  %vm8368_vm10 = vcmask 1041409  }
0x16e1   : > { %v8312_v13 = vadd.f32 %v8311_v8, %v8310_v50  ;;  %v8314_v38 = vrot.slane %v8313_v39, 4  ;;  %v8342_v44 = vpop.permute.xlu2 %8341 }
0x16e2   : > { %v8367_v30 = vrot.slane %v8342_v44, 7 }
0x16e3   : > { %v8315_v48 = vadd.f32 %v8314_v38, %v8313_v39  ;;  %v8330_v60 = vadd.f32 %v13203_v20, %v8312_v13 }
0x16e5   : > { %v8316_v49 = vrot.slane %v8315_v48, 2  ;;  %8361 = vperm.xlu1 %8854, %v8330_v60  }
0x16e7   : > { %v8317_v53 = vadd.f32 %v8316_v49, %v8315_v48 }
0x16e9   : > { %v8318_v21 = vrot.slane %v8317_v53, 1 }
0x16eb   : > { %v8319_v46 = vadd.f32 %v8318_v21, %v8317_v53 }
0x16ed   : > { %v8331_v2 = vadd.f32 %v13203_v20, %v8319_v46 }
0x16ef   : > { %8365 = vperm.xlu2 %8853, %v8331_v2  }
0x16f2   : > { %v8338_v55 = vpop.permute.xlu0 %8337 }
0x16f3   : > { %v8369_v58 = vsel %vm8368_vm10, %v8367_v30, %v8338_v55 }
0x1721   : > { %v8350_v33 = vpop.permute.xlu2 %8349 }
0x1722   : > { %v8373_v20 = vrot.slane %v8350_v33, 5 }
0x172f   : > { %v8346_v36 = vpop.permute.xlu1 %8345 }
0x1730   : > { %v8370_v19 = vrot.slane %v8346_v36, 6 }
0x1732   : > { %v8372_v40 = vsel %vm8371_vm13, %v8370_v19, %v8369_v58 }
0x1733   : > { %v8375_v62 = vsel %vm8374_vm14, %v8373_v20, %v8372_v40 }
0x1735   : > { %v8358_v6 = vpop.permute.xlu2 %8357 }
0x1736   : > { %v8379_v61 = vrot.slane %v8358_v6, 3 }
0x1743   : > { %v8354_v25 = vpop.permute.xlu1 %8353 }
0x1744   : > { %v8376_v59 = vrot.slane %v8354_v25, 4 }
0x1746   : > { %v8378_v15 = vsel %vm8377_vm2, %v8376_v59, %v8375_v62 }
0x1747   : > { %v8381_v54 = vsel %vm8380_vm4, %v8379_v61, %v8378_v15 }
0x1749   : > { %v8366_v14 = vpop.permute.xlu2 %8365 }
0x174a   : > { %v8385_v63 = vrot.slane %v8366_v14, 1 }
0x1757   : > { %v8362_v32 = vpop.permute.xlu1 %8361 }
0x1758   : > { %v8382_v9 = vrot.slane %v8362_v32, 2 }
0x175a   : > { %v8384_v3 = vsel %vm8383_vm6, %v8382_v9, %v8381_v54 }
0x175b   : > { %v8387_v42 = vsel %vm8386_vm15, %v8385_v63, %v8384_v3 }
0x175c   : > { %v8389_v56 = vsel %vm8334_vm7, %v8387_v42, 0.0 }
0x175d   : > { %8390 = vst [vmem:[%s560_s22] sm:$0xff] %v8389_v56 }
0x175e   : > { %9182 = shalt.err (!%p9179_p3)
}
0x175f   : > { %8804 = dma.vmem_to_hbm [thread:$0]  (%p9360_p5), %s8405_s23, 128, %s8407_s16, %s8392_s28  }
0x1760 PF: > { %p8810_p4 = scmp.ge.s32.totalorder %s9217_s29, 2  ;;  %s8418_s2 = sand.u32 1, %s9205_s26  }
0x1761   : > { %s8419_s22 = scalar_lea.sflag [#allocation4], %s8418_s2 }
0x1762   : > { %p8807_p7 = pnand %p8810_p4, %p9364_p6 }
0x1764   : > { %p8808_p8 = pneg %p8807_p7 }
0x1766   : > { %9200 = dma.done.wait (%p8808_p8), %s8419_s22, 128  }
0x1767   : > { %9202 = vsyncadd (%p8808_p8), %s8419_s22, 4294967168  ;;  %s13847_s3 = sld [smem:[#allocation6_spill]]  ;;  %p29_p9 = scmp.ge.s32.totalorder %s9347_s30, 4  }
0x1768   : > { %s13848_s28 = sld [smem:[#allocation7_spill]]  ;;  %s13849_s26 = smov %s9209_s27 }
0x1769   : > { %s13851_s29 = smov %s9347_s30  ;;  %31 = sbr.rel (!%p29_p9) target bundleno = 8 (0x8), region = 538 }
0x176d   : > { %s13850_s27 = smov %s13847_s3 }
0x176e   :  { %8425 = vsyncpa [#allocation4], 1 }
0x176f   :  { %8427 = vsyncpa [#allocation4 + $0x1], 1 }

</bundles_post_ra>
